<compile_context>
chip_gen: v7x
topology: tpu7x:2x2x1
jax: 0.10.0
libtpu: 0.0.40
codegen_flags: <defaults>
</compile_context>

<pallas_src>
import jax
import jax.numpy as jnp
from jax.experimental import pallas as pl
from jax.experimental.pallas import tpu as pltpu


# ----------------------------------------------------------------------------
# Pallas kernels
# ----------------------------------------------------------------------------
def _gemm_bias_relu_kernel(x_ref, w_ref, b_ref, o_ref):
    """o = relu(x @ w + b).  x,w bf16, b f32, o bf16; f32 MXU accumulation."""
    acc = jnp.dot(x_ref[...], w_ref[...], preferred_element_type=jnp.float32)
    acc = jnp.maximum(acc + b_ref[...], 0.0)
    o_ref[...] = acc.astype(o_ref.dtype)


def gemm_bias_relu(x, w, b, m_tiles=1):
    """Fused (M,K)@(K,N) + bias + ReLU.  Optional parallel M tiling (v7x)."""
    M, K = x.shape
    N = w.shape[1]
    tm = M
    if m_tiles > 1 and M % m_tiles == 0 and (M // m_tiles) % 16 == 0:
        tm = M // m_tiles
    return pl.pallas_call(
        _gemm_bias_relu_kernel,
        grid=(M // tm,),
        in_specs=[
            pl.BlockSpec((tm, K), lambda i: (i, 0)),
            pl.BlockSpec((K, N), lambda i: (0, 0)),
            pl.BlockSpec((1, N), lambda i: (0, 0)),
        ],
        out_specs=pl.BlockSpec((tm, N), lambda i: (i, 0)),
        out_shape=jax.ShapeDtypeStruct((M, N), jnp.bfloat16),
        compiler_params=pltpu.CompilerParams(dimension_semantics=("parallel",)),
    )(x, w, b)


def _fc_heads_mix_kernel(x_ref, w1_ref, b1_ref, w2_ref, b2_ref, a_ref,
                         logp_ref, i_ref):
    """Fused: h = relu(x@w1+b1); head_n = h@w2[n]+b2[n];
    i = sum_n alpha_n * head_n (alpha row-normalized); logp = log_softmax(i)."""
    h = jnp.dot(x_ref[...], w1_ref[...], preferred_element_type=jnp.float32)
    h = jnp.maximum(h + b1_ref[...], 0.0).astype(jnp.bfloat16)        # (B,512)

    a = a_ref[...]                                                     # (5,B,1) f32
    a = a / jnp.sum(a, axis=0, keepdims=True)                          # normalize

    n_heads = w2_ref.shape[0]
    B = h.shape[0]
    A = w2_ref.shape[2]
    mix = jnp.zeros((B, A), jnp.float32)
    for n in range(n_heads):                                           # static unroll
        hn = jnp.dot(h, w2_ref[n], preferred_element_type=jnp.float32)
        hn = hn + b2_ref[n]                                            # (B,A)
        mix = mix + a[n] * hn

    m = jnp.max(mix, axis=-1, keepdims=True)
    lse = jnp.log(jnp.sum(jnp.exp(mix - m), axis=-1, keepdims=True)) + m
    logp_ref[...] = mix - lse
    i_ref[...] = mix


def fc_heads_mix(flat, w1, b1, w2, b2, alpha):
    """flat (B,3136) bf16; w1 (3136,512) bf16; w2 (5,512,A) bf16; alpha (5,B,1)."""
    B, K = flat.shape
    H = w1.shape[1]
    n_heads, _, A = w2.shape
    return pl.pallas_call(
        _fc_heads_mix_kernel,
        grid=(1,),
        in_specs=[
            pl.BlockSpec((B, K), lambda i: (0, 0)),
            pl.BlockSpec((K, H), lambda i: (0, 0)),
            pl.BlockSpec((1, H), lambda i: (0, 0)),
            pl.BlockSpec((n_heads, H, A), lambda i: (0, 0, 0)),
            pl.BlockSpec((n_heads, 1, A), lambda i: (0, 0, 0)),
            pl.BlockSpec((n_heads, B, 1), lambda i: (0, 0, 0)),
        ],
        out_specs=[
            pl.BlockSpec((B, A), lambda i: (0, 0)),
            pl.BlockSpec((B, A), lambda i: (0, 0)),
        ],
        out_shape=[
            jax.ShapeDtypeStruct((B, A), jnp.float32),
            jax.ShapeDtypeStruct((B, A), jnp.float32),
        ],
        compiler_params=pltpu.CompilerParams(dimension_semantics=("arbitrary",)),
    )(flat, w1, b1, w2, b2, alpha)


# ----------------------------------------------------------------------------
# JAX glue: channels-last im2col (pure data movement) + conv-as-GEMM
# ----------------------------------------------------------------------------
def im2col_nhwc(x, k, s):
    """x: (B,H,W,C) -> patches (B*Ho*Wo, k*k*C) with (kh, kw, Cin) feature order."""
    B, H, W, C = x.shape
    Ho = (H - k) // s + 1
    Wo = (W - k) // s + 1
    cols = [x[:, i:i + s * Ho:s, j:j + s * Wo:s, :]
            for i in range(k) for j in range(k)]                       # (B,Ho,Wo,C)
    p = jnp.stack(cols, axis=3)                                        # (B,Ho,Wo,k*k,C)
    return p.reshape(B * Ho * Wo, k * k * C), Ho, Wo


def conv2d_relu_nhwc(x, w_mat, b, k, s, m_tiles=1):
    """x: (B,H,W,Cin) bf16; w_mat: (k*k*Cin, Cout) bf16; b: (1,Cout) f32."""
    B = x.shape[0]
    Cout = w_mat.shape[1]
    patches, Ho, Wo = im2col_nhwc(x, k, s)
    y = gemm_bias_relu(patches, w_mat, b, m_tiles=m_tiles)             # (M,Cout) bf16
    return y.reshape(B, Ho, Wo, Cout)                                  # channels-last


# ----------------------------------------------------------------------------
# Parameter setup (deterministic, synthetic) + one-time kernel-ready prep
# ----------------------------------------------------------------------------
def init_params(key, frames, num_actions):
    """Synthetic parameters in PyTorch layouts (as the nn.Module would hold)."""
    ks = jax.random.split(key, 16)
    sc = 0.05
    p = {
        "c1_w": sc * jax.random.normal(ks[0], (32, frames, 8, 8), jnp.float32),
        "c1_b": sc * jax.random.normal(ks[1], (32,), jnp.float32),
        "c2_w": sc * jax.random.normal(ks[2], (64, 32, 4, 4), jnp.float32),
        "c2_b": sc * jax.random.normal(ks[3], (64,), jnp.float32),
        "c3_w": sc * jax.random.normal(ks[4], (64, 64, 3, 3), jnp.float32),
        "c3_b": sc * jax.random.normal(ks[5], (64,), jnp.float32),
        "i1_w": sc * jax.random.normal(ks[6], (512, 3136), jnp.float32),
        "i1_b": sc * jax.random.normal(ks[7], (512,), jnp.float32),
    }
    for n in range(1, 6):
        p[f"i2_{n}_w"] = sc * jax.random.normal(
            ks[7 + n], (num_actions, 512), jnp.float32)
        p[f"i2_{n}_b"] = sc * jax.random.normal(
            ks[12 + (n - 1) % 3], (num_actions,), jnp.float32)
    return p


def prepare_params(p):
    """One-time weight prep: pre-transpose/reshape into kernel-ready bf16."""
    def conv_w(w):  # (Cout,Cin,kh,kw) -> (kh*kw*Cin, Cout), matches im2col order
        cout = w.shape[0]
        return jnp.transpose(w, (2, 3, 1, 0)).reshape(-1, cout).astype(jnp.bfloat16)

    # i1 weight: permute columns from torch NCHW-flatten (c*49 + h*7 + w) to the
    # NHWC-flatten (h*7*64 + w*64 + c) used by the channels-last conv trunk, and
    # store pre-transposed as (3136, 512).
    w1 = p["i1_w"].reshape(512, 64, 7, 7).transpose(0, 2, 3, 1).reshape(512, 3136)
    w1 = jnp.transpose(w1).astype(jnp.bfloat16)

    w2 = jnp.stack([jnp.transpose(p[f"i2_{n}_w"]) for n in range(1, 6)], axis=0)
    b2 = jnp.stack([p[f"i2_{n}_b"].reshape(1, -1) for n in range(1, 6)], axis=0)

    return {
        "c1_w": conv_w(p["c1_w"]), "c1_b": p["c1_b"].reshape(1, -1),
        "c2_w": conv_w(p["c2_w"]), "c2_b": p["c2_b"].reshape(1, -1),
        "c3_w": conv_w(p["c3_w"]), "c3_b": p["c3_b"].reshape(1, -1),
        "i1_w": w1, "i1_b": p["i1_b"].reshape(1, -1),
        "i2_w": w2.astype(jnp.bfloat16), "i2_b": b2.astype(jnp.float32),
    }


# ----------------------------------------------------------------------------
# Forward pass (matches Conv.forward semantics)
# ----------------------------------------------------------------------------
def conv_forward(params, state, alpha_key):
    """state: (B, frames, 84, 84) NCHW f32.  Returns (log_softmax(i), i)."""
    B = state.shape[0]

    # one-time layout conversion to channels-last bf16 for the conv trunk
    x = jnp.transpose(state, (0, 2, 3, 1)).astype(jnp.bfloat16)        # (B,84,84,C)

    x = conv2d_relu_nhwc(x, params["c1_w"], params["c1_b"], k=8, s=4, m_tiles=2)
    x = conv2d_relu_nhwc(x, params["c2_w"], params["c2_b"], k=4, s=2)  # (B,9,9,64)
    x = conv2d_relu_nhwc(x, params["c3_w"], params["c3_b"], k=3, s=1)  # (B,7,7,64)

    flat = x.reshape(B, -1)                                            # (B,3136) bf16

    # alpha ~ U(0,1) per (head, batch); per-batch-row normalization is in-kernel
    alpha = jax.random.uniform(alpha_key, (5, B, 1), dtype=jnp.float32)

    # fused: i1 GEMM + ReLU, 5 heads, alpha mix, log_softmax — one pallas_call
    logp, i_out = fc_heads_mix(flat, params["i1_w"], params["i1_b"],
                               params["i2_w"], params["i2_b"], alpha)
    return logp, i_out


# ----------------------------------------------------------------------------
if __name__ == "__main__":
    FRAMES = 4
    NUM_ACTIONS = 6
    BATCH = 2
    H = W = 84   # required: conv stack must produce 64*7*7 = 3136 features

    root = jax.random.PRNGKey(0)
    k_param, k_state, k_alpha = jax.random.split(root, 3)

    params = prepare_params(init_params(k_param, FRAMES, NUM_ACTIONS))
    state = jax.random.uniform(k_state, (BATCH, FRAMES, H, W), jnp.float32)

    fwd = jax.jit(conv_forward)
    logp, logits = fwd(params, state, k_alpha)
    jax.block_until_ready((logp, logits))

    assert logp.shape == (BATCH, NUM_ACTIONS)
    assert logits.shape == (BATCH, NUM_ACTIONS)
    # log_softmax rows should exponentiate-and-sum to ~1
    assert jnp.allclose(jnp.sum(jnp.exp(logp), axis=1), 1.0, atol=1e-4)

    print("KERNEL_OK")
</pallas_src>

<mosaic_0001>
module attributes {stable_mosaic.version = 11 : i64} {
  func.func @_gemm_bias_relu_kernel(%arg0: i32, %arg1: memref<400x256xbf16, #tpu.memory_space<vmem>>, %arg2: memref<256x32xbf16, #tpu.memory_space<vmem>>, %arg3: memref<1x32xf32, #tpu.memory_space<vmem>>, %arg4: memref<400x32xbf16, #tpu.memory_space<vmem>>) attributes {dimension_semantics = [#tpu.dimension_semantics<parallel>], iteration_bounds = array<i64: 2>, scalar_prefetch = 0 : i64, scratch_operands = 0 : i64, tpu.core_type = #tpu.core_type<tc>, window_params = [{transform_indices = @transform_0, window_bounds = array<i64: 400, 256>}, {pipeline_mode = #tpu.pipeline_mode<synchronous>, transform_indices = @transform_1, window_bounds = array<i64: 256, 32>}, {pipeline_mode = #tpu.pipeline_mode<synchronous>, transform_indices = @transform_2, window_bounds = array<i64: 1, 32>}, {transform_indices = @transform_3, window_bounds = array<i64: 400, 32>}]} {
    %c0 = arith.constant 0 : index
    %c0_0 = arith.constant 0 : index
    %0 = vector.load %arg1[%c0, %c0_0] : memref<400x256xbf16, #tpu.memory_space<vmem>>, vector<400x256xbf16>
    %c0_1 = arith.constant 0 : index
    %c0_2 = arith.constant 0 : index
    %1 = vector.load %arg2[%c0_1, %c0_2] : memref<256x32xbf16, #tpu.memory_space<vmem>>, vector<256x32xbf16>
    %cst = arith.constant dense<0.000000e+00> : vector<400x32xf32>
    %2 = tpu.matmul %0, %1, %cst {dimension_numbers = #tpu.dot_dimension_numbers<[1], [0], [0], [1], [0, 0, 1, 1], [], []>} : vector<400x256xbf16>, vector<256x32xbf16>, vector<400x32xf32> -> vector<400x32xf32>
    %c0_3 = arith.constant 0 : index
    %c0_4 = arith.constant 0 : index
    %3 = vector.load %arg3[%c0_3, %c0_4] : memref<1x32xf32, #tpu.memory_space<vmem>>, vector<1x32xf32>
    %4 = vector.broadcast %3 : vector<1x32xf32> to vector<400x32xf32>
    %5 = arith.addf %2, %4 : vector<400x32xf32>
    %cst_5 = arith.constant 0.000000e+00 : f32
    %6 = vector.broadcast %cst_5 : f32 to vector<400x32xf32>
    %7 = arith.maximumf %5, %6 : vector<400x32xf32>
    %8 = arith.truncf %7 : vector<400x32xf32> to vector<400x32xbf16>
    %c0_6 = arith.constant 0 : index
    %c0_7 = arith.constant 0 : index
    %9 = vector.load %arg4[%c0_6, %c0_7] : memref<400x32xbf16, #tpu.memory_space<vmem>>, vector<400x32xbf16>
    tpu.vector_store %arg4[%c0_6, %c0_7], %8 {strides = array<i32>} : memref<400x32xbf16, #tpu.memory_space<vmem>>, vector<400x32xbf16>,
    return
  }
  func.func @transform_0(%arg0: i32) -> (i32, i32) {
    %c0_i32 = arith.constant 0 : i32
    %c0_i32_0 = arith.constant 0 : i32
    return %arg0, %c0_i32 : i32, i32
  }
  func.func @transform_1(%arg0: i32) -> (i32, i32) {
    %c0_i32 = arith.constant 0 : i32
    %c0_i32_0 = arith.constant 0 : i32
    %c0_i32_1 = arith.constant 0 : i32
    return %c0_i32, %c0_i32_0 : i32, i32
  }
  func.func @transform_2(%arg0: i32) -> (i32, i32) {
    %c0_i32 = arith.constant 0 : i32
    %c0_i32_0 = arith.constant 0 : i32
    %c0_i32_1 = arith.constant 0 : i32
    return %c0_i32, %c0_i32_0 : i32, i32
  }
  func.func @transform_3(%arg0: i32) -> (i32, i32) {
    %c0_i32 = arith.constant 0 : i32
    %c0_i32_0 = arith.constant 0 : i32
    return %arg0, %c0_i32 : i32, i32
  }
}

module attributes {stable_mosaic.version = 11 : i64} {
  func.func @_gemm_bias_relu_kernel(%arg0: i32, %arg1: memref<162x512xbf16, #tpu.memory_space<vmem>>, %arg2: memref<512x64xbf16, #tpu.memory_space<vmem>>, %arg3: memref<1x64xf32, #tpu.memory_space<vmem>>, %arg4: memref<162x64xbf16, #tpu.memory_space<vmem>>) attributes {dimension_semantics = [#tpu.dimension_semantics<parallel>], iteration_bounds = array<i64: 1>, scalar_prefetch = 0 : i64, scratch_operands = 0 : i64, tpu.core_type = #tpu.core_type<tc>, window_params = [{transform_indices = @transform_0, window_bounds = array<i64: 162, 512>}, {pipeline_mode = #tpu.pipeline_mode<synchronous>, transform_indices = @transform_1, window_bounds = array<i64: 512, 64>}, {pipeline_mode = #tpu.pipeline_mode<synchronous>, transform_indices = @transform_2, window_bounds = array<i64: 1, 64>}, {transform_indices = @transform_3, window_bounds = array<i64: 162, 64>}]} {
    %c0 = arith.constant 0 : index
    %c0_0 = arith.constant 0 : index
    %0 = vector.load %arg1[%c0, %c0_0] : memref<162x512xbf16, #tpu.memory_space<vmem>>, vector<162x512xbf16>
    %c0_1 = arith.constant 0 : index
    %c0_2 = arith.constant 0 : index
    %1 = vector.load %arg2[%c0_1, %c0_2] : memref<512x64xbf16, #tpu.memory_space<vmem>>, vector<512x64xbf16>
    %cst = arith.constant dense<0.000000e+00> : vector<162x64xf32>
    %2 = tpu.matmul %0, %1, %cst {dimension_numbers = #tpu.dot_dimension_numbers<[1], [0], [0], [1], [0, 0, 1, 1], [], []>} : vector<162x512xbf16>, vector<512x64xbf16>, vector<162x64xf32> -> vector<162x64xf32>
    %c0_3 = arith.constant 0 : index
    %c0_4 = arith.constant 0 : index
    %3 = vector.load %arg3[%c0_3, %c0_4] : memref<1x64xf32, #tpu.memory_space<vmem>>, vector<1x64xf32>
    %4 = vector.broadcast %3 : vector<1x64xf32> to vector<162x64xf32>
    %5 = arith.addf %2, %4 : vector<162x64xf32>
    %cst_5 = arith.constant 0.000000e+00 : f32
    %6 = vector.broadcast %cst_5 : f32 to vector<162x64xf32>
    %7 = arith.maximumf %5, %6 : vector<162x64xf32>
    %8 = arith.truncf %7 : vector<162x64xf32> to vector<162x64xbf16>
    %c0_6 = arith.constant 0 : index
    %c0_7 = arith.constant 0 : index
    %9 = vector.load %arg4[%c0_6, %c0_7] : memref<162x64xbf16, #tpu.memory_space<vmem>>, vector<162x64xbf16>
    tpu.vector_store %arg4[%c0_6, %c0_7], %8 {strides = array<i32>} : memref<162x64xbf16, #tpu.memory_space<vmem>>, vector<162x64xbf16>,
    return
  }
  func.func @transform_0(%arg0: i32) -> (i32, i32) {
    %c0_i32 = arith.constant 0 : i32
    %c0_i32_0 = arith.constant 0 : i32
    return %arg0, %c0_i32 : i32, i32
  }
  func.func @transform_1(%arg0: i32) -> (i32, i32) {
    %c0_i32 = arith.constant 0 : i32
    %c0_i32_0 = arith.constant 0 : i32
    %c0_i32_1 = arith.constant 0 : i32
    return %c0_i32, %c0_i32_0 : i32, i32
  }
  func.func @transform_2(%arg0: i32) -> (i32, i32) {
    %c0_i32 = arith.constant 0 : i32
    %c0_i32_0 = arith.constant 0 : i32
    %c0_i32_1 = arith.constant 0 : i32
    return %c0_i32, %c0_i32_0 : i32, i32
  }
  func.func @transform_3(%arg0: i32) -> (i32, i32) {
    %c0_i32 = arith.constant 0 : i32
    %c0_i32_0 = arith.constant 0 : i32
    return %arg0, %c0_i32 : i32, i32
  }
}

module attributes {stable_mosaic.version = 11 : i64} {
  func.func @_gemm_bias_relu_kernel(%arg0: i32, %arg1: memref<98x576xbf16, #tpu.memory_space<vmem>>, %arg2: memref<576x64xbf16, #tpu.memory_space<vmem>>, %arg3: memref<1x64xf32, #tpu.memory_space<vmem>>, %arg4: memref<98x64xbf16, #tpu.memory_space<vmem>>) attributes {dimension_semantics = [#tpu.dimension_semantics<parallel>], iteration_bounds = array<i64: 1>, scalar_prefetch = 0 : i64, scratch_operands = 0 : i64, tpu.core_type = #tpu.core_type<tc>, window_params = [{transform_indices = @transform_0, window_bounds = array<i64: 98, 576>}, {pipeline_mode = #tpu.pipeline_mode<synchronous>, transform_indices = @transform_1, window_bounds = array<i64: 576, 64>}, {pipeline_mode = #tpu.pipeline_mode<synchronous>, transform_indices = @transform_2, window_bounds = array<i64: 1, 64>}, {transform_indices = @transform_3, window_bounds = array<i64: 98, 64>}]} {
    %c0 = arith.constant 0 : index
    %c0_0 = arith.constant 0 : index
    %0 = vector.load %arg1[%c0, %c0_0] : memref<98x576xbf16, #tpu.memory_space<vmem>>, vector<98x576xbf16>
    %c0_1 = arith.constant 0 : index
    %c0_2 = arith.constant 0 : index
    %1 = vector.load %arg2[%c0_1, %c0_2] : memref<576x64xbf16, #tpu.memory_space<vmem>>, vector<576x64xbf16>
    %cst = arith.constant dense<0.000000e+00> : vector<98x64xf32>
    %2 = tpu.matmul %0, %1, %cst {dimension_numbers = #tpu.dot_dimension_numbers<[1], [0], [0], [1], [0, 0, 1, 1], [], []>} : vector<98x576xbf16>, vector<576x64xbf16>, vector<98x64xf32> -> vector<98x64xf32>
    %c0_3 = arith.constant 0 : index
    %c0_4 = arith.constant 0 : index
    %3 = vector.load %arg3[%c0_3, %c0_4] : memref<1x64xf32, #tpu.memory_space<vmem>>, vector<1x64xf32>
    %4 = vector.broadcast %3 : vector<1x64xf32> to vector<98x64xf32>
    %5 = arith.addf %2, %4 : vector<98x64xf32>
    %cst_5 = arith.constant 0.000000e+00 : f32
    %6 = vector.broadcast %cst_5 : f32 to vector<98x64xf32>
    %7 = arith.maximumf %5, %6 : vector<98x64xf32>
    %8 = arith.truncf %7 : vector<98x64xf32> to vector<98x64xbf16>
    %c0_6 = arith.constant 0 : index
    %c0_7 = arith.constant 0 : index
    %9 = vector.load %arg4[%c0_6, %c0_7] : memref<98x64xbf16, #tpu.memory_space<vmem>>, vector<98x64xbf16>
    tpu.vector_store %arg4[%c0_6, %c0_7], %8 {strides = array<i32>} : memref<98x64xbf16, #tpu.memory_space<vmem>>, vector<98x64xbf16>,
    return
  }
  func.func @transform_0(%arg0: i32) -> (i32, i32) {
    %c0_i32 = arith.constant 0 : i32
    %c0_i32_0 = arith.constant 0 : i32
    return %arg0, %c0_i32 : i32, i32
  }
  func.func @transform_1(%arg0: i32) -> (i32, i32) {
    %c0_i32 = arith.constant 0 : i32
    %c0_i32_0 = arith.constant 0 : i32
    %c0_i32_1 = arith.constant 0 : i32
    return %c0_i32, %c0_i32_0 : i32, i32
  }
  func.func @transform_2(%arg0: i32) -> (i32, i32) {
    %c0_i32 = arith.constant 0 : i32
    %c0_i32_0 = arith.constant 0 : i32
    %c0_i32_1 = arith.constant 0 : i32
    return %c0_i32, %c0_i32_0 : i32, i32
  }
  func.func @transform_3(%arg0: i32) -> (i32, i32) {
    %c0_i32 = arith.constant 0 : i32
    %c0_i32_0 = arith.constant 0 : i32
    return %arg0, %c0_i32 : i32, i32
  }
}

module attributes {stable_mosaic.version = 11 : i64} {
  func.func @_fc_heads_mix_kernel(%arg0: i32, %arg1: memref<2x3136xbf16, #tpu.memory_space<vmem>>, %arg2: memref<3136x512xbf16, #tpu.memory_space<vmem>>, %arg3: memref<1x512xf32, #tpu.memory_space<vmem>>, %arg4: memref<5x512x6xbf16, #tpu.memory_space<vmem>>, %arg5: memref<5x1x6xf32, #tpu.memory_space<vmem>>, %arg6: memref<5x2x1xf32, #tpu.memory_space<vmem>>, %arg7: memref<2x6xf32, #tpu.memory_space<vmem>>, %arg8: memref<2x6xf32, #tpu.memory_space<vmem>>) attributes {dimension_semantics = [#tpu.dimension_semantics<arbitrary>], iteration_bounds = array<i64: 1>, scalar_prefetch = 0 : i64, scratch_operands = 0 : i64, tpu.core_type = #tpu.core_type<tc>, window_params = [{pipeline_mode = #tpu.pipeline_mode<synchronous>, transform_indices = @transform_0, window_bounds = array<i64: 2, 3136>}, {pipeline_mode = #tpu.pipeline_mode<synchronous>, transform_indices = @transform_1, window_bounds = array<i64: 3136, 512>}, {pipeline_mode = #tpu.pipeline_mode<synchronous>, transform_indices = @transform_2, window_bounds = array<i64: 1, 512>}, {pipeline_mode = #tpu.pipeline_mode<synchronous>, transform_indices = @transform_3, window_bounds = array<i64: 5, 512, 6>}, {pipeline_mode = #tpu.pipeline_mode<synchronous>, transform_indices = @transform_4, window_bounds = array<i64: 5, 1, 6>}, {pipeline_mode = #tpu.pipeline_mode<synchronous>, transform_indices = @transform_5, window_bounds = array<i64: 5, 2, 1>}, {pipeline_mode = #tpu.pipeline_mode<synchronous>, transform_indices = @transform_6, window_bounds = array<i64: 2, 6>}, {pipeline_mode = #tpu.pipeline_mode<synchronous>, transform_indices = @transform_7, window_bounds = array<i64: 2, 6>}]} {
    %c0 = arith.constant 0 : index
    %c0_0 = arith.constant 0 : index
    %0 = vector.load %arg1[%c0, %c0_0] : memref<2x3136xbf16, #tpu.memory_space<vmem>>, vector<2x3136xbf16>
    %c0_1 = arith.constant 0 : index
    %c0_2 = arith.constant 0 : index
    %1 = vector.load %arg2[%c0_1, %c0_2] : memref<3136x512xbf16, #tpu.memory_space<vmem>>, vector<3136x512xbf16>
    %cst = arith.constant dense<0.000000e+00> : vector<2x512xf32>
    %2 = tpu.matmul %0, %1, %cst {dimension_numbers = #tpu.dot_dimension_numbers<[1], [0], [0], [1], [0, 0, 1, 1], [], []>} : vector<2x3136xbf16>, vector<3136x512xbf16>, vector<2x512xf32> -> vector<2x512xf32>
    %c0_3 = arith.constant 0 : index
    %c0_4 = arith.constant 0 : index
    %3 = vector.load %arg3[%c0_3, %c0_4] : memref<1x512xf32, #tpu.memory_space<vmem>>, vector<1x512xf32>
    %4 = vector.broadcast %3 : vector<1x512xf32> to vector<2x512xf32>
    %5 = arith.addf %2, %4 : vector<2x512xf32>
    %cst_5 = arith.constant 0.000000e+00 : f32
    %6 = vector.broadcast %cst_5 : f32 to vector<2x512xf32>
    %7 = arith.maximumf %5, %6 : vector<2x512xf32>
    %8 = arith.truncf %7 : vector<2x512xf32> to vector<2x512xbf16>
    %c0_6 = arith.constant 0 : index
    %c0_7 = arith.constant 0 : index
    %c0_8 = arith.constant 0 : index
    %9 = vector.load %arg6[%c0_6, %c0_7, %c0_8] : memref<5x2x1xf32, #tpu.memory_space<vmem>>, vector<5x2x1xf32>
    %cst_9 = arith.constant dense<0.000000e+00> : vector<2x1xf32>
    %10 = vector.multi_reduction <add>, %9, %cst_9 [0] : vector<5x2x1xf32> to vector<2x1xf32>
    %11 = vector.shape_cast %10 : vector<2x1xf32> to vector<1x2x1xf32>
    %12 = vector.broadcast %11 : vector<1x2x1xf32> to vector<5x2x1xf32>
    %13 = arith.divf %9, %12 : vector<5x2x1xf32>
    %cst_10 = arith.constant 0.000000e+00 : f32
    %14 = vector.broadcast %cst_10 : f32 to vector<2x6xf32>
    %c0_11 = arith.constant 0 : index
    %c0_12 = arith.constant 0 : index
    %c0_13 = arith.constant 0 : index
    %15 = vector.load %arg4[%c0_11, %c0_12, %c0_13] : memref<5x512x6xbf16, #tpu.memory_space<vmem>>, vector<1x512x6xbf16>
    %16 = vector.shape_cast %15 : vector<1x512x6xbf16> to vector<512x6xbf16>
    %cst_14 = arith.constant dense<0.000000e+00> : vector<2x6xf32>
    %17 = tpu.matmul %8, %16, %cst_14 {dimension_numbers = #tpu.dot_dimension_numbers<[1], [0], [0], [1], [0, 0, 1, 1], [], []>} : vector<2x512xbf16>, vector<512x6xbf16>, vector<2x6xf32> -> vector<2x6xf32>
    %c0_15 = arith.constant 0 : index
    %c0_16 = arith.constant 0 : index
    %c0_17 = arith.constant 0 : index
    %18 = vector.load %arg5[%c0_15, %c0_16, %c0_17] : memref<5x1x6xf32, #tpu.memory_space<vmem>>, vector<1x1x6xf32>
    %19 = vector.shape_cast %18 : vector<1x1x6xf32> to vector<1x6xf32>
    %20 = vector.broadcast %19 : vector<1x6xf32> to vector<2x6xf32>
    %21 = arith.addf %17, %20 : vector<2x6xf32>
    %22 = vector.extract_strided_slice %13 {offsets = [0, 0, 0], sizes = [1, 2, 1], strides = [1, 1, 1]} : vector<5x2x1xf32> to vector<1x2x1xf32>
    %23 = vector.shape_cast %22 : vector<1x2x1xf32> to vector<2x1xf32>
    %24 = vector.broadcast %23 : vector<2x1xf32> to vector<2x6xf32>
    %25 = arith.mulf %24, %21 : vector<2x6xf32>
    %26 = arith.addf %14, %25 : vector<2x6xf32>
    %c1 = arith.constant 1 : index
    %c0_18 = arith.constant 0 : index
    %c0_19 = arith.constant 0 : index
    %27 = vector.load %arg4[%c1, %c0_18, %c0_19] : memref<5x512x6xbf16, #tpu.memory_space<vmem>>, vector<1x512x6xbf16>
    %28 = vector.shape_cast %27 : vector<1x512x6xbf16> to vector<512x6xbf16>
    %cst_20 = arith.constant dense<0.000000e+00> : vector<2x6xf32>
    %29 = tpu.matmul %8, %28, %cst_20 {dimension_numbers = #tpu.dot_dimension_numbers<[1], [0], [0], [1], [0, 0, 1, 1], [], []>} : vector<2x512xbf16>, vector<512x6xbf16>, vector<2x6xf32> -> vector<2x6xf32>
    %c1_21 = arith.constant 1 : index
    %c0_22 = arith.constant 0 : index
    %c0_23 = arith.constant 0 : index
    %30 = vector.load %arg5[%c1_21, %c0_22, %c0_23] : memref<5x1x6xf32, #tpu.memory_space<vmem>>, vector<1x1x6xf32>
    %31 = vector.shape_cast %30 : vector<1x1x6xf32> to vector<1x6xf32>
    %32 = vector.broadcast %31 : vector<1x6xf32> to vector<2x6xf32>
    %33 = arith.addf %29, %32 : vector<2x6xf32>
    %34 = vector.extract_strided_slice %13 {offsets = [1, 0, 0], sizes = [1, 2, 1], strides = [1, 1, 1]} : vector<5x2x1xf32> to vector<1x2x1xf32>
    %35 = vector.shape_cast %34 : vector<1x2x1xf32> to vector<2x1xf32>
    %36 = vector.broadcast %35 : vector<2x1xf32> to vector<2x6xf32>
    %37 = arith.mulf %36, %33 : vector<2x6xf32>
    %38 = arith.addf %26, %37 : vector<2x6xf32>
    %c2 = arith.constant 2 : index
    %c0_24 = arith.constant 0 : index
    %c0_25 = arith.constant 0 : index
    %39 = vector.load %arg4[%c2, %c0_24, %c0_25] : memref<5x512x6xbf16, #tpu.memory_space<vmem>>, vector<1x512x6xbf16>
    %40 = vector.shape_cast %39 : vector<1x512x6xbf16> to vector<512x6xbf16>
    %cst_26 = arith.constant dense<0.000000e+00> : vector<2x6xf32>
    %41 = tpu.matmul %8, %40, %cst_26 {dimension_numbers = #tpu.dot_dimension_numbers<[1], [0], [0], [1], [0, 0, 1, 1], [], []>} : vector<2x512xbf16>, vector<512x6xbf16>, vector<2x6xf32> -> vector<2x6xf32>
    %c2_27 = arith.constant 2 : index
    %c0_28 = arith.constant 0 : index
    %c0_29 = arith.constant 0 : index
    %42 = vector.load %arg5[%c2_27, %c0_28, %c0_29] : memref<5x1x6xf32, #tpu.memory_space<vmem>>, vector<1x1x6xf32>
    %43 = vector.shape_cast %42 : vector<1x1x6xf32> to vector<1x6xf32>
    %44 = vector.broadcast %43 : vector<1x6xf32> to vector<2x6xf32>
    %45 = arith.addf %41, %44 : vector<2x6xf32>
    %46 = vector.extract_strided_slice %13 {offsets = [2, 0, 0], sizes = [1, 2, 1], strides = [1, 1, 1]} : vector<5x2x1xf32> to vector<1x2x1xf32>
    %47 = vector.shape_cast %46 : vector<1x2x1xf32> to vector<2x1xf32>
    %48 = vector.broadcast %47 : vector<2x1xf32> to vector<2x6xf32>
    %49 = arith.mulf %48, %45 : vector<2x6xf32>
    %50 = arith.addf %38, %49 : vector<2x6xf32>
    %c3 = arith.constant 3 : index
    %c0_30 = arith.constant 0 : index
    %c0_31 = arith.constant 0 : index
    %51 = vector.load %arg4[%c3, %c0_30, %c0_31] : memref<5x512x6xbf16, #tpu.memory_space<vmem>>, vector<1x512x6xbf16>
    %52 = vector.shape_cast %51 : vector<1x512x6xbf16> to vector<512x6xbf16>
    %cst_32 = arith.constant dense<0.000000e+00> : vector<2x6xf32>
    %53 = tpu.matmul %8, %52, %cst_32 {dimension_numbers = #tpu.dot_dimension_numbers<[1], [0], [0], [1], [0, 0, 1, 1], [], []>} : vector<2x512xbf16>, vector<512x6xbf16>, vector<2x6xf32> -> vector<2x6xf32>
    %c3_33 = arith.constant 3 : index
    %c0_34 = arith.constant 0 : index
    %c0_35 = arith.constant 0 : index
    %54 = vector.load %arg5[%c3_33, %c0_34, %c0_35] : memref<5x1x6xf32, #tpu.memory_space<vmem>>, vector<1x1x6xf32>
    %55 = vector.shape_cast %54 : vector<1x1x6xf32> to vector<1x6xf32>
    %56 = vector.broadcast %55 : vector<1x6xf32> to vector<2x6xf32>
    %57 = arith.addf %53, %56 : vector<2x6xf32>
    %58 = vector.extract_strided_slice %13 {offsets = [3, 0, 0], sizes = [1, 2, 1], strides = [1, 1, 1]} : vector<5x2x1xf32> to vector<1x2x1xf32>
    %59 = vector.shape_cast %58 : vector<1x2x1xf32> to vector<2x1xf32>
    %60 = vector.broadcast %59 : vector<2x1xf32> to vector<2x6xf32>
    %61 = arith.mulf %60, %57 : vector<2x6xf32>
    %62 = arith.addf %50, %61 : vector<2x6xf32>
    %c4 = arith.constant 4 : index
    %c0_36 = arith.constant 0 : index
    %c0_37 = arith.constant 0 : index
    %63 = vector.load %arg4[%c4, %c0_36, %c0_37] : memref<5x512x6xbf16, #tpu.memory_space<vmem>>, vector<1x512x6xbf16>
    %64 = vector.shape_cast %63 : vector<1x512x6xbf16> to vector<512x6xbf16>
    %cst_38 = arith.constant dense<0.000000e+00> : vector<2x6xf32>
    %65 = tpu.matmul %8, %64, %cst_38 {dimension_numbers = #tpu.dot_dimension_numbers<[1], [0], [0], [1], [0, 0, 1, 1], [], []>} : vector<2x512xbf16>, vector<512x6xbf16>, vector<2x6xf32> -> vector<2x6xf32>
    %c4_39 = arith.constant 4 : index
    %c0_40 = arith.constant 0 : index
    %c0_41 = arith.constant 0 : index
    %66 = vector.load %arg5[%c4_39, %c0_40, %c0_41] : memref<5x1x6xf32, #tpu.memory_space<vmem>>, vector<1x1x6xf32>
    %67 = vector.shape_cast %66 : vector<1x1x6xf32> to vector<1x6xf32>
    %68 = vector.broadcast %67 : vector<1x6xf32> to vector<2x6xf32>
    %69 = arith.addf %65, %68 : vector<2x6xf32>
    %70 = vector.extract_strided_slice %13 {offsets = [4, 0, 0], sizes = [1, 2, 1], strides = [1, 1, 1]} : vector<5x2x1xf32> to vector<1x2x1xf32>
    %71 = vector.shape_cast %70 : vector<1x2x1xf32> to vector<2x1xf32>
    %72 = vector.broadcast %71 : vector<2x1xf32> to vector<2x6xf32>
    %73 = arith.mulf %72, %69 : vector<2x6xf32>
    %74 = arith.addf %62, %73 : vector<2x6xf32>
    %cst_42 = arith.constant dense<0xFF800000> : vector<2xf32>
    %75 = vector.multi_reduction <maximumf>, %74, %cst_42 [1] : vector<2x6xf32> to vector<2xf32>
    %76 = vector.shape_cast %75 : vector<2xf32> to vector<2x1xf32>
    %77 = vector.broadcast %76 : vector<2x1xf32> to vector<2x6xf32>
    %78 = arith.subf %74, %77 : vector<2x6xf32>
    %79 = math.exp %78 : vector<2x6xf32>
    %cst_43 = arith.constant dense<0.000000e+00> : vector<2xf32>
    %80 = vector.multi_reduction <add>, %79, %cst_43 [1] : vector<2x6xf32> to vector<2xf32>
    %81 = vector.shape_cast %80 : vector<2xf32> to vector<2x1xf32>
    %82 = math.log %81 : vector<2x1xf32>
    %83 = arith.addf %82, %76 : vector<2x1xf32>
    %84 = vector.broadcast %83 : vector<2x1xf32> to vector<2x6xf32>
    %85 = arith.subf %74, %84 : vector<2x6xf32>
    %c0_44 = arith.constant 0 : index
    %c0_45 = arith.constant 0 : index
    %86 = vector.load %arg7[%c0_44, %c0_45] : memref<2x6xf32, #tpu.memory_space<vmem>>, vector<2x6xf32>
    tpu.vector_store %arg7[%c0_44, %c0_45], %85 {strides = array<i32>} : memref<2x6xf32, #tpu.memory_space<vmem>>, vector<2x6xf32>,
    %c0_46 = arith.constant 0 : index
    %c0_47 = arith.constant 0 : index
    %87 = vector.load %arg8[%c0_46, %c0_47] : memref<2x6xf32, #tpu.memory_space<vmem>>, vector<2x6xf32>
    tpu.vector_store %arg8[%c0_46, %c0_47], %74 {strides = array<i32>} : memref<2x6xf32, #tpu.memory_space<vmem>>, vector<2x6xf32>,
    return
  }
  func.func @transform_0(%arg0: i32) -> (i32, i32) {
    %c0_i32 = arith.constant 0 : i32
    %c0_i32_0 = arith.constant 0 : i32
    %c0_i32_1 = arith.constant 0 : i32
    return %c0_i32, %c0_i32_0 : i32, i32
  }
  func.func @transform_1(%arg0: i32) -> (i32, i32) {
    %c0_i32 = arith.constant 0 : i32
    %c0_i32_0 = arith.constant 0 : i32
    %c0_i32_1 = arith.constant 0 : i32
    return %c0_i32, %c0_i32_0 : i32, i32
  }
  func.func @transform_2(%arg0: i32) -> (i32, i32) {
    %c0_i32 = arith.constant 0 : i32
    %c0_i32_0 = arith.constant 0 : i32
    %c0_i32_1 = arith.constant 0 : i32
    return %c0_i32, %c0_i32_0 : i32, i32
  }
  func.func @transform_3(%arg0: i32) -> (i32, i32, i32) {
    %c0_i32 = arith.constant 0 : i32
    %c0_i32_0 = arith.constant 0 : i32
    %c0_i32_1 = arith.constant 0 : i32
    %c0_i32_2 = arith.constant 0 : i32
    return %c0_i32, %c0_i32_0, %c0_i32_1 : i32, i32, i32
  }
  func.func @transform_4(%arg0: i32) -> (i32, i32, i32) {
    %c0_i32 = arith.constant 0 : i32
    %c0_i32_0 = arith.constant 0 : i32
    %c0_i32_1 = arith.constant 0 : i32
    %c0_i32_2 = arith.constant 0 : i32
    return %c0_i32, %c0_i32_0, %c0_i32_1 : i32, i32, i32
  }
  func.func @transform_5(%arg0: i32) -> (i32, i32, i32) {
    %c0_i32 = arith.constant 0 : i32
    %c0_i32_0 = arith.constant 0 : i32
    %c0_i32_1 = arith.constant 0 : i32
    %c0_i32_2 = arith.constant 0 : i32
    return %c0_i32, %c0_i32_0, %c0_i32_1 : i32, i32, i32
  }
  func.func @transform_6(%arg0: i32) -> (i32, i32) {
    %c0_i32 = arith.constant 0 : i32
    %c0_i32_0 = arith.constant 0 : i32
    %c0_i32_1 = arith.constant 0 : i32
    return %c0_i32, %c0_i32_0 : i32, i32
  }
  func.func @transform_7(%arg0: i32) -> (i32, i32) {
    %c0_i32 = arith.constant 0 : i32
    %c0_i32_0 = arith.constant 0 : i32
    %c0_i32_1 = arith.constant 0 : i32
    return %c0_i32, %c0_i32_0 : i32, i32
  }
}

</mosaic_0001>

<bundles_post_ra>
// kernel: conv_forward.4
= control target key start
LH: loop header
LB: loop body
LE: loop exit
PB: predicated region body
PF: predicated region fallthrough
CT: control target
= control target key end

     0   :  { %s1542_s12 = smov 0   ;;  %s1852_s0 = inlined_call_operand.vmem [shape: bf16[800,256], index: 0, kind: input, shape index: {}]   ;;  %s1853_s1 = inlined_call_operand.vmem [shape: bf16[256,32], index: 1, kind: input, shape index: {}]   ;;  %s1854_s2 = inlined_call_operand.vmem [shape: f32[1,32], index: 2, kind: input, shape index: {}]   ;;  %s1855_s3 = inlined_call_operand.vmem [shape: bf16[800,32], index: 3, kind: output, shape index: {}]  }
   0x1 LB: > { %s1203_s13 = sadd.s32 4294967295, %s1519_s12   ;;  %p1207_p0 = scmp.ge.s32.totalorder %s1519_s12, 1  ;;  %s1519_s12 = sphi %s1542_s12, %s13_s12  }
   0x2   : > { %p139_p1 = scmp.lt.s32.totalorder %s1519_s12, 3 }
   0x4   : > { %p140_p2 = pnand %p1207_p0, %p139_p1 }
   0x5   : > { %v1422_v0 = vld [vmem:[%s1853_s1] sm:$0xff] (!%p140_p2)   ;;  %v1521_v1 = vmov (!%p140_p2), 0   ;;  %s164_s16 = smul.u32 (!%p140_p2), 50, %s1203_s13  ;;  %v1423_v2 = vld [vmem:[%s1853_s1 + $0x8] sm:$0xff] (!%p140_p2)   ;;  %v1424_v3 = vld [vmem:[%s1853_s1 + $0x10] sm:$0xff] (!%p140_p2)   ;;  %vm1096_vm0 = vcmask (!%p140_p2), 257024  }
   0x6   : > { %143 = sbr.rel (%p140_p2) target bundleno = 387 (0x183), region = 32  ;;  %613 = vmatprep.subr.bf16.mxu0 (!%p140_p2), %v1521_v1  ;;  %1381 = vmatprep.subr.bf16.mxu1 (!%p140_p2), %v1521_v1  ;;  %v1425_v4 = vld [vmem:[%s1853_s1 + $0x18] sm:$0xff] (!%p140_p2)   ;;  %v1426_v5 = vld [vmem:[%s1853_s1 + $0x20] sm:$0xff] (!%p140_p2)   ;;  %v1427_v7 = vld [vmem:[%s1853_s1 + $0x28] sm:$0xff] (!%p140_p2)  }
   0x7   : > { %614 = vmatpush1.bf16.msra.mxu0 (!%p140_p2), %v1422_v0  ;;  %1397 = vmatpush1.bf16.msra.mxu1 (!%p140_p2), %v1422_v0  ;;  %p165_p3 = scmp.lt.s32.totalorder (!%p140_p2), %s164_s16, 99  ;;  %v1428_v9 = vld [vmem:[%s1853_s1 + $0x30] sm:$0xff] (!%p140_p2)   ;;  %v1429_v10 = vld [vmem:[%s1853_s1 + $0x38] sm:$0xff] (!%p140_p2)   ;;  %v1430_v11 = vld [vmem:[%s1853_s1 + $0x40] sm:$0xff] (!%p140_p2)  }
   0x8   : > { %615 = vmatprep.subr.bf16.mxu0 (!%p140_p2), %v1521_v1  ;;  %1382 = vmatprep.subr.bf16.mxu1 (!%p140_p2), %v1521_v1  ;;  %v1431_v12 = vld [vmem:[%s1853_s1 + $0x48] sm:$0xff] (!%p140_p2)   ;;  %v1432_v13 = vld [vmem:[%s1853_s1 + $0x50] sm:$0xff] (!%p140_p2)   ;;  %v1433_v14 = vld [vmem:[%s1853_s1 + $0x58] sm:$0xff] (!%p140_p2)  }
   0x9   : > { %v1434_v15 = vld [vmem:[%s1853_s1 + $0x60] sm:$0xff] (!%p140_p2)   ;;  %v1435_v16 = vld [vmem:[%s1853_s1 + $0x68] sm:$0xff] (!%p140_p2)   ;;  %v1436_v17 = vld [vmem:[%s1853_s1 + $0x70] sm:$0xff] (!%p140_p2)  }
   0xa   : > { %v1437_v18 = vld [vmem:[%s1853_s1 + $0x78] sm:$0xff] (!%p140_p2)  }
   0xb   : > { %616 = vmatpush1.bf16.msra.mxu0 (!%p140_p2), %v1423_v2  ;;  %1398 = vmatpush1.bf16.msra.mxu1 (!%p140_p2), %v1423_v2 }
   0xc   : > { %617 = vmatprep.subr.bf16.mxu0 (!%p140_p2), %v1521_v1  ;;  %1383 = vmatprep.subr.bf16.mxu1 (!%p140_p2), %v1521_v1 }
   0xd   : > { %s1857_s16 = smov (!%p165_p3, %s164_s16), 99 }
   0xe   : > { %s1330_s23 = sshll.u32 %s1857_s16, 3  ;;  %s1210_s29 = sshll.u32 %s1857_s16, 2 }
   0xf   : > { %618 = vmatpush1.bf16.msra.mxu0 %v1424_v3  ;;  %1399 = vmatpush1.bf16.msra.mxu1 %v1424_v3  ;;  %s1579_s28 = scalar_lea.vmem %s1852_s0, %s1330_s23  ;;  %v1691_v3 = vld [vmem:[%s1854_s2] ss:$0 sm:$0xff]  ;;  %s1701_s16 = scalar_lea.vmem %s1855_s3, %s1210_s29 }
  0x10   : > { %619 = vmatprep.subr.bf16.mxu0 %v1521_v1  ;;  %1384 = vmatprep.subr.bf16.mxu1 %v1521_v1  ;;  %v1440_v6 = vld [vmem:[%s1579_s28 + $0x4] ss:$8 sps:$4 sm:$0xff]   ;;  %v1443_v8 = vld [vmem:[%s1579_s28 + $0xd4] ss:$8 sps:$4 sm:$0xff]   ;;  %v1438_v19 = vld [vmem:[%s1579_s28] ss:$8 sps:$4 sm:$0xff]  }
  0x11   : > { %645 = vmatprep.mubr.bf16.mxu0 %v1440_v6  ;;  %749 = vmatprep.mubr.bf16.mxu1 %v1443_v8  ;;  %v1441_v20 = vld [vmem:[%s1579_s28 + $0xd0] ss:$8 sps:$4 sm:$0xff]   ;;  %v1444_v21 = vld [vmem:[%s1579_s28 + $0x14] ss:$8 sps:$4 sm:$0xff]   ;;  %v1447_v22 = vld [vmem:[%s1579_s28 + $0xe4] ss:$8 sps:$4 sm:$0xff]  }
  0x12   : > { %v1446_v23 = vld [vmem:[%s1579_s28 + $0x10] ss:$8 sps:$4 sm:$0xff]   ;;  %v1449_v24 = vld [vmem:[%s1579_s28 + $0xe0] ss:$8 sps:$4 sm:$0xff]   ;;  %v1450_v25 = vld [vmem:[%s1579_s28 + $0x24] ss:$8 sps:$4 sm:$0xff]  }
  0x13   : > { %620 = vmatpush1.bf16.msra.mxu0 %v1425_v4  ;;  %1400 = vmatpush1.bf16.msra.mxu1 %v1425_v4  ;;  %v1453_v26 = vld [vmem:[%s1579_s28 + $0xf4] ss:$8 sps:$4 sm:$0xff]   ;;  %v1452_v27 = vld [vmem:[%s1579_s28 + $0x20] ss:$8 sps:$4 sm:$0xff]   ;;  %v1455_v28 = vld [vmem:[%s1579_s28 + $0xf0] ss:$8 sps:$4 sm:$0xff]  }
  0x14   : > { %621 = vmatprep.subr.bf16.mxu0 %v1521_v1  ;;  %1385 = vmatprep.subr.bf16.mxu1 %v1521_v1  ;;  %v1456_v29 = vld [vmem:[%s1579_s28 + $0x34] ss:$8 sps:$4 sm:$0xff]   ;;  %v1459_v30 = vld [vmem:[%s1579_s28 + $0x104] ss:$8 sps:$4 sm:$0xff]   ;;  %v1458_v31 = vld [vmem:[%s1579_s28 + $0x30] ss:$8 sps:$4 sm:$0xff]  }
  0x15   : > { %v1461_v32 = vld [vmem:[%s1579_s28 + $0x100] ss:$8 sps:$4 sm:$0xff]   ;;  %v1462_v33 = vld [vmem:[%s1579_s28 + $0x44] ss:$8 sps:$4 sm:$0xff]   ;;  %v1465_v34 = vld [vmem:[%s1579_s28 + $0x114] ss:$8 sps:$4 sm:$0xff]  }
  0x16   : > { %v1464_v35 = vld [vmem:[%s1579_s28 + $0x40] ss:$8 sps:$4 sm:$0xff]   ;;  %v1467_v36 = vld [vmem:[%s1579_s28 + $0x110] ss:$8 sps:$4 sm:$0xff]   ;;  %v1468_v37 = vld [vmem:[%s1579_s28 + $0x54] ss:$8 sps:$4 sm:$0xff]  }
  0x17   : > { %622 = vmatpush1.bf16.msra.mxu0 %v1426_v5  ;;  %1401 = vmatpush1.bf16.msra.mxu1 %v1426_v5  ;;  %v1471_v38 = vld [vmem:[%s1579_s28 + $0x124] ss:$8 sps:$4 sm:$0xff]   ;;  %v1470_v39 = vld [vmem:[%s1579_s28 + $0x50] ss:$8 sps:$4 sm:$0xff]   ;;  %v1473_v40 = vld [vmem:[%s1579_s28 + $0x120] ss:$8 sps:$4 sm:$0xff]  }
  0x18   : > { %623 = vmatprep.subr.bf16.mxu0 %v1521_v1  ;;  %1386 = vmatprep.subr.bf16.mxu1 %v1521_v1  ;;  %v1474_v41 = vld [vmem:[%s1579_s28 + $0x64] ss:$8 sps:$4 sm:$0xff]   ;;  %v1477_v42 = vld [vmem:[%s1579_s28 + $0x134] ss:$8 sps:$4 sm:$0xff]   ;;  %v1476_v43 = vld [vmem:[%s1579_s28 + $0x60] ss:$8 sps:$4 sm:$0xff]  }
  0x19   : > { %v1479_v44 = vld [vmem:[%s1579_s28 + $0x130] ss:$8 sps:$4 sm:$0xff]   ;;  %v1480_v45 = vld [vmem:[%s1579_s28 + $0x74] ss:$8 sps:$4 sm:$0xff]   ;;  %v1483_v46 = vld [vmem:[%s1579_s28 + $0x144] ss:$8 sps:$4 sm:$0xff]  }
  0x1a   : > { %v1482_v47 = vld [vmem:[%s1579_s28 + $0x70] ss:$8 sps:$4 sm:$0xff]   ;;  %v1485_v48 = vld [vmem:[%s1579_s28 + $0x140] ss:$8 sps:$4 sm:$0xff]   ;;  %v1486_v49 = vld [vmem:[%s1579_s28 + $0x84] ss:$8 sps:$4 sm:$0xff]  }
  0x1b   : > { %624 = vmatpush1.bf16.msra.mxu0 %v1427_v7  ;;  %1402 = vmatpush1.bf16.msra.mxu1 %v1427_v7  ;;  %v1489_v50 = vld [vmem:[%s1579_s28 + $0x154] ss:$8 sps:$4 sm:$0xff]   ;;  %v1488_v51 = vld [vmem:[%s1579_s28 + $0x80] ss:$8 sps:$4 sm:$0xff]   ;;  %v1491_v52 = vld [vmem:[%s1579_s28 + $0x150] ss:$8 sps:$4 sm:$0xff]  }
  0x1c   : > { %625 = vmatprep.subr.bf16.mxu0 %v1521_v1  ;;  %1387 = vmatprep.subr.bf16.mxu1 %v1521_v1  ;;  %v1492_v53 = vld [vmem:[%s1579_s28 + $0x94] ss:$8 sps:$4 sm:$0xff]   ;;  %v1495_v54 = vld [vmem:[%s1579_s28 + $0x164] ss:$8 sps:$4 sm:$0xff]   ;;  %v1494_v55 = vld [vmem:[%s1579_s28 + $0x90] ss:$8 sps:$4 sm:$0xff]  }
  0x1d   : > { %v1497_v56 = vld [vmem:[%s1579_s28 + $0x160] ss:$8 sps:$4 sm:$0xff]   ;;  %v1498_v57 = vld [vmem:[%s1579_s28 + $0xa4] ss:$8 sps:$4 sm:$0xff]   ;;  %v1501_v58 = vld [vmem:[%s1579_s28 + $0x174] ss:$8 sps:$4 sm:$0xff]  }
  0x1e   : > { %v1500_v59 = vld [vmem:[%s1579_s28 + $0xa0] ss:$8 sps:$4 sm:$0xff]   ;;  %v1503_v60 = vld [vmem:[%s1579_s28 + $0x170] ss:$8 sps:$4 sm:$0xff]   ;;  %v1504_v61 = vld [vmem:[%s1579_s28 + $0xb4] ss:$8 sps:$4 sm:$0xff]  }
  0x1f   : > { %626 = vmatpush1.bf16.msra.mxu0 %v1428_v9  ;;  %1403 = vmatpush1.bf16.msra.mxu1 %v1428_v9  ;;  %v1507_v62 = vld [vmem:[%s1579_s28 + $0x184] ss:$8 sps:$4 sm:$0xff]   ;;  %v1506_v63 = vld [vmem:[%s1579_s28 + $0xb0] ss:$8 sps:$4 sm:$0xff]   ;;  %v1509_v0 = vld [vmem:[%s1579_s28 + $0x180] ss:$8 sps:$4 sm:$0xff]  }
  0x20   : > { %627 = vmatprep.subr.bf16.mxu0 %v1521_v1  ;;  %1388 = vmatprep.subr.bf16.mxu1 %v1521_v1  ;;  %v1512_v2 = vld [vmem:[%s1579_s28 + $0xc0] ss:$8 sps:$4 sm:$0xff]  }
  0x23   : > { %628 = vmatpush1.bf16.msra.mxu0 %v1429_v10  ;;  %1404 = vmatpush1.bf16.msra.mxu1 %v1429_v10 }
  0x24   : > { %629 = vmatprep.subr.bf16.mxu0 %v1521_v1  ;;  %1389 = vmatprep.subr.bf16.mxu1 %v1521_v1 }
  0x27   : > { %630 = vmatpush1.bf16.msra.mxu0 %v1430_v11  ;;  %1405 = vmatpush1.bf16.msra.mxu1 %v1430_v11 }
  0x28   : > { %631 = vmatprep.subr.bf16.mxu0 %v1521_v1  ;;  %1390 = vmatprep.subr.bf16.mxu1 %v1521_v1 }
  0x2b   : > { %632 = vmatpush1.bf16.msra.mxu0 %v1431_v12  ;;  %1406 = vmatpush1.bf16.msra.mxu1 %v1431_v12 }
  0x2c   : > { %633 = vmatprep.subr.bf16.mxu0 %v1521_v1  ;;  %1391 = vmatprep.subr.bf16.mxu1 %v1521_v1 }
  0x2f   : > { %634 = vmatpush1.bf16.msra.mxu0 %v1432_v13  ;;  %1407 = vmatpush1.bf16.msra.mxu1 %v1432_v13 }
  0x30   : > { %635 = vmatprep.subr.bf16.mxu0 %v1521_v1  ;;  %1392 = vmatprep.subr.bf16.mxu1 %v1521_v1 }
  0x33   : > { %636 = vmatpush1.bf16.msra.mxu0 %v1433_v14  ;;  %1408 = vmatpush1.bf16.msra.mxu1 %v1433_v14 }
  0x34   : > { %637 = vmatprep.subr.bf16.mxu0 %v1521_v1  ;;  %1393 = vmatprep.subr.bf16.mxu1 %v1521_v1 }
  0x37   : > { %638 = vmatpush1.bf16.msra.mxu0 %v1434_v15  ;;  %1409 = vmatpush1.bf16.msra.mxu1 %v1434_v15 }
  0x38   : > { %639 = vmatprep.subr.bf16.mxu0 %v1521_v1  ;;  %1394 = vmatprep.subr.bf16.mxu1 %v1521_v1 }
  0x3b   : > { %640 = vmatpush1.bf16.msra.mxu0 %v1435_v16  ;;  %1410 = vmatpush1.bf16.msra.mxu1 %v1435_v16 }
  0x3c   : > { %641 = vmatprep.subr.bf16.mxu0 %v1521_v1  ;;  %1395 = vmatprep.subr.bf16.mxu1 %v1521_v1 }
  0x3f   : > { %642 = vmatpush1.bf16.msra.mxu0 %v1436_v17  ;;  %1411 = vmatpush1.bf16.msra.mxu1 %v1436_v17 }
  0x40   : > { %643 = vmatprep.subr.bf16.mxu0 %v1521_v1  ;;  %1396 = vmatprep.subr.bf16.mxu1 %v1521_v1  ;;  %v1510_v1 = vld [vmem:[%s1579_s28 + $0xc4] ss:$8 sps:$4 sm:$0xff]  }
  0x43   : > { %644 = vmatpush1.bf16.msra.mxu0 %v1437_v18  ;;  %1412 = vmatpush1.bf16.msra.mxu1 %v1437_v18 }
  0x46   : > { %646 = vmatmul.mubr.bf16.vlgmr.msra.gmra.mrb[0].mxu0 %v1438_v19  ;;  %750 = vmatmul.mubr.bf16.vlgmr.msra.gmra.mrb[0].mxu1 %v1441_v20 }
  0x47   : > { %653 = vmatprep.mubr.bf16.mxu0 %v1444_v21  ;;  %757 = vmatprep.mubr.bf16.mxu1 %v1447_v22 }
  0x4e   : > { %654 = vmatmul.mubr.bf16.gmra.mrb[4].mxu0 %v1446_v23  ;;  %758 = vmatmul.mubr.bf16.gmra.mrb[4].mxu1 %v1449_v24 }
  0x4f   : > { %661 = vmatprep.mubr.bf16.mxu0 %v1450_v25  ;;  %765 = vmatprep.mubr.bf16.mxu1 %v1453_v26 }
  0x56   : > { %662 = vmatmul.mubr.bf16.gmra.mrb[8].mxu0 %v1452_v27  ;;  %766 = vmatmul.mubr.bf16.gmra.mrb[8].mxu1 %v1455_v28 }
  0x57   : > { %669 = vmatprep.mubr.bf16.mxu0 %v1456_v29  ;;  %773 = vmatprep.mubr.bf16.mxu1 %v1459_v30 }
  0x5e   : > { %670 = vmatmul.mubr.bf16.gmra.mrb[12].mxu0 %v1458_v31  ;;  %774 = vmatmul.mubr.bf16.gmra.mrb[12].mxu1 %v1461_v32 }
  0x5f   : > { %677 = vmatprep.mubr.bf16.mxu0 %v1462_v33  ;;  %781 = vmatprep.mubr.bf16.mxu1 %v1465_v34 }
  0x66   : > { %678 = vmatmul.mubr.bf16.gmra.mrb[16].mxu0 %v1464_v35  ;;  %782 = vmatmul.mubr.bf16.gmra.mrb[16].mxu1 %v1467_v36 }
  0x67   : > { %685 = vmatprep.mubr.bf16.mxu0 %v1468_v37  ;;  %789 = vmatprep.mubr.bf16.mxu1 %v1471_v38 }
  0x6e   : > { %686 = vmatmul.mubr.bf16.gmra.mrb[20].mxu0 %v1470_v39  ;;  %790 = vmatmul.mubr.bf16.gmra.mrb[20].mxu1 %v1473_v40 }
  0x6f   : > { %693 = vmatprep.mubr.bf16.mxu0 %v1474_v41  ;;  %797 = vmatprep.mubr.bf16.mxu1 %v1477_v42 }
  0x76   : > { %694 = vmatmul.mubr.bf16.gmra.mrb[24].mxu0 %v1476_v43  ;;  %798 = vmatmul.mubr.bf16.gmra.mrb[24].mxu1 %v1479_v44 }
  0x77   : > { %701 = vmatprep.mubr.bf16.mxu0 %v1480_v45  ;;  %805 = vmatprep.mubr.bf16.mxu1 %v1483_v46 }
  0x7e   : > { %702 = vmatmul.mubr.bf16.gmra.mrb[28].mxu0 %v1482_v47  ;;  %806 = vmatmul.mubr.bf16.gmra.mrb[28].mxu1 %v1485_v48 }
  0x7f   : > { %709 = vmatprep.mubr.bf16.mxu0 %v1486_v49  ;;  %813 = vmatprep.mubr.bf16.mxu1 %v1489_v50 }
  0x86   : > { %710 = vmatmul.mubr.bf16.gmra.mrb[32].mxu0 %v1488_v51  ;;  %814 = vmatmul.mubr.bf16.gmra.mrb[32].mxu1 %v1491_v52 }
  0x87   : > { %717 = vmatprep.mubr.bf16.mxu0 %v1492_v53  ;;  %821 = vmatprep.mubr.bf16.mxu1 %v1495_v54 }
  0x8e   : > { %718 = vmatmul.mubr.bf16.gmra.mrb[36].mxu0 %v1494_v55  ;;  %822 = vmatmul.mubr.bf16.gmra.mrb[36].mxu1 %v1497_v56 }
  0x8f   : > { %725 = vmatprep.mubr.bf16.mxu0 %v1498_v57  ;;  %829 = vmatprep.mubr.bf16.mxu1 %v1501_v58 }
  0x96   : > { %726 = vmatmul.mubr.bf16.gmra.mrb[40].mxu0 %v1500_v59  ;;  %830 = vmatmul.mubr.bf16.gmra.mrb[40].mxu1 %v1503_v60 }
  0x97   : > { %733 = vmatprep.mubr.bf16.mxu0 %v1504_v61  ;;  %837 = vmatprep.mubr.bf16.mxu1 %v1507_v62 }
  0x9e   : > { %734 = vmatmul.mubr.bf16.gmra.mrb[44].mxu0 %v1506_v63  ;;  %838 = vmatmul.mubr.bf16.gmra.mrb[44].mxu1 %v1509_v0 }
  0x9f   : > { %741 = vmatprep.mubr.bf16.mxu0 %v1510_v1 }
  0xa6   : > { %742 = vmatmul.mubr.bf16.gmra.mrb[48].mxu0 %v1512_v2 }
 0x119   : > { %v647_v4 = vpop.f32.mrb[0].mxu0  ;;  %v751_v5 = vpop.f32.mrb[0].mxu1 }
 0x11a   : > { %v648_v6 = vadd.f32 %v1691_v3, %v647_v4  ;;  %v649_v7 = vpop.f32.mrb[1].mxu0  ;;  %v752_v8 = vadd.f32 %v1691_v3, %v751_v5  ;;  %v753_v9 = vpop.f32.mrb[1].mxu1 }
 0x11b   : > { %v650_v10 = vpop.f32.mrb[2].mxu0  ;;  %v754_v11 = vpop.f32.mrb[2].mxu1 }
 0x11c   : > { %v846_v12 = vmax.f32 %v648_v6, 0.0  ;;  %v651_v13 = vadd.f32 %v1691_v3, %v650_v10  ;;  %v652_v14 = vpop.f32.mrb[3].mxu0  ;;  %v872_v15 = vmax.f32 %v752_v8, 0.0  ;;  %v755_v16 = vadd.f32 %v1691_v3, %v754_v11  ;;  %v756_v17 = vpop.f32.mrb[3].mxu1 }
 0x11e   : > { %v1331_v18 = vpack.c.bf16 %v846_v12, %v846_v12  ;;  %v847_v19 = vmax.f32 %v651_v13, 0.0  ;;  %v1357_v20 = vpack.c.bf16 %v872_v15, %v872_v15  ;;  %v873_v21 = vmax.f32 %v755_v16, 0.0 }
 0x120   : > { %1097 = vst.msk [vmem:[%s1701_s16] sm:$0xf] %vm1096_vm0, %v1331_v18  ;;  %v1332_v22 = vpack.c.bf16 %v847_v19, %v847_v19  ;;  %1123 = vst.msk [vmem:[%s1701_s16 + $0x68] sm:$0xf] %vm1096_vm0, %v1357_v20  ;;  %v1358_v23 = vpack.c.bf16 %v873_v21, %v873_v21 }
 0x121   : > { %v655_v24 = vpop.f32.mrb[4].mxu0  ;;  %v759_v25 = vpop.f32.mrb[4].mxu1 }
 0x122   : > { %1098 = vst.msk [vmem:[%s1701_s16 + $0x4] sm:$0xf] %vm1096_vm0, %v1332_v22  ;;  %1124 = vst.msk [vmem:[%s1701_s16 + $0x6c] sm:$0xf] %vm1096_vm0, %v1358_v23  ;;  %v656_v26 = vadd.f32 %v1691_v3, %v655_v24  ;;  %v657_v27 = vpop.f32.mrb[5].mxu0  ;;  %v760_v28 = vadd.f32 %v1691_v3, %v759_v25  ;;  %v761_v29 = vpop.f32.mrb[5].mxu1 }
 0x123   : > { %v658_v30 = vpop.f32.mrb[6].mxu0  ;;  %v762_v31 = vpop.f32.mrb[6].mxu1 }
 0x124   : > { %v848_v32 = vmax.f32 %v656_v26, 0.0  ;;  %v659_v33 = vadd.f32 %v1691_v3, %v658_v30  ;;  %v660_v34 = vpop.f32.mrb[7].mxu0  ;;  %v874_v35 = vmax.f32 %v760_v28, 0.0  ;;  %v763_v36 = vadd.f32 %v1691_v3, %v762_v31  ;;  %v764_v37 = vpop.f32.mrb[7].mxu1 }
 0x126   : > { %v1333_v38 = vpack.c.bf16 %v848_v32, %v848_v32  ;;  %v849_v39 = vmax.f32 %v659_v33, 0.0  ;;  %v1359_v40 = vpack.c.bf16 %v874_v35, %v874_v35  ;;  %v875_v41 = vmax.f32 %v763_v36, 0.0 }
 0x128   : > { %1099 = vst.msk [vmem:[%s1701_s16 + $0x8] sm:$0xf] %vm1096_vm0, %v1333_v38  ;;  %v1334_v42 = vpack.c.bf16 %v849_v39, %v849_v39  ;;  %1125 = vst.msk [vmem:[%s1701_s16 + $0x70] sm:$0xf] %vm1096_vm0, %v1359_v40  ;;  %v1360_v43 = vpack.c.bf16 %v875_v41, %v875_v41 }
 0x129   : > { %v663_v44 = vpop.f32.mrb[8].mxu0  ;;  %v767_v45 = vpop.f32.mrb[8].mxu1 }
 0x12a   : > { %1100 = vst.msk [vmem:[%s1701_s16 + $0xc] sm:$0xf] %vm1096_vm0, %v1334_v42  ;;  %1126 = vst.msk [vmem:[%s1701_s16 + $0x74] sm:$0xf] %vm1096_vm0, %v1360_v43  ;;  %v664_v46 = vadd.f32 %v1691_v3, %v663_v44  ;;  %v665_v47 = vpop.f32.mrb[9].mxu0  ;;  %v768_v48 = vadd.f32 %v1691_v3, %v767_v45  ;;  %v769_v49 = vpop.f32.mrb[9].mxu1 }
 0x12b   : > { %v666_v50 = vpop.f32.mrb[10].mxu0  ;;  %v770_v51 = vpop.f32.mrb[10].mxu1 }
 0x12c   : > { %v850_v52 = vmax.f32 %v664_v46, 0.0  ;;  %v667_v53 = vadd.f32 %v1691_v3, %v666_v50  ;;  %v668_v54 = vpop.f32.mrb[11].mxu0  ;;  %v876_v55 = vmax.f32 %v768_v48, 0.0  ;;  %v771_v56 = vadd.f32 %v1691_v3, %v770_v51  ;;  %v772_v57 = vpop.f32.mrb[11].mxu1 }
 0x12e   : > { %v1335_v58 = vpack.c.bf16 %v850_v52, %v850_v52  ;;  %v851_v59 = vmax.f32 %v667_v53, 0.0  ;;  %v1361_v60 = vpack.c.bf16 %v876_v55, %v876_v55  ;;  %v877_v61 = vmax.f32 %v771_v56, 0.0 }
 0x130   : > { %1101 = vst.msk [vmem:[%s1701_s16 + $0x10] sm:$0xf] %vm1096_vm0, %v1335_v58  ;;  %v1336_v62 = vpack.c.bf16 %v851_v59, %v851_v59  ;;  %1127 = vst.msk [vmem:[%s1701_s16 + $0x78] sm:$0xf] %vm1096_vm0, %v1361_v60  ;;  %v1362_v63 = vpack.c.bf16 %v877_v61, %v877_v61 }
 0x131   : > { %v671_v0 = vpop.f32.mrb[12].mxu0  ;;  %v775_v1 = vpop.f32.mrb[12].mxu1 }
 0x132   : > { %1102 = vst.msk [vmem:[%s1701_s16 + $0x14] sm:$0xf] %vm1096_vm0, %v1336_v62  ;;  %1128 = vst.msk [vmem:[%s1701_s16 + $0x7c] sm:$0xf] %vm1096_vm0, %v1362_v63  ;;  %v672_v2 = vadd.f32 %v1691_v3, %v671_v0  ;;  %v673_v4 = vpop.f32.mrb[13].mxu0  ;;  %v776_v5 = vadd.f32 %v1691_v3, %v775_v1  ;;  %v777_v6 = vpop.f32.mrb[13].mxu1 }
 0x133   : > { %v674_v7 = vpop.f32.mrb[14].mxu0  ;;  %v778_v8 = vpop.f32.mrb[14].mxu1 }
 0x134   : > { %v852_v9 = vmax.f32 %v672_v2, 0.0  ;;  %v675_v10 = vadd.f32 %v1691_v3, %v674_v7  ;;  %v676_v11 = vpop.f32.mrb[15].mxu0  ;;  %v878_v12 = vmax.f32 %v776_v5, 0.0  ;;  %v779_v13 = vadd.f32 %v1691_v3, %v778_v8  ;;  %v780_v14 = vpop.f32.mrb[15].mxu1 }
 0x136   : > { %v1337_v15 = vpack.c.bf16 %v852_v9, %v852_v9  ;;  %v853_v16 = vmax.f32 %v675_v10, 0.0  ;;  %v1363_v17 = vpack.c.bf16 %v878_v12, %v878_v12  ;;  %v879_v18 = vmax.f32 %v779_v13, 0.0 }
 0x138   : > { %1103 = vst.msk [vmem:[%s1701_s16 + $0x18] sm:$0xf] %vm1096_vm0, %v1337_v15  ;;  %v1338_v19 = vpack.c.bf16 %v853_v16, %v853_v16  ;;  %1129 = vst.msk [vmem:[%s1701_s16 + $0x80] sm:$0xf] %vm1096_vm0, %v1363_v17  ;;  %v1364_v20 = vpack.c.bf16 %v879_v18, %v879_v18 }
 0x139   : > { %v679_v21 = vpop.f32.mrb[16].mxu0  ;;  %v783_v22 = vpop.f32.mrb[16].mxu1 }
 0x13a   : > { %1104 = vst.msk [vmem:[%s1701_s16 + $0x1c] sm:$0xf] %vm1096_vm0, %v1338_v19  ;;  %1130 = vst.msk [vmem:[%s1701_s16 + $0x84] sm:$0xf] %vm1096_vm0, %v1364_v20  ;;  %v680_v23 = vadd.f32 %v1691_v3, %v679_v21  ;;  %v681_v24 = vpop.f32.mrb[17].mxu0  ;;  %v784_v25 = vadd.f32 %v1691_v3, %v783_v22  ;;  %v785_v26 = vpop.f32.mrb[17].mxu1 }
 0x13b   : > { %v682_v27 = vpop.f32.mrb[18].mxu0  ;;  %v786_v28 = vpop.f32.mrb[18].mxu1 }
 0x13c   : > { %v854_v29 = vmax.f32 %v680_v23, 0.0  ;;  %v683_v30 = vadd.f32 %v1691_v3, %v682_v27  ;;  %v684_v31 = vpop.f32.mrb[19].mxu0  ;;  %v880_v32 = vmax.f32 %v784_v25, 0.0  ;;  %v787_v33 = vadd.f32 %v1691_v3, %v786_v28  ;;  %v788_v34 = vpop.f32.mrb[19].mxu1 }
 0x13e   : > { %v1339_v35 = vpack.c.bf16 %v854_v29, %v854_v29  ;;  %v855_v36 = vmax.f32 %v683_v30, 0.0  ;;  %v1365_v37 = vpack.c.bf16 %v880_v32, %v880_v32  ;;  %v881_v38 = vmax.f32 %v787_v33, 0.0 }
 0x140   : > { %1105 = vst.msk [vmem:[%s1701_s16 + $0x20] sm:$0xf] %vm1096_vm0, %v1339_v35  ;;  %v1340_v39 = vpack.c.bf16 %v855_v36, %v855_v36  ;;  %1131 = vst.msk [vmem:[%s1701_s16 + $0x88] sm:$0xf] %vm1096_vm0, %v1365_v37  ;;  %v1366_v40 = vpack.c.bf16 %v881_v38, %v881_v38 }
 0x141   : > { %v687_v41 = vpop.f32.mrb[20].mxu0  ;;  %v791_v42 = vpop.f32.mrb[20].mxu1 }
 0x142   : > { %1106 = vst.msk [vmem:[%s1701_s16 + $0x24] sm:$0xf] %vm1096_vm0, %v1340_v39  ;;  %1132 = vst.msk [vmem:[%s1701_s16 + $0x8c] sm:$0xf] %vm1096_vm0, %v1366_v40  ;;  %v688_v43 = vadd.f32 %v1691_v3, %v687_v41  ;;  %v689_v44 = vpop.f32.mrb[21].mxu0  ;;  %v792_v45 = vadd.f32 %v1691_v3, %v791_v42  ;;  %v793_v46 = vpop.f32.mrb[21].mxu1 }
 0x143   : > { %v690_v47 = vpop.f32.mrb[22].mxu0  ;;  %v794_v48 = vpop.f32.mrb[22].mxu1 }
 0x144   : > { %v856_v49 = vmax.f32 %v688_v43, 0.0  ;;  %v691_v50 = vadd.f32 %v1691_v3, %v690_v47  ;;  %v692_v51 = vpop.f32.mrb[23].mxu0  ;;  %v882_v52 = vmax.f32 %v792_v45, 0.0  ;;  %v795_v53 = vadd.f32 %v1691_v3, %v794_v48  ;;  %v796_v54 = vpop.f32.mrb[23].mxu1 }
 0x146   : > { %v1341_v55 = vpack.c.bf16 %v856_v49, %v856_v49  ;;  %v857_v56 = vmax.f32 %v691_v50, 0.0  ;;  %v1367_v57 = vpack.c.bf16 %v882_v52, %v882_v52  ;;  %v883_v58 = vmax.f32 %v795_v53, 0.0 }
 0x148   : > { %1107 = vst.msk [vmem:[%s1701_s16 + $0x28] sm:$0xf] %vm1096_vm0, %v1341_v55  ;;  %v1342_v59 = vpack.c.bf16 %v857_v56, %v857_v56  ;;  %1133 = vst.msk [vmem:[%s1701_s16 + $0x90] sm:$0xf] %vm1096_vm0, %v1367_v57  ;;  %v1368_v60 = vpack.c.bf16 %v883_v58, %v883_v58 }
 0x149   : > { %v695_v61 = vpop.f32.mrb[24].mxu0  ;;  %v799_v62 = vpop.f32.mrb[24].mxu1 }
 0x14a   : > { %1108 = vst.msk [vmem:[%s1701_s16 + $0x2c] sm:$0xf] %vm1096_vm0, %v1342_v59  ;;  %1134 = vst.msk [vmem:[%s1701_s16 + $0x94] sm:$0xf] %vm1096_vm0, %v1368_v60  ;;  %v696_v63 = vadd.f32 %v1691_v3, %v695_v61  ;;  %v697_v0 = vpop.f32.mrb[25].mxu0  ;;  %v800_v1 = vadd.f32 %v1691_v3, %v799_v62  ;;  %v801_v2 = vpop.f32.mrb[25].mxu1 }
 0x14b   : > { %v698_v4 = vpop.f32.mrb[26].mxu0  ;;  %v802_v5 = vpop.f32.mrb[26].mxu1 }
 0x14c   : > { %v858_v6 = vmax.f32 %v696_v63, 0.0  ;;  %v699_v7 = vadd.f32 %v1691_v3, %v698_v4  ;;  %v700_v8 = vpop.f32.mrb[27].mxu0  ;;  %v884_v9 = vmax.f32 %v800_v1, 0.0  ;;  %v803_v10 = vadd.f32 %v1691_v3, %v802_v5  ;;  %v804_v11 = vpop.f32.mrb[27].mxu1 }
 0x14e   : > { %v1343_v12 = vpack.c.bf16 %v858_v6, %v858_v6  ;;  %v859_v13 = vmax.f32 %v699_v7, 0.0  ;;  %v1369_v14 = vpack.c.bf16 %v884_v9, %v884_v9  ;;  %v885_v15 = vmax.f32 %v803_v10, 0.0 }
 0x150   : > { %1109 = vst.msk [vmem:[%s1701_s16 + $0x30] sm:$0xf] %vm1096_vm0, %v1343_v12  ;;  %v1344_v16 = vpack.c.bf16 %v859_v13, %v859_v13  ;;  %1135 = vst.msk [vmem:[%s1701_s16 + $0x98] sm:$0xf] %vm1096_vm0, %v1369_v14  ;;  %v1370_v17 = vpack.c.bf16 %v885_v15, %v885_v15 }
 0x151   : > { %v703_v18 = vpop.f32.mrb[28].mxu0  ;;  %v807_v19 = vpop.f32.mrb[28].mxu1 }
 0x152   : > { %1110 = vst.msk [vmem:[%s1701_s16 + $0x34] sm:$0xf] %vm1096_vm0, %v1344_v16  ;;  %1136 = vst.msk [vmem:[%s1701_s16 + $0x9c] sm:$0xf] %vm1096_vm0, %v1370_v17  ;;  %v704_v20 = vadd.f32 %v1691_v3, %v703_v18  ;;  %v705_v21 = vpop.f32.mrb[29].mxu0  ;;  %v808_v22 = vadd.f32 %v1691_v3, %v807_v19  ;;  %v809_v23 = vpop.f32.mrb[29].mxu1 }
 0x153   : > { %v706_v24 = vpop.f32.mrb[30].mxu0  ;;  %v810_v25 = vpop.f32.mrb[30].mxu1 }
 0x154   : > { %v860_v26 = vmax.f32 %v704_v20, 0.0  ;;  %v707_v27 = vadd.f32 %v1691_v3, %v706_v24  ;;  %v708_v28 = vpop.f32.mrb[31].mxu0  ;;  %v886_v29 = vmax.f32 %v808_v22, 0.0  ;;  %v811_v30 = vadd.f32 %v1691_v3, %v810_v25  ;;  %v812_v31 = vpop.f32.mrb[31].mxu1 }
 0x156   : > { %v1345_v32 = vpack.c.bf16 %v860_v26, %v860_v26  ;;  %v861_v33 = vmax.f32 %v707_v27, 0.0  ;;  %v1371_v34 = vpack.c.bf16 %v886_v29, %v886_v29  ;;  %v887_v35 = vmax.f32 %v811_v30, 0.0 }
 0x158   : > { %1111 = vst.msk [vmem:[%s1701_s16 + $0x38] sm:$0xf] %vm1096_vm0, %v1345_v32  ;;  %v1346_v36 = vpack.c.bf16 %v861_v33, %v861_v33  ;;  %1137 = vst.msk [vmem:[%s1701_s16 + $0xa0] sm:$0xf] %vm1096_vm0, %v1371_v34  ;;  %v1372_v37 = vpack.c.bf16 %v887_v35, %v887_v35 }
 0x159   : > { %v711_v38 = vpop.f32.mrb[32].mxu0  ;;  %v815_v39 = vpop.f32.mrb[32].mxu1 }
 0x15a   : > { %1112 = vst.msk [vmem:[%s1701_s16 + $0x3c] sm:$0xf] %vm1096_vm0, %v1346_v36  ;;  %1138 = vst.msk [vmem:[%s1701_s16 + $0xa4] sm:$0xf] %vm1096_vm0, %v1372_v37  ;;  %v712_v40 = vadd.f32 %v1691_v3, %v711_v38  ;;  %v713_v41 = vpop.f32.mrb[33].mxu0  ;;  %v816_v42 = vadd.f32 %v1691_v3, %v815_v39  ;;  %v817_v43 = vpop.f32.mrb[33].mxu1 }
 0x15b   : > { %v714_v44 = vpop.f32.mrb[34].mxu0  ;;  %v818_v45 = vpop.f32.mrb[34].mxu1 }
 0x15c   : > { %v862_v46 = vmax.f32 %v712_v40, 0.0  ;;  %v715_v47 = vadd.f32 %v1691_v3, %v714_v44  ;;  %v716_v48 = vpop.f32.mrb[35].mxu0  ;;  %v888_v49 = vmax.f32 %v816_v42, 0.0  ;;  %v819_v50 = vadd.f32 %v1691_v3, %v818_v45  ;;  %v820_v51 = vpop.f32.mrb[35].mxu1 }
 0x15e   : > { %v1347_v52 = vpack.c.bf16 %v862_v46, %v862_v46  ;;  %v863_v53 = vmax.f32 %v715_v47, 0.0  ;;  %v1373_v54 = vpack.c.bf16 %v888_v49, %v888_v49  ;;  %v889_v55 = vmax.f32 %v819_v50, 0.0 }
 0x160   : > { %1113 = vst.msk [vmem:[%s1701_s16 + $0x40] sm:$0xf] %vm1096_vm0, %v1347_v52  ;;  %v1348_v56 = vpack.c.bf16 %v863_v53, %v863_v53  ;;  %1139 = vst.msk [vmem:[%s1701_s16 + $0xa8] sm:$0xf] %vm1096_vm0, %v1373_v54  ;;  %v1374_v57 = vpack.c.bf16 %v889_v55, %v889_v55 }
 0x161   : > { %v719_v58 = vpop.f32.mrb[36].mxu0  ;;  %v823_v59 = vpop.f32.mrb[36].mxu1 }
 0x162   : > { %1114 = vst.msk [vmem:[%s1701_s16 + $0x44] sm:$0xf] %vm1096_vm0, %v1348_v56  ;;  %1140 = vst.msk [vmem:[%s1701_s16 + $0xac] sm:$0xf] %vm1096_vm0, %v1374_v57  ;;  %v720_v60 = vadd.f32 %v1691_v3, %v719_v58  ;;  %v721_v61 = vpop.f32.mrb[37].mxu0  ;;  %v824_v62 = vadd.f32 %v1691_v3, %v823_v59  ;;  %v825_v63 = vpop.f32.mrb[37].mxu1 }
 0x163   : > { %v722_v0 = vpop.f32.mrb[38].mxu0  ;;  %v826_v1 = vpop.f32.mrb[38].mxu1 }
 0x164   : > { %v864_v2 = vmax.f32 %v720_v60, 0.0  ;;  %v723_v4 = vadd.f32 %v1691_v3, %v722_v0  ;;  %v724_v5 = vpop.f32.mrb[39].mxu0  ;;  %v890_v6 = vmax.f32 %v824_v62, 0.0  ;;  %v827_v7 = vadd.f32 %v1691_v3, %v826_v1  ;;  %v828_v8 = vpop.f32.mrb[39].mxu1 }
 0x166   : > { %v1349_v9 = vpack.c.bf16 %v864_v2, %v864_v2  ;;  %v865_v10 = vmax.f32 %v723_v4, 0.0  ;;  %v1375_v11 = vpack.c.bf16 %v890_v6, %v890_v6  ;;  %v891_v12 = vmax.f32 %v827_v7, 0.0 }
 0x168   : > { %1115 = vst.msk [vmem:[%s1701_s16 + $0x48] sm:$0xf] %vm1096_vm0, %v1349_v9  ;;  %v1350_v13 = vpack.c.bf16 %v865_v10, %v865_v10  ;;  %1141 = vst.msk [vmem:[%s1701_s16 + $0xb0] sm:$0xf] %vm1096_vm0, %v1375_v11  ;;  %v1376_v14 = vpack.c.bf16 %v891_v12, %v891_v12 }
 0x169   : > { %v727_v15 = vpop.f32.mrb[40].mxu0  ;;  %v831_v16 = vpop.f32.mrb[40].mxu1 }
 0x16a   : > { %1116 = vst.msk [vmem:[%s1701_s16 + $0x4c] sm:$0xf] %vm1096_vm0, %v1350_v13  ;;  %1142 = vst.msk [vmem:[%s1701_s16 + $0xb4] sm:$0xf] %vm1096_vm0, %v1376_v14  ;;  %v728_v17 = vadd.f32 %v1691_v3, %v727_v15  ;;  %v729_v18 = vpop.f32.mrb[41].mxu0  ;;  %v832_v19 = vadd.f32 %v1691_v3, %v831_v16  ;;  %v833_v20 = vpop.f32.mrb[41].mxu1 }
 0x16b   : > { %v730_v21 = vpop.f32.mrb[42].mxu0  ;;  %v834_v22 = vpop.f32.mrb[42].mxu1 }
 0x16c   : > { %v866_v23 = vmax.f32 %v728_v17, 0.0  ;;  %v731_v24 = vadd.f32 %v1691_v3, %v730_v21  ;;  %v732_v25 = vpop.f32.mrb[43].mxu0  ;;  %v892_v26 = vmax.f32 %v832_v19, 0.0  ;;  %v835_v27 = vadd.f32 %v1691_v3, %v834_v22  ;;  %v836_v28 = vpop.f32.mrb[43].mxu1 }
 0x16e   : > { %v1351_v29 = vpack.c.bf16 %v866_v23, %v866_v23  ;;  %v867_v30 = vmax.f32 %v731_v24, 0.0  ;;  %v1377_v31 = vpack.c.bf16 %v892_v26, %v892_v26  ;;  %v893_v32 = vmax.f32 %v835_v27, 0.0 }
 0x170   : > { %1117 = vst.msk [vmem:[%s1701_s16 + $0x50] sm:$0xf] %vm1096_vm0, %v1351_v29  ;;  %v1352_v33 = vpack.c.bf16 %v867_v30, %v867_v30  ;;  %1143 = vst.msk [vmem:[%s1701_s16 + $0xb8] sm:$0xf] %vm1096_vm0, %v1377_v31  ;;  %v1378_v34 = vpack.c.bf16 %v893_v32, %v893_v32 }
 0x171   : > { %v735_v35 = vpop.f32.mrb[44].mxu0  ;;  %v839_v36 = vpop.f32.mrb[44].mxu1 }
 0x172   : > { %1118 = vst.msk [vmem:[%s1701_s16 + $0x54] sm:$0xf] %vm1096_vm0, %v1352_v33  ;;  %1144 = vst.msk [vmem:[%s1701_s16 + $0xbc] sm:$0xf] %vm1096_vm0, %v1378_v34  ;;  %v736_v37 = vadd.f32 %v1691_v3, %v735_v35  ;;  %v737_v38 = vpop.f32.mrb[45].mxu0  ;;  %v840_v39 = vadd.f32 %v1691_v3, %v839_v36  ;;  %v841_v40 = vpop.f32.mrb[45].mxu1 }
 0x173   : > { %v738_v41 = vpop.f32.mrb[46].mxu0  ;;  %v842_v42 = vpop.f32.mrb[46].mxu1 }
 0x174   : > { %v868_v43 = vmax.f32 %v736_v37, 0.0  ;;  %v739_v44 = vadd.f32 %v1691_v3, %v738_v41  ;;  %v740_v45 = vpop.f32.mrb[47].mxu0  ;;  %v894_v46 = vmax.f32 %v840_v39, 0.0  ;;  %v843_v47 = vadd.f32 %v1691_v3, %v842_v42  ;;  %v844_v48 = vpop.f32.mrb[47].mxu1 }
 0x176   : > { %v1353_v49 = vpack.c.bf16 %v868_v43, %v868_v43  ;;  %v869_v50 = vmax.f32 %v739_v44, 0.0  ;;  %v1379_v51 = vpack.c.bf16 %v894_v46, %v894_v46  ;;  %v895_v52 = vmax.f32 %v843_v47, 0.0 }
 0x178   : > { %1119 = vst.msk [vmem:[%s1701_s16 + $0x58] sm:$0xf] %vm1096_vm0, %v1353_v49  ;;  %v1354_v53 = vpack.c.bf16 %v869_v50, %v869_v50  ;;  %1145 = vst.msk [vmem:[%s1701_s16 + $0xc0] sm:$0xf] %vm1096_vm0, %v1379_v51  ;;  %v1380_v54 = vpack.c.bf16 %v895_v52, %v895_v52 }
 0x179   : > { %v743_v55 = vpop.f32.mrb[48].mxu0 }
 0x17a   : > { %1120 = vst.msk [vmem:[%s1701_s16 + $0x5c] sm:$0xf] %vm1096_vm0, %v1354_v53  ;;  %1146 = vst.msk [vmem:[%s1701_s16 + $0xc4] sm:$0xf] %vm1096_vm0, %v1380_v54  ;;  %v744_v56 = vadd.f32 %v1691_v3, %v743_v55  ;;  %v745_v57 = vpop.f32.mrb[49].mxu0 }
 0x17b   : > { %v746_v58 = vpop.f32.mrb[50].mxu0 }
 0x17c   : > { %v870_v59 = vmax.f32 %v744_v56, 0.0  ;;  %v747_v60 = vadd.f32 %v1691_v3, %v746_v58  ;;  %v748_v61 = vpop.f32.mrb[51].mxu0 }
 0x17e   : > { %v1355_v62 = vpack.c.bf16 %v870_v59, %v870_v59  ;;  %v871_v63 = vmax.f32 %v747_v60, 0.0 }
 0x180   : > { %1121 = vst.msk [vmem:[%s1701_s16 + $0x60] sm:$0xf] %vm1096_vm0, %v1355_v62  ;;  %v1356_v0 = vpack.c.bf16 %v871_v63, %v871_v63 }
 0x182   : > { %1122 = vst.msk [vmem:[%s1701_s16 + $0x64] sm:$0xf] %vm1096_vm0, %v1356_v0 }
 0x183 PF: > { %s13_s12 = sadd.s32 1, %s1519_s12  }
 0x184   : > { %p10_p4 = scmp.ge.s32.totalorder %s13_s12, 4  }
 0x186   :  { %12 = sbr.rel (!%p10_p4) target bundleno = 1 (0x1), region = 62 }

// kernel: conv_forward.5
= control target key start
LH: loop header
LB: loop body
LE: loop exit
PB: predicated region body
PF: predicated region fallthrough
CT: control target
= control target key end

     0   :  { %vm880_vm0 = vcmask 519168   ;;  %vm901_vm1 = vcmask 516096   ;;  %s1637_s1 = inlined_call_operand.vmem [shape: bf16[512,64], index: 1, kind: input, shape index: {}]   ;;  %s1638_s0 = inlined_call_operand.vmem [shape: bf16[162,512], index: 0, kind: input, shape index: {}]   ;;  %s1639_s2 = inlined_call_operand.vmem [shape: f32[1,64], index: 2, kind: input, shape index: {}]   ;;  %s1640_s3 = inlined_call_operand.vmem [shape: bf16[162,64], index: 3, kind: output, shape index: {}]  }
   0x1   :  { %v1190_v0 = vld [vmem:[%s1637_s1 + $0x40] sm:$0xff]   ;;  %v1194_v4 = vld [vmem:[%s1637_s1 + $0x48] sm:$0xff]   ;;  %v1198_v8 = vld [vmem:[%s1637_s1 + $0x50] sm:$0xff]  }
   0x2   :  { %v1191_v1 = vld [vmem:[%s1637_s1 + $0xc0] sm:$0xff]   ;;  %1026 = vmatprep.subr.bf16.mxu0 %v1190_v0  ;;  %v1195_v5 = vld [vmem:[%s1637_s1 + $0xc8] sm:$0xff]   ;;  %v1199_v9 = vld [vmem:[%s1637_s1 + $0xd0] sm:$0xff]  }
   0x3   :  { %v1192_v2 = vld [vmem:[%s1637_s1] sm:$0xff]   ;;  %1108 = vmatprep.subr.bf16.mxu1 %v1191_v1  ;;  %v1196_v6 = vld [vmem:[%s1637_s1 + $0x8] sm:$0xff]   ;;  %v1200_v10 = vld [vmem:[%s1637_s1 + $0x10] sm:$0xff]  }
   0x4   :  { %v1193_v3 = vld [vmem:[%s1637_s1 + $0x80] sm:$0xff]   ;;  %1027 = vmatpush3.bf16.msra.mxu0 %v1192_v2  ;;  %v1197_v7 = vld [vmem:[%s1637_s1 + $0x88] sm:$0xff]   ;;  %v1201_v11 = vld [vmem:[%s1637_s1 + $0x90] sm:$0xff]  }
   0x5   :  { %1109 = vmatpush3.bf16.msra.mxu1 %v1193_v3  ;;  %1028 = vmatprep.subr.bf16.mxu0 %v1194_v4  ;;  %v1202_v12 = vld [vmem:[%s1637_s1 + $0x58] sm:$0xff]   ;;  %v1206_v16 = vld [vmem:[%s1637_s1 + $0x60] sm:$0xff]   ;;  %v1210_v20 = vld [vmem:[%s1637_s1 + $0x68] sm:$0xff]  }
   0x6   :  { %1110 = vmatprep.subr.bf16.mxu1 %v1195_v5  ;;  %v1203_v13 = vld [vmem:[%s1637_s1 + $0xd8] sm:$0xff]   ;;  %v1207_v17 = vld [vmem:[%s1637_s1 + $0xe0] sm:$0xff]   ;;  %v1211_v21 = vld [vmem:[%s1637_s1 + $0xe8] sm:$0xff]  }
   0x7   :  { %v1204_v14 = vld [vmem:[%s1637_s1 + $0x18] sm:$0xff]   ;;  %v1208_v18 = vld [vmem:[%s1637_s1 + $0x20] sm:$0xff]   ;;  %v1212_v22 = vld [vmem:[%s1637_s1 + $0x28] sm:$0xff]  }
   0x8   :  { %1029 = vmatpush3.bf16.msra.mxu0 %v1196_v6  ;;  %v1205_v15 = vld [vmem:[%s1637_s1 + $0x98] sm:$0xff]   ;;  %v1209_v19 = vld [vmem:[%s1637_s1 + $0xa0] sm:$0xff]   ;;  %v1213_v23 = vld [vmem:[%s1637_s1 + $0xa8] sm:$0xff]  }
   0x9   :  { %1111 = vmatpush3.bf16.msra.mxu1 %v1197_v7  ;;  %1030 = vmatprep.subr.bf16.mxu0 %v1198_v8  ;;  %v1214_v24 = vld [vmem:[%s1637_s1 + $0x70] sm:$0xff]   ;;  %v1218_v28 = vld [vmem:[%s1637_s1 + $0x78] sm:$0xff]   ;;  %v55_v6 = vld [vmem:[%s1638_s0 + $0x140] sm:$0x11] }
   0xa   :  { %1112 = vmatprep.subr.bf16.mxu1 %v1199_v9  ;;  %v1215_v25 = vld [vmem:[%s1637_s1 + $0xf0] sm:$0xff]   ;;  %v1219_v29 = vld [vmem:[%s1637_s1 + $0xf8] sm:$0xff]   ;;  %v56_v7 = vld [vmem:[%s1638_s0 + $0x148] sm:$0x11] }
   0xb   :  { %v1216_v26 = vld [vmem:[%s1637_s1 + $0x30] sm:$0xff]   ;;  %v1220_v30 = vld [vmem:[%s1637_s1 + $0x38] sm:$0xff]  }
   0xc   :  { %1031 = vmatpush3.bf16.msra.mxu0 %v1200_v10  ;;  %v1217_v27 = vld [vmem:[%s1637_s1 + $0xb0] sm:$0xff]   ;;  %v1221_v31 = vld [vmem:[%s1637_s1 + $0xb8] sm:$0xff]   ;;  %v949_v10 = vcombine.high %v55_v6, %v55_v6 }
   0xd   :  { %1113 = vmatpush3.bf16.msra.mxu1 %v1201_v11  ;;  %1032 = vmatprep.subr.bf16.mxu0 %v1202_v12  ;;  %v1222_v32 = vld [vmem:[%s1638_s0] ss:$16 sps:$4 sm:$0xff]   ;;  %v1224_v33 = vld [vmem:[%s1638_s0 + $0x4] ss:$16 sps:$4 sm:$0xff]   ;;  %v1225_v34 = vld [vmem:[%s1638_s0 + $0x8] ss:$16 sps:$4 sm:$0xff]   ;;  %v951_v11 = vcombine.high %v56_v7, %v56_v7  ;;  %v948_v12 = vcombine.low %v55_v6, %v55_v6 }
   0xe   :  { %1114 = vmatprep.subr.bf16.mxu1 %v1203_v13  ;;  %v1227_v35 = vld [vmem:[%s1638_s0 + $0xc] ss:$16 sps:$4 sm:$0xff]   ;;  %566 = vmatprep.mubr.bf16.mxu0 %v1224_v33  ;;  %v1228_v36 = vld [vmem:[%s1638_s0 + $0x24] ss:$16 sps:$4 sm:$0xff]   ;;  %v1232_v38 = vld [vmem:[%s1638_s0 + $0x20] ss:$16 sps:$4 sm:$0xff]   ;;  %v950_v13 = vcombine.low %v56_v7, %v56_v7 }
   0xf   :  { %686 = vmatprep.mubr.bf16.mxu1 %v1227_v35  ;;  %v1230_v37 = vld [vmem:[%s1638_s0 + $0x2c] ss:$16 sps:$4 sm:$0xff]   ;;  %v1233_v39 = vld [vmem:[%s1638_s0 + $0x28] ss:$16 sps:$4 sm:$0xff]   ;;  %v1234_v40 = vld [vmem:[%s1638_s0 + $0x44] ss:$16 sps:$4 sm:$0xff]  }
  0x10   :  { %1033 = vmatpush3.bf16.msra.mxu0 %v1204_v14  ;;  %v1236_v41 = vld [vmem:[%s1638_s0 + $0x4c] ss:$16 sps:$4 sm:$0xff]   ;;  %v1238_v42 = vld [vmem:[%s1638_s0 + $0x40] ss:$16 sps:$4 sm:$0xff]   ;;  %v1239_v43 = vld [vmem:[%s1638_s0 + $0x48] ss:$16 sps:$4 sm:$0xff]  }
  0x11   :  { %1115 = vmatpush3.bf16.msra.mxu1 %v1205_v15  ;;  %1034 = vmatprep.subr.bf16.mxu0 %v1206_v16  ;;  %v1240_v44 = vld [vmem:[%s1638_s0 + $0x64] ss:$16 sps:$4 sm:$0xff]   ;;  %v1242_v45 = vld [vmem:[%s1638_s0 + $0x6c] ss:$16 sps:$4 sm:$0xff]   ;;  %v1244_v46 = vld [vmem:[%s1638_s0 + $0x60] ss:$16 sps:$4 sm:$0xff]  }
  0x12   :  { %1116 = vmatprep.subr.bf16.mxu1 %v1207_v17  ;;  %v1245_v47 = vld [vmem:[%s1638_s0 + $0x68] ss:$16 sps:$4 sm:$0xff]   ;;  %v1246_v48 = vld [vmem:[%s1638_s0 + $0x84] ss:$16 sps:$4 sm:$0xff]   ;;  %v1248_v49 = vld [vmem:[%s1638_s0 + $0x8c] ss:$16 sps:$4 sm:$0xff]  }
  0x13   :  { %v1250_v50 = vld [vmem:[%s1638_s0 + $0x80] ss:$16 sps:$4 sm:$0xff]   ;;  %v1251_v51 = vld [vmem:[%s1638_s0 + $0x88] ss:$16 sps:$4 sm:$0xff]   ;;  %v1252_v52 = vld [vmem:[%s1638_s0 + $0xa4] ss:$16 sps:$4 sm:$0xff]  }
  0x14   :  { %1035 = vmatpush3.bf16.msra.mxu0 %v1208_v18  ;;  %v1254_v53 = vld [vmem:[%s1638_s0 + $0xac] ss:$16 sps:$4 sm:$0xff]   ;;  %v1256_v54 = vld [vmem:[%s1638_s0 + $0xa0] ss:$16 sps:$4 sm:$0xff]   ;;  %v1257_v55 = vld [vmem:[%s1638_s0 + $0xa8] ss:$16 sps:$4 sm:$0xff]  }
  0x15   :  { %1117 = vmatpush3.bf16.msra.mxu1 %v1209_v19  ;;  %1036 = vmatprep.subr.bf16.mxu0 %v1210_v20  ;;  %v1258_v56 = vld [vmem:[%s1638_s0 + $0xc4] ss:$16 sps:$4 sm:$0xff]   ;;  %v1260_v57 = vld [vmem:[%s1638_s0 + $0xcc] ss:$16 sps:$4 sm:$0xff]   ;;  %v1262_v58 = vld [vmem:[%s1638_s0 + $0xc0] ss:$16 sps:$4 sm:$0xff]  }
  0x16   :  { %1118 = vmatprep.subr.bf16.mxu1 %v1211_v21  ;;  %v1263_v59 = vld [vmem:[%s1638_s0 + $0xc8] ss:$16 sps:$4 sm:$0xff]   ;;  %v1264_v60 = vld [vmem:[%s1638_s0 + $0xe4] ss:$16 sps:$4 sm:$0xff]   ;;  %v1266_v61 = vld [vmem:[%s1638_s0 + $0xec] ss:$16 sps:$4 sm:$0xff]  }
  0x17   :  { %v1268_v62 = vld [vmem:[%s1638_s0 + $0xe0] ss:$16 sps:$4 sm:$0xff]   ;;  %v1269_v63 = vld [vmem:[%s1638_s0 + $0xe8] ss:$16 sps:$4 sm:$0xff]   ;;  %v1270_v0 = vld [vmem:[%s1638_s0 + $0x104] ss:$16 sps:$4 sm:$0xff]  }
  0x18   :  { %1037 = vmatpush3.bf16.msra.mxu0 %v1212_v22  ;;  %v1272_v1 = vld [vmem:[%s1638_s0 + $0x10c] ss:$16 sps:$4 sm:$0xff]   ;;  %v1274_v2 = vld [vmem:[%s1638_s0 + $0x100] ss:$16 sps:$4 sm:$0xff]   ;;  %v1275_v3 = vld [vmem:[%s1638_s0 + $0x108] ss:$16 sps:$4 sm:$0xff]  }
  0x19   :  { %1119 = vmatpush3.bf16.msra.mxu1 %v1213_v23  ;;  %1038 = vmatprep.subr.bf16.mxu0 %v1214_v24  ;;  %v1276_v4 = vld [vmem:[%s1638_s0 + $0x124] ss:$16 sps:$4 sm:$0xff]   ;;  %v1278_v5 = vld [vmem:[%s1638_s0 + $0x12c] ss:$16 sps:$4 sm:$0xff]   ;;  %v1280_v8 = vld [vmem:[%s1638_s0 + $0x120] ss:$16 sps:$4 sm:$0xff]  }
  0x1a   :  { %1120 = vmatprep.subr.bf16.mxu1 %v1215_v25  ;;  %v1281_v9 = vld [vmem:[%s1638_s0 + $0x128] ss:$16 sps:$4 sm:$0xff]   ;;  %v1531_v16 = vld [vmem:[%s1639_s2] ss:$0 sm:$0xff] }
  0x1c   :  { %1039 = vmatpush3.bf16.msra.mxu0 %v1216_v26 }
  0x1d   :  { %1121 = vmatpush3.bf16.msra.mxu1 %v1217_v27  ;;  %1040 = vmatprep.subr.bf16.mxu0 %v1218_v28 }
  0x1e   :  { %1122 = vmatprep.subr.bf16.mxu1 %v1219_v29 }
  0x20   :  { %1041 = vmatpush3.bf16.msra.mxu0 %v1220_v30 }
  0x21   :  { %1123 = vmatpush3.bf16.msra.mxu1 %v1221_v31 }
  0x23   :  { %567 = vmatmul.mubr.bf16.vlgmr.msra.gmra.mrb[0].mxu0 %v1222_v32 }
  0x24   :  { %687 = vmatmul.mubr.bf16.vlgmr.msra.gmra.mrb[0].mxu1 %v1225_v34  ;;  %574 = vmatprep.mubr.bf16.mxu0 %v1228_v36 }
  0x25   :  { %694 = vmatprep.mubr.bf16.mxu1 %v1230_v37 }
  0x2b   :  { %575 = vmatmul.mubr.bf16.gmra.mrb[4].mxu0 %v1232_v38 }
  0x2c   :  { %695 = vmatmul.mubr.bf16.gmra.mrb[4].mxu1 %v1233_v39  ;;  %582 = vmatprep.mubr.bf16.mxu0 %v1234_v40 }
  0x2d   :  { %702 = vmatprep.mubr.bf16.mxu1 %v1236_v41 }
  0x33   :  { %583 = vmatmul.mubr.bf16.gmra.mrb[8].mxu0 %v1238_v42 }
  0x34   :  { %703 = vmatmul.mubr.bf16.gmra.mrb[8].mxu1 %v1239_v43  ;;  %590 = vmatprep.mubr.bf16.mxu0 %v1240_v44 }
  0x35   :  { %710 = vmatprep.mubr.bf16.mxu1 %v1242_v45 }
  0x3b   :  { %591 = vmatmul.mubr.bf16.gmra.mrb[12].mxu0 %v1244_v46 }
  0x3c   :  { %711 = vmatmul.mubr.bf16.gmra.mrb[12].mxu1 %v1245_v47  ;;  %598 = vmatprep.mubr.bf16.mxu0 %v1246_v48 }
  0x3d   :  { %718 = vmatprep.mubr.bf16.mxu1 %v1248_v49 }
  0x43   :  { %599 = vmatmul.mubr.bf16.gmra.mrb[16].mxu0 %v1250_v50 }
  0x44   :  { %719 = vmatmul.mubr.bf16.gmra.mrb[16].mxu1 %v1251_v51  ;;  %606 = vmatprep.mubr.bf16.mxu0 %v1252_v52 }
  0x45   :  { %726 = vmatprep.mubr.bf16.mxu1 %v1254_v53 }
  0x4b   :  { %607 = vmatmul.mubr.bf16.gmra.mrb[20].mxu0 %v1256_v54 }
  0x4c   :  { %727 = vmatmul.mubr.bf16.gmra.mrb[20].mxu1 %v1257_v55  ;;  %614 = vmatprep.mubr.bf16.mxu0 %v1258_v56 }
  0x4d   :  { %734 = vmatprep.mubr.bf16.mxu1 %v1260_v57 }
  0x53   :  { %615 = vmatmul.mubr.bf16.gmra.mrb[24].mxu0 %v1262_v58 }
  0x54   :  { %735 = vmatmul.mubr.bf16.gmra.mrb[24].mxu1 %v1263_v59  ;;  %622 = vmatprep.mubr.bf16.mxu0 %v1264_v60 }
  0x55   :  { %742 = vmatprep.mubr.bf16.mxu1 %v1266_v61 }
  0x5b   :  { %623 = vmatmul.mubr.bf16.gmra.mrb[28].mxu0 %v1268_v62 }
  0x5c   :  { %743 = vmatmul.mubr.bf16.gmra.mrb[28].mxu1 %v1269_v63  ;;  %630 = vmatprep.mubr.bf16.mxu0 %v1270_v0 }
  0x5d   :  { %750 = vmatprep.mubr.bf16.mxu1 %v1272_v1 }
  0x63   :  { %631 = vmatmul.mubr.bf16.gmra.mrb[32].mxu0 %v1274_v2 }
  0x64   :  { %751 = vmatmul.mubr.bf16.gmra.mrb[32].mxu1 %v1275_v3  ;;  %638 = vmatprep.mubr.bf16.mxu0 %v1276_v4 }
  0x65   :  { %758 = vmatprep.mubr.bf16.mxu1 %v1278_v5 }
  0x6b   :  { %639 = vmatmul.mubr.bf16.gmra.mrb[36].mxu0 %v1280_v8 }
  0x6c   :  { %759 = vmatmul.mubr.bf16.gmra.mrb[36].mxu1 %v1281_v9  ;;  %646 = vmatprep.mubr.bf16.mxu0 %v949_v10 }
  0x6d   :  { %766 = vmatprep.mubr.bf16.mxu1 %v951_v11 }
  0x73   :  { %647 = vmatmul.mubr.bf16.gmra.mrb[40].mxu0 %v948_v12 }
  0x74   :  { %767 = vmatmul.mubr.bf16.gmra.mrb[40].mxu1 %v950_v13 }
  0xf6   :  { %v1042_v14 = vpop.f32.mrb[0].mxu0 }
  0xf7   :  { %v1124_v15 = vpop.f32.mrb[0].mxu1  ;;  %v1043_v17 = vpop.f32.mrb[1].mxu0 }
  0xf8   :  { %v1044_v18 = vadd.f32 %v1043_v17, %v1042_v14  ;;  %v1125_v19 = vpop.f32.mrb[1].mxu1  ;;  %v1045_v20 = vpop.f32.mrb[2].mxu0 }
  0xf9   :  { %v1126_v21 = vadd.f32 %v1125_v19, %v1124_v15  ;;  %v1127_v22 = vpop.f32.mrb[2].mxu1  ;;  %v1046_v23 = vpop.f32.mrb[3].mxu0 }
  0xfa   :  { %v569_v24 = vadd.f32 %v1044_v18, %v1531_v16  ;;  %v1047_v25 = vadd.f32 %v1046_v23, %v1045_v20  ;;  %v1128_v26 = vpop.f32.mrb[3].mxu1 }
  0xfb   :  { %v1129_v27 = vadd.f32 %v1128_v26, %v1127_v22 }
  0xfc   :  { %v689_v28 = vadd.f32 %v1126_v21, %v569_v24  ;;  %v572_v29 = vadd.f32 %v1047_v25, %v1531_v16 }
  0xfe   :  { %v774_v30 = vmax.f32 %v689_v28, 0.0  ;;  %v692_v31 = vadd.f32 %v1129_v27, %v572_v29  ;;  %v1048_v32 = vpop.f32.mrb[4].mxu0 }
  0xff   :  { %v1130_v33 = vpop.f32.mrb[4].mxu1  ;;  %v1049_v34 = vpop.f32.mrb[5].mxu0 }
 0x100   :  { %v1005_v35 = vpack.c.bf16 %v774_v30, %v774_v30  ;;  %v775_v36 = vmax.f32 %v692_v31, 0.0  ;;  %v1050_v37 = vadd.f32 %v1049_v34, %v1048_v32  ;;  %v1131_v38 = vpop.f32.mrb[5].mxu1  ;;  %v1051_v39 = vpop.f32.mrb[6].mxu0 }
 0x101   :  { %v1132_v40 = vadd.f32 %v1131_v38, %v1130_v33  ;;  %v1133_v41 = vpop.f32.mrb[6].mxu1  ;;  %v1052_v42 = vpop.f32.mrb[7].mxu0 }
 0x102   :  { %881 = vst.msk [vmem:[%s1640_s3] sm:$0xf] %vm880_vm0, %v1005_v35  ;;  %v1006_v43 = vpack.c.bf16 %v775_v36, %v775_v36  ;;  %v577_v44 = vadd.f32 %v1050_v37, %v1531_v16  ;;  %v1053_v45 = vadd.f32 %v1052_v42, %v1051_v39  ;;  %v1134_v46 = vpop.f32.mrb[7].mxu1 }
 0x103   :  { %v1135_v47 = vadd.f32 %v1134_v46, %v1133_v41 }
 0x104   :  { %882 = vst.msk [vmem:[%s1640_s3 + $0x4] sm:$0xf] %vm880_vm0, %v1006_v43  ;;  %v697_v48 = vadd.f32 %v1132_v40, %v577_v44  ;;  %v580_v49 = vadd.f32 %v1053_v45, %v1531_v16 }
 0x106   :  { %v776_v50 = vmax.f32 %v697_v48, 0.0  ;;  %v700_v51 = vadd.f32 %v1135_v47, %v580_v49  ;;  %v1054_v52 = vpop.f32.mrb[8].mxu0 }
 0x107   :  { %v1136_v53 = vpop.f32.mrb[8].mxu1  ;;  %v1055_v54 = vpop.f32.mrb[9].mxu0 }
 0x108   :  { %v1007_v55 = vpack.c.bf16 %v776_v50, %v776_v50  ;;  %v777_v56 = vmax.f32 %v700_v51, 0.0  ;;  %v1056_v57 = vadd.f32 %v1055_v54, %v1054_v52  ;;  %v1137_v58 = vpop.f32.mrb[9].mxu1  ;;  %v1057_v59 = vpop.f32.mrb[10].mxu0 }
 0x109   :  { %v1138_v60 = vadd.f32 %v1137_v58, %v1136_v53  ;;  %v1139_v61 = vpop.f32.mrb[10].mxu1  ;;  %v1058_v62 = vpop.f32.mrb[11].mxu0 }
 0x10a   :  { %883 = vst.msk [vmem:[%s1640_s3 + $0x8] sm:$0xf] %vm880_vm0, %v1007_v55  ;;  %v1008_v63 = vpack.c.bf16 %v777_v56, %v777_v56  ;;  %v585_v0 = vadd.f32 %v1056_v57, %v1531_v16  ;;  %v1059_v1 = vadd.f32 %v1058_v62, %v1057_v59  ;;  %v1140_v2 = vpop.f32.mrb[11].mxu1 }
 0x10b   :  { %v1141_v3 = vadd.f32 %v1140_v2, %v1139_v61 }
 0x10c   :  { %884 = vst.msk [vmem:[%s1640_s3 + $0xc] sm:$0xf] %vm880_vm0, %v1008_v63  ;;  %v705_v4 = vadd.f32 %v1138_v60, %v585_v0  ;;  %v588_v5 = vadd.f32 %v1059_v1, %v1531_v16 }
 0x10e   :  { %v778_v6 = vmax.f32 %v705_v4, 0.0  ;;  %v708_v7 = vadd.f32 %v1141_v3, %v588_v5  ;;  %v1060_v8 = vpop.f32.mrb[12].mxu0 }
 0x10f   :  { %v1142_v9 = vpop.f32.mrb[12].mxu1  ;;  %v1061_v10 = vpop.f32.mrb[13].mxu0 }
 0x110   :  { %v1009_v11 = vpack.c.bf16 %v778_v6, %v778_v6  ;;  %v779_v12 = vmax.f32 %v708_v7, 0.0  ;;  %v1062_v13 = vadd.f32 %v1061_v10, %v1060_v8  ;;  %v1143_v14 = vpop.f32.mrb[13].mxu1  ;;  %v1063_v15 = vpop.f32.mrb[14].mxu0 }
 0x111   :  { %v1144_v17 = vadd.f32 %v1143_v14, %v1142_v9  ;;  %v1145_v18 = vpop.f32.mrb[14].mxu1  ;;  %v1064_v19 = vpop.f32.mrb[15].mxu0 }
 0x112   :  { %885 = vst.msk [vmem:[%s1640_s3 + $0x10] sm:$0xf] %vm880_vm0, %v1009_v11  ;;  %v1010_v20 = vpack.c.bf16 %v779_v12, %v779_v12  ;;  %v593_v21 = vadd.f32 %v1062_v13, %v1531_v16  ;;  %v1065_v22 = vadd.f32 %v1064_v19, %v1063_v15  ;;  %v1146_v23 = vpop.f32.mrb[15].mxu1 }
 0x113   :  { %v1147_v24 = vadd.f32 %v1146_v23, %v1145_v18 }
 0x114   :  { %886 = vst.msk [vmem:[%s1640_s3 + $0x14] sm:$0xf] %vm880_vm0, %v1010_v20  ;;  %v713_v25 = vadd.f32 %v1144_v17, %v593_v21  ;;  %v596_v26 = vadd.f32 %v1065_v22, %v1531_v16 }
 0x116   :  { %v780_v27 = vmax.f32 %v713_v25, 0.0  ;;  %v716_v28 = vadd.f32 %v1147_v24, %v596_v26  ;;  %v1066_v29 = vpop.f32.mrb[16].mxu0 }
 0x117   :  { %v1148_v30 = vpop.f32.mrb[16].mxu1  ;;  %v1067_v31 = vpop.f32.mrb[17].mxu0 }
 0x118   :  { %v1011_v32 = vpack.c.bf16 %v780_v27, %v780_v27  ;;  %v781_v33 = vmax.f32 %v716_v28, 0.0  ;;  %v1068_v34 = vadd.f32 %v1067_v31, %v1066_v29  ;;  %v1149_v35 = vpop.f32.mrb[17].mxu1  ;;  %v1069_v36 = vpop.f32.mrb[18].mxu0 }
 0x119   :  { %v1150_v37 = vadd.f32 %v1149_v35, %v1148_v30  ;;  %v1151_v38 = vpop.f32.mrb[18].mxu1  ;;  %v1070_v39 = vpop.f32.mrb[19].mxu0 }
 0x11a   :  { %887 = vst.msk [vmem:[%s1640_s3 + $0x18] sm:$0xf] %vm880_vm0, %v1011_v32  ;;  %v1012_v40 = vpack.c.bf16 %v781_v33, %v781_v33  ;;  %v601_v41 = vadd.f32 %v1068_v34, %v1531_v16  ;;  %v1071_v42 = vadd.f32 %v1070_v39, %v1069_v36  ;;  %v1152_v43 = vpop.f32.mrb[19].mxu1 }
 0x11b   :  { %v1153_v44 = vadd.f32 %v1152_v43, %v1151_v38 }
 0x11c   :  { %888 = vst.msk [vmem:[%s1640_s3 + $0x1c] sm:$0xf] %vm880_vm0, %v1012_v40  ;;  %v721_v45 = vadd.f32 %v1150_v37, %v601_v41  ;;  %v604_v46 = vadd.f32 %v1071_v42, %v1531_v16 }
 0x11e   :  { %v782_v47 = vmax.f32 %v721_v45, 0.0  ;;  %v724_v48 = vadd.f32 %v1153_v44, %v604_v46  ;;  %v1072_v49 = vpop.f32.mrb[20].mxu0 }
 0x11f   :  { %v1154_v50 = vpop.f32.mrb[20].mxu1  ;;  %v1073_v51 = vpop.f32.mrb[21].mxu0 }
 0x120   :  { %v1013_v52 = vpack.c.bf16 %v782_v47, %v782_v47  ;;  %v783_v53 = vmax.f32 %v724_v48, 0.0  ;;  %v1074_v54 = vadd.f32 %v1073_v51, %v1072_v49  ;;  %v1155_v55 = vpop.f32.mrb[21].mxu1  ;;  %v1075_v56 = vpop.f32.mrb[22].mxu0 }
 0x121   :  { %v1156_v57 = vadd.f32 %v1155_v55, %v1154_v50  ;;  %v1157_v58 = vpop.f32.mrb[22].mxu1  ;;  %v1076_v59 = vpop.f32.mrb[23].mxu0 }
 0x122   :  { %889 = vst.msk [vmem:[%s1640_s3 + $0x20] sm:$0xf] %vm880_vm0, %v1013_v52  ;;  %v1014_v60 = vpack.c.bf16 %v783_v53, %v783_v53  ;;  %v609_v61 = vadd.f32 %v1074_v54, %v1531_v16  ;;  %v1077_v62 = vadd.f32 %v1076_v59, %v1075_v56  ;;  %v1158_v63 = vpop.f32.mrb[23].mxu1 }
 0x123   :  { %v1159_v0 = vadd.f32 %v1158_v63, %v1157_v58 }
 0x124   :  { %890 = vst.msk [vmem:[%s1640_s3 + $0x24] sm:$0xf] %vm880_vm0, %v1014_v60  ;;  %v729_v1 = vadd.f32 %v1156_v57, %v609_v61  ;;  %v612_v2 = vadd.f32 %v1077_v62, %v1531_v16 }
 0x126   :  { %v784_v3 = vmax.f32 %v729_v1, 0.0  ;;  %v732_v4 = vadd.f32 %v1159_v0, %v612_v2  ;;  %v1078_v5 = vpop.f32.mrb[24].mxu0 }
 0x127   :  { %v1160_v6 = vpop.f32.mrb[24].mxu1  ;;  %v1079_v7 = vpop.f32.mrb[25].mxu0 }
 0x128   :  { %v1015_v8 = vpack.c.bf16 %v784_v3, %v784_v3  ;;  %v785_v9 = vmax.f32 %v732_v4, 0.0  ;;  %v1080_v10 = vadd.f32 %v1079_v7, %v1078_v5  ;;  %v1161_v11 = vpop.f32.mrb[25].mxu1  ;;  %v1081_v12 = vpop.f32.mrb[26].mxu0 }
 0x129   :  { %v1162_v13 = vadd.f32 %v1161_v11, %v1160_v6  ;;  %v1163_v14 = vpop.f32.mrb[26].mxu1  ;;  %v1082_v15 = vpop.f32.mrb[27].mxu0 }
 0x12a   :  { %891 = vst.msk [vmem:[%s1640_s3 + $0x28] sm:$0xf] %vm880_vm0, %v1015_v8  ;;  %v1016_v17 = vpack.c.bf16 %v785_v9, %v785_v9  ;;  %v617_v18 = vadd.f32 %v1080_v10, %v1531_v16  ;;  %v1083_v19 = vadd.f32 %v1082_v15, %v1081_v12  ;;  %v1164_v20 = vpop.f32.mrb[27].mxu1 }
 0x12b   :  { %v1165_v21 = vadd.f32 %v1164_v20, %v1163_v14 }
 0x12c   :  { %892 = vst.msk [vmem:[%s1640_s3 + $0x2c] sm:$0xf] %vm880_vm0, %v1016_v17  ;;  %v737_v22 = vadd.f32 %v1162_v13, %v617_v18  ;;  %v620_v23 = vadd.f32 %v1083_v19, %v1531_v16 }
 0x12e   :  { %v786_v24 = vmax.f32 %v737_v22, 0.0  ;;  %v740_v25 = vadd.f32 %v1165_v21, %v620_v23  ;;  %v1084_v26 = vpop.f32.mrb[28].mxu0 }
 0x12f   :  { %v1166_v27 = vpop.f32.mrb[28].mxu1  ;;  %v1085_v28 = vpop.f32.mrb[29].mxu0 }
 0x130   :  { %v1017_v29 = vpack.c.bf16 %v786_v24, %v786_v24  ;;  %v787_v30 = vmax.f32 %v740_v25, 0.0  ;;  %v1086_v31 = vadd.f32 %v1085_v28, %v1084_v26  ;;  %v1167_v32 = vpop.f32.mrb[29].mxu1  ;;  %v1087_v33 = vpop.f32.mrb[30].mxu0 }
 0x131   :  { %v1168_v34 = vadd.f32 %v1167_v32, %v1166_v27  ;;  %v1169_v35 = vpop.f32.mrb[30].mxu1  ;;  %v1088_v36 = vpop.f32.mrb[31].mxu0 }
 0x132   :  { %893 = vst.msk [vmem:[%s1640_s3 + $0x30] sm:$0xf] %vm880_vm0, %v1017_v29  ;;  %v1018_v37 = vpack.c.bf16 %v787_v30, %v787_v30  ;;  %v625_v38 = vadd.f32 %v1086_v31, %v1531_v16  ;;  %v1089_v39 = vadd.f32 %v1088_v36, %v1087_v33  ;;  %v1170_v40 = vpop.f32.mrb[31].mxu1 }
 0x133   :  { %v1171_v41 = vadd.f32 %v1170_v40, %v1169_v35 }
 0x134   :  { %894 = vst.msk [vmem:[%s1640_s3 + $0x34] sm:$0xf] %vm880_vm0, %v1018_v37  ;;  %v745_v42 = vadd.f32 %v1168_v34, %v625_v38  ;;  %v628_v43 = vadd.f32 %v1089_v39, %v1531_v16 }
 0x136   :  { %v788_v44 = vmax.f32 %v745_v42, 0.0  ;;  %v748_v45 = vadd.f32 %v1171_v41, %v628_v43  ;;  %v1090_v46 = vpop.f32.mrb[32].mxu0 }
 0x137   :  { %v1172_v47 = vpop.f32.mrb[32].mxu1  ;;  %v1091_v48 = vpop.f32.mrb[33].mxu0 }
 0x138   :  { %v1019_v49 = vpack.c.bf16 %v788_v44, %v788_v44  ;;  %v789_v50 = vmax.f32 %v748_v45, 0.0  ;;  %v1092_v51 = vadd.f32 %v1091_v48, %v1090_v46  ;;  %v1173_v52 = vpop.f32.mrb[33].mxu1  ;;  %v1093_v53 = vpop.f32.mrb[34].mxu0 }
 0x139   :  { %v1174_v54 = vadd.f32 %v1173_v52, %v1172_v47  ;;  %v1175_v55 = vpop.f32.mrb[34].mxu1  ;;  %v1094_v56 = vpop.f32.mrb[35].mxu0 }
 0x13a   :  { %895 = vst.msk [vmem:[%s1640_s3 + $0x38] sm:$0xf] %vm880_vm0, %v1019_v49  ;;  %v1020_v57 = vpack.c.bf16 %v789_v50, %v789_v50  ;;  %v633_v58 = vadd.f32 %v1092_v51, %v1531_v16  ;;  %v1095_v59 = vadd.f32 %v1094_v56, %v1093_v53  ;;  %v1176_v60 = vpop.f32.mrb[35].mxu1 }
 0x13b   :  { %v1177_v61 = vadd.f32 %v1176_v60, %v1175_v55 }
 0x13c   :  { %896 = vst.msk [vmem:[%s1640_s3 + $0x3c] sm:$0xf] %vm880_vm0, %v1020_v57  ;;  %v753_v62 = vadd.f32 %v1174_v54, %v633_v58  ;;  %v636_v63 = vadd.f32 %v1095_v59, %v1531_v16 }
 0x13e   :  { %v790_v0 = vmax.f32 %v753_v62, 0.0  ;;  %v756_v1 = vadd.f32 %v1177_v61, %v636_v63  ;;  %v1096_v2 = vpop.f32.mrb[36].mxu0 }
 0x13f   :  { %v1178_v3 = vpop.f32.mrb[36].mxu1  ;;  %v1097_v4 = vpop.f32.mrb[37].mxu0 }
 0x140   :  { %v1021_v5 = vpack.c.bf16 %v790_v0, %v790_v0  ;;  %v791_v6 = vmax.f32 %v756_v1, 0.0  ;;  %v1098_v7 = vadd.f32 %v1097_v4, %v1096_v2  ;;  %v1179_v8 = vpop.f32.mrb[37].mxu1  ;;  %v1099_v9 = vpop.f32.mrb[38].mxu0 }
 0x141   :  { %v1180_v10 = vadd.f32 %v1179_v8, %v1178_v3  ;;  %v1181_v11 = vpop.f32.mrb[38].mxu1  ;;  %v1100_v12 = vpop.f32.mrb[39].mxu0 }
 0x142   :  { %897 = vst.msk [vmem:[%s1640_s3 + $0x40] sm:$0xf] %vm880_vm0, %v1021_v5  ;;  %v1022_v13 = vpack.c.bf16 %v791_v6, %v791_v6  ;;  %v641_v14 = vadd.f32 %v1098_v7, %v1531_v16  ;;  %v1101_v15 = vadd.f32 %v1100_v12, %v1099_v9  ;;  %v1182_v17 = vpop.f32.mrb[39].mxu1 }
 0x143   :  { %v1183_v18 = vadd.f32 %v1182_v17, %v1181_v11 }
 0x144   :  { %898 = vst.msk [vmem:[%s1640_s3 + $0x44] sm:$0xf] %vm880_vm0, %v1022_v13  ;;  %v761_v19 = vadd.f32 %v1180_v10, %v641_v14  ;;  %v644_v20 = vadd.f32 %v1101_v15, %v1531_v16 }
 0x146   :  { %v792_v21 = vmax.f32 %v761_v19, 0.0  ;;  %v764_v22 = vadd.f32 %v1183_v18, %v644_v20  ;;  %v1102_v23 = vpop.f32.mrb[40].mxu0 }
 0x147   :  { %v1184_v24 = vpop.f32.mrb[40].mxu1  ;;  %v1103_v25 = vpop.f32.mrb[41].mxu0 }
 0x148   :  { %v1023_v26 = vpack.c.bf16 %v792_v21, %v792_v21  ;;  %v793_v27 = vmax.f32 %v764_v22, 0.0  ;;  %v1104_v28 = vadd.f32 %v1103_v25, %v1102_v23  ;;  %v1185_v29 = vpop.f32.mrb[41].mxu1  ;;  %v1105_v30 = vpop.f32.mrb[42].mxu0 }
 0x149   :  { %v1186_v31 = vadd.f32 %v1185_v29, %v1184_v24  ;;  %v1187_v32 = vpop.f32.mrb[42].mxu1  ;;  %v1106_v33 = vpop.f32.mrb[43].mxu0 }
 0x14a   :  { %899 = vst.msk [vmem:[%s1640_s3 + $0x48] sm:$0xf] %vm880_vm0, %v1023_v26  ;;  %v1024_v34 = vpack.c.bf16 %v793_v27, %v793_v27  ;;  %v649_v35 = vadd.f32 %v1104_v28, %v1531_v16  ;;  %v1188_v36 = vpop.f32.mrb[43].mxu1 }
 0x14c   :  { %900 = vst.msk [vmem:[%s1640_s3 + $0x4c] sm:$0xf] %vm880_vm0, %v1024_v34  ;;  %v769_v37 = vadd.f32 %v1186_v31, %v649_v35 }
 0x14e   :  { %v794_v38 = vmax.f32 %v769_v37, 0.0 }
 0x150   :  { %v1025_v39 = vpack.c.bf16 %v794_v38, %v794_v38 }
 0x152   :  { %902 = vst.msk [vmem:[%s1640_s3 + $0x50] sm:$0x1] %vm901_vm1, %v1025_v39 }

// kernel: conv_forward.6
= control target key start
LH: loop header
LB: loop body
LE: loop exit
PB: predicated region body
PF: predicated region fallthrough
CT: control target
= control target key end

     0   :  { %v1248_v34 = vmov 0.0   ;;  %vm1249_vm0 = vmmov 0   ;;  %vm516_vm1 = vcmask 523264   ;;  %vm868_vm2 = vcmask 519168   ;;  %s1599_s1 = inlined_call_operand.vmem [shape: bf16[576,64], index: 1, kind: input, shape index: {}]   ;;  %s1600_s0 = inlined_call_operand.vmem [shape: bf16[98,576], index: 0, kind: input, shape index: {}]   ;;  %s1601_s2 = inlined_call_operand.vmem [shape: f32[1,64], index: 2, kind: input, shape index: {}]   ;;  %s1602_s3 = inlined_call_operand.vmem [shape: bf16[98,64], index: 3, kind: output, shape index: {}]  }
   0x1   :  { %v1165_v0 = vld [vmem:[%s1599_s1 + $0x40] sm:$0xff]   ;;  %v1169_v4 = vld [vmem:[%s1599_s1 + $0x48] sm:$0xff]   ;;  %v1173_v8 = vld [vmem:[%s1599_s1 + $0x50] sm:$0xff]   ;;  %vm881_vm3 = vcmask 516096  }
   0x2   :  { %v1166_v1 = vld [vmem:[%s1599_s1 + $0xc0] sm:$0xff]   ;;  %992 = vmatprep.subr.bf16.mxu0 %v1165_v0  ;;  %v1170_v5 = vld [vmem:[%s1599_s1 + $0xc8] sm:$0xff]   ;;  %v1174_v9 = vld [vmem:[%s1599_s1 + $0xd0] sm:$0xff]  }
   0x3   :  { %v1167_v2 = vld [vmem:[%s1599_s1] sm:$0xff]   ;;  %1050 = vmatprep.subr.bf16.mxu1 %v1166_v1  ;;  %v1171_v6 = vld [vmem:[%s1599_s1 + $0x8] sm:$0xff]   ;;  %v1175_v10 = vld [vmem:[%s1599_s1 + $0x10] sm:$0xff]  }
   0x4   :  { %v1168_v3 = vld [vmem:[%s1599_s1 + $0x80] sm:$0xff]   ;;  %993 = vmatpush3.bf16.msra.mxu0 %v1167_v2  ;;  %v1172_v7 = vld [vmem:[%s1599_s1 + $0x88] sm:$0xff]   ;;  %v1176_v11 = vld [vmem:[%s1599_s1 + $0x90] sm:$0xff]  }
   0x5   :  { %1051 = vmatpush3.bf16.msra.mxu1 %v1168_v3  ;;  %994 = vmatprep.subr.bf16.mxu0 %v1169_v4  ;;  %v1177_v12 = vld [vmem:[%s1599_s1 + $0x58] sm:$0xff]   ;;  %v1181_v16 = vld [vmem:[%s1599_s1 + $0x60] sm:$0xff]   ;;  %v1185_v20 = vld [vmem:[%s1599_s1 + $0x68] sm:$0xff]  }
   0x6   :  { %1052 = vmatprep.subr.bf16.mxu1 %v1170_v5  ;;  %v1178_v13 = vld [vmem:[%s1599_s1 + $0xd8] sm:$0xff]   ;;  %v1182_v17 = vld [vmem:[%s1599_s1 + $0xe0] sm:$0xff]   ;;  %v1186_v21 = vld [vmem:[%s1599_s1 + $0xe8] sm:$0xff]  }
   0x7   :  { %v1179_v14 = vld [vmem:[%s1599_s1 + $0x18] sm:$0xff]   ;;  %v1183_v18 = vld [vmem:[%s1599_s1 + $0x20] sm:$0xff]   ;;  %v1187_v22 = vld [vmem:[%s1599_s1 + $0x28] sm:$0xff]  }
   0x8   :  { %995 = vmatpush3.bf16.msra.mxu0 %v1171_v6  ;;  %v1180_v15 = vld [vmem:[%s1599_s1 + $0x98] sm:$0xff]   ;;  %v1184_v19 = vld [vmem:[%s1599_s1 + $0xa0] sm:$0xff]   ;;  %v1188_v23 = vld [vmem:[%s1599_s1 + $0xa8] sm:$0xff]  }
   0x9   :  { %1053 = vmatpush3.bf16.msra.mxu1 %v1172_v7  ;;  %996 = vmatprep.subr.bf16.mxu0 %v1173_v8  ;;  %v1189_v24 = vld [vmem:[%s1599_s1 + $0x70] sm:$0xff]   ;;  %v1193_v28 = vld [vmem:[%s1599_s1 + $0x78] sm:$0xff]   ;;  %v1202_v36 = vld [vmem:[%s1600_s0 + $0xc] ss:$20 sps:$4 sm:$0xff]  }
   0xa   :  { %1054 = vmatprep.subr.bf16.mxu1 %v1174_v9  ;;  %v1190_v25 = vld [vmem:[%s1599_s1 + $0xf0] sm:$0xff]   ;;  %v1194_v29 = vld [vmem:[%s1599_s1 + $0xf8] sm:$0xff]   ;;  %v1203_v37 = vld [vmem:[%s1599_s1 + $0x100] sm:$0xff]   ;;  %658 = vmatprep.mubr.bf16.mxu1 %v1202_v36 }
   0xb   :  { %v1191_v26 = vld [vmem:[%s1599_s1 + $0x30] sm:$0xff]   ;;  %v1195_v30 = vld [vmem:[%s1599_s1 + $0x38] sm:$0xff]   ;;  %v1204_v38 = vld [vmem:[%s1600_s0 + $0x2c] ss:$20 sps:$4 sm:$0xff]  }
   0xc   :  { %997 = vmatpush3.bf16.msra.mxu0 %v1175_v10  ;;  %v1192_v27 = vld [vmem:[%s1599_s1 + $0xb0] sm:$0xff]   ;;  %v1196_v31 = vld [vmem:[%s1599_s1 + $0xb8] sm:$0xff]   ;;  %v1214_v43 = vld [vmem:[%s1599_s1 + $0x108] sm:$0xff]  }
   0xd   :  { %1055 = vmatpush3.bf16.msra.mxu1 %v1176_v11  ;;  %998 = vmatprep.subr.bf16.mxu0 %v1177_v12  ;;  %v1197_v32 = vld [vmem:[%s1600_s0] ss:$20 sps:$4 sm:$0xff]   ;;  %v1199_v33 = vld [vmem:[%s1600_s0 + $0x4] ss:$20 sps:$4 sm:$0xff]   ;;  %v1200_v35 = vld [vmem:[%s1600_s0 + $0x8] ss:$20 sps:$4 sm:$0xff]  }
   0xe   :  { %1056 = vmatprep.subr.bf16.mxu1 %v1178_v13  ;;  %570 = vmatprep.mubr.bf16.mxu0 %v1199_v33  ;;  %v1206_v39 = vld [vmem:[%s1600_s0 + $0x34] ss:$20 sps:$4 sm:$0xff]   ;;  %v1209_v41 = vld [vmem:[%s1600_s0 + $0x30] ss:$20 sps:$4 sm:$0xff]   ;;  %v1216_v47 = vld [vmem:[%s1600_s0 + $0x58] ss:$20 sps:$4 sm:$0xff]  }
   0xf   :  { %v1208_v40 = vld [vmem:[%s1600_s0 + $0x28] ss:$20 sps:$4 sm:$0xff]   ;;  %v1223_v45 = vld [vmem:[%s1599_s1 + $0x110] sm:$0xff]   ;;  %v1219_v49 = vld [vmem:[%s1600_s0 + $0x84] ss:$20 sps:$4 sm:$0xff]  }
  0x10   :  { %999 = vmatpush3.bf16.msra.mxu0 %v1179_v14  ;;  %v1210_v42 = vld [vmem:[%s1600_s0 + $0x54] ss:$20 sps:$4 sm:$0xff]   ;;  %v1212_v44 = vld [vmem:[%s1600_s0 + $0x5c] ss:$20 sps:$4 sm:$0xff]   ;;  %v1221_v51 = vld [vmem:[%s1600_s0 + $0x78] ss:$20 sps:$4 sm:$0xff]  }
  0x11   :  { %1057 = vmatpush3.bf16.msra.mxu1 %v1180_v15  ;;  %1000 = vmatprep.subr.bf16.mxu0 %v1181_v16  ;;  %v1215_v46 = vld [vmem:[%s1600_s0 + $0x50] ss:$20 sps:$4 sm:$0xff]   ;;  %v1236_v50 = vld [vmem:[%s1599_s1 + $0x118] sm:$0xff]   ;;  %v1222_v52 = vld [vmem:[%s1600_s0 + $0x80] ss:$20 sps:$4 sm:$0xff]  }
  0x12   :  { %1058 = vmatprep.subr.bf16.mxu1 %v1182_v17  ;;  %v1217_v48 = vld [vmem:[%s1600_s0 + $0x7c] ss:$20 sps:$4 sm:$0xff]   ;;  %v1224_v53 = vld [vmem:[%s1600_s0 + $0xa4] ss:$20 sps:$4 sm:$0xff]   ;;  %v1226_v54 = vld [vmem:[%s1600_s0 + $0xac] ss:$20 sps:$4 sm:$0xff]  }
  0x13   :  { %v1228_v55 = vld [vmem:[%s1600_s0 + $0xa0] ss:$20 sps:$4 sm:$0xff]   ;;  %v1229_v56 = vld [vmem:[%s1600_s0 + $0xa8] ss:$20 sps:$4 sm:$0xff]   ;;  %v1235_v62 = vld [vmem:[%s1600_s0 + $0xd0] ss:$20 sps:$4 sm:$0xff]  }
  0x14   :  { %1001 = vmatpush3.bf16.msra.mxu0 %v1183_v18  ;;  %v1230_v57 = vld [vmem:[%s1600_s0 + $0xcc] ss:$20 sps:$4 sm:$0xff]   ;;  %v1232_v58 = vld [vmem:[%s1600_s0 + $0xd4] ss:$20 sps:$4 sm:$0xff]   ;;  %v52_v60 = vld [vmem:[%s1600_s0 + $0xf8] sm:$0x11] }
  0x15   :  { %1059 = vmatpush3.bf16.msra.mxu1 %v1184_v19  ;;  %1002 = vmatprep.subr.bf16.mxu0 %v1185_v20  ;;  %v51_v59 = vld [vmem:[%s1600_s0 + $0xf0] sm:$0x11]  ;;  %v1234_v61 = vld [vmem:[%s1600_s0 + $0xc8] ss:$20 sps:$4 sm:$0xff]   ;;  %v921_v0 = vcombine.high %v52_v60, %v52_v60  ;;  %v920_v2 = vcombine.low %v52_v60, %v52_v60  ;;  %v1243_v5 = vld [vmem:[%s1600_s0 + $0x38] ss:$20 sps:$4 sm:$0xff]  }
  0x16   :  { %1060 = vmatprep.subr.bf16.mxu1 %v1186_v21  ;;  %v919_v63 = vcombine.high %v51_v59, %v51_v59  ;;  %v918_v1 = vcombine.low %v51_v59, %v51_v59  ;;  %v1241_v3 = vld [vmem:[%s1600_s0 + $0x10] ss:$20 sps:$4 sm:$0xff]   ;;  %v1244_v6 = vld [vmem:[%s1600_s0 + $0xd8] ss:$20 sps:$4 sm:$0xff]   ;;  %v1245_v7 = vld [vmem:[%s1600_s0 + $0x60] ss:$20 sps:$4 sm:$0xff]  }
  0x17   :  { %v1242_v4 = vld [vmem:[%s1600_s0 + $0xb0] ss:$20 sps:$4 sm:$0xff]   ;;  %v1246_v8 = vld [vmem:[%s1600_s0 + $0x100] ss:$0 sps:$4 sm:$0x11]  }
  0x18   :  { %1003 = vmatpush3.bf16.msra.mxu0 %v1187_v22  ;;  %v1247_v9 = vld [vmem:[%s1600_s0 + $0x88] ss:$20 sps:$4 sm:$0xff]   ;;  %v1509_v11 = vld [vmem:[%s1601_s2] ss:$0 sm:$0xff] }
  0x19   :  { %1061 = vmatpush3.bf16.msra.mxu1 %v1188_v23  ;;  %1004 = vmatprep.subr.bf16.mxu0 %v1189_v24 }
  0x1a   :  { %1062 = vmatprep.subr.bf16.mxu1 %v1190_v25 }
  0x1c   :  { %1005 = vmatpush3.bf16.msra.mxu0 %v1191_v26 }
  0x1d   :  { %1063 = vmatpush3.bf16.msra.mxu1 %v1192_v27  ;;  %1006 = vmatprep.subr.bf16.mxu0 %v1193_v28 }
  0x1e   :  { %1064 = vmatprep.subr.bf16.mxu1 %v1194_v29 }
  0x20   :  { %1007 = vmatpush3.bf16.msra.mxu0 %v1195_v30 }
  0x21   :  { %1065 = vmatpush3.bf16.msra.mxu1 %v1196_v31  ;;  %1119 = vmatprep.subr.bf16.mxu0 %v1248_v34 }
  0x22   :  { %1155 = vmatprep.subr.bf16.mxu1 %v1248_v34 }
  0x23   :  { %571 = vmatmul.mubr.bf16.vlgmr.msra.gmra.mrb[0].mxu0 %v1197_v32 }
  0x24   :  { %659 = vmatmul.mubr.bf16.vlgmr.msra.gmra.mrb[0].mxu1 %v1200_v35  ;;  %1120 = vmatpush3.bf16.msra.mxu0 %v1203_v37 }
  0x25   :  { %578 = vmatprep.mubr.bf16.mxu0 %v1204_v38  ;;  %1159 = vmatpush3.bf16.msra.mxu1 %v1203_v37 }
  0x26   :  { %666 = vmatprep.mubr.bf16.mxu1 %v1206_v39  ;;  %1121 = vmatprep.subr.bf16.mxu0 %v1248_v34 }
  0x27   :  { %1156 = vmatprep.subr.bf16.mxu1 %v1248_v34 }
  0x28   :  { %1122 = vmatpush3.bf16.msra.mxu0 %v1214_v43 }
  0x29   :  { %1160 = vmatpush3.bf16.msra.mxu1 %v1214_v43  ;;  %1123 = vmatprep.subr.bf16.mxu0 %v1248_v34 }
  0x2a   :  { %1157 = vmatprep.subr.bf16.mxu1 %v1248_v34 }
  0x2b   :  { %579 = vmatmul.mubr.bf16.gmra.mrb[4].mxu0 %v1208_v40 }
  0x2c   :  { %667 = vmatmul.mubr.bf16.gmra.mrb[4].mxu1 %v1209_v41  ;;  %586 = vmatprep.mubr.bf16.mxu0 %v1210_v42 }
  0x2d   :  { %674 = vmatprep.mubr.bf16.mxu1 %v1212_v44  ;;  %1124 = vmatpush3.bf16.msra.mxu0 %v1223_v45 }
  0x2e   :  { %1161 = vmatpush3.bf16.msra.mxu1 %v1223_v45  ;;  %1125 = vmatprep.subr.bf16.mxu0 %v1248_v34 }
  0x2f   :  { %1158 = vmatprep.subr.bf16.mxu1 %v1248_v34 }
  0x31   :  { %1126 = vmatpush3.bf16.msra.mxu0 %v1236_v50 }
  0x32   :  { %1162 = vmatpush3.bf16.msra.mxu1 %v1236_v50 }
  0x33   :  { %587 = vmatmul.mubr.bf16.gmra.mrb[8].mxu0 %v1215_v46 }
  0x34   :  { %675 = vmatmul.mubr.bf16.gmra.mrb[8].mxu1 %v1216_v47  ;;  %594 = vmatprep.mubr.bf16.mxu0 %v1217_v48 }
  0x35   :  { %682 = vmatprep.mubr.bf16.mxu1 %v1219_v49 }
  0x3b   :  { %595 = vmatmul.mubr.bf16.gmra.mrb[12].mxu0 %v1221_v51 }
  0x3c   :  { %683 = vmatmul.mubr.bf16.gmra.mrb[12].mxu1 %v1222_v52  ;;  %602 = vmatprep.mubr.bf16.mxu0 %v1224_v53 }
  0x3d   :  { %690 = vmatprep.mubr.bf16.mxu1 %v1226_v54 }
  0x43   :  { %603 = vmatmul.mubr.bf16.gmra.mrb[16].mxu0 %v1228_v55 }
  0x44   :  { %691 = vmatmul.mubr.bf16.gmra.mrb[16].mxu1 %v1229_v56  ;;  %610 = vmatprep.mubr.bf16.mxu0 %v1230_v57 }
  0x45   :  { %698 = vmatprep.mubr.bf16.mxu1 %v1232_v58 }
  0x4b   :  { %611 = vmatmul.mubr.bf16.gmra.mrb[20].mxu0 %v1234_v61 }
  0x4c   :  { %699 = vmatmul.mubr.bf16.gmra.mrb[20].mxu1 %v1235_v62  ;;  %618 = vmatprep.mubr.bf16.mxu0 %v919_v63 }
  0x4d   :  { %706 = vmatprep.mubr.bf16.mxu1 %v921_v0 }
  0x53   :  { %619 = vmatmul.mubr.bf16.gmra.mrb[24].mxu0 %v918_v1 }
  0x54   :  { %707 = vmatmul.mubr.bf16.gmra.mrb[24].mxu1 %v920_v2  ;;  %1127 = vmatprep.mubr.msk.bf16.mxu0 %vm1249_vm0, %v1248_v34 }
  0x55   :  { %1143 = vmatprep.mubr.msk.bf16.mxu1 %vm1249_vm0, %v1248_v34 }
  0x5b   :  { %1128 = vmatmul.mubr.msk.bf16.vlgmr.msra.gmra.mrb[28].mxu0 %vm516_vm1, %v1241_v3 }
  0x5c   :  { %1144 = vmatmul.mubr.msk.bf16.vlgmr.msra.gmra.mrb[28].mxu1 %vm516_vm1, %v1242_v4  ;;  %1131 = vmatprep.mubr.msk.bf16.mxu0 %vm1249_vm0, %v1248_v34 }
  0x5d   :  { %1147 = vmatprep.mubr.msk.bf16.mxu1 %vm1249_vm0, %v1248_v34 }
  0x63   :  { %1132 = vmatmul.mubr.msk.bf16.gmra.mrb[32].mxu0 %vm516_vm1, %v1243_v5 }
  0x64   :  { %1148 = vmatmul.mubr.msk.bf16.gmra.mrb[32].mxu1 %vm516_vm1, %v1244_v6  ;;  %1135 = vmatprep.mubr.msk.bf16.mxu0 %vm1249_vm0, %v1248_v34 }
  0x65   :  { %1151 = vmatprep.mubr.msk.bf16.mxu1 %vm1249_vm0, %v1248_v34 }
  0x6b   :  { %1136 = vmatmul.mubr.msk.bf16.gmra.mrb[36].mxu0 %vm516_vm1, %v1245_v7 }
  0x6c   :  { %1152 = vmatmul.mubr.msk.bf16.gmra.mrb[36].mxu1 %vm516_vm1, %v1246_v8  ;;  %1139 = vmatprep.mubr.msk.bf16.mxu0 %vm1249_vm0, %v1248_v34 }
  0x73   :  { %1140 = vmatmul.mubr.msk.bf16.gmra.mrb[40].mxu0 %vm516_vm1, %v1247_v9 }
  0xf6   :  { %v1008_v10 = vpop.f32.mrb[0].mxu0 }
  0xf7   :  { %v1009_v12 = vpop.f32.mrb[1].mxu0  ;;  %v1066_v13 = vpop.f32.mrb[0].mxu1 }
  0xf8   :  { %v1010_v14 = vadd.f32 %v1009_v12, %v1008_v10  ;;  %v1011_v15 = vpop.f32.mrb[2].mxu0  ;;  %v1067_v16 = vpop.f32.mrb[1].mxu1 }
  0xf9   :  { %v1012_v17 = vpop.f32.mrb[3].mxu0  ;;  %v1068_v18 = vadd.f32 %v1067_v16, %v1066_v13  ;;  %v1069_v19 = vpop.f32.mrb[2].mxu1 }
  0xfa   :  { %v573_v20 = vadd.f32 %v1010_v14, %v1509_v11  ;;  %v1013_v21 = vadd.f32 %v1012_v17, %v1011_v15  ;;  %v1070_v22 = vpop.f32.mrb[3].mxu1 }
  0xfb   :  { %v1071_v23 = vadd.f32 %v1070_v22, %v1069_v19 }
  0xfc   :  { %v576_v24 = vadd.f32 %v1013_v21, %v1509_v11  ;;  %v1513_v25 = vadd.f32 %v1068_v18, %v573_v20 }
  0xfe   :  { %v1014_v26 = vpop.f32.mrb[4].mxu0  ;;  %v1515_v27 = vadd.f32 %v1071_v23, %v576_v24 }
  0xff   :  { %v1015_v28 = vpop.f32.mrb[5].mxu0  ;;  %v1072_v29 = vpop.f32.mrb[4].mxu1 }
 0x100   :  { %v1016_v30 = vadd.f32 %v1015_v28, %v1014_v26  ;;  %v1017_v31 = vpop.f32.mrb[6].mxu0  ;;  %v1073_v32 = vpop.f32.mrb[5].mxu1 }
 0x101   :  { %v1018_v33 = vpop.f32.mrb[7].mxu0  ;;  %v1074_v34 = vadd.f32 %v1073_v32, %v1072_v29  ;;  %v1075_v35 = vpop.f32.mrb[6].mxu1 }
 0x102   :  { %v581_v36 = vadd.f32 %v1016_v30, %v1509_v11  ;;  %v1019_v37 = vadd.f32 %v1018_v33, %v1017_v31  ;;  %v1076_v38 = vpop.f32.mrb[7].mxu1 }
 0x103   :  { %v1077_v39 = vadd.f32 %v1076_v38, %v1075_v35 }
 0x104   :  { %v584_v40 = vadd.f32 %v1019_v37, %v1509_v11  ;;  %v1519_v41 = vadd.f32 %v1074_v34, %v581_v36 }
 0x106   :  { %v1020_v42 = vpop.f32.mrb[8].mxu0  ;;  %v1521_v43 = vadd.f32 %v1077_v39, %v584_v40 }
 0x107   :  { %v1021_v44 = vpop.f32.mrb[9].mxu0  ;;  %v1078_v45 = vpop.f32.mrb[8].mxu1 }
 0x108   :  { %v1022_v46 = vadd.f32 %v1021_v44, %v1020_v42  ;;  %v1023_v47 = vpop.f32.mrb[10].mxu0  ;;  %v1079_v48 = vpop.f32.mrb[9].mxu1 }
 0x109   :  { %v1024_v49 = vpop.f32.mrb[11].mxu0  ;;  %v1080_v50 = vadd.f32 %v1079_v48, %v1078_v45  ;;  %v1081_v51 = vpop.f32.mrb[10].mxu1 }
 0x10a   :  { %v589_v52 = vadd.f32 %v1022_v46, %v1509_v11  ;;  %v1025_v53 = vadd.f32 %v1024_v49, %v1023_v47  ;;  %v1082_v54 = vpop.f32.mrb[11].mxu1 }
 0x10b   :  { %v1083_v55 = vadd.f32 %v1082_v54, %v1081_v51 }
 0x10c   :  { %v592_v56 = vadd.f32 %v1025_v53, %v1509_v11  ;;  %v1525_v57 = vadd.f32 %v1080_v50, %v589_v52 }
 0x10e   :  { %v1026_v58 = vpop.f32.mrb[12].mxu0  ;;  %v1527_v59 = vadd.f32 %v1083_v55, %v592_v56 }
 0x10f   :  { %v1027_v60 = vpop.f32.mrb[13].mxu0  ;;  %v1084_v61 = vpop.f32.mrb[12].mxu1 }
 0x110   :  { %v1028_v62 = vadd.f32 %v1027_v60, %v1026_v58  ;;  %v1029_v63 = vpop.f32.mrb[14].mxu0  ;;  %v1085_v0 = vpop.f32.mrb[13].mxu1 }
 0x111   :  { %v1030_v1 = vpop.f32.mrb[15].mxu0  ;;  %v1086_v2 = vadd.f32 %v1085_v0, %v1084_v61  ;;  %v1087_v3 = vpop.f32.mrb[14].mxu1 }
 0x112   :  { %v597_v4 = vadd.f32 %v1028_v62, %v1509_v11  ;;  %v1031_v5 = vadd.f32 %v1030_v1, %v1029_v63  ;;  %v1088_v6 = vpop.f32.mrb[15].mxu1 }
 0x113   :  { %v1089_v7 = vadd.f32 %v1088_v6, %v1087_v3 }
 0x114   :  { %v600_v8 = vadd.f32 %v1031_v5, %v1509_v11  ;;  %v1531_v9 = vadd.f32 %v1086_v2, %v597_v4 }
 0x116   :  { %v1032_v10 = vpop.f32.mrb[16].mxu0  ;;  %v1533_v12 = vadd.f32 %v1089_v7, %v600_v8 }
 0x117   :  { %v1033_v13 = vpop.f32.mrb[17].mxu0  ;;  %v1090_v14 = vpop.f32.mrb[16].mxu1 }
 0x118   :  { %v1034_v15 = vadd.f32 %v1033_v13, %v1032_v10  ;;  %v1035_v16 = vpop.f32.mrb[18].mxu0  ;;  %v1091_v17 = vpop.f32.mrb[17].mxu1 }
 0x119   :  { %v1036_v18 = vpop.f32.mrb[19].mxu0  ;;  %v1092_v19 = vadd.f32 %v1091_v17, %v1090_v14  ;;  %v1093_v20 = vpop.f32.mrb[18].mxu1 }
 0x11a   :  { %v605_v21 = vadd.f32 %v1034_v15, %v1509_v11  ;;  %v1037_v22 = vadd.f32 %v1036_v18, %v1035_v16  ;;  %v1094_v23 = vpop.f32.mrb[19].mxu1 }
 0x11b   :  { %v1095_v24 = vadd.f32 %v1094_v23, %v1093_v20 }
 0x11c   :  { %v608_v26 = vadd.f32 %v1037_v22, %v1509_v11  ;;  %v693_v28 = vadd.f32 %v1092_v19, %v605_v21 }
 0x11e   :  { %v1038_v29 = vpop.f32.mrb[20].mxu0  ;;  %v696_v30 = vadd.f32 %v1095_v24, %v608_v26 }
 0x11f   :  { %v1039_v31 = vpop.f32.mrb[21].mxu0  ;;  %v1096_v32 = vpop.f32.mrb[20].mxu1 }
 0x120   :  { %v1040_v33 = vadd.f32 %v1039_v31, %v1038_v29  ;;  %v1041_v34 = vpop.f32.mrb[22].mxu0  ;;  %v1097_v35 = vpop.f32.mrb[21].mxu1 }
 0x121   :  { %v1042_v36 = vpop.f32.mrb[23].mxu0  ;;  %v1098_v37 = vadd.f32 %v1097_v35, %v1096_v32  ;;  %v1099_v38 = vpop.f32.mrb[22].mxu1 }
 0x122   :  { %v613_v39 = vadd.f32 %v1040_v33, %v1509_v11  ;;  %v1043_v40 = vadd.f32 %v1042_v36, %v1041_v34  ;;  %v1100_v42 = vpop.f32.mrb[23].mxu1 }
 0x123   :  { %v1101_v44 = vadd.f32 %v1100_v42, %v1099_v38 }
 0x124   :  { %v616_v45 = vadd.f32 %v1043_v40, %v1509_v11  ;;  %v701_v46 = vadd.f32 %v1098_v37, %v613_v39 }
 0x126   :  { %v1044_v47 = vpop.f32.mrb[24].mxu0  ;;  %v704_v48 = vadd.f32 %v1101_v44, %v616_v45 }
 0x127   :  { %v1045_v49 = vpop.f32.mrb[25].mxu0  ;;  %v1102_v50 = vpop.f32.mrb[24].mxu1 }
 0x128   :  { %v1046_v51 = vadd.f32 %v1045_v49, %v1044_v47  ;;  %v1047_v52 = vpop.f32.mrb[26].mxu0  ;;  %v1103_v53 = vpop.f32.mrb[25].mxu1 }
 0x129   :  { %v1048_v54 = vpop.f32.mrb[27].mxu0  ;;  %v1104_v55 = vadd.f32 %v1103_v53, %v1102_v50  ;;  %v1105_v56 = vpop.f32.mrb[26].mxu1 }
 0x12a   :  { %v621_v58 = vadd.f32 %v1046_v51, %v1509_v11  ;;  %v1106_v60 = vpop.f32.mrb[27].mxu1 }
 0x12c   :  { %v709_v61 = vadd.f32 %v1104_v55, %v621_v58 }
 0x12e   :  { %v748_v62 = vpop.f32.mrb[28].mxu0 }
 0x12f   :  { %v749_v63 = vadd.f32 %v748_v62, %v1513_v25  ;;  %v780_v0 = vpop.f32.mrb[28].mxu1  ;;  %v1129_v1 = vpop.f32.mrb[29].mxu0 }
 0x130   :  { %v781_v2 = vadd.f32 %v780_v0, %v693_v28  ;;  %v1145_v3 = vpop.f32.mrb[29].mxu1  ;;  %v751_v4 = vpop.f32.mrb[30].mxu0 }
 0x131   :  { %v802_v5 = vmax.f32 %v749_v63, 0.0  ;;  %v752_v6 = vadd.f32 %v751_v4, %v1515_v27  ;;  %v783_v7 = vpop.f32.mrb[30].mxu1  ;;  %v1130_v8 = vpop.f32.mrb[31].mxu0 }
 0x132   :  { %v810_v10 = vmax.f32 %v781_v2, 0.0  ;;  %v784_v13 = vadd.f32 %v783_v7, %v696_v30  ;;  %v1146_v14 = vpop.f32.mrb[31].mxu1 }
 0x133   :  { %v979_v11 = vpack.c.bf16 %v802_v5, %v802_v5  ;;  %v803_v15 = vmax.f32 %v752_v6, 0.0 }
 0x134   :  { %v987_v16 = vpack.c.bf16 %v810_v10, %v810_v10  ;;  %v811_v17 = vmax.f32 %v784_v13, 0.0 }
 0x135   :  { %869 = vst.msk [vmem:[%s1602_s3] sm:$0xf] %vm868_vm2, %v979_v11  ;;  %v980_v25 = vpack.c.bf16 %v803_v15, %v803_v15 }
 0x136   :  { %877 = vst.msk [vmem:[%s1602_s3 + $0x20] sm:$0xf] %vm868_vm2, %v987_v16  ;;  %v988_v27 = vpack.c.bf16 %v811_v17, %v811_v17  ;;  %v756_v18 = vpop.f32.mrb[32].mxu0 }
 0x137   :  { %870 = vst.msk [vmem:[%s1602_s3 + $0x4] sm:$0xf] %vm868_vm2, %v980_v25  ;;  %v757_v19 = vadd.f32 %v756_v18, %v1519_v41  ;;  %v788_v20 = vpop.f32.mrb[32].mxu1  ;;  %v1133_v21 = vpop.f32.mrb[33].mxu0 }
 0x138   :  { %878 = vst.msk [vmem:[%s1602_s3 + $0x24] sm:$0xf] %vm868_vm2, %v988_v27  ;;  %v789_v22 = vadd.f32 %v788_v20, %v701_v46  ;;  %v1149_v23 = vpop.f32.mrb[33].mxu1  ;;  %v759_v24 = vpop.f32.mrb[34].mxu0 }
 0x139   :  { %v804_v26 = vmax.f32 %v757_v19, 0.0  ;;  %v760_v28 = vadd.f32 %v759_v24, %v1521_v43  ;;  %v791_v29 = vpop.f32.mrb[34].mxu1  ;;  %v1134_v30 = vpop.f32.mrb[35].mxu0 }
 0x13a   :  { %v812_v31 = vmax.f32 %v789_v22, 0.0  ;;  %v792_v32 = vadd.f32 %v791_v29, %v704_v48  ;;  %v1150_v33 = vpop.f32.mrb[35].mxu1 }
 0x13b   :  { %v981_v34 = vpack.c.bf16 %v804_v26, %v804_v26  ;;  %v805_v41 = vmax.f32 %v760_v28, 0.0 }
 0x13c   :  { %v989_v35 = vpack.c.bf16 %v812_v31, %v812_v31  ;;  %v813_v36 = vmax.f32 %v792_v32, 0.0 }
 0x13d   :  { %871 = vst.msk [vmem:[%s1602_s3 + $0x8] sm:$0xf] %vm868_vm2, %v981_v34  ;;  %v982_v37 = vpack.c.bf16 %v805_v41, %v805_v41 }
 0x13e   :  { %879 = vst.msk [vmem:[%s1602_s3 + $0x28] sm:$0xf] %vm868_vm2, %v989_v35  ;;  %v990_v43 = vpack.c.bf16 %v813_v36, %v813_v36  ;;  %v764_v38 = vpop.f32.mrb[36].mxu0 }
 0x13f   :  { %872 = vst.msk [vmem:[%s1602_s3 + $0xc] sm:$0xf] %vm868_vm2, %v982_v37  ;;  %v765_v39 = vadd.f32 %v764_v38, %v1525_v57  ;;  %v796_v40 = vpop.f32.mrb[36].mxu1  ;;  %v1137_v42 = vpop.f32.mrb[37].mxu0 }
 0x140   :  { %880 = vst.msk [vmem:[%s1602_s3 + $0x2c] sm:$0xf] %vm868_vm2, %v990_v43  ;;  %v797_v44 = vadd.f32 %v796_v40, %v709_v61  ;;  %v767_v45 = vpop.f32.mrb[38].mxu0  ;;  %v1153_v46 = vpop.f32.mrb[37].mxu1 }
 0x141   :  { %v806_v47 = vmax.f32 %v765_v39, 0.0  ;;  %v768_v48 = vadd.f32 %v767_v45, %v1527_v59  ;;  %v1138_v49 = vpop.f32.mrb[39].mxu0  ;;  %v799_v50 = vpop.f32.mrb[38].mxu1 }
 0x142   :  { %v814_v51 = vmax.f32 %v797_v44, 0.0  ;;  %v1154_v52 = vpop.f32.mrb[39].mxu1 }
 0x143   :  { %v983_v53 = vpack.c.bf16 %v806_v47, %v806_v47  ;;  %v807_v57 = vmax.f32 %v768_v48, 0.0 }
 0x144   :  { %v991_v54 = vpack.c.bf16 %v814_v51, %v814_v51 }
 0x145   :  { %873 = vst.msk [vmem:[%s1602_s3 + $0x10] sm:$0xf] %vm868_vm2, %v983_v53  ;;  %v984_v55 = vpack.c.bf16 %v807_v57, %v807_v57 }
 0x146   :  { %882 = vst.msk [vmem:[%s1602_s3 + $0x30] sm:$0x1] %vm881_vm3, %v991_v54  ;;  %v772_v56 = vpop.f32.mrb[40].mxu0 }
 0x147   :  { %874 = vst.msk [vmem:[%s1602_s3 + $0x14] sm:$0xf] %vm868_vm2, %v984_v55  ;;  %v773_v59 = vadd.f32 %v772_v56, %v1531_v9  ;;  %v1141_v58 = vpop.f32.mrb[41].mxu0 }
 0x148   :  { %v775_v60 = vpop.f32.mrb[42].mxu0 }
 0x149   :  { %v808_v61 = vmax.f32 %v773_v59, 0.0  ;;  %v776_v62 = vadd.f32 %v775_v60, %v1533_v12  ;;  %v1142_v63 = vpop.f32.mrb[43].mxu0 }
 0x14b   :  { %v985_v0 = vpack.c.bf16 %v808_v61, %v808_v61  ;;  %v809_v1 = vmax.f32 %v776_v62, 0.0 }
 0x14d   :  { %875 = vst.msk [vmem:[%s1602_s3 + $0x18] sm:$0xf] %vm868_vm2, %v985_v0  ;;  %v986_v2 = vpack.c.bf16 %v809_v1, %v809_v1 }
 0x14f   :  { %876 = vst.msk [vmem:[%s1602_s3 + $0x1c] sm:$0xf] %vm868_vm2, %v986_v2 }

// kernel: conv_forward.7
= control target key start
LH: loop header
LB: loop body
LE: loop exit
PB: predicated region body
PF: predicated region fallthrough
CT: control target
= control target key end

     0   :  { %13 = vsyncpa [#allocation3], 0  ;;  %v818_v36 = vlaneseq  ;;  %v10781_v37 = vmov 1966171168   ;;  %s13897_s0 = inlined_call_operand.vmem [shape: bf16[2,3136], index: 0, kind: input, shape index: {}]   ;;  %s13898_s1 = inlined_call_operand.vmem [shape: bf16[3136,512], index: 1, kind: input, shape index: {}]   ;;  %s13899_s2 = inlined_call_operand.vmem [shape: f32[1,512], index: 2, kind: input, shape index: {}]   ;;  %s13900_s3 = inlined_call_operand.vmem [shape: bf16[5,512,6], index: 3, kind: input, shape index: {}]   ;;  %s13901_s4 = inlined_call_operand.vmem [shape: f32[5,1,6], index: 4, kind: input, shape index: {}]   ;;  %s13902_s5 = inlined_call_operand.vmem [shape: f32[5,2,1], index: 5, kind: input, shape index: {}]   ;;  %s13903_s6 = inlined_call_operand.hbm [shape: f32[2,6], index: 6, kind: output, shape index: {0}]   ;;  %s13904_s7 = inlined_call_operand.hbm [shape: f32[2,6], index: 7, kind: output, shape index: {1}]  }
   0x1   :  { %v9386_v0 = vld [vmem:[%s13898_s1 + $0x4] ss:$16 sps:$4 sm:$0xff]   ;;  %v9388_v1 = vld [vmem:[%s13898_s1 + $0xc] ss:$16 sps:$4 sm:$0xff]   ;;  %v9390_v2 = vld [vmem:[%s13898_s1] ss:$16 sps:$4 sm:$0xff]   ;;  %v844_v38 = vunpack.c.l.s4 %v10781_v37 }
   0x2   :  { %4951 = vmatprep.subr.bf16.mxu0 %v9386_v0  ;;  %v9391_v3 = vld [vmem:[%s13898_s1 + $0x8] ss:$16 sps:$4 sm:$0xff]   ;;  %5484 = vmatprep.subr.bf16.mxu1 %v9388_v1  ;;  %v9392_v4 = vld [vmem:[%s13898_s1 + $0x24] ss:$16 sps:$4 sm:$0xff]   ;;  %v9394_v5 = vld [vmem:[%s13898_s1 + $0x2c] ss:$16 sps:$4 sm:$0xff]  }
   0x3   :  { %4952 = vmatpush1.bf16.msra.mxu0 %v9390_v2  ;;  %5485 = vmatpush1.bf16.msra.mxu1 %v9391_v3  ;;  %v9396_v6 = vld [vmem:[%s13898_s1 + $0x20] ss:$16 sps:$4 sm:$0xff]   ;;  %v9397_v7 = vld [vmem:[%s13898_s1 + $0x28] ss:$16 sps:$4 sm:$0xff]   ;;  %v9398_v8 = vld [vmem:[%s13898_s1 + $0x44] ss:$16 sps:$4 sm:$0xff]   ;;  %v845_v43 = vunpack.c.0.s8 %v844_v38 }
   0x4   :  { %4953 = vmatprep.subr.bf16.mxu0 %v9392_v4  ;;  %5486 = vmatprep.subr.bf16.mxu1 %v9394_v5  ;;  %v9400_v9 = vld [vmem:[%s13898_s1 + $0x4c] ss:$16 sps:$4 sm:$0xff]   ;;  %v9402_v10 = vld [vmem:[%s13898_s1 + $0x40] ss:$16 sps:$4 sm:$0xff]   ;;  %v9403_v11 = vld [vmem:[%s13898_s1 + $0x48] ss:$16 sps:$4 sm:$0xff]  }
   0x5   :  { %v9404_v12 = vld [vmem:[%s13898_s1 + $0x64] ss:$16 sps:$4 sm:$0xff]   ;;  %v9406_v13 = vld [vmem:[%s13898_s1 + $0x6c] ss:$16 sps:$4 sm:$0xff]   ;;  %v9408_v14 = vld [vmem:[%s13898_s1 + $0x60] ss:$16 sps:$4 sm:$0xff]  }
   0x6   :  { %v9409_v15 = vld [vmem:[%s13898_s1 + $0x68] ss:$16 sps:$4 sm:$0xff]   ;;  %v9410_v16 = vld [vmem:[%s13898_s1 + $0x84] ss:$16 sps:$4 sm:$0xff]   ;;  %v9412_v17 = vld [vmem:[%s13898_s1 + $0x8c] ss:$16 sps:$4 sm:$0xff]  }
   0x7   :  { %4954 = vmatpush1.bf16.msra.mxu0 %v9396_v6  ;;  %5487 = vmatpush1.bf16.msra.mxu1 %v9397_v7  ;;  %v9414_v18 = vld [vmem:[%s13898_s1 + $0x80] ss:$16 sps:$4 sm:$0xff]   ;;  %v9415_v19 = vld [vmem:[%s13898_s1 + $0x88] ss:$16 sps:$4 sm:$0xff]   ;;  %v9416_v20 = vld [vmem:[%s13898_s1 + $0xa4] ss:$16 sps:$4 sm:$0xff]  }
   0x8   :  { %4955 = vmatprep.subr.bf16.mxu0 %v9398_v8  ;;  %5488 = vmatprep.subr.bf16.mxu1 %v9400_v9  ;;  %v9418_v21 = vld [vmem:[%s13898_s1 + $0xac] ss:$16 sps:$4 sm:$0xff]   ;;  %v9420_v22 = vld [vmem:[%s13898_s1 + $0xa0] ss:$16 sps:$4 sm:$0xff]   ;;  %v9421_v23 = vld [vmem:[%s13898_s1 + $0xa8] ss:$16 sps:$4 sm:$0xff]  }
   0x9   :  { %v9422_v24 = vld [vmem:[%s13898_s1 + $0xc4] ss:$16 sps:$4 sm:$0xff]   ;;  %v9424_v25 = vld [vmem:[%s13898_s1 + $0xcc] ss:$16 sps:$4 sm:$0xff]   ;;  %v9426_v26 = vld [vmem:[%s13898_s1 + $0xc0] ss:$16 sps:$4 sm:$0xff]  }
   0xa   :  { %v9427_v27 = vld [vmem:[%s13898_s1 + $0xc8] ss:$16 sps:$4 sm:$0xff]   ;;  %v9428_v28 = vld [vmem:[%s13898_s1 + $0xe4] ss:$16 sps:$4 sm:$0xff]   ;;  %v9430_v29 = vld [vmem:[%s13898_s1 + $0xec] ss:$16 sps:$4 sm:$0xff]  }
   0xb   :  { %4956 = vmatpush1.bf16.msra.mxu0 %v9402_v10  ;;  %5489 = vmatpush1.bf16.msra.mxu1 %v9403_v11  ;;  %v9432_v30 = vld [vmem:[%s13898_s1 + $0xe0] ss:$16 sps:$4 sm:$0xff]   ;;  %v9433_v31 = vld [vmem:[%s13898_s1 + $0xe8] ss:$16 sps:$4 sm:$0xff]   ;;  %v9434_v32 = vld [vmem:[%s13898_s1 + $0x104] ss:$16 sps:$4 sm:$0xff]  }
   0xc   :  { %4957 = vmatprep.subr.bf16.mxu0 %v9404_v12  ;;  %5490 = vmatprep.subr.bf16.mxu1 %v9406_v13  ;;  %v9436_v33 = vld [vmem:[%s13898_s1 + $0x10c] ss:$16 sps:$4 sm:$0xff]   ;;  %v9438_v34 = vld [vmem:[%s13898_s1 + $0x100] ss:$16 sps:$4 sm:$0xff]   ;;  %v9439_v35 = vld [vmem:[%s13898_s1 + $0x108] ss:$16 sps:$4 sm:$0xff]  }
   0xd   :  { %v9440_v39 = vld [vmem:[%s13898_s1 + $0x124] ss:$16 sps:$4 sm:$0xff]   ;;  %v9442_v40 = vld [vmem:[%s13898_s1 + $0x12c] ss:$16 sps:$4 sm:$0xff]   ;;  %v9444_v41 = vld [vmem:[%s13898_s1 + $0x120] ss:$16 sps:$4 sm:$0xff]  }
   0xe   :  { %v10942_v42 = vshrl.u32 %v818_v36, 7  ;;  %v9445_v44 = vld [vmem:[%s13898_s1 + $0x128] ss:$16 sps:$4 sm:$0xff]   ;;  %v9446_v45 = vld [vmem:[%s13898_s1 + $0x144] ss:$16 sps:$4 sm:$0xff]  }
   0xf   :  { %4958 = vmatpush1.bf16.msra.mxu0 %v9408_v14  ;;  %5491 = vmatpush1.bf16.msra.mxu1 %v9409_v15  ;;  %v9448_v46 = vld [vmem:[%s13898_s1 + $0x14c] ss:$16 sps:$4 sm:$0xff]   ;;  %v9450_v47 = vld [vmem:[%s13898_s1 + $0x140] ss:$16 sps:$4 sm:$0xff]   ;;  %v9451_v48 = vld [vmem:[%s13898_s1 + $0x148] ss:$16 sps:$4 sm:$0xff]  }
  0x10   :  { %4959 = vmatprep.subr.bf16.mxu0 %v9410_v16  ;;  %5492 = vmatprep.subr.bf16.mxu1 %v9412_v17  ;;  %v10960_v49 = vsub.s32 %v845_v43, %v10942_v42  ;;  %v9452_v50 = vld [vmem:[%s13898_s1 + $0x164] ss:$16 sps:$4 sm:$0xff]   ;;  %v9454_v51 = vld [vmem:[%s13898_s1 + $0x16c] ss:$16 sps:$4 sm:$0xff]   ;;  %v9456_v53 = vld [vmem:[%s13898_s1 + $0x160] ss:$16 sps:$4 sm:$0xff]  }
  0x11   :  { %v10971_v52 = vld [vmem:[%s13897_s0] sm:$0xff]  ;;  %v9457_v55 = vld [vmem:[%s13898_s1 + $0x168] ss:$16 sps:$4 sm:$0xff]   ;;  %v9460_v57 = vld [vmem:[%s13898_s1 + $0x18c] ss:$16 sps:$4 sm:$0xff]  }
  0x12   :  { %v849_v54 = vrot.slane %v10971_v52, %v10960_v49  ;;  %v9458_v56 = vld [vmem:[%s13898_s1 + $0x184] ss:$16 sps:$4 sm:$0xff]   ;;  %v9462_v59 = vld [vmem:[%s13898_s1 + $0x180] ss:$16 sps:$4 sm:$0xff]   ;;  %v9463_v61 = vld [vmem:[%s13898_s1 + $0x188] ss:$16 sps:$4 sm:$0xff]  }
  0x13   :  { %4960 = vmatpush1.bf16.msra.mxu0 %v9414_v18  ;;  %5493 = vmatpush1.bf16.msra.mxu1 %v9415_v19  ;;  %v9464_v62 = vld [vmem:[%s13898_s1 + $0x1a4] ss:$16 sps:$4 sm:$0xff]   ;;  %v9466_v63 = vld [vmem:[%s13898_s1 + $0x1ac] ss:$16 sps:$4 sm:$0xff]   ;;  %v9468_v0 = vld [vmem:[%s13898_s1 + $0x1a0] ss:$16 sps:$4 sm:$0xff]  }
  0x14   :  { %4961 = vmatprep.subr.bf16.mxu0 %v9416_v20  ;;  %5494 = vmatprep.subr.bf16.mxu1 %v9418_v21  ;;  %v857_v58 = vcombine.high %v849_v54, %v849_v54  ;;  %v9469_v1 = vld [vmem:[%s13898_s1 + $0x1a8] ss:$16 sps:$4 sm:$0xff]   ;;  %v9470_v2 = vld [vmem:[%s13898_s1 + $0x1c4] ss:$16 sps:$4 sm:$0xff]   ;;  %v9472_v3 = vld [vmem:[%s13898_s1 + $0x1cc] ss:$16 sps:$4 sm:$0xff]   ;;  %v11040_v13 = vrot.slane %v849_v54, %v10960_v49 }
  0x15   :  { %v9474_v4 = vld [vmem:[%s13898_s1 + $0x1c0] ss:$16 sps:$4 sm:$0xff]   ;;  %v9475_v5 = vld [vmem:[%s13898_s1 + $0x1c8] ss:$16 sps:$4 sm:$0xff]   ;;  %v9476_v6 = vld [vmem:[%s13898_s1 + $0x1e4] ss:$16 sps:$4 sm:$0xff]  }
  0x16   :  { %v879_v60 = vrot.slane %v857_v58, %v10960_v49  ;;  %v9478_v7 = vld [vmem:[%s13898_s1 + $0x1ec] ss:$16 sps:$4 sm:$0xff]   ;;  %v9480_v8 = vld [vmem:[%s13898_s1 + $0x1e0] ss:$16 sps:$4 sm:$0xff]   ;;  %v9481_v9 = vld [vmem:[%s13898_s1 + $0x1e8] ss:$16 sps:$4 sm:$0xff]  }
  0x17   :  { %4962 = vmatpush1.bf16.msra.mxu0 %v9420_v22  ;;  %5495 = vmatpush1.bf16.msra.mxu1 %v9421_v23  ;;  %v9484_v10 = vld [vmem:[%s13898_s1 + $0x204] ss:$16 sps:$4 sm:$0xff]   ;;  %v9487_v11 = vld [vmem:[%s13898_s1 + $0x20c] ss:$16 sps:$4 sm:$0xff]   ;;  %v9482_v12 = vld [vmem:[%s13898_s1 + $0x200] ss:$16 sps:$4 sm:$0xff]  }
  0x18   :  { %4963 = vmatprep.subr.bf16.mxu0 %v9422_v24  ;;  %5496 = vmatprep.subr.bf16.mxu1 %v9424_v25  ;;  %v9485_v14 = vld [vmem:[%s13898_s1 + $0x208] ss:$16 sps:$4 sm:$0xff]   ;;  %v9490_v15 = vld [vmem:[%s13898_s1 + $0x224] ss:$16 sps:$4 sm:$0xff]   ;;  %v9493_v16 = vld [vmem:[%s13898_s1 + $0x22c] ss:$16 sps:$4 sm:$0xff]   ;;  %v889_v17 = vcombine.high %v879_v60, %v879_v60 }
  0x19   :  { %4983 = vmatprep.mubr.bf16.mxu0 %v879_v60  ;;  %5516 = vmatprep.mubr.bf16.mxu1 %v879_v60  ;;  %v9488_v18 = vld [vmem:[%s13898_s1 + $0x220] ss:$16 sps:$4 sm:$0xff]   ;;  %v9491_v19 = vld [vmem:[%s13898_s1 + $0x228] ss:$16 sps:$4 sm:$0xff]   ;;  %v9496_v20 = vld [vmem:[%s13898_s1 + $0x244] ss:$16 sps:$4 sm:$0xff]  }
  0x1a   :  { %v9499_v21 = vld [vmem:[%s13898_s1 + $0x24c] ss:$16 sps:$4 sm:$0xff]   ;;  %v9494_v22 = vld [vmem:[%s13898_s1 + $0x240] ss:$16 sps:$4 sm:$0xff]   ;;  %v9497_v23 = vld [vmem:[%s13898_s1 + $0x248] ss:$16 sps:$4 sm:$0xff]  }
  0x1b   :  { %4964 = vmatpush1.bf16.msra.mxu0 %v9426_v26  ;;  %5497 = vmatpush1.bf16.msra.mxu1 %v9427_v27  ;;  %v9502_v24 = vld [vmem:[%s13898_s1 + $0x264] ss:$16 sps:$4 sm:$0xff]   ;;  %v9505_v25 = vld [vmem:[%s13898_s1 + $0x26c] ss:$16 sps:$4 sm:$0xff]   ;;  %v9500_v26 = vld [vmem:[%s13898_s1 + $0x260] ss:$16 sps:$4 sm:$0xff]  }
  0x1c   :  { %4965 = vmatprep.subr.bf16.mxu0 %v9428_v28  ;;  %5498 = vmatprep.subr.bf16.mxu1 %v9430_v29  ;;  %v9503_v27 = vld [vmem:[%s13898_s1 + $0x268] ss:$16 sps:$4 sm:$0xff]   ;;  %v9508_v28 = vld [vmem:[%s13898_s1 + $0x284] ss:$16 sps:$4 sm:$0xff]   ;;  %v9511_v29 = vld [vmem:[%s13898_s1 + $0x28c] ss:$16 sps:$4 sm:$0xff]  }
  0x1d   :  { %v9520_v36 = vld [vmem:[%s13898_s1 + $0x2c4] ss:$16 sps:$4 sm:$0xff]   ;;  %v9523_v37 = vld [vmem:[%s13898_s1 + $0x2cc] ss:$16 sps:$4 sm:$0xff]   ;;  %v9518_v38 = vld [vmem:[%s13898_s1 + $0x2c0] ss:$16 sps:$4 sm:$0xff]  }
  0x1e   :  { %v9524_v43 = vld [vmem:[%s13898_s1 + $0x2e0] ss:$16 sps:$4 sm:$0xff]   ;;  %v9539_v54 = vld [vmem:[%s13898_s1 + $0x328] ss:$16 sps:$4 sm:$0xff]   ;;  %v9553_v60 = vld [vmem:[%s13898_s1 + $0x36c] ss:$16 sps:$4 sm:$0xff]  }
  0x1f   :  { %4966 = vmatpush1.bf16.msra.mxu0 %v9432_v30  ;;  %5499 = vmatpush1.bf16.msra.mxu1 %v9433_v31  ;;  %v9506_v30 = vld [vmem:[%s13898_s1 + $0x280] ss:$16 sps:$4 sm:$0xff]   ;;  %v9509_v31 = vld [vmem:[%s13898_s1 + $0x288] ss:$16 sps:$4 sm:$0xff]  }
  0x20   :  { %4967 = vmatprep.subr.bf16.mxu0 %v9434_v32  ;;  %5500 = vmatprep.subr.bf16.mxu1 %v9436_v33  ;;  %v9514_v32 = vld [vmem:[%s13898_s1 + $0x2a4] ss:$16 sps:$4 sm:$0xff]   ;;  %v9517_v33 = vld [vmem:[%s13898_s1 + $0x2ac] ss:$16 sps:$4 sm:$0xff]   ;;  %v9545_v58 = vld [vmem:[%s13898_s1 + $0x348] ss:$16 sps:$4 sm:$0xff]  }
  0x23   :  { %4968 = vmatpush1.bf16.msra.mxu0 %v9438_v34  ;;  %5501 = vmatpush1.bf16.msra.mxu1 %v9439_v35  ;;  %v9512_v34 = vld [vmem:[%s13898_s1 + $0x2a0] ss:$16 sps:$4 sm:$0xff]   ;;  %v9515_v35 = vld [vmem:[%s13898_s1 + $0x2a8] ss:$16 sps:$4 sm:$0xff]  }
  0x24   :  { %4969 = vmatprep.subr.bf16.mxu0 %v9440_v39  ;;  %5502 = vmatprep.subr.bf16.mxu1 %v9442_v40  ;;  %v9521_v39 = vld [vmem:[%s13898_s1 + $0x2c8] ss:$16 sps:$4 sm:$0xff]   ;;  %v9526_v40 = vld [vmem:[%s13898_s1 + $0x2e4] ss:$16 sps:$4 sm:$0xff]  }
  0x27   :  { %4970 = vmatpush1.bf16.msra.mxu0 %v9444_v41  ;;  %5503 = vmatpush1.bf16.msra.mxu1 %v9445_v44  ;;  %v9529_v41 = vld [vmem:[%s13898_s1 + $0x2ec] ss:$16 sps:$4 sm:$0xff]   ;;  %v9527_v44 = vld [vmem:[%s13898_s1 + $0x2e8] ss:$16 sps:$4 sm:$0xff]  }
  0x28   :  { %4971 = vmatprep.subr.bf16.mxu0 %v9446_v45  ;;  %5504 = vmatprep.subr.bf16.mxu1 %v9448_v46  ;;  %v9532_v45 = vld [vmem:[%s13898_s1 + $0x304] ss:$16 sps:$4 sm:$0xff]   ;;  %v9535_v46 = vld [vmem:[%s13898_s1 + $0x30c] ss:$16 sps:$4 sm:$0xff]  }
  0x2b   :  { %4972 = vmatpush1.bf16.msra.mxu0 %v9450_v47  ;;  %5505 = vmatpush1.bf16.msra.mxu1 %v9451_v48  ;;  %v9530_v47 = vld [vmem:[%s13898_s1 + $0x300] ss:$16 sps:$4 sm:$0xff]   ;;  %v9533_v48 = vld [vmem:[%s13898_s1 + $0x308] ss:$16 sps:$4 sm:$0xff]  }
  0x2c   :  { %4973 = vmatprep.subr.bf16.mxu0 %v9452_v50  ;;  %5506 = vmatprep.subr.bf16.mxu1 %v9454_v51  ;;  %v9538_v50 = vld [vmem:[%s13898_s1 + $0x324] ss:$16 sps:$4 sm:$0xff]   ;;  %v9541_v51 = vld [vmem:[%s13898_s1 + $0x32c] ss:$16 sps:$4 sm:$0xff]  }
  0x2f   :  { %4974 = vmatpush1.bf16.msra.mxu0 %v9456_v53  ;;  %5507 = vmatpush1.bf16.msra.mxu1 %v9457_v55  ;;  %v9536_v53 = vld [vmem:[%s13898_s1 + $0x320] ss:$16 sps:$4 sm:$0xff]   ;;  %v9544_v55 = vld [vmem:[%s13898_s1 + $0x344] ss:$16 sps:$4 sm:$0xff]  }
  0x30   :  { %4975 = vmatprep.subr.bf16.mxu0 %v9458_v56  ;;  %5508 = vmatprep.subr.bf16.mxu1 %v9460_v57  ;;  %v9547_v56 = vld [vmem:[%s13898_s1 + $0x34c] ss:$16 sps:$4 sm:$0xff]   ;;  %v9542_v57 = vld [vmem:[%s13898_s1 + $0x340] ss:$16 sps:$4 sm:$0xff]  }
  0x33   :  { %4976 = vmatpush1.bf16.msra.mxu0 %v9462_v59  ;;  %5509 = vmatpush1.bf16.msra.mxu1 %v9463_v61  ;;  %v9550_v59 = vld [vmem:[%s13898_s1 + $0x364] ss:$16 sps:$4 sm:$0xff]   ;;  %v9548_v61 = vld [vmem:[%s13898_s1 + $0x360] ss:$16 sps:$4 sm:$0xff]  }
  0x34   :  { %4977 = vmatprep.subr.bf16.mxu0 %v9464_v62  ;;  %5510 = vmatprep.subr.bf16.mxu1 %v9466_v63  ;;  %v9551_v62 = vld [vmem:[%s13898_s1 + $0x368] ss:$16 sps:$4 sm:$0xff]   ;;  %v9556_v63 = vld [vmem:[%s13898_s1 + $0x384] ss:$16 sps:$4 sm:$0xff]  }
  0x37   :  { %4978 = vmatpush1.bf16.msra.mxu0 %v9468_v0  ;;  %5511 = vmatpush1.bf16.msra.mxu1 %v9469_v1  ;;  %v9559_v0 = vld [vmem:[%s13898_s1 + $0x38c] ss:$16 sps:$4 sm:$0xff]   ;;  %v9554_v1 = vld [vmem:[%s13898_s1 + $0x380] ss:$16 sps:$4 sm:$0xff]  }
  0x38   :  { %4979 = vmatprep.subr.bf16.mxu0 %v9470_v2  ;;  %5512 = vmatprep.subr.bf16.mxu1 %v9472_v3  ;;  %v9557_v2 = vld [vmem:[%s13898_s1 + $0x388] ss:$16 sps:$4 sm:$0xff]   ;;  %v9562_v3 = vld [vmem:[%s13898_s1 + $0x3a4] ss:$16 sps:$4 sm:$0xff]  }
  0x3b   :  { %4980 = vmatpush1.bf16.msra.mxu0 %v9474_v4  ;;  %5513 = vmatpush1.bf16.msra.mxu1 %v9475_v5  ;;  %v9565_v4 = vld [vmem:[%s13898_s1 + $0x3ac] ss:$16 sps:$4 sm:$0xff]   ;;  %v9560_v5 = vld [vmem:[%s13898_s1 + $0x3a0] ss:$16 sps:$4 sm:$0xff]  }
  0x3c   :  { %4981 = vmatprep.subr.bf16.mxu0 %v9476_v6  ;;  %5514 = vmatprep.subr.bf16.mxu1 %v9478_v7  ;;  %v9563_v6 = vld [vmem:[%s13898_s1 + $0x3a8] ss:$16 sps:$4 sm:$0xff]   ;;  %v9568_v7 = vld [vmem:[%s13898_s1 + $0x3c4] ss:$16 sps:$4 sm:$0xff]  }
  0x3f   :  { %4982 = vmatpush1.bf16.msra.mxu0 %v9480_v8  ;;  %5515 = vmatpush1.bf16.msra.mxu1 %v9481_v9  ;;  %v9571_v8 = vld [vmem:[%s13898_s1 + $0x3cc] ss:$16 sps:$4 sm:$0xff]   ;;  %v842_v9 = vcombine.high %v10971_v52, %v10971_v52 }
  0x40   :  { %4992 = vmatprep.subr.bf16.mxu0 %v9484_v10  ;;  %5525 = vmatprep.subr.bf16.mxu1 %v9487_v11  ;;  %v9566_v10 = vld [vmem:[%s13898_s1 + $0x3c0] ss:$16 sps:$4 sm:$0xff]   ;;  %v9569_v11 = vld [vmem:[%s13898_s1 + $0x3c8] ss:$16 sps:$4 sm:$0xff]   ;;  %v9577_v52 = vld [vmem:[%s13898_s1 + $0x3ec] ss:$16 sps:$4 sm:$0xff]  }
  0x42   :  { %4984 = vmatmul.mubr.bf16.vlgmr.msra.gmra.mrb[0].mxu0 %v11040_v13  ;;  %5517 = vmatmul.mubr.bf16.vlgmr.msra.gmra.mrb[0].mxu1 %v11040_v13 }
  0x43   :  { %4993 = vmatpush1.bf16.msra.mxu0 %v9482_v12  ;;  %5526 = vmatpush1.bf16.msra.mxu1 %v9485_v14  ;;  %v9574_v12 = vld [vmem:[%s13898_s1 + $0x3e4] ss:$16 sps:$4 sm:$0xff]   ;;  %v11224_v14 = vrot.slane %v842_v9, %v10960_v49  ;;  %v9653_v9 = vld [vmem:[%s13898_s1 + $0x588] ss:$16 sps:$4 sm:$0xff]  }
  0x44   :  { %4994 = vmatprep.subr.bf16.mxu0 %v9490_v15  ;;  %5527 = vmatprep.subr.bf16.mxu1 %v9493_v16  ;;  %v9572_v15 = vld [vmem:[%s13898_s1 + $0x3e0] ss:$16 sps:$4 sm:$0xff]   ;;  %v9575_v16 = vld [vmem:[%s13898_s1 + $0x3e8] ss:$16 sps:$4 sm:$0xff]  }
  0x45   :  { %5024 = vmatprep.mubr.bf16.mxu0 %v889_v17  ;;  %5557 = vmatprep.mubr.bf16.mxu1 %v889_v17  ;;  %v9580_v17 = vld [vmem:[%s13898_s1 + $0x404] ss:$16 sps:$4 sm:$0xff]  }
  0x47   :  { %4995 = vmatpush1.bf16.msra.mxu0 %v9488_v18  ;;  %5528 = vmatpush1.bf16.msra.mxu1 %v9491_v19  ;;  %v9583_v18 = vld [vmem:[%s13898_s1 + $0x40c] ss:$16 sps:$4 sm:$0xff]   ;;  %v858_v19 = vcombine.high %v11224_v14, %v11224_v14 }
  0x48   :  { %4996 = vmatprep.subr.bf16.mxu0 %v9496_v20  ;;  %5529 = vmatprep.subr.bf16.mxu1 %v9499_v21  ;;  %v9578_v20 = vld [vmem:[%s13898_s1 + $0x400] ss:$16 sps:$4 sm:$0xff]   ;;  %v887_v21 = vcombine.high %v11040_v13, %v11040_v13 }
  0x49   :  { %v9584_v13 = vld [vmem:[%s13898_s1 + $0x420] ss:$16 sps:$4 sm:$0xff]  }
  0x4b   :  { %4997 = vmatpush1.bf16.msra.mxu0 %v9494_v22  ;;  %5530 = vmatpush1.bf16.msra.mxu1 %v9497_v23  ;;  %v9581_v22 = vld [vmem:[%s13898_s1 + $0x408] ss:$16 sps:$4 sm:$0xff]   ;;  %v9586_v23 = vld [vmem:[%s13898_s1 + $0x424] ss:$16 sps:$4 sm:$0xff]  }
  0x4c   :  { %4998 = vmatprep.subr.bf16.mxu0 %v9502_v24  ;;  %5531 = vmatprep.subr.bf16.mxu1 %v9505_v25  ;;  %v9589_v24 = vld [vmem:[%s13898_s1 + $0x42c] ss:$16 sps:$4 sm:$0xff]   ;;  %v11255_v25 = vrot.slane %v858_v19, %v10960_v49  ;;  %v9670_v19 = vld [vmem:[%s13898_s1 + $0x5e4] ss:$16 sps:$4 sm:$0xff]  }
  0x4f   :  { %4999 = vmatpush1.bf16.msra.mxu0 %v9500_v26  ;;  %5532 = vmatpush1.bf16.msra.mxu1 %v9503_v27  ;;  %v9587_v26 = vld [vmem:[%s13898_s1 + $0x428] ss:$16 sps:$4 sm:$0xff]   ;;  %v9592_v27 = vld [vmem:[%s13898_s1 + $0x444] ss:$16 sps:$4 sm:$0xff]  }
  0x50   :  { %5000 = vmatprep.subr.bf16.mxu0 %v9508_v28  ;;  %5533 = vmatprep.subr.bf16.mxu1 %v9511_v29  ;;  %v9595_v28 = vld [vmem:[%s13898_s1 + $0x44c] ss:$16 sps:$4 sm:$0xff]   ;;  %v9590_v29 = vld [vmem:[%s13898_s1 + $0x440] ss:$16 sps:$4 sm:$0xff]  }
  0x53   :  { %5001 = vmatpush1.bf16.msra.mxu0 %v9506_v30  ;;  %5534 = vmatpush1.bf16.msra.mxu1 %v9509_v31  ;;  %v9593_v30 = vld [vmem:[%s13898_s1 + $0x448] ss:$16 sps:$4 sm:$0xff]   ;;  %v9598_v31 = vld [vmem:[%s13898_s1 + $0x464] ss:$16 sps:$4 sm:$0xff]  }
  0x54   :  { %5002 = vmatprep.subr.bf16.mxu0 %v9514_v32  ;;  %5535 = vmatprep.subr.bf16.mxu1 %v9517_v33  ;;  %v9601_v32 = vld [vmem:[%s13898_s1 + $0x46c] ss:$16 sps:$4 sm:$0xff]   ;;  %v9596_v33 = vld [vmem:[%s13898_s1 + $0x460] ss:$16 sps:$4 sm:$0xff]  }
  0x57   :  { %5003 = vmatpush1.bf16.msra.mxu0 %v9512_v34  ;;  %5536 = vmatpush1.bf16.msra.mxu1 %v9515_v35  ;;  %v9599_v34 = vld [vmem:[%s13898_s1 + $0x468] ss:$16 sps:$4 sm:$0xff]   ;;  %v9604_v35 = vld [vmem:[%s13898_s1 + $0x484] ss:$16 sps:$4 sm:$0xff]  }
  0x58   :  { %5004 = vmatprep.subr.bf16.mxu0 %v9520_v36  ;;  %5537 = vmatprep.subr.bf16.mxu1 %v9523_v37  ;;  %v9607_v36 = vld [vmem:[%s13898_s1 + $0x48c] ss:$16 sps:$4 sm:$0xff]   ;;  %v9602_v37 = vld [vmem:[%s13898_s1 + $0x480] ss:$16 sps:$4 sm:$0xff]  }
  0x5b   :  { %5005 = vmatpush1.bf16.msra.mxu0 %v9518_v38  ;;  %5538 = vmatpush1.bf16.msra.mxu1 %v9521_v39  ;;  %v9605_v38 = vld [vmem:[%s13898_s1 + $0x488] ss:$16 sps:$4 sm:$0xff]   ;;  %v9610_v39 = vld [vmem:[%s13898_s1 + $0x4a4] ss:$16 sps:$4 sm:$0xff]  }
  0x5c   :  { %5006 = vmatprep.subr.bf16.mxu0 %v9526_v40  ;;  %5539 = vmatprep.subr.bf16.mxu1 %v9529_v41  ;;  %v9613_v40 = vld [vmem:[%s13898_s1 + $0x4ac] ss:$16 sps:$4 sm:$0xff]   ;;  %v9608_v41 = vld [vmem:[%s13898_s1 + $0x4a0] ss:$16 sps:$4 sm:$0xff]  }
  0x5f   :  { %5007 = vmatpush1.bf16.msra.mxu0 %v9524_v43  ;;  %5540 = vmatpush1.bf16.msra.mxu1 %v9527_v44  ;;  %v9611_v43 = vld [vmem:[%s13898_s1 + $0x4a8] ss:$16 sps:$4 sm:$0xff]   ;;  %v9616_v44 = vld [vmem:[%s13898_s1 + $0x4c4] ss:$16 sps:$4 sm:$0xff]  }
  0x60   :  { %5008 = vmatprep.subr.bf16.mxu0 %v9532_v45  ;;  %5541 = vmatprep.subr.bf16.mxu1 %v9535_v46  ;;  %v9619_v45 = vld [vmem:[%s13898_s1 + $0x4cc] ss:$16 sps:$4 sm:$0xff]   ;;  %v9614_v46 = vld [vmem:[%s13898_s1 + $0x4c0] ss:$16 sps:$4 sm:$0xff]  }
  0x63   :  { %5009 = vmatpush1.bf16.msra.mxu0 %v9530_v47  ;;  %5542 = vmatpush1.bf16.msra.mxu1 %v9533_v48  ;;  %v9617_v47 = vld [vmem:[%s13898_s1 + $0x4c8] ss:$16 sps:$4 sm:$0xff]   ;;  %v9622_v48 = vld [vmem:[%s13898_s1 + $0x4e4] ss:$16 sps:$4 sm:$0xff]  }
  0x64   :  { %5010 = vmatprep.subr.bf16.mxu0 %v9538_v50  ;;  %5543 = vmatprep.subr.bf16.mxu1 %v9541_v51  ;;  %v9625_v50 = vld [vmem:[%s13898_s1 + $0x4ec] ss:$16 sps:$4 sm:$0xff]   ;;  %v9620_v51 = vld [vmem:[%s13898_s1 + $0x4e0] ss:$16 sps:$4 sm:$0xff]  }
  0x67   :  { %5011 = vmatpush1.bf16.msra.mxu0 %v9536_v53  ;;  %5544 = vmatpush1.bf16.msra.mxu1 %v9539_v54  ;;  %v9623_v53 = vld [vmem:[%s13898_s1 + $0x4e8] ss:$16 sps:$4 sm:$0xff]   ;;  %v9628_v54 = vld [vmem:[%s13898_s1 + $0x504] ss:$16 sps:$4 sm:$0xff]  }
  0x68   :  { %5012 = vmatprep.subr.bf16.mxu0 %v9544_v55  ;;  %5545 = vmatprep.subr.bf16.mxu1 %v9547_v56  ;;  %v9631_v55 = vld [vmem:[%s13898_s1 + $0x50c] ss:$16 sps:$4 sm:$0xff]   ;;  %v9626_v56 = vld [vmem:[%s13898_s1 + $0x500] ss:$16 sps:$4 sm:$0xff]  }
  0x6b   :  { %5013 = vmatpush1.bf16.msra.mxu0 %v9542_v57  ;;  %5546 = vmatpush1.bf16.msra.mxu1 %v9545_v58  ;;  %v9629_v57 = vld [vmem:[%s13898_s1 + $0x508] ss:$16 sps:$4 sm:$0xff]   ;;  %v9634_v58 = vld [vmem:[%s13898_s1 + $0x524] ss:$16 sps:$4 sm:$0xff]  }
  0x6c   :  { %5014 = vmatprep.subr.bf16.mxu0 %v9550_v59  ;;  %5547 = vmatprep.subr.bf16.mxu1 %v9553_v60  ;;  %v9637_v59 = vld [vmem:[%s13898_s1 + $0x52c] ss:$16 sps:$4 sm:$0xff]   ;;  %v9632_v60 = vld [vmem:[%s13898_s1 + $0x520] ss:$16 sps:$4 sm:$0xff]  }
  0x6f   :  { %5015 = vmatpush1.bf16.msra.mxu0 %v9548_v61  ;;  %5548 = vmatpush1.bf16.msra.mxu1 %v9551_v62  ;;  %v9635_v61 = vld [vmem:[%s13898_s1 + $0x528] ss:$16 sps:$4 sm:$0xff]   ;;  %v9640_v62 = vld [vmem:[%s13898_s1 + $0x544] ss:$16 sps:$4 sm:$0xff]  }
  0x70   :  { %5016 = vmatprep.subr.bf16.mxu0 %v9556_v63  ;;  %5549 = vmatprep.subr.bf16.mxu1 %v9559_v0  ;;  %v9643_v63 = vld [vmem:[%s13898_s1 + $0x54c] ss:$16 sps:$4 sm:$0xff]   ;;  %v9638_v0 = vld [vmem:[%s13898_s1 + $0x540] ss:$16 sps:$4 sm:$0xff]  }
  0x73   :  { %5017 = vmatpush1.bf16.msra.mxu0 %v9554_v1  ;;  %5550 = vmatpush1.bf16.msra.mxu1 %v9557_v2  ;;  %v9641_v1 = vld [vmem:[%s13898_s1 + $0x548] ss:$16 sps:$4 sm:$0xff]   ;;  %v9646_v2 = vld [vmem:[%s13898_s1 + $0x564] ss:$16 sps:$4 sm:$0xff]  }
  0x74   :  { %5018 = vmatprep.subr.bf16.mxu0 %v9562_v3  ;;  %5551 = vmatprep.subr.bf16.mxu1 %v9565_v4  ;;  %v9649_v3 = vld [vmem:[%s13898_s1 + $0x56c] ss:$16 sps:$4 sm:$0xff]   ;;  %v9644_v4 = vld [vmem:[%s13898_s1 + $0x560] ss:$16 sps:$4 sm:$0xff]  }
  0x77   :  { %5019 = vmatpush1.bf16.msra.mxu0 %v9560_v5  ;;  %5552 = vmatpush1.bf16.msra.mxu1 %v9563_v6  ;;  %v9647_v5 = vld [vmem:[%s13898_s1 + $0x568] ss:$16 sps:$4 sm:$0xff]   ;;  %v9652_v6 = vld [vmem:[%s13898_s1 + $0x584] ss:$16 sps:$4 sm:$0xff]  }
  0x78   :  { %5020 = vmatprep.subr.bf16.mxu0 %v9568_v7  ;;  %5553 = vmatprep.subr.bf16.mxu1 %v9571_v8  ;;  %v9655_v7 = vld [vmem:[%s13898_s1 + $0x58c] ss:$16 sps:$4 sm:$0xff]   ;;  %v9650_v8 = vld [vmem:[%s13898_s1 + $0x580] ss:$16 sps:$4 sm:$0xff]  }
  0x7b   :  { %5021 = vmatpush1.bf16.msra.mxu0 %v9566_v10  ;;  %5554 = vmatpush1.bf16.msra.mxu1 %v9569_v11  ;;  %v9658_v10 = vld [vmem:[%s13898_s1 + $0x5a4] ss:$16 sps:$4 sm:$0xff]   ;;  %v9661_v11 = vld [vmem:[%s13898_s1 + $0x5ac] ss:$16 sps:$4 sm:$0xff]  }
  0x7c   :  { %5022 = vmatprep.subr.bf16.mxu0 %v9574_v12  ;;  %5555 = vmatprep.subr.bf16.mxu1 %v9577_v52  ;;  %v9656_v12 = vld [vmem:[%s13898_s1 + $0x5a0] ss:$16 sps:$4 sm:$0xff]   ;;  %v9659_v52 = vld [vmem:[%s13898_s1 + $0x5a8] ss:$16 sps:$4 sm:$0xff]  }
  0x7f   :  { %5023 = vmatpush1.bf16.msra.mxu0 %v9572_v15  ;;  %5556 = vmatpush1.bf16.msra.mxu1 %v9575_v16  ;;  %v9664_v15 = vld [vmem:[%s13898_s1 + $0x5c4] ss:$16 sps:$4 sm:$0xff]   ;;  %v9667_v16 = vld [vmem:[%s13898_s1 + $0x5cc] ss:$16 sps:$4 sm:$0xff]  }
  0x80   :  { %5033 = vmatprep.subr.bf16.mxu0 %v9580_v17  ;;  %5566 = vmatprep.subr.bf16.mxu1 %v9583_v18  ;;  %v9662_v17 = vld [vmem:[%s13898_s1 + $0x5c0] ss:$16 sps:$4 sm:$0xff]   ;;  %v9665_v18 = vld [vmem:[%s13898_s1 + $0x5c8] ss:$16 sps:$4 sm:$0xff]  }
  0x82   :  { %5025 = vmatmul.mubr.bf16.vlgmr.msra.gmra.mrb[0].mxu0 %v887_v21  ;;  %5558 = vmatmul.mubr.bf16.vlgmr.msra.gmra.mrb[0].mxu1 %v887_v21  ;;  %v9668_v21 = vld [vmem:[%s13898_s1 + $0x5e0] ss:$16 sps:$4 sm:$0xff]  }
  0x83   :  { %5034 = vmatpush1.bf16.msra.mxu0 %v9578_v20  ;;  %5567 = vmatpush1.bf16.msra.mxu1 %v9581_v22  ;;  %v9673_v20 = vld [vmem:[%s13898_s1 + $0x5ec] ss:$16 sps:$4 sm:$0xff]   ;;  %v9671_v22 = vld [vmem:[%s13898_s1 + $0x5e8] ss:$16 sps:$4 sm:$0xff]  }
  0x84   :  { %5035 = vmatprep.subr.bf16.mxu0 %v9586_v23  ;;  %5568 = vmatprep.subr.bf16.mxu1 %v9589_v24  ;;  %v9677_v23 = vld [vmem:[%s13898_s1 + $0x604] ss:$16 sps:$4 sm:$0xff]   ;;  %v9680_v24 = vld [vmem:[%s13898_s1 + $0x60c] ss:$16 sps:$4 sm:$0xff]  }
  0x85   :  { %5065 = vmatprep.mubr.bf16.mxu0 %v11255_v25  ;;  %5598 = vmatprep.mubr.bf16.mxu1 %v11255_v25 }
  0x87   :  { %5036 = vmatpush1.bf16.msra.mxu0 %v9584_v13  ;;  %5569 = vmatpush1.bf16.msra.mxu1 %v9587_v26  ;;  %v9675_v13 = vld [vmem:[%s13898_s1 + $0x600] ss:$16 sps:$4 sm:$0xff]   ;;  %v11444_v26 = vrot.slane %v11224_v14, %v10960_v49  ;;  %v890_v14 = vcombine.high %v11255_v25, %v11255_v25  ;;  %v9689_v25 = vld [vmem:[%s13898_s1 + $0x644] ss:$16 sps:$4 sm:$0xff]  }
  0x88   :  { %5037 = vmatprep.subr.bf16.mxu0 %v9592_v27  ;;  %5570 = vmatprep.subr.bf16.mxu1 %v9595_v28  ;;  %v9678_v27 = vld [vmem:[%s13898_s1 + $0x608] ss:$16 sps:$4 sm:$0xff]   ;;  %v9683_v28 = vld [vmem:[%s13898_s1 + $0x624] ss:$16 sps:$4 sm:$0xff]  }
  0x8b   :  { %5038 = vmatpush1.bf16.msra.mxu0 %v9590_v29  ;;  %5571 = vmatpush1.bf16.msra.mxu1 %v9593_v30  ;;  %v9686_v29 = vld [vmem:[%s13898_s1 + $0x62c] ss:$16 sps:$4 sm:$0xff]   ;;  %v9681_v30 = vld [vmem:[%s13898_s1 + $0x620] ss:$16 sps:$4 sm:$0xff]  }
  0x8c   :  { %5039 = vmatprep.subr.bf16.mxu0 %v9598_v31  ;;  %5572 = vmatprep.subr.bf16.mxu1 %v9601_v32  ;;  %v9684_v31 = vld [vmem:[%s13898_s1 + $0x628] ss:$16 sps:$4 sm:$0xff]   ;;  %v9692_v32 = vld [vmem:[%s13898_s1 + $0x64c] ss:$16 sps:$4 sm:$0xff]  }
  0x8f   :  { %5040 = vmatpush1.bf16.msra.mxu0 %v9596_v33  ;;  %5573 = vmatpush1.bf16.msra.mxu1 %v9599_v34  ;;  %v9687_v33 = vld [vmem:[%s13898_s1 + $0x640] ss:$16 sps:$4 sm:$0xff]   ;;  %v9690_v34 = vld [vmem:[%s13898_s1 + $0x648] ss:$16 sps:$4 sm:$0xff]  }
  0x90   :  { %5041 = vmatprep.subr.bf16.mxu0 %v9604_v35  ;;  %5574 = vmatprep.subr.bf16.mxu1 %v9607_v36  ;;  %v9695_v35 = vld [vmem:[%s13898_s1 + $0x664] ss:$16 sps:$4 sm:$0xff]   ;;  %v9698_v36 = vld [vmem:[%s13898_s1 + $0x66c] ss:$16 sps:$4 sm:$0xff]  }
  0x93   :  { %5042 = vmatpush1.bf16.msra.mxu0 %v9602_v37  ;;  %5575 = vmatpush1.bf16.msra.mxu1 %v9605_v38  ;;  %v9693_v37 = vld [vmem:[%s13898_s1 + $0x660] ss:$16 sps:$4 sm:$0xff]   ;;  %v9696_v38 = vld [vmem:[%s13898_s1 + $0x668] ss:$16 sps:$4 sm:$0xff]  }
  0x94   :  { %5043 = vmatprep.subr.bf16.mxu0 %v9610_v39  ;;  %5576 = vmatprep.subr.bf16.mxu1 %v9613_v40  ;;  %v9701_v39 = vld [vmem:[%s13898_s1 + $0x684] ss:$16 sps:$4 sm:$0xff]   ;;  %v9704_v40 = vld [vmem:[%s13898_s1 + $0x68c] ss:$16 sps:$4 sm:$0xff]  }
  0x97   :  { %5044 = vmatpush1.bf16.msra.mxu0 %v9608_v41  ;;  %5577 = vmatpush1.bf16.msra.mxu1 %v9611_v43  ;;  %v9699_v41 = vld [vmem:[%s13898_s1 + $0x680] ss:$16 sps:$4 sm:$0xff]   ;;  %v9702_v43 = vld [vmem:[%s13898_s1 + $0x688] ss:$16 sps:$4 sm:$0xff]  }
  0x98   :  { %5045 = vmatprep.subr.bf16.mxu0 %v9616_v44  ;;  %5578 = vmatprep.subr.bf16.mxu1 %v9619_v45  ;;  %v9707_v44 = vld [vmem:[%s13898_s1 + $0x6a4] ss:$16 sps:$4 sm:$0xff]   ;;  %v9710_v45 = vld [vmem:[%s13898_s1 + $0x6ac] ss:$16 sps:$4 sm:$0xff]  }
  0x9b   :  { %5046 = vmatpush1.bf16.msra.mxu0 %v9614_v46  ;;  %5579 = vmatpush1.bf16.msra.mxu1 %v9617_v47  ;;  %v9705_v46 = vld [vmem:[%s13898_s1 + $0x6a0] ss:$16 sps:$4 sm:$0xff]   ;;  %v9708_v47 = vld [vmem:[%s13898_s1 + $0x6a8] ss:$16 sps:$4 sm:$0xff]  }
  0x9c   :  { %5047 = vmatprep.subr.bf16.mxu0 %v9622_v48  ;;  %5580 = vmatprep.subr.bf16.mxu1 %v9625_v50  ;;  %v9713_v48 = vld [vmem:[%s13898_s1 + $0x6c4] ss:$16 sps:$4 sm:$0xff]   ;;  %v9716_v50 = vld [vmem:[%s13898_s1 + $0x6cc] ss:$16 sps:$4 sm:$0xff]  }
  0x9f   :  { %5048 = vmatpush1.bf16.msra.mxu0 %v9620_v51  ;;  %5581 = vmatpush1.bf16.msra.mxu1 %v9623_v53  ;;  %v9711_v51 = vld [vmem:[%s13898_s1 + $0x6c0] ss:$16 sps:$4 sm:$0xff]   ;;  %v9714_v53 = vld [vmem:[%s13898_s1 + $0x6c8] ss:$16 sps:$4 sm:$0xff]  }
  0xa0   :  { %5049 = vmatprep.subr.bf16.mxu0 %v9628_v54  ;;  %5582 = vmatprep.subr.bf16.mxu1 %v9631_v55  ;;  %v9719_v54 = vld [vmem:[%s13898_s1 + $0x6e4] ss:$16 sps:$4 sm:$0xff]   ;;  %v9722_v55 = vld [vmem:[%s13898_s1 + $0x6ec] ss:$16 sps:$4 sm:$0xff]  }
  0xa3   :  { %5050 = vmatpush1.bf16.msra.mxu0 %v9626_v56  ;;  %5583 = vmatpush1.bf16.msra.mxu1 %v9629_v57  ;;  %v9717_v56 = vld [vmem:[%s13898_s1 + $0x6e0] ss:$16 sps:$4 sm:$0xff]   ;;  %v9720_v57 = vld [vmem:[%s13898_s1 + $0x6e8] ss:$16 sps:$4 sm:$0xff]  }
  0xa4   :  { %5051 = vmatprep.subr.bf16.mxu0 %v9634_v58  ;;  %5584 = vmatprep.subr.bf16.mxu1 %v9637_v59  ;;  %v9725_v58 = vld [vmem:[%s13898_s1 + $0x704] ss:$16 sps:$4 sm:$0xff]   ;;  %v9728_v59 = vld [vmem:[%s13898_s1 + $0x70c] ss:$16 sps:$4 sm:$0xff]  }
  0xa7   :  { %5052 = vmatpush1.bf16.msra.mxu0 %v9632_v60  ;;  %5585 = vmatpush1.bf16.msra.mxu1 %v9635_v61  ;;  %v9723_v60 = vld [vmem:[%s13898_s1 + $0x700] ss:$16 sps:$4 sm:$0xff]   ;;  %v9726_v61 = vld [vmem:[%s13898_s1 + $0x708] ss:$16 sps:$4 sm:$0xff]  }
  0xa8   :  { %5053 = vmatprep.subr.bf16.mxu0 %v9640_v62  ;;  %5586 = vmatprep.subr.bf16.mxu1 %v9643_v63  ;;  %v9731_v62 = vld [vmem:[%s13898_s1 + $0x724] ss:$16 sps:$4 sm:$0xff]   ;;  %v9734_v63 = vld [vmem:[%s13898_s1 + $0x72c] ss:$16 sps:$4 sm:$0xff]  }
  0xab   :  { %5054 = vmatpush1.bf16.msra.mxu0 %v9638_v0  ;;  %5587 = vmatpush1.bf16.msra.mxu1 %v9641_v1  ;;  %v9729_v0 = vld [vmem:[%s13898_s1 + $0x720] ss:$16 sps:$4 sm:$0xff]   ;;  %v9732_v1 = vld [vmem:[%s13898_s1 + $0x728] ss:$16 sps:$4 sm:$0xff]  }
  0xac   :  { %5055 = vmatprep.subr.bf16.mxu0 %v9646_v2  ;;  %5588 = vmatprep.subr.bf16.mxu1 %v9649_v3  ;;  %v9737_v2 = vld [vmem:[%s13898_s1 + $0x744] ss:$16 sps:$4 sm:$0xff]   ;;  %v9740_v3 = vld [vmem:[%s13898_s1 + $0x74c] ss:$16 sps:$4 sm:$0xff]  }
  0xaf   :  { %5056 = vmatpush1.bf16.msra.mxu0 %v9644_v4  ;;  %5589 = vmatpush1.bf16.msra.mxu1 %v9647_v5  ;;  %v9735_v4 = vld [vmem:[%s13898_s1 + $0x740] ss:$16 sps:$4 sm:$0xff]   ;;  %v9738_v5 = vld [vmem:[%s13898_s1 + $0x748] ss:$16 sps:$4 sm:$0xff]  }
  0xb0   :  { %5057 = vmatprep.subr.bf16.mxu0 %v9652_v6  ;;  %5590 = vmatprep.subr.bf16.mxu1 %v9655_v7  ;;  %v9743_v6 = vld [vmem:[%s13898_s1 + $0x764] ss:$16 sps:$4 sm:$0xff]   ;;  %v9746_v7 = vld [vmem:[%s13898_s1 + $0x76c] ss:$16 sps:$4 sm:$0xff]  }
  0xb3   :  { %5058 = vmatpush1.bf16.msra.mxu0 %v9650_v8  ;;  %5591 = vmatpush1.bf16.msra.mxu1 %v9653_v9  ;;  %v9741_v8 = vld [vmem:[%s13898_s1 + $0x760] ss:$16 sps:$4 sm:$0xff]   ;;  %v9744_v9 = vld [vmem:[%s13898_s1 + $0x768] ss:$16 sps:$4 sm:$0xff]  }
  0xb4   :  { %5059 = vmatprep.subr.bf16.mxu0 %v9658_v10  ;;  %5592 = vmatprep.subr.bf16.mxu1 %v9661_v11  ;;  %v9749_v10 = vld [vmem:[%s13898_s1 + $0x784] ss:$16 sps:$4 sm:$0xff]   ;;  %v9752_v11 = vld [vmem:[%s13898_s1 + $0x78c] ss:$16 sps:$4 sm:$0xff]  }
  0xb7   :  { %5060 = vmatpush1.bf16.msra.mxu0 %v9656_v12  ;;  %5593 = vmatpush1.bf16.msra.mxu1 %v9659_v52  ;;  %v9747_v12 = vld [vmem:[%s13898_s1 + $0x780] ss:$16 sps:$4 sm:$0xff]   ;;  %v9750_v52 = vld [vmem:[%s13898_s1 + $0x788] ss:$16 sps:$4 sm:$0xff]  }
  0xb8   :  { %5061 = vmatprep.subr.bf16.mxu0 %v9664_v15  ;;  %5594 = vmatprep.subr.bf16.mxu1 %v9667_v16  ;;  %v9755_v15 = vld [vmem:[%s13898_s1 + $0x7a4] ss:$16 sps:$4 sm:$0xff]   ;;  %v9758_v16 = vld [vmem:[%s13898_s1 + $0x7ac] ss:$16 sps:$4 sm:$0xff]  }
  0xbb   :  { %5062 = vmatpush1.bf16.msra.mxu0 %v9662_v17  ;;  %5595 = vmatpush1.bf16.msra.mxu1 %v9665_v18  ;;  %v9753_v17 = vld [vmem:[%s13898_s1 + $0x7a0] ss:$16 sps:$4 sm:$0xff]   ;;  %v9756_v18 = vld [vmem:[%s13898_s1 + $0x7a8] ss:$16 sps:$4 sm:$0xff]  }
  0xbc   :  { %5063 = vmatprep.subr.bf16.mxu0 %v9670_v19  ;;  %5596 = vmatprep.subr.bf16.mxu1 %v9673_v20  ;;  %v9761_v19 = vld [vmem:[%s13898_s1 + $0x7c4] ss:$16 sps:$4 sm:$0xff]   ;;  %v9764_v20 = vld [vmem:[%s13898_s1 + $0x7cc] ss:$16 sps:$4 sm:$0xff]  }
  0xbf   :  { %5064 = vmatpush1.bf16.msra.mxu0 %v9668_v21  ;;  %5597 = vmatpush1.bf16.msra.mxu1 %v9671_v22  ;;  %v11618_v21 = vld.sshfl [vmem:[%s13897_s0 + $0x8] sm:$0xff pattern:$0x75316420]  ;;  %v9759_v22 = vld [vmem:[%s13898_s1 + $0x7c0] ss:$16 sps:$4 sm:$0xff]  }
  0xc0   :  { %5074 = vmatprep.subr.bf16.mxu0 %v9677_v23  ;;  %5607 = vmatprep.subr.bf16.mxu1 %v9680_v24  ;;  %v9762_v23 = vld [vmem:[%s13898_s1 + $0x7c8] ss:$16 sps:$4 sm:$0xff]   ;;  %v9767_v24 = vld [vmem:[%s13898_s1 + $0x7e4] ss:$16 sps:$4 sm:$0xff]  }
  0xc2   :  { %5066 = vmatmul.mubr.bf16.vlgmr.msra.gmra.mrb[0].mxu0 %v11444_v26  ;;  %5599 = vmatmul.mubr.bf16.vlgmr.msra.gmra.mrb[0].mxu1 %v11444_v26 }
  0xc3   :  { %5075 = vmatpush1.bf16.msra.mxu0 %v9675_v13  ;;  %5608 = vmatpush1.bf16.msra.mxu1 %v9678_v27  ;;  %v9770_v13 = vld [vmem:[%s13898_s1 + $0x7ec] ss:$16 sps:$4 sm:$0xff]   ;;  %v9765_v27 = vld [vmem:[%s13898_s1 + $0x7e0] ss:$16 sps:$4 sm:$0xff]  }
  0xc4   :  { %5076 = vmatprep.subr.bf16.mxu0 %v9683_v28  ;;  %5609 = vmatprep.subr.bf16.mxu1 %v9686_v29  ;;  %v9768_v28 = vld [vmem:[%s13898_s1 + $0x7e8] ss:$16 sps:$4 sm:$0xff]   ;;  %v9773_v29 = vld [vmem:[%s13898_s1 + $0x804] ss:$16 sps:$4 sm:$0xff]  }
  0xc5   :  { %5106 = vmatprep.mubr.bf16.mxu0 %v890_v14  ;;  %5639 = vmatprep.mubr.bf16.mxu1 %v890_v14  ;;  %v9776_v14 = vld [vmem:[%s13898_s1 + $0x80c] ss:$16 sps:$4 sm:$0xff]  }
  0xc7   :  { %5077 = vmatpush1.bf16.msra.mxu0 %v9681_v30  ;;  %5610 = vmatpush1.bf16.msra.mxu1 %v9684_v31  ;;  %v906_v30 = vcombine.high %v11618_v21, %v11618_v21  ;;  %v888_v31 = vcombine.high %v11444_v26, %v11444_v26  ;;  %v9782_v26 = vld [vmem:[%s13898_s1 + $0x82c] ss:$16 sps:$4 sm:$0xff]  }
  0xc8   :  { %5078 = vmatprep.subr.bf16.mxu0 %v9689_v25  ;;  %5611 = vmatprep.subr.bf16.mxu1 %v9692_v32  ;;  %v9771_v25 = vld [vmem:[%s13898_s1 + $0x800] ss:$16 sps:$4 sm:$0xff]   ;;  %v9774_v32 = vld [vmem:[%s13898_s1 + $0x808] ss:$16 sps:$4 sm:$0xff]  }
  0xcb   :  { %5079 = vmatpush1.bf16.msra.mxu0 %v9687_v33  ;;  %5612 = vmatpush1.bf16.msra.mxu1 %v9690_v34  ;;  %v9779_v33 = vld [vmem:[%s13898_s1 + $0x824] ss:$16 sps:$4 sm:$0xff]   ;;  %v11661_v34 = vrot.slane %v906_v30, %v10960_v49 }
  0xcc   :  { %5080 = vmatprep.subr.bf16.mxu0 %v9695_v35  ;;  %5613 = vmatprep.subr.bf16.mxu1 %v9698_v36  ;;  %v9777_v35 = vld [vmem:[%s13898_s1 + $0x820] ss:$16 sps:$4 sm:$0xff]   ;;  %v9780_v36 = vld [vmem:[%s13898_s1 + $0x828] ss:$16 sps:$4 sm:$0xff]   ;;  %v9863_v30 = vld [vmem:[%s13898_s1 + $0x9e4] ss:$16 sps:$4 sm:$0xff]  }
  0xcf   :  { %5081 = vmatpush1.bf16.msra.mxu0 %v9693_v37  ;;  %5614 = vmatpush1.bf16.msra.mxu1 %v9696_v38  ;;  %v9785_v37 = vld [vmem:[%s13898_s1 + $0x844] ss:$16 sps:$4 sm:$0xff]   ;;  %v9788_v38 = vld [vmem:[%s13898_s1 + $0x84c] ss:$16 sps:$4 sm:$0xff]  }
  0xd0   :  { %5082 = vmatprep.subr.bf16.mxu0 %v9701_v39  ;;  %5615 = vmatprep.subr.bf16.mxu1 %v9704_v40  ;;  %v9783_v39 = vld [vmem:[%s13898_s1 + $0x840] ss:$16 sps:$4 sm:$0xff]   ;;  %v9786_v40 = vld [vmem:[%s13898_s1 + $0x848] ss:$16 sps:$4 sm:$0xff]  }
  0xd3   :  { %5083 = vmatpush1.bf16.msra.mxu0 %v9699_v41  ;;  %5616 = vmatpush1.bf16.msra.mxu1 %v9702_v43  ;;  %v9791_v41 = vld [vmem:[%s13898_s1 + $0x864] ss:$16 sps:$4 sm:$0xff]   ;;  %v9794_v43 = vld [vmem:[%s13898_s1 + $0x86c] ss:$16 sps:$4 sm:$0xff]  }
  0xd4   :  { %5084 = vmatprep.subr.bf16.mxu0 %v9707_v44  ;;  %5617 = vmatprep.subr.bf16.mxu1 %v9710_v45  ;;  %v9789_v44 = vld [vmem:[%s13898_s1 + $0x860] ss:$16 sps:$4 sm:$0xff]   ;;  %v9792_v45 = vld [vmem:[%s13898_s1 + $0x868] ss:$16 sps:$4 sm:$0xff]  }
  0xd7   :  { %5085 = vmatpush1.bf16.msra.mxu0 %v9705_v46  ;;  %5618 = vmatpush1.bf16.msra.mxu1 %v9708_v47  ;;  %v9797_v46 = vld [vmem:[%s13898_s1 + $0x884] ss:$16 sps:$4 sm:$0xff]   ;;  %v9800_v47 = vld [vmem:[%s13898_s1 + $0x88c] ss:$16 sps:$4 sm:$0xff]  }
  0xd8   :  { %5086 = vmatprep.subr.bf16.mxu0 %v9713_v48  ;;  %5619 = vmatprep.subr.bf16.mxu1 %v9716_v50  ;;  %v9795_v48 = vld [vmem:[%s13898_s1 + $0x880] ss:$16 sps:$4 sm:$0xff]   ;;  %v9798_v50 = vld [vmem:[%s13898_s1 + $0x888] ss:$16 sps:$4 sm:$0xff]  }
  0xdb   :  { %5087 = vmatpush1.bf16.msra.mxu0 %v9711_v51  ;;  %5620 = vmatpush1.bf16.msra.mxu1 %v9714_v53  ;;  %v9803_v51 = vld [vmem:[%s13898_s1 + $0x8a4] ss:$16 sps:$4 sm:$0xff]   ;;  %v9806_v53 = vld [vmem:[%s13898_s1 + $0x8ac] ss:$16 sps:$4 sm:$0xff]  }
  0xdc   :  { %5088 = vmatprep.subr.bf16.mxu0 %v9719_v54  ;;  %5621 = vmatprep.subr.bf16.mxu1 %v9722_v55  ;;  %v9801_v54 = vld [vmem:[%s13898_s1 + $0x8a0] ss:$16 sps:$4 sm:$0xff]   ;;  %v9804_v55 = vld [vmem:[%s13898_s1 + $0x8a8] ss:$16 sps:$4 sm:$0xff]  }
  0xdf   :  { %5089 = vmatpush1.bf16.msra.mxu0 %v9717_v56  ;;  %5622 = vmatpush1.bf16.msra.mxu1 %v9720_v57  ;;  %v9809_v56 = vld [vmem:[%s13898_s1 + $0x8c4] ss:$16 sps:$4 sm:$0xff]   ;;  %v9812_v57 = vld [vmem:[%s13898_s1 + $0x8cc] ss:$16 sps:$4 sm:$0xff]  }
  0xe0   :  { %5090 = vmatprep.subr.bf16.mxu0 %v9725_v58  ;;  %5623 = vmatprep.subr.bf16.mxu1 %v9728_v59  ;;  %v9807_v58 = vld [vmem:[%s13898_s1 + $0x8c0] ss:$16 sps:$4 sm:$0xff]   ;;  %v9810_v59 = vld [vmem:[%s13898_s1 + $0x8c8] ss:$16 sps:$4 sm:$0xff]  }
  0xe3   :  { %5091 = vmatpush1.bf16.msra.mxu0 %v9723_v60  ;;  %5624 = vmatpush1.bf16.msra.mxu1 %v9726_v61  ;;  %v9815_v60 = vld [vmem:[%s13898_s1 + $0x8e4] ss:$16 sps:$4 sm:$0xff]   ;;  %v9818_v61 = vld [vmem:[%s13898_s1 + $0x8ec] ss:$16 sps:$4 sm:$0xff]  }
  0xe4   :  { %5092 = vmatprep.subr.bf16.mxu0 %v9731_v62  ;;  %5625 = vmatprep.subr.bf16.mxu1 %v9734_v63  ;;  %v9813_v62 = vld [vmem:[%s13898_s1 + $0x8e0] ss:$16 sps:$4 sm:$0xff]   ;;  %v9816_v63 = vld [vmem:[%s13898_s1 + $0x8e8] ss:$16 sps:$4 sm:$0xff]  }
  0xe7   :  { %5093 = vmatpush1.bf16.msra.mxu0 %v9729_v0  ;;  %5626 = vmatpush1.bf16.msra.mxu1 %v9732_v1  ;;  %v9821_v0 = vld [vmem:[%s13898_s1 + $0x904] ss:$16 sps:$4 sm:$0xff]   ;;  %v9824_v1 = vld [vmem:[%s13898_s1 + $0x90c] ss:$16 sps:$4 sm:$0xff]  }
  0xe8   :  { %5094 = vmatprep.subr.bf16.mxu0 %v9737_v2  ;;  %5627 = vmatprep.subr.bf16.mxu1 %v9740_v3  ;;  %v9819_v2 = vld [vmem:[%s13898_s1 + $0x900] ss:$16 sps:$4 sm:$0xff]   ;;  %v9822_v3 = vld [vmem:[%s13898_s1 + $0x908] ss:$16 sps:$4 sm:$0xff]  }
  0xeb   :  { %5095 = vmatpush1.bf16.msra.mxu0 %v9735_v4  ;;  %5628 = vmatpush1.bf16.msra.mxu1 %v9738_v5  ;;  %v9827_v4 = vld [vmem:[%s13898_s1 + $0x924] ss:$16 sps:$4 sm:$0xff]   ;;  %v9830_v5 = vld [vmem:[%s13898_s1 + $0x92c] ss:$16 sps:$4 sm:$0xff]  }
  0xec   :  { %5096 = vmatprep.subr.bf16.mxu0 %v9743_v6  ;;  %5629 = vmatprep.subr.bf16.mxu1 %v9746_v7  ;;  %v9825_v6 = vld [vmem:[%s13898_s1 + $0x920] ss:$16 sps:$4 sm:$0xff]   ;;  %v9828_v7 = vld [vmem:[%s13898_s1 + $0x928] ss:$16 sps:$4 sm:$0xff]  }
  0xef   :  { %5097 = vmatpush1.bf16.msra.mxu0 %v9741_v8  ;;  %5630 = vmatpush1.bf16.msra.mxu1 %v9744_v9  ;;  %v9833_v8 = vld [vmem:[%s13898_s1 + $0x944] ss:$16 sps:$4 sm:$0xff]   ;;  %v9836_v9 = vld [vmem:[%s13898_s1 + $0x94c] ss:$16 sps:$4 sm:$0xff]  }
  0xf0   :  { %5098 = vmatprep.subr.bf16.mxu0 %v9749_v10  ;;  %5631 = vmatprep.subr.bf16.mxu1 %v9752_v11  ;;  %v9831_v10 = vld [vmem:[%s13898_s1 + $0x940] ss:$16 sps:$4 sm:$0xff]   ;;  %v9834_v11 = vld [vmem:[%s13898_s1 + $0x948] ss:$16 sps:$4 sm:$0xff]  }
  0xf3   :  { %5099 = vmatpush1.bf16.msra.mxu0 %v9747_v12  ;;  %5632 = vmatpush1.bf16.msra.mxu1 %v9750_v52  ;;  %v9839_v12 = vld [vmem:[%s13898_s1 + $0x964] ss:$16 sps:$4 sm:$0xff]   ;;  %v9842_v52 = vld [vmem:[%s13898_s1 + $0x96c] ss:$16 sps:$4 sm:$0xff]  }
  0xf4   :  { %5100 = vmatprep.subr.bf16.mxu0 %v9755_v15  ;;  %5633 = vmatprep.subr.bf16.mxu1 %v9758_v16  ;;  %v9837_v15 = vld [vmem:[%s13898_s1 + $0x960] ss:$16 sps:$4 sm:$0xff]   ;;  %v9840_v16 = vld [vmem:[%s13898_s1 + $0x968] ss:$16 sps:$4 sm:$0xff]  }
  0xf7   :  { %5101 = vmatpush1.bf16.msra.mxu0 %v9753_v17  ;;  %5634 = vmatpush1.bf16.msra.mxu1 %v9756_v18  ;;  %v9845_v17 = vld [vmem:[%s13898_s1 + $0x984] ss:$16 sps:$4 sm:$0xff]   ;;  %v9848_v18 = vld [vmem:[%s13898_s1 + $0x98c] ss:$16 sps:$4 sm:$0xff]  }
  0xf8   :  { %5102 = vmatprep.subr.bf16.mxu0 %v9761_v19  ;;  %5635 = vmatprep.subr.bf16.mxu1 %v9764_v20  ;;  %v9843_v19 = vld [vmem:[%s13898_s1 + $0x980] ss:$16 sps:$4 sm:$0xff]   ;;  %v9846_v20 = vld [vmem:[%s13898_s1 + $0x988] ss:$16 sps:$4 sm:$0xff]  }
  0xfb   :  { %5103 = vmatpush1.bf16.msra.mxu0 %v9759_v22  ;;  %5636 = vmatpush1.bf16.msra.mxu1 %v9762_v23  ;;  %v9851_v22 = vld [vmem:[%s13898_s1 + $0x9a4] ss:$16 sps:$4 sm:$0xff]   ;;  %v9854_v23 = vld [vmem:[%s13898_s1 + $0x9ac] ss:$16 sps:$4 sm:$0xff]  }
  0xfc   :  { %5104 = vmatprep.subr.bf16.mxu0 %v9767_v24  ;;  %5637 = vmatprep.subr.bf16.mxu1 %v9770_v13  ;;  %v9849_v24 = vld [vmem:[%s13898_s1 + $0x9a0] ss:$16 sps:$4 sm:$0xff]   ;;  %v9852_v13 = vld [vmem:[%s13898_s1 + $0x9a8] ss:$16 sps:$4 sm:$0xff]  }
  0xff   :  { %5105 = vmatpush1.bf16.msra.mxu0 %v9765_v27  ;;  %5638 = vmatpush1.bf16.msra.mxu1 %v9768_v28  ;;  %v9857_v27 = vld [vmem:[%s13898_s1 + $0x9c4] ss:$16 sps:$4 sm:$0xff]   ;;  %v9860_v28 = vld [vmem:[%s13898_s1 + $0x9cc] ss:$16 sps:$4 sm:$0xff]  }
 0x100   :  { %5115 = vmatprep.subr.bf16.mxu0 %v9773_v29  ;;  %5648 = vmatprep.subr.bf16.mxu1 %v9776_v14  ;;  %v9855_v29 = vld [vmem:[%s13898_s1 + $0x9c0] ss:$16 sps:$4 sm:$0xff]   ;;  %v9858_v14 = vld [vmem:[%s13898_s1 + $0x9c8] ss:$16 sps:$4 sm:$0xff]  }
 0x102   :  { %5107 = vmatmul.mubr.bf16.vlgmr.msra.gmra.mrb[0].mxu0 %v888_v31  ;;  %5640 = vmatmul.mubr.bf16.vlgmr.msra.gmra.mrb[0].mxu1 %v888_v31  ;;  %v9866_v31 = vld [vmem:[%s13898_s1 + $0x9ec] ss:$16 sps:$4 sm:$0xff]  }
 0x103   :  { %5116 = vmatpush1.bf16.msra.mxu0 %v9771_v25  ;;  %5649 = vmatpush1.bf16.msra.mxu1 %v9774_v32  ;;  %v9861_v25 = vld [vmem:[%s13898_s1 + $0x9e0] ss:$16 sps:$4 sm:$0xff]   ;;  %v9864_v32 = vld [vmem:[%s13898_s1 + $0x9e8] ss:$16 sps:$4 sm:$0xff]  }
 0x104   :  { %5117 = vmatprep.subr.bf16.mxu0 %v9779_v33  ;;  %5650 = vmatprep.subr.bf16.mxu1 %v9782_v26  ;;  %v9869_v33 = vld [vmem:[%s13898_s1 + $0xa04] ss:$16 sps:$4 sm:$0xff]   ;;  %v9872_v26 = vld [vmem:[%s13898_s1 + $0xa0c] ss:$16 sps:$4 sm:$0xff]  }
 0x105   :  { %5147 = vmatprep.mubr.bf16.mxu0 %v11661_v34  ;;  %5680 = vmatprep.mubr.bf16.mxu1 %v11661_v34 }
 0x107   :  { %5118 = vmatpush1.bf16.msra.mxu0 %v9777_v35  ;;  %5651 = vmatpush1.bf16.msra.mxu1 %v9780_v36  ;;  %v11847_v35 = vrot.slane %v11618_v21, %v10960_v49  ;;  %v9867_v36 = vld [vmem:[%s13898_s1 + $0xa00] ss:$16 sps:$4 sm:$0xff]   ;;  %v9878_v21 = vld [vmem:[%s13898_s1 + $0xa2c] ss:$16 sps:$4 sm:$0xff]  }
 0x108   :  { %5119 = vmatprep.subr.bf16.mxu0 %v9785_v37  ;;  %5652 = vmatprep.subr.bf16.mxu1 %v9788_v38  ;;  %v9870_v37 = vld [vmem:[%s13898_s1 + $0xa08] ss:$16 sps:$4 sm:$0xff]   ;;  %v9875_v38 = vld [vmem:[%s13898_s1 + $0xa24] ss:$16 sps:$4 sm:$0xff]  }
 0x10b   :  { %5120 = vmatpush1.bf16.msra.mxu0 %v9783_v39  ;;  %5653 = vmatpush1.bf16.msra.mxu1 %v9786_v40  ;;  %v938_v39 = vcombine.high %v11661_v34, %v11661_v34  ;;  %v9873_v40 = vld [vmem:[%s13898_s1 + $0xa20] ss:$16 sps:$4 sm:$0xff]   ;;  %v9881_v34 = vld [vmem:[%s13898_s1 + $0xa44] ss:$16 sps:$4 sm:$0xff]  }
 0x10c   :  { %5121 = vmatprep.subr.bf16.mxu0 %v9791_v41  ;;  %5654 = vmatprep.subr.bf16.mxu1 %v9794_v43  ;;  %v9876_v41 = vld [vmem:[%s13898_s1 + $0xa28] ss:$16 sps:$4 sm:$0xff]   ;;  %v9884_v43 = vld [vmem:[%s13898_s1 + $0xa4c] ss:$16 sps:$4 sm:$0xff]  }
 0x10f   :  { %5122 = vmatpush1.bf16.msra.mxu0 %v9789_v44  ;;  %5655 = vmatpush1.bf16.msra.mxu1 %v9792_v45  ;;  %v9879_v44 = vld [vmem:[%s13898_s1 + $0xa40] ss:$16 sps:$4 sm:$0xff]   ;;  %v9882_v45 = vld [vmem:[%s13898_s1 + $0xa48] ss:$16 sps:$4 sm:$0xff]  }
 0x110   :  { %5123 = vmatprep.subr.bf16.mxu0 %v9797_v46  ;;  %5656 = vmatprep.subr.bf16.mxu1 %v9800_v47  ;;  %v9887_v46 = vld [vmem:[%s13898_s1 + $0xa64] ss:$16 sps:$4 sm:$0xff]   ;;  %v9890_v47 = vld [vmem:[%s13898_s1 + $0xa6c] ss:$16 sps:$4 sm:$0xff]  }
 0x113   :  { %5124 = vmatpush1.bf16.msra.mxu0 %v9795_v48  ;;  %5657 = vmatpush1.bf16.msra.mxu1 %v9798_v50  ;;  %v9885_v48 = vld [vmem:[%s13898_s1 + $0xa60] ss:$16 sps:$4 sm:$0xff]   ;;  %v9888_v50 = vld [vmem:[%s13898_s1 + $0xa68] ss:$16 sps:$4 sm:$0xff]  }
 0x114   :  { %5125 = vmatprep.subr.bf16.mxu0 %v9803_v51  ;;  %5658 = vmatprep.subr.bf16.mxu1 %v9806_v53  ;;  %v9893_v51 = vld [vmem:[%s13898_s1 + $0xa84] ss:$16 sps:$4 sm:$0xff]   ;;  %v9896_v53 = vld [vmem:[%s13898_s1 + $0xa8c] ss:$16 sps:$4 sm:$0xff]  }
 0x117   :  { %5126 = vmatpush1.bf16.msra.mxu0 %v9801_v54  ;;  %5659 = vmatpush1.bf16.msra.mxu1 %v9804_v55  ;;  %v9891_v54 = vld [vmem:[%s13898_s1 + $0xa80] ss:$16 sps:$4 sm:$0xff]   ;;  %v9894_v55 = vld [vmem:[%s13898_s1 + $0xa88] ss:$16 sps:$4 sm:$0xff]  }
 0x118   :  { %5127 = vmatprep.subr.bf16.mxu0 %v9809_v56  ;;  %5660 = vmatprep.subr.bf16.mxu1 %v9812_v57  ;;  %v9899_v56 = vld [vmem:[%s13898_s1 + $0xaa4] ss:$16 sps:$4 sm:$0xff]   ;;  %v9902_v57 = vld [vmem:[%s13898_s1 + $0xaac] ss:$16 sps:$4 sm:$0xff]  }
 0x11b   :  { %5128 = vmatpush1.bf16.msra.mxu0 %v9807_v58  ;;  %5661 = vmatpush1.bf16.msra.mxu1 %v9810_v59  ;;  %v9897_v58 = vld [vmem:[%s13898_s1 + $0xaa0] ss:$16 sps:$4 sm:$0xff]   ;;  %v9900_v59 = vld [vmem:[%s13898_s1 + $0xaa8] ss:$16 sps:$4 sm:$0xff]  }
 0x11c   :  { %5129 = vmatprep.subr.bf16.mxu0 %v9815_v60  ;;  %5662 = vmatprep.subr.bf16.mxu1 %v9818_v61  ;;  %v9905_v60 = vld [vmem:[%s13898_s1 + $0xac4] ss:$16 sps:$4 sm:$0xff]   ;;  %v9908_v61 = vld [vmem:[%s13898_s1 + $0xacc] ss:$16 sps:$4 sm:$0xff]  }
 0x11f   :  { %5130 = vmatpush1.bf16.msra.mxu0 %v9813_v62  ;;  %5663 = vmatpush1.bf16.msra.mxu1 %v9816_v63  ;;  %v9903_v62 = vld [vmem:[%s13898_s1 + $0xac0] ss:$16 sps:$4 sm:$0xff]   ;;  %v9906_v63 = vld [vmem:[%s13898_s1 + $0xac8] ss:$16 sps:$4 sm:$0xff]  }
 0x120   :  { %5131 = vmatprep.subr.bf16.mxu0 %v9821_v0  ;;  %5664 = vmatprep.subr.bf16.mxu1 %v9824_v1  ;;  %v9911_v0 = vld [vmem:[%s13898_s1 + $0xae4] ss:$16 sps:$4 sm:$0xff]   ;;  %v9914_v1 = vld [vmem:[%s13898_s1 + $0xaec] ss:$16 sps:$4 sm:$0xff]  }
 0x123   :  { %5132 = vmatpush1.bf16.msra.mxu0 %v9819_v2  ;;  %5665 = vmatpush1.bf16.msra.mxu1 %v9822_v3  ;;  %v9909_v2 = vld [vmem:[%s13898_s1 + $0xae0] ss:$16 sps:$4 sm:$0xff]   ;;  %v9912_v3 = vld [vmem:[%s13898_s1 + $0xae8] ss:$16 sps:$4 sm:$0xff]  }
 0x124   :  { %5133 = vmatprep.subr.bf16.mxu0 %v9827_v4  ;;  %5666 = vmatprep.subr.bf16.mxu1 %v9830_v5  ;;  %v9917_v4 = vld [vmem:[%s13898_s1 + $0xb04] ss:$16 sps:$4 sm:$0xff]   ;;  %v9920_v5 = vld [vmem:[%s13898_s1 + $0xb0c] ss:$16 sps:$4 sm:$0xff]  }
 0x127   :  { %5134 = vmatpush1.bf16.msra.mxu0 %v9825_v6  ;;  %5667 = vmatpush1.bf16.msra.mxu1 %v9828_v7  ;;  %v9915_v6 = vld [vmem:[%s13898_s1 + $0xb00] ss:$16 sps:$4 sm:$0xff]   ;;  %v9918_v7 = vld [vmem:[%s13898_s1 + $0xb08] ss:$16 sps:$4 sm:$0xff]  }
 0x128   :  { %5135 = vmatprep.subr.bf16.mxu0 %v9833_v8  ;;  %5668 = vmatprep.subr.bf16.mxu1 %v9836_v9  ;;  %v9923_v8 = vld [vmem:[%s13898_s1 + $0xb24] ss:$16 sps:$4 sm:$0xff]   ;;  %v9926_v9 = vld [vmem:[%s13898_s1 + $0xb2c] ss:$16 sps:$4 sm:$0xff]  }
 0x12b   :  { %5136 = vmatpush1.bf16.msra.mxu0 %v9831_v10  ;;  %5669 = vmatpush1.bf16.msra.mxu1 %v9834_v11  ;;  %v9921_v10 = vld [vmem:[%s13898_s1 + $0xb20] ss:$16 sps:$4 sm:$0xff]   ;;  %v9924_v11 = vld [vmem:[%s13898_s1 + $0xb28] ss:$16 sps:$4 sm:$0xff]  }
 0x12c   :  { %5137 = vmatprep.subr.bf16.mxu0 %v9839_v12  ;;  %5670 = vmatprep.subr.bf16.mxu1 %v9842_v52  ;;  %v9929_v12 = vld [vmem:[%s13898_s1 + $0xb44] ss:$16 sps:$4 sm:$0xff]   ;;  %v9932_v52 = vld [vmem:[%s13898_s1 + $0xb4c] ss:$16 sps:$4 sm:$0xff]  }
 0x12f   :  { %5138 = vmatpush1.bf16.msra.mxu0 %v9837_v15  ;;  %5671 = vmatpush1.bf16.msra.mxu1 %v9840_v16  ;;  %v9927_v15 = vld [vmem:[%s13898_s1 + $0xb40] ss:$16 sps:$4 sm:$0xff]   ;;  %v9930_v16 = vld [vmem:[%s13898_s1 + $0xb48] ss:$16 sps:$4 sm:$0xff]  }
 0x130   :  { %5139 = vmatprep.subr.bf16.mxu0 %v9845_v17  ;;  %5672 = vmatprep.subr.bf16.mxu1 %v9848_v18  ;;  %v9935_v17 = vld [vmem:[%s13898_s1 + $0xb64] ss:$16 sps:$4 sm:$0xff]   ;;  %v9938_v18 = vld [vmem:[%s13898_s1 + $0xb6c] ss:$16 sps:$4 sm:$0xff]  }
 0x133   :  { %5140 = vmatpush1.bf16.msra.mxu0 %v9843_v19  ;;  %5673 = vmatpush1.bf16.msra.mxu1 %v9846_v20  ;;  %v9933_v19 = vld [vmem:[%s13898_s1 + $0xb60] ss:$16 sps:$4 sm:$0xff]   ;;  %v9936_v20 = vld [vmem:[%s13898_s1 + $0xb68] ss:$16 sps:$4 sm:$0xff]  }
 0x134   :  { %5141 = vmatprep.subr.bf16.mxu0 %v9851_v22  ;;  %5674 = vmatprep.subr.bf16.mxu1 %v9854_v23  ;;  %v9941_v22 = vld [vmem:[%s13898_s1 + $0xb84] ss:$16 sps:$4 sm:$0xff]   ;;  %v9944_v23 = vld [vmem:[%s13898_s1 + $0xb8c] ss:$16 sps:$4 sm:$0xff]  }
 0x137   :  { %5142 = vmatpush1.bf16.msra.mxu0 %v9849_v24  ;;  %5675 = vmatpush1.bf16.msra.mxu1 %v9852_v13  ;;  %v9939_v24 = vld [vmem:[%s13898_s1 + $0xb80] ss:$16 sps:$4 sm:$0xff]   ;;  %v9942_v13 = vld [vmem:[%s13898_s1 + $0xb88] ss:$16 sps:$4 sm:$0xff]  }
 0x138   :  { %5143 = vmatprep.subr.bf16.mxu0 %v9857_v27  ;;  %5676 = vmatprep.subr.bf16.mxu1 %v9860_v28  ;;  %v9947_v27 = vld [vmem:[%s13898_s1 + $0xba4] ss:$16 sps:$4 sm:$0xff]   ;;  %v9950_v28 = vld [vmem:[%s13898_s1 + $0xbac] ss:$16 sps:$4 sm:$0xff]  }
 0x13b   :  { %5144 = vmatpush1.bf16.msra.mxu0 %v9855_v29  ;;  %5677 = vmatpush1.bf16.msra.mxu1 %v9858_v14  ;;  %v9945_v29 = vld [vmem:[%s13898_s1 + $0xba0] ss:$16 sps:$4 sm:$0xff]   ;;  %v9948_v14 = vld [vmem:[%s13898_s1 + $0xba8] ss:$16 sps:$4 sm:$0xff]  }
 0x13c   :  { %5145 = vmatprep.subr.bf16.mxu0 %v9863_v30  ;;  %5678 = vmatprep.subr.bf16.mxu1 %v9866_v31  ;;  %v9953_v30 = vld [vmem:[%s13898_s1 + $0xbc4] ss:$16 sps:$4 sm:$0xff]   ;;  %v9956_v31 = vld [vmem:[%s13898_s1 + $0xbcc] ss:$16 sps:$4 sm:$0xff]  }
 0x13f   :  { %5146 = vmatpush1.bf16.msra.mxu0 %v9861_v25  ;;  %5679 = vmatpush1.bf16.msra.mxu1 %v9864_v32  ;;  %v10731_v25 = vld [vmem:[%s13897_s0 + $0x8] sm:$0xff] }
 0x140   :  { %5156 = vmatprep.subr.bf16.mxu0 %v9869_v33  ;;  %5689 = vmatprep.subr.bf16.mxu1 %v9872_v26  ;;  %v891_v32 = vcombine.high %v10731_v25, %v10731_v25  ;;  %v9951_v33 = vld [vmem:[%s13898_s1 + $0xbc0] ss:$16 sps:$4 sm:$0xff]   ;;  %v9954_v26 = vld [vmem:[%s13898_s1 + $0xbc8] ss:$16 sps:$4 sm:$0xff]  }
 0x141   :  { %v10035_v25 = vld [vmem:[%s13898_s1 + $0xd80] ss:$16 sps:$4 sm:$0xff]  }
 0x142   :  { %5148 = vmatmul.mubr.bf16.vlgmr.msra.gmra.mrb[0].mxu0 %v11847_v35  ;;  %5681 = vmatmul.mubr.bf16.vlgmr.msra.gmra.mrb[0].mxu1 %v11847_v35 }
 0x143   :  { %5157 = vmatpush1.bf16.msra.mxu0 %v9867_v36  ;;  %5690 = vmatpush1.bf16.msra.mxu1 %v9870_v37  ;;  %v9959_v36 = vld [vmem:[%s13898_s1 + $0xbe4] ss:$16 sps:$4 sm:$0xff]   ;;  %v9962_v37 = vld [vmem:[%s13898_s1 + $0xbec] ss:$16 sps:$4 sm:$0xff]  }
 0x144   :  { %5158 = vmatprep.subr.bf16.mxu0 %v9875_v38  ;;  %5691 = vmatprep.subr.bf16.mxu1 %v9878_v21  ;;  %v12037_v38 = vrot.slane %v891_v32, %v10960_v49  ;;  %v9957_v21 = vld [vmem:[%s13898_s1 + $0xbe0] ss:$16 sps:$4 sm:$0xff]   ;;  %v10038_v32 = vld [vmem:[%s13898_s1 + $0xd88] ss:$16 sps:$4 sm:$0xff]  }
 0x145   :  { %5188 = vmatprep.mubr.bf16.mxu0 %v938_v39  ;;  %5721 = vmatprep.mubr.bf16.mxu1 %v938_v39  ;;  %v9960_v39 = vld [vmem:[%s13898_s1 + $0xbe8] ss:$16 sps:$4 sm:$0xff]  }
 0x147   :  { %5159 = vmatpush1.bf16.msra.mxu0 %v9873_v40  ;;  %5692 = vmatpush1.bf16.msra.mxu1 %v9876_v41  ;;  %v9965_v40 = vld [vmem:[%s13898_s1 + $0xc04] ss:$16 sps:$4 sm:$0xff]   ;;  %v9968_v41 = vld [vmem:[%s13898_s1 + $0xc0c] ss:$16 sps:$4 sm:$0xff]  }
 0x148   :  { %5160 = vmatprep.subr.bf16.mxu0 %v9881_v34  ;;  %5693 = vmatprep.subr.bf16.mxu1 %v9884_v43  ;;  %v907_v34 = vcombine.high %v12037_v38, %v12037_v38  ;;  %v936_v43 = vcombine.high %v11847_v35, %v11847_v35  ;;  %v9974_v35 = vld [vmem:[%s13898_s1 + $0xc2c] ss:$16 sps:$4 sm:$0xff]  }
 0x14b   :  { %5161 = vmatpush1.bf16.msra.mxu0 %v9879_v44  ;;  %5694 = vmatpush1.bf16.msra.mxu1 %v9882_v45  ;;  %v9963_v44 = vld [vmem:[%s13898_s1 + $0xc00] ss:$16 sps:$4 sm:$0xff]   ;;  %v9966_v45 = vld [vmem:[%s13898_s1 + $0xc08] ss:$16 sps:$4 sm:$0xff]  }
 0x14c   :  { %5162 = vmatprep.subr.bf16.mxu0 %v9887_v46  ;;  %5695 = vmatprep.subr.bf16.mxu1 %v9890_v47  ;;  %v9971_v46 = vld [vmem:[%s13898_s1 + $0xc24] ss:$16 sps:$4 sm:$0xff]   ;;  %v12068_v47 = vrot.slane %v907_v34, %v10960_v49 }
 0x14d   :  { %v10055_v34 = vld [vmem:[%s13898_s1 + $0xde4] ss:$16 sps:$4 sm:$0xff]  }
 0x14f   :  { %5163 = vmatpush1.bf16.msra.mxu0 %v9885_v48  ;;  %5696 = vmatpush1.bf16.msra.mxu1 %v9888_v50  ;;  %v9969_v48 = vld [vmem:[%s13898_s1 + $0xc20] ss:$16 sps:$4 sm:$0xff]   ;;  %v9972_v50 = vld [vmem:[%s13898_s1 + $0xc28] ss:$16 sps:$4 sm:$0xff]  }
 0x150   :  { %5164 = vmatprep.subr.bf16.mxu0 %v9893_v51  ;;  %5697 = vmatprep.subr.bf16.mxu1 %v9896_v53  ;;  %v9977_v51 = vld [vmem:[%s13898_s1 + $0xc44] ss:$16 sps:$4 sm:$0xff]   ;;  %v9980_v53 = vld [vmem:[%s13898_s1 + $0xc4c] ss:$16 sps:$4 sm:$0xff]  }
 0x153   :  { %5165 = vmatpush1.bf16.msra.mxu0 %v9891_v54  ;;  %5698 = vmatpush1.bf16.msra.mxu1 %v9894_v55  ;;  %v9975_v54 = vld [vmem:[%s13898_s1 + $0xc40] ss:$16 sps:$4 sm:$0xff]   ;;  %v9978_v55 = vld [vmem:[%s13898_s1 + $0xc48] ss:$16 sps:$4 sm:$0xff]  }
 0x154   :  { %5166 = vmatprep.subr.bf16.mxu0 %v9899_v56  ;;  %5699 = vmatprep.subr.bf16.mxu1 %v9902_v57  ;;  %v9983_v56 = vld [vmem:[%s13898_s1 + $0xc64] ss:$16 sps:$4 sm:$0xff]   ;;  %v9986_v57 = vld [vmem:[%s13898_s1 + $0xc6c] ss:$16 sps:$4 sm:$0xff]  }
 0x157   :  { %5167 = vmatpush1.bf16.msra.mxu0 %v9897_v58  ;;  %5700 = vmatpush1.bf16.msra.mxu1 %v9900_v59  ;;  %v9981_v58 = vld [vmem:[%s13898_s1 + $0xc60] ss:$16 sps:$4 sm:$0xff]   ;;  %v9984_v59 = vld [vmem:[%s13898_s1 + $0xc68] ss:$16 sps:$4 sm:$0xff]  }
 0x158   :  { %5168 = vmatprep.subr.bf16.mxu0 %v9905_v60  ;;  %5701 = vmatprep.subr.bf16.mxu1 %v9908_v61  ;;  %v9989_v60 = vld [vmem:[%s13898_s1 + $0xc84] ss:$16 sps:$4 sm:$0xff]   ;;  %v9992_v61 = vld [vmem:[%s13898_s1 + $0xc8c] ss:$16 sps:$4 sm:$0xff]  }
 0x15b   :  { %5169 = vmatpush1.bf16.msra.mxu0 %v9903_v62  ;;  %5702 = vmatpush1.bf16.msra.mxu1 %v9906_v63  ;;  %v9987_v62 = vld [vmem:[%s13898_s1 + $0xc80] ss:$16 sps:$4 sm:$0xff]   ;;  %v9990_v63 = vld [vmem:[%s13898_s1 + $0xc88] ss:$16 sps:$4 sm:$0xff]  }
 0x15c   :  { %5170 = vmatprep.subr.bf16.mxu0 %v9911_v0  ;;  %5703 = vmatprep.subr.bf16.mxu1 %v9914_v1  ;;  %v9995_v0 = vld [vmem:[%s13898_s1 + $0xca4] ss:$16 sps:$4 sm:$0xff]   ;;  %v9998_v1 = vld [vmem:[%s13898_s1 + $0xcac] ss:$16 sps:$4 sm:$0xff]  }
 0x15f   :  { %5171 = vmatpush1.bf16.msra.mxu0 %v9909_v2  ;;  %5704 = vmatpush1.bf16.msra.mxu1 %v9912_v3  ;;  %v9993_v2 = vld [vmem:[%s13898_s1 + $0xca0] ss:$16 sps:$4 sm:$0xff]   ;;  %v9996_v3 = vld [vmem:[%s13898_s1 + $0xca8] ss:$16 sps:$4 sm:$0xff]  }
 0x160   :  { %5172 = vmatprep.subr.bf16.mxu0 %v9917_v4  ;;  %5705 = vmatprep.subr.bf16.mxu1 %v9920_v5  ;;  %v10001_v4 = vld [vmem:[%s13898_s1 + $0xcc4] ss:$16 sps:$4 sm:$0xff]   ;;  %v10004_v5 = vld [vmem:[%s13898_s1 + $0xccc] ss:$16 sps:$4 sm:$0xff]  }
 0x163   :  { %5173 = vmatpush1.bf16.msra.mxu0 %v9915_v6  ;;  %5706 = vmatpush1.bf16.msra.mxu1 %v9918_v7  ;;  %v9999_v6 = vld [vmem:[%s13898_s1 + $0xcc0] ss:$16 sps:$4 sm:$0xff]   ;;  %v10002_v7 = vld [vmem:[%s13898_s1 + $0xcc8] ss:$16 sps:$4 sm:$0xff]  }
 0x164   :  { %5174 = vmatprep.subr.bf16.mxu0 %v9923_v8  ;;  %5707 = vmatprep.subr.bf16.mxu1 %v9926_v9  ;;  %v10007_v8 = vld [vmem:[%s13898_s1 + $0xce4] ss:$16 sps:$4 sm:$0xff]   ;;  %v10010_v9 = vld [vmem:[%s13898_s1 + $0xcec] ss:$16 sps:$4 sm:$0xff]  }
 0x167   :  { %5175 = vmatpush1.bf16.msra.mxu0 %v9921_v10  ;;  %5708 = vmatpush1.bf16.msra.mxu1 %v9924_v11  ;;  %v10005_v10 = vld [vmem:[%s13898_s1 + $0xce0] ss:$16 sps:$4 sm:$0xff]   ;;  %v10008_v11 = vld [vmem:[%s13898_s1 + $0xce8] ss:$16 sps:$4 sm:$0xff]  }
 0x168   :  { %5176 = vmatprep.subr.bf16.mxu0 %v9929_v12  ;;  %5709 = vmatprep.subr.bf16.mxu1 %v9932_v52  ;;  %v10013_v12 = vld [vmem:[%s13898_s1 + $0xd04] ss:$16 sps:$4 sm:$0xff]   ;;  %v10016_v52 = vld [vmem:[%s13898_s1 + $0xd0c] ss:$16 sps:$4 sm:$0xff]  }
 0x16b   :  { %5177 = vmatpush1.bf16.msra.mxu0 %v9927_v15  ;;  %5710 = vmatpush1.bf16.msra.mxu1 %v9930_v16  ;;  %v10011_v15 = vld [vmem:[%s13898_s1 + $0xd00] ss:$16 sps:$4 sm:$0xff]   ;;  %v10014_v16 = vld [vmem:[%s13898_s1 + $0xd08] ss:$16 sps:$4 sm:$0xff]  }
 0x16c   :  { %5178 = vmatprep.subr.bf16.mxu0 %v9935_v17  ;;  %5711 = vmatprep.subr.bf16.mxu1 %v9938_v18  ;;  %v10019_v17 = vld [vmem:[%s13898_s1 + $0xd24] ss:$16 sps:$4 sm:$0xff]   ;;  %v10022_v18 = vld [vmem:[%s13898_s1 + $0xd2c] ss:$16 sps:$4 sm:$0xff]  }
 0x16f   :  { %5179 = vmatpush1.bf16.msra.mxu0 %v9933_v19  ;;  %5712 = vmatpush1.bf16.msra.mxu1 %v9936_v20  ;;  %v10017_v19 = vld [vmem:[%s13898_s1 + $0xd20] ss:$16 sps:$4 sm:$0xff]   ;;  %v10020_v20 = vld [vmem:[%s13898_s1 + $0xd28] ss:$16 sps:$4 sm:$0xff]  }
 0x170   :  { %5180 = vmatprep.subr.bf16.mxu0 %v9941_v22  ;;  %5713 = vmatprep.subr.bf16.mxu1 %v9944_v23  ;;  %v10025_v22 = vld [vmem:[%s13898_s1 + $0xd44] ss:$16 sps:$4 sm:$0xff]   ;;  %v10028_v23 = vld [vmem:[%s13898_s1 + $0xd4c] ss:$16 sps:$4 sm:$0xff]  }
 0x173   :  { %5181 = vmatpush1.bf16.msra.mxu0 %v9939_v24  ;;  %5714 = vmatpush1.bf16.msra.mxu1 %v9942_v13  ;;  %v10023_v24 = vld [vmem:[%s13898_s1 + $0xd40] ss:$16 sps:$4 sm:$0xff]   ;;  %v10026_v13 = vld [vmem:[%s13898_s1 + $0xd48] ss:$16 sps:$4 sm:$0xff]  }
 0x174   :  { %5182 = vmatprep.subr.bf16.mxu0 %v9947_v27  ;;  %5715 = vmatprep.subr.bf16.mxu1 %v9950_v28  ;;  %v10031_v27 = vld [vmem:[%s13898_s1 + $0xd64] ss:$16 sps:$4 sm:$0xff]   ;;  %v10034_v28 = vld [vmem:[%s13898_s1 + $0xd6c] ss:$16 sps:$4 sm:$0xff]  }
 0x177   :  { %5183 = vmatpush1.bf16.msra.mxu0 %v9945_v29  ;;  %5716 = vmatpush1.bf16.msra.mxu1 %v9948_v14  ;;  %v10029_v29 = vld [vmem:[%s13898_s1 + $0xd60] ss:$16 sps:$4 sm:$0xff]   ;;  %v10032_v14 = vld [vmem:[%s13898_s1 + $0xd68] ss:$16 sps:$4 sm:$0xff]  }
 0x178   :  { %5184 = vmatprep.subr.bf16.mxu0 %v9953_v30  ;;  %5717 = vmatprep.subr.bf16.mxu1 %v9956_v31  ;;  %v10037_v30 = vld [vmem:[%s13898_s1 + $0xd84] ss:$16 sps:$4 sm:$0xff]   ;;  %v10040_v31 = vld [vmem:[%s13898_s1 + $0xd8c] ss:$16 sps:$4 sm:$0xff]  }
 0x17b   :  { %5185 = vmatpush1.bf16.msra.mxu0 %v9951_v33  ;;  %5718 = vmatpush1.bf16.msra.mxu1 %v9954_v26  ;;  %v10043_v33 = vld [vmem:[%s13898_s1 + $0xda4] ss:$16 sps:$4 sm:$0xff]   ;;  %v10046_v26 = vld [vmem:[%s13898_s1 + $0xdac] ss:$16 sps:$4 sm:$0xff]  }
 0x17c   :  { %5186 = vmatprep.subr.bf16.mxu0 %v9959_v36  ;;  %5719 = vmatprep.subr.bf16.mxu1 %v9962_v37  ;;  %v10041_v36 = vld [vmem:[%s13898_s1 + $0xda0] ss:$16 sps:$4 sm:$0xff]   ;;  %v10044_v37 = vld [vmem:[%s13898_s1 + $0xda8] ss:$16 sps:$4 sm:$0xff]  }
 0x17f   :  { %5187 = vmatpush1.bf16.msra.mxu0 %v9957_v21  ;;  %5720 = vmatpush1.bf16.msra.mxu1 %v9960_v39  ;;  %v10049_v21 = vld [vmem:[%s13898_s1 + $0xdc4] ss:$16 sps:$4 sm:$0xff]   ;;  %v10052_v39 = vld [vmem:[%s13898_s1 + $0xdcc] ss:$16 sps:$4 sm:$0xff]  }
 0x180   :  { %5197 = vmatprep.subr.bf16.mxu0 %v9965_v40  ;;  %5730 = vmatprep.subr.bf16.mxu1 %v9968_v41  ;;  %v10047_v40 = vld [vmem:[%s13898_s1 + $0xdc0] ss:$16 sps:$4 sm:$0xff]   ;;  %v10050_v41 = vld [vmem:[%s13898_s1 + $0xdc8] ss:$16 sps:$4 sm:$0xff]  }
 0x182   :  { %5189 = vmatmul.mubr.bf16.vlgmr.msra.gmra.mrb[0].mxu0 %v936_v43  ;;  %5722 = vmatmul.mubr.bf16.vlgmr.msra.gmra.mrb[0].mxu1 %v936_v43  ;;  %v10058_v43 = vld [vmem:[%s13898_s1 + $0xdec] ss:$16 sps:$4 sm:$0xff]  }
 0x183   :  { %5198 = vmatpush1.bf16.msra.mxu0 %v9963_v44  ;;  %5731 = vmatpush1.bf16.msra.mxu1 %v9966_v45  ;;  %v10053_v44 = vld [vmem:[%s13898_s1 + $0xde0] ss:$16 sps:$4 sm:$0xff]   ;;  %v10056_v45 = vld [vmem:[%s13898_s1 + $0xde8] ss:$16 sps:$4 sm:$0xff]  }
 0x184   :  { %5199 = vmatprep.subr.bf16.mxu0 %v9971_v46  ;;  %5732 = vmatprep.subr.bf16.mxu1 %v9974_v35  ;;  %v10062_v46 = vld [vmem:[%s13898_s1 + $0xe04] ss:$16 sps:$4 sm:$0xff]   ;;  %v10065_v35 = vld [vmem:[%s13898_s1 + $0xe0c] ss:$16 sps:$4 sm:$0xff]  }
 0x185   :  { %5229 = vmatprep.mubr.bf16.mxu0 %v12068_v47  ;;  %5762 = vmatprep.mubr.bf16.mxu1 %v12068_v47 }
 0x187   :  { %5200 = vmatpush1.bf16.msra.mxu0 %v9969_v48  ;;  %5733 = vmatpush1.bf16.msra.mxu1 %v9972_v50  ;;  %v12254_v48 = vrot.slane %v12037_v38, %v10960_v49  ;;  %v10060_v50 = vld [vmem:[%s13898_s1 + $0xe00] ss:$16 sps:$4 sm:$0xff]   ;;  %v10071_v38 = vld [vmem:[%s13898_s1 + $0xe2c] ss:$16 sps:$4 sm:$0xff]  }
 0x188   :  { %5201 = vmatprep.subr.bf16.mxu0 %v9977_v51  ;;  %5734 = vmatprep.subr.bf16.mxu1 %v9980_v53  ;;  %v10063_v51 = vld [vmem:[%s13898_s1 + $0xe08] ss:$16 sps:$4 sm:$0xff]   ;;  %v10068_v53 = vld [vmem:[%s13898_s1 + $0xe24] ss:$16 sps:$4 sm:$0xff]  }
 0x18b   :  { %5202 = vmatpush1.bf16.msra.mxu0 %v9975_v54  ;;  %5735 = vmatpush1.bf16.msra.mxu1 %v9978_v55  ;;  %v939_v54 = vcombine.high %v12068_v47, %v12068_v47  ;;  %v10066_v55 = vld [vmem:[%s13898_s1 + $0xe20] ss:$16 sps:$4 sm:$0xff]   ;;  %v10074_v47 = vld [vmem:[%s13898_s1 + $0xe44] ss:$16 sps:$4 sm:$0xff]  }
 0x18c   :  { %5203 = vmatprep.subr.bf16.mxu0 %v9983_v56  ;;  %5736 = vmatprep.subr.bf16.mxu1 %v9986_v57  ;;  %v10069_v56 = vld [vmem:[%s13898_s1 + $0xe28] ss:$16 sps:$4 sm:$0xff]   ;;  %v10077_v57 = vld [vmem:[%s13898_s1 + $0xe4c] ss:$16 sps:$4 sm:$0xff]  }
 0x18f   :  { %5204 = vmatpush1.bf16.msra.mxu0 %v9981_v58  ;;  %5737 = vmatpush1.bf16.msra.mxu1 %v9984_v59  ;;  %v10072_v58 = vld [vmem:[%s13898_s1 + $0xe40] ss:$16 sps:$4 sm:$0xff]   ;;  %v10075_v59 = vld [vmem:[%s13898_s1 + $0xe48] ss:$16 sps:$4 sm:$0xff]  }
 0x190   :  { %5205 = vmatprep.subr.bf16.mxu0 %v9989_v60  ;;  %5738 = vmatprep.subr.bf16.mxu1 %v9992_v61  ;;  %v10080_v60 = vld [vmem:[%s13898_s1 + $0xe64] ss:$16 sps:$4 sm:$0xff]   ;;  %v10083_v61 = vld [vmem:[%s13898_s1 + $0xe6c] ss:$16 sps:$4 sm:$0xff]  }
 0x193   :  { %5206 = vmatpush1.bf16.msra.mxu0 %v9987_v62  ;;  %5739 = vmatpush1.bf16.msra.mxu1 %v9990_v63  ;;  %v10078_v62 = vld [vmem:[%s13898_s1 + $0xe60] ss:$16 sps:$4 sm:$0xff]   ;;  %v10081_v63 = vld [vmem:[%s13898_s1 + $0xe68] ss:$16 sps:$4 sm:$0xff]  }
 0x194   :  { %5207 = vmatprep.subr.bf16.mxu0 %v9995_v0  ;;  %5740 = vmatprep.subr.bf16.mxu1 %v9998_v1  ;;  %v10086_v0 = vld [vmem:[%s13898_s1 + $0xe84] ss:$16 sps:$4 sm:$0xff]   ;;  %v10089_v1 = vld [vmem:[%s13898_s1 + $0xe8c] ss:$16 sps:$4 sm:$0xff]  }
 0x197   :  { %5208 = vmatpush1.bf16.msra.mxu0 %v9993_v2  ;;  %5741 = vmatpush1.bf16.msra.mxu1 %v9996_v3  ;;  %v10084_v2 = vld [vmem:[%s13898_s1 + $0xe80] ss:$16 sps:$4 sm:$0xff]   ;;  %v10087_v3 = vld [vmem:[%s13898_s1 + $0xe88] ss:$16 sps:$4 sm:$0xff]  }
 0x198   :  { %5209 = vmatprep.subr.bf16.mxu0 %v10001_v4  ;;  %5742 = vmatprep.subr.bf16.mxu1 %v10004_v5  ;;  %v10092_v4 = vld [vmem:[%s13898_s1 + $0xea4] ss:$16 sps:$4 sm:$0xff]   ;;  %v10095_v5 = vld [vmem:[%s13898_s1 + $0xeac] ss:$16 sps:$4 sm:$0xff]  }
 0x19b   :  { %5210 = vmatpush1.bf16.msra.mxu0 %v9999_v6  ;;  %5743 = vmatpush1.bf16.msra.mxu1 %v10002_v7  ;;  %v10090_v6 = vld [vmem:[%s13898_s1 + $0xea0] ss:$16 sps:$4 sm:$0xff]   ;;  %v10093_v7 = vld [vmem:[%s13898_s1 + $0xea8] ss:$16 sps:$4 sm:$0xff]  }
 0x19c   :  { %5211 = vmatprep.subr.bf16.mxu0 %v10007_v8  ;;  %5744 = vmatprep.subr.bf16.mxu1 %v10010_v9  ;;  %v10098_v8 = vld [vmem:[%s13898_s1 + $0xec4] ss:$16 sps:$4 sm:$0xff]   ;;  %v10101_v9 = vld [vmem:[%s13898_s1 + $0xecc] ss:$16 sps:$4 sm:$0xff]  }
 0x19f   :  { %5212 = vmatpush1.bf16.msra.mxu0 %v10005_v10  ;;  %5745 = vmatpush1.bf16.msra.mxu1 %v10008_v11  ;;  %v10096_v10 = vld [vmem:[%s13898_s1 + $0xec0] ss:$16 sps:$4 sm:$0xff]   ;;  %v10099_v11 = vld [vmem:[%s13898_s1 + $0xec8] ss:$16 sps:$4 sm:$0xff]  }
 0x1a0   :  { %5213 = vmatprep.subr.bf16.mxu0 %v10013_v12  ;;  %5746 = vmatprep.subr.bf16.mxu1 %v10016_v52  ;;  %v10104_v12 = vld [vmem:[%s13898_s1 + $0xee4] ss:$16 sps:$4 sm:$0xff]   ;;  %v10107_v52 = vld [vmem:[%s13898_s1 + $0xeec] ss:$16 sps:$4 sm:$0xff]  }
 0x1a3   :  { %5214 = vmatpush1.bf16.msra.mxu0 %v10011_v15  ;;  %5747 = vmatpush1.bf16.msra.mxu1 %v10014_v16  ;;  %v10102_v15 = vld [vmem:[%s13898_s1 + $0xee0] ss:$16 sps:$4 sm:$0xff]   ;;  %v10105_v16 = vld [vmem:[%s13898_s1 + $0xee8] ss:$16 sps:$4 sm:$0xff]  }
 0x1a4   :  { %5215 = vmatprep.subr.bf16.mxu0 %v10019_v17  ;;  %5748 = vmatprep.subr.bf16.mxu1 %v10022_v18  ;;  %v10110_v17 = vld [vmem:[%s13898_s1 + $0xf04] ss:$16 sps:$4 sm:$0xff]   ;;  %v10113_v18 = vld [vmem:[%s13898_s1 + $0xf0c] ss:$16 sps:$4 sm:$0xff]  }
 0x1a7   :  { %5216 = vmatpush1.bf16.msra.mxu0 %v10017_v19  ;;  %5749 = vmatpush1.bf16.msra.mxu1 %v10020_v20  ;;  %v10108_v19 = vld [vmem:[%s13898_s1 + $0xf00] ss:$16 sps:$4 sm:$0xff]   ;;  %v10111_v20 = vld [vmem:[%s13898_s1 + $0xf08] ss:$16 sps:$4 sm:$0xff]  }
 0x1a8   :  { %5217 = vmatprep.subr.bf16.mxu0 %v10025_v22  ;;  %5750 = vmatprep.subr.bf16.mxu1 %v10028_v23  ;;  %v10116_v22 = vld [vmem:[%s13898_s1 + $0xf24] ss:$16 sps:$4 sm:$0xff]   ;;  %v10119_v23 = vld [vmem:[%s13898_s1 + $0xf2c] ss:$16 sps:$4 sm:$0xff]  }
 0x1ab   :  { %5218 = vmatpush1.bf16.msra.mxu0 %v10023_v24  ;;  %5751 = vmatpush1.bf16.msra.mxu1 %v10026_v13  ;;  %v10114_v24 = vld [vmem:[%s13898_s1 + $0xf20] ss:$16 sps:$4 sm:$0xff]   ;;  %v10117_v13 = vld [vmem:[%s13898_s1 + $0xf28] ss:$16 sps:$4 sm:$0xff]  }
 0x1ac   :  { %5219 = vmatprep.subr.bf16.mxu0 %v10031_v27  ;;  %5752 = vmatprep.subr.bf16.mxu1 %v10034_v28  ;;  %v10122_v27 = vld [vmem:[%s13898_s1 + $0xf44] ss:$16 sps:$4 sm:$0xff]   ;;  %v10125_v28 = vld [vmem:[%s13898_s1 + $0xf4c] ss:$16 sps:$4 sm:$0xff]  }
 0x1af   :  { %5220 = vmatpush1.bf16.msra.mxu0 %v10029_v29  ;;  %5753 = vmatpush1.bf16.msra.mxu1 %v10032_v14  ;;  %v10120_v29 = vld [vmem:[%s13898_s1 + $0xf40] ss:$16 sps:$4 sm:$0xff]   ;;  %v10123_v14 = vld [vmem:[%s13898_s1 + $0xf48] ss:$16 sps:$4 sm:$0xff]  }
 0x1b0   :  { %5221 = vmatprep.subr.bf16.mxu0 %v10037_v30  ;;  %5754 = vmatprep.subr.bf16.mxu1 %v10040_v31  ;;  %v10128_v30 = vld [vmem:[%s13898_s1 + $0xf64] ss:$16 sps:$4 sm:$0xff]   ;;  %v10131_v31 = vld [vmem:[%s13898_s1 + $0xf6c] ss:$16 sps:$4 sm:$0xff]  }
 0x1b3   :  { %5222 = vmatpush1.bf16.msra.mxu0 %v10035_v25  ;;  %5755 = vmatpush1.bf16.msra.mxu1 %v10038_v32  ;;  %v10126_v25 = vld [vmem:[%s13898_s1 + $0xf60] ss:$16 sps:$4 sm:$0xff]   ;;  %v10129_v32 = vld [vmem:[%s13898_s1 + $0xf68] ss:$16 sps:$4 sm:$0xff]  }
 0x1b4   :  { %5223 = vmatprep.subr.bf16.mxu0 %v10043_v33  ;;  %5756 = vmatprep.subr.bf16.mxu1 %v10046_v26  ;;  %v10134_v33 = vld [vmem:[%s13898_s1 + $0xf84] ss:$16 sps:$4 sm:$0xff]   ;;  %v10137_v26 = vld [vmem:[%s13898_s1 + $0xf8c] ss:$16 sps:$4 sm:$0xff]  }
 0x1b7   :  { %5224 = vmatpush1.bf16.msra.mxu0 %v10041_v36  ;;  %5757 = vmatpush1.bf16.msra.mxu1 %v10044_v37  ;;  %v10132_v36 = vld [vmem:[%s13898_s1 + $0xf80] ss:$16 sps:$4 sm:$0xff]   ;;  %v10135_v37 = vld [vmem:[%s13898_s1 + $0xf88] ss:$16 sps:$4 sm:$0xff]  }
 0x1b8   :  { %5225 = vmatprep.subr.bf16.mxu0 %v10049_v21  ;;  %5758 = vmatprep.subr.bf16.mxu1 %v10052_v39  ;;  %v10140_v21 = vld [vmem:[%s13898_s1 + $0xfa4] ss:$16 sps:$4 sm:$0xff]   ;;  %v10143_v39 = vld [vmem:[%s13898_s1 + $0xfac] ss:$16 sps:$4 sm:$0xff]  }
 0x1bb   :  { %5226 = vmatpush1.bf16.msra.mxu0 %v10047_v40  ;;  %5759 = vmatpush1.bf16.msra.mxu1 %v10050_v41  ;;  %v10138_v40 = vld [vmem:[%s13898_s1 + $0xfa0] ss:$16 sps:$4 sm:$0xff]   ;;  %v10141_v41 = vld [vmem:[%s13898_s1 + $0xfa8] ss:$16 sps:$4 sm:$0xff]  }
 0x1bc   :  { %5227 = vmatprep.subr.bf16.mxu0 %v10055_v34  ;;  %5760 = vmatprep.subr.bf16.mxu1 %v10058_v43  ;;  %v10146_v34 = vld [vmem:[%s13898_s1 + $0xfc4] ss:$16 sps:$4 sm:$0xff]   ;;  %v10149_v43 = vld [vmem:[%s13898_s1 + $0xfcc] ss:$16 sps:$4 sm:$0xff]  }
 0x1bf   :  { %5228 = vmatpush1.bf16.msra.mxu0 %v10053_v44  ;;  %5761 = vmatpush1.bf16.msra.mxu1 %v10056_v45  ;;  %v12431_v44 = vld [vmem:[%s13897_s0 + $0x10] sm:$0xff] }
 0x1c0   :  { %5238 = vmatprep.subr.bf16.mxu0 %v10062_v46  ;;  %5771 = vmatprep.subr.bf16.mxu1 %v10065_v35  ;;  %v10144_v45 = vld [vmem:[%s13898_s1 + $0xfc0] ss:$16 sps:$4 sm:$0xff]   ;;  %v10147_v46 = vld [vmem:[%s13898_s1 + $0xfc8] ss:$16 sps:$4 sm:$0xff]   ;;  %v10152_v35 = vld [vmem:[%s13898_s1 + $0xfe4] ss:$16 sps:$4 sm:$0xff]  }
 0x1c2   :  { %5230 = vmatmul.mubr.bf16.vlgmr.msra.gmra.mrb[0].mxu0 %v12254_v48  ;;  %5763 = vmatmul.mubr.bf16.vlgmr.msra.gmra.mrb[0].mxu1 %v12254_v48 }
 0x1c3   :  { %5239 = vmatpush1.bf16.msra.mxu0 %v10060_v50  ;;  %5772 = vmatpush1.bf16.msra.mxu1 %v10063_v51  ;;  %v10155_v50 = vld [vmem:[%s13898_s1 + $0xfec] ss:$16 sps:$4 sm:$0xff]   ;;  %v12447_v51 = vrot.slane %v12431_v44, %v10960_v49 }
 0x1c4   :  { %5240 = vmatprep.subr.bf16.mxu0 %v10068_v53  ;;  %5773 = vmatprep.subr.bf16.mxu1 %v10071_v38  ;;  %v10150_v53 = vld [vmem:[%s13898_s1 + $0xfe0] ss:$16 sps:$4 sm:$0xff]   ;;  %v10153_v38 = vld [vmem:[%s13898_s1 + $0xfe8] ss:$16 sps:$4 sm:$0xff]  }
 0x1c5   :  { %5270 = vmatprep.mubr.bf16.mxu0 %v939_v54  ;;  %5803 = vmatprep.mubr.bf16.mxu1 %v939_v54  ;;  %v10158_v54 = vld [vmem:[%s13898_s1 + $0x1004] ss:$16 sps:$4 sm:$0xff]  }
 0x1c7   :  { %5241 = vmatpush1.bf16.msra.mxu0 %v10066_v55  ;;  %5774 = vmatpush1.bf16.msra.mxu1 %v10069_v56  ;;  %v10161_v55 = vld [vmem:[%s13898_s1 + $0x100c] ss:$16 sps:$4 sm:$0xff]   ;;  %v955_v56 = vcombine.high %v12447_v51, %v12447_v51 }
 0x1c8   :  { %5242 = vmatprep.subr.bf16.mxu0 %v10074_v47  ;;  %5775 = vmatprep.subr.bf16.mxu1 %v10077_v57  ;;  %v937_v47 = vcombine.high %v12254_v48, %v12254_v48  ;;  %v10156_v57 = vld [vmem:[%s13898_s1 + $0x1000] ss:$16 sps:$4 sm:$0xff]   ;;  %v10167_v48 = vld [vmem:[%s13898_s1 + $0x102c] ss:$16 sps:$4 sm:$0xff]  }
 0x1cb   :  { %5243 = vmatpush1.bf16.msra.mxu0 %v10072_v58  ;;  %5776 = vmatpush1.bf16.msra.mxu1 %v10075_v59  ;;  %v10159_v58 = vld [vmem:[%s13898_s1 + $0x1008] ss:$16 sps:$4 sm:$0xff]   ;;  %v10164_v59 = vld [vmem:[%s13898_s1 + $0x1024] ss:$16 sps:$4 sm:$0xff]  }
 0x1cc   :  { %5244 = vmatprep.subr.bf16.mxu0 %v10080_v60  ;;  %5777 = vmatprep.subr.bf16.mxu1 %v10083_v61  ;;  %v12478_v60 = vrot.slane %v955_v56, %v10960_v49  ;;  %v10162_v61 = vld [vmem:[%s13898_s1 + $0x1020] ss:$16 sps:$4 sm:$0xff]   ;;  %v10243_v56 = vld [vmem:[%s13898_s1 + $0x11c8] ss:$16 sps:$4 sm:$0xff]  }
 0x1cf   :  { %5245 = vmatpush1.bf16.msra.mxu0 %v10078_v62  ;;  %5778 = vmatpush1.bf16.msra.mxu1 %v10081_v63  ;;  %v10165_v62 = vld [vmem:[%s13898_s1 + $0x1028] ss:$16 sps:$4 sm:$0xff]   ;;  %v10170_v63 = vld [vmem:[%s13898_s1 + $0x1044] ss:$16 sps:$4 sm:$0xff]  }
 0x1d0   :  { %5246 = vmatprep.subr.bf16.mxu0 %v10086_v0  ;;  %5779 = vmatprep.subr.bf16.mxu1 %v10089_v1  ;;  %v10173_v0 = vld [vmem:[%s13898_s1 + $0x104c] ss:$16 sps:$4 sm:$0xff]   ;;  %v10168_v1 = vld [vmem:[%s13898_s1 + $0x1040] ss:$16 sps:$4 sm:$0xff]  }
 0x1d3   :  { %5247 = vmatpush1.bf16.msra.mxu0 %v10084_v2  ;;  %5780 = vmatpush1.bf16.msra.mxu1 %v10087_v3  ;;  %v10171_v2 = vld [vmem:[%s13898_s1 + $0x1048] ss:$16 sps:$4 sm:$0xff]   ;;  %v10176_v3 = vld [vmem:[%s13898_s1 + $0x1064] ss:$16 sps:$4 sm:$0xff]  }
 0x1d4   :  { %5248 = vmatprep.subr.bf16.mxu0 %v10092_v4  ;;  %5781 = vmatprep.subr.bf16.mxu1 %v10095_v5  ;;  %v10179_v4 = vld [vmem:[%s13898_s1 + $0x106c] ss:$16 sps:$4 sm:$0xff]   ;;  %v10174_v5 = vld [vmem:[%s13898_s1 + $0x1060] ss:$16 sps:$4 sm:$0xff]  }
 0x1d7   :  { %5249 = vmatpush1.bf16.msra.mxu0 %v10090_v6  ;;  %5782 = vmatpush1.bf16.msra.mxu1 %v10093_v7  ;;  %v10177_v6 = vld [vmem:[%s13898_s1 + $0x1068] ss:$16 sps:$4 sm:$0xff]   ;;  %v10182_v7 = vld [vmem:[%s13898_s1 + $0x1084] ss:$16 sps:$4 sm:$0xff]  }
 0x1d8   :  { %5250 = vmatprep.subr.bf16.mxu0 %v10098_v8  ;;  %5783 = vmatprep.subr.bf16.mxu1 %v10101_v9  ;;  %v10185_v8 = vld [vmem:[%s13898_s1 + $0x108c] ss:$16 sps:$4 sm:$0xff]   ;;  %v10180_v9 = vld [vmem:[%s13898_s1 + $0x1080] ss:$16 sps:$4 sm:$0xff]  }
 0x1db   :  { %5251 = vmatpush1.bf16.msra.mxu0 %v10096_v10  ;;  %5784 = vmatpush1.bf16.msra.mxu1 %v10099_v11  ;;  %v10183_v10 = vld [vmem:[%s13898_s1 + $0x1088] ss:$16 sps:$4 sm:$0xff]   ;;  %v10188_v11 = vld [vmem:[%s13898_s1 + $0x10a4] ss:$16 sps:$4 sm:$0xff]  }
 0x1dc   :  { %5252 = vmatprep.subr.bf16.mxu0 %v10104_v12  ;;  %5785 = vmatprep.subr.bf16.mxu1 %v10107_v52  ;;  %v10191_v12 = vld [vmem:[%s13898_s1 + $0x10ac] ss:$16 sps:$4 sm:$0xff]   ;;  %v10186_v52 = vld [vmem:[%s13898_s1 + $0x10a0] ss:$16 sps:$4 sm:$0xff]  }
 0x1df   :  { %5253 = vmatpush1.bf16.msra.mxu0 %v10102_v15  ;;  %5786 = vmatpush1.bf16.msra.mxu1 %v10105_v16  ;;  %v10189_v15 = vld [vmem:[%s13898_s1 + $0x10a8] ss:$16 sps:$4 sm:$0xff]   ;;  %v10194_v16 = vld [vmem:[%s13898_s1 + $0x10c4] ss:$16 sps:$4 sm:$0xff]  }
 0x1e0   :  { %5254 = vmatprep.subr.bf16.mxu0 %v10110_v17  ;;  %5787 = vmatprep.subr.bf16.mxu1 %v10113_v18  ;;  %v10197_v17 = vld [vmem:[%s13898_s1 + $0x10cc] ss:$16 sps:$4 sm:$0xff]   ;;  %v10192_v18 = vld [vmem:[%s13898_s1 + $0x10c0] ss:$16 sps:$4 sm:$0xff]  }
 0x1e3   :  { %5255 = vmatpush1.bf16.msra.mxu0 %v10108_v19  ;;  %5788 = vmatpush1.bf16.msra.mxu1 %v10111_v20  ;;  %v10195_v19 = vld [vmem:[%s13898_s1 + $0x10c8] ss:$16 sps:$4 sm:$0xff]   ;;  %v10200_v20 = vld [vmem:[%s13898_s1 + $0x10e4] ss:$16 sps:$4 sm:$0xff]  }
 0x1e4   :  { %5256 = vmatprep.subr.bf16.mxu0 %v10116_v22  ;;  %5789 = vmatprep.subr.bf16.mxu1 %v10119_v23  ;;  %v10203_v22 = vld [vmem:[%s13898_s1 + $0x10ec] ss:$16 sps:$4 sm:$0xff]   ;;  %v10198_v23 = vld [vmem:[%s13898_s1 + $0x10e0] ss:$16 sps:$4 sm:$0xff]  }
 0x1e7   :  { %5257 = vmatpush1.bf16.msra.mxu0 %v10114_v24  ;;  %5790 = vmatpush1.bf16.msra.mxu1 %v10117_v13  ;;  %v10201_v24 = vld [vmem:[%s13898_s1 + $0x10e8] ss:$16 sps:$4 sm:$0xff]   ;;  %v10206_v13 = vld [vmem:[%s13898_s1 + $0x1104] ss:$16 sps:$4 sm:$0xff]  }
 0x1e8   :  { %5258 = vmatprep.subr.bf16.mxu0 %v10122_v27  ;;  %5791 = vmatprep.subr.bf16.mxu1 %v10125_v28  ;;  %v10209_v27 = vld [vmem:[%s13898_s1 + $0x110c] ss:$16 sps:$4 sm:$0xff]   ;;  %v10204_v28 = vld [vmem:[%s13898_s1 + $0x1100] ss:$16 sps:$4 sm:$0xff]  }
 0x1eb   :  { %5259 = vmatpush1.bf16.msra.mxu0 %v10120_v29  ;;  %5792 = vmatpush1.bf16.msra.mxu1 %v10123_v14  ;;  %v10207_v29 = vld [vmem:[%s13898_s1 + $0x1108] ss:$16 sps:$4 sm:$0xff]   ;;  %v10212_v14 = vld [vmem:[%s13898_s1 + $0x1124] ss:$16 sps:$4 sm:$0xff]  }
 0x1ec   :  { %5260 = vmatprep.subr.bf16.mxu0 %v10128_v30  ;;  %5793 = vmatprep.subr.bf16.mxu1 %v10131_v31  ;;  %v10215_v30 = vld [vmem:[%s13898_s1 + $0x112c] ss:$16 sps:$4 sm:$0xff]   ;;  %v10210_v31 = vld [vmem:[%s13898_s1 + $0x1120] ss:$16 sps:$4 sm:$0xff]  }
 0x1ef   :  { %5261 = vmatpush1.bf16.msra.mxu0 %v10126_v25  ;;  %5794 = vmatpush1.bf16.msra.mxu1 %v10129_v32  ;;  %v10213_v25 = vld [vmem:[%s13898_s1 + $0x1128] ss:$16 sps:$4 sm:$0xff]   ;;  %v10218_v32 = vld [vmem:[%s13898_s1 + $0x1144] ss:$16 sps:$4 sm:$0xff]  }
 0x1f0   :  { %5262 = vmatprep.subr.bf16.mxu0 %v10134_v33  ;;  %5795 = vmatprep.subr.bf16.mxu1 %v10137_v26  ;;  %v10221_v33 = vld [vmem:[%s13898_s1 + $0x114c] ss:$16 sps:$4 sm:$0xff]   ;;  %v10216_v26 = vld [vmem:[%s13898_s1 + $0x1140] ss:$16 sps:$4 sm:$0xff]  }
 0x1f3   :  { %5263 = vmatpush1.bf16.msra.mxu0 %v10132_v36  ;;  %5796 = vmatpush1.bf16.msra.mxu1 %v10135_v37  ;;  %v10219_v36 = vld [vmem:[%s13898_s1 + $0x1148] ss:$16 sps:$4 sm:$0xff]   ;;  %v10224_v37 = vld [vmem:[%s13898_s1 + $0x1164] ss:$16 sps:$4 sm:$0xff]  }
 0x1f4   :  { %5264 = vmatprep.subr.bf16.mxu0 %v10140_v21  ;;  %5797 = vmatprep.subr.bf16.mxu1 %v10143_v39  ;;  %v10227_v21 = vld [vmem:[%s13898_s1 + $0x116c] ss:$16 sps:$4 sm:$0xff]   ;;  %v10222_v39 = vld [vmem:[%s13898_s1 + $0x1160] ss:$16 sps:$4 sm:$0xff]  }
 0x1f7   :  { %5265 = vmatpush1.bf16.msra.mxu0 %v10138_v40  ;;  %5798 = vmatpush1.bf16.msra.mxu1 %v10141_v41  ;;  %v10225_v40 = vld [vmem:[%s13898_s1 + $0x1168] ss:$16 sps:$4 sm:$0xff]   ;;  %v10230_v41 = vld [vmem:[%s13898_s1 + $0x1184] ss:$16 sps:$4 sm:$0xff]  }
 0x1f8   :  { %5266 = vmatprep.subr.bf16.mxu0 %v10146_v34  ;;  %5799 = vmatprep.subr.bf16.mxu1 %v10149_v43  ;;  %v10233_v34 = vld [vmem:[%s13898_s1 + $0x118c] ss:$16 sps:$4 sm:$0xff]   ;;  %v10228_v43 = vld [vmem:[%s13898_s1 + $0x1180] ss:$16 sps:$4 sm:$0xff]  }
 0x1fb   :  { %5267 = vmatpush1.bf16.msra.mxu0 %v10144_v45  ;;  %5800 = vmatpush1.bf16.msra.mxu1 %v10147_v46  ;;  %v10231_v45 = vld [vmem:[%s13898_s1 + $0x1188] ss:$16 sps:$4 sm:$0xff]   ;;  %v10236_v46 = vld [vmem:[%s13898_s1 + $0x11a4] ss:$16 sps:$4 sm:$0xff]  }
 0x1fc   :  { %5268 = vmatprep.subr.bf16.mxu0 %v10152_v35  ;;  %5801 = vmatprep.subr.bf16.mxu1 %v10155_v50  ;;  %v10239_v35 = vld [vmem:[%s13898_s1 + $0x11ac] ss:$16 sps:$4 sm:$0xff]   ;;  %v10234_v50 = vld [vmem:[%s13898_s1 + $0x11a0] ss:$16 sps:$4 sm:$0xff]  }
 0x1ff   :  { %5269 = vmatpush1.bf16.msra.mxu0 %v10150_v53  ;;  %5802 = vmatpush1.bf16.msra.mxu1 %v10153_v38  ;;  %v10237_v53 = vld [vmem:[%s13898_s1 + $0x11a8] ss:$16 sps:$4 sm:$0xff]   ;;  %v10242_v38 = vld [vmem:[%s13898_s1 + $0x11c4] ss:$16 sps:$4 sm:$0xff]  }
 0x200   :  { %5279 = vmatprep.subr.bf16.mxu0 %v10158_v54  ;;  %5812 = vmatprep.subr.bf16.mxu1 %v10161_v55  ;;  %v10245_v54 = vld [vmem:[%s13898_s1 + $0x11cc] ss:$16 sps:$4 sm:$0xff]   ;;  %v10240_v55 = vld [vmem:[%s13898_s1 + $0x11c0] ss:$16 sps:$4 sm:$0xff]  }
 0x202   :  { %5271 = vmatmul.mubr.bf16.vlgmr.msra.gmra.mrb[0].mxu0 %v937_v47  ;;  %5804 = vmatmul.mubr.bf16.vlgmr.msra.gmra.mrb[0].mxu1 %v937_v47  ;;  %v10248_v47 = vld [vmem:[%s13898_s1 + $0x11e4] ss:$16 sps:$4 sm:$0xff]  }
 0x203   :  { %5280 = vmatpush1.bf16.msra.mxu0 %v10156_v57  ;;  %5813 = vmatpush1.bf16.msra.mxu1 %v10159_v58  ;;  %v10251_v57 = vld [vmem:[%s13898_s1 + $0x11ec] ss:$16 sps:$4 sm:$0xff]   ;;  %v10246_v58 = vld [vmem:[%s13898_s1 + $0x11e0] ss:$16 sps:$4 sm:$0xff]  }
 0x204   :  { %5281 = vmatprep.subr.bf16.mxu0 %v10164_v59  ;;  %5814 = vmatprep.subr.bf16.mxu1 %v10167_v48  ;;  %v10249_v59 = vld [vmem:[%s13898_s1 + $0x11e8] ss:$16 sps:$4 sm:$0xff]   ;;  %v10254_v48 = vld [vmem:[%s13898_s1 + $0x1204] ss:$16 sps:$4 sm:$0xff]  }
 0x205   :  { %5311 = vmatprep.mubr.bf16.mxu0 %v12478_v60  ;;  %5844 = vmatprep.mubr.bf16.mxu1 %v12478_v60 }
 0x207   :  { %5282 = vmatpush1.bf16.msra.mxu0 %v10162_v61  ;;  %5815 = vmatpush1.bf16.msra.mxu1 %v10165_v62  ;;  %v10257_v61 = vld [vmem:[%s13898_s1 + $0x120c] ss:$16 sps:$4 sm:$0xff]   ;;  %v12664_v62 = vrot.slane %v12447_v51, %v10960_v49 }
 0x208   :  { %5283 = vmatprep.subr.bf16.mxu0 %v10170_v63  ;;  %5816 = vmatprep.subr.bf16.mxu1 %v10173_v0  ;;  %v10252_v63 = vld [vmem:[%s13898_s1 + $0x1200] ss:$16 sps:$4 sm:$0xff]   ;;  %v10255_v0 = vld [vmem:[%s13898_s1 + $0x1208] ss:$16 sps:$4 sm:$0xff]   ;;  %v10263_v51 = vld [vmem:[%s13898_s1 + $0x122c] ss:$16 sps:$4 sm:$0xff]  }
 0x20b   :  { %5284 = vmatpush1.bf16.msra.mxu0 %v10168_v1  ;;  %5817 = vmatpush1.bf16.msra.mxu1 %v10171_v2  ;;  %v10260_v1 = vld [vmem:[%s13898_s1 + $0x1224] ss:$16 sps:$4 sm:$0xff]   ;;  %v987_v2 = vcombine.high %v12478_v60, %v12478_v60 }
 0x20c   :  { %5285 = vmatprep.subr.bf16.mxu0 %v10176_v3  ;;  %5818 = vmatprep.subr.bf16.mxu1 %v10179_v4  ;;  %v10258_v3 = vld [vmem:[%s13898_s1 + $0x1220] ss:$16 sps:$4 sm:$0xff]   ;;  %v10261_v4 = vld [vmem:[%s13898_s1 + $0x1228] ss:$16 sps:$4 sm:$0xff]   ;;  %v10266_v60 = vld [vmem:[%s13898_s1 + $0x1244] ss:$16 sps:$4 sm:$0xff]  }
 0x20f   :  { %5286 = vmatpush1.bf16.msra.mxu0 %v10174_v5  ;;  %5819 = vmatpush1.bf16.msra.mxu1 %v10177_v6  ;;  %v10269_v5 = vld [vmem:[%s13898_s1 + $0x124c] ss:$16 sps:$4 sm:$0xff]   ;;  %v10264_v6 = vld [vmem:[%s13898_s1 + $0x1240] ss:$16 sps:$4 sm:$0xff]  }
 0x210   :  { %5287 = vmatprep.subr.bf16.mxu0 %v10182_v7  ;;  %5820 = vmatprep.subr.bf16.mxu1 %v10185_v8  ;;  %v10267_v7 = vld [vmem:[%s13898_s1 + $0x1248] ss:$16 sps:$4 sm:$0xff]   ;;  %v10272_v8 = vld [vmem:[%s13898_s1 + $0x1264] ss:$16 sps:$4 sm:$0xff]  }
 0x213   :  { %5288 = vmatpush1.bf16.msra.mxu0 %v10180_v9  ;;  %5821 = vmatpush1.bf16.msra.mxu1 %v10183_v10  ;;  %v10275_v9 = vld [vmem:[%s13898_s1 + $0x126c] ss:$16 sps:$4 sm:$0xff]   ;;  %v10270_v10 = vld [vmem:[%s13898_s1 + $0x1260] ss:$16 sps:$4 sm:$0xff]  }
 0x214   :  { %5289 = vmatprep.subr.bf16.mxu0 %v10188_v11  ;;  %5822 = vmatprep.subr.bf16.mxu1 %v10191_v12  ;;  %v10273_v11 = vld [vmem:[%s13898_s1 + $0x1268] ss:$16 sps:$4 sm:$0xff]   ;;  %v10278_v12 = vld [vmem:[%s13898_s1 + $0x1284] ss:$16 sps:$4 sm:$0xff]  }
 0x217   :  { %5290 = vmatpush1.bf16.msra.mxu0 %v10186_v52  ;;  %5823 = vmatpush1.bf16.msra.mxu1 %v10189_v15  ;;  %v10281_v52 = vld [vmem:[%s13898_s1 + $0x128c] ss:$16 sps:$4 sm:$0xff]   ;;  %v10276_v15 = vld [vmem:[%s13898_s1 + $0x1280] ss:$16 sps:$4 sm:$0xff]  }
 0x218   :  { %5291 = vmatprep.subr.bf16.mxu0 %v10194_v16  ;;  %5824 = vmatprep.subr.bf16.mxu1 %v10197_v17  ;;  %v10279_v16 = vld [vmem:[%s13898_s1 + $0x1288] ss:$16 sps:$4 sm:$0xff]   ;;  %v10284_v17 = vld [vmem:[%s13898_s1 + $0x12a4] ss:$16 sps:$4 sm:$0xff]  }
 0x21b   :  { %5292 = vmatpush1.bf16.msra.mxu0 %v10192_v18  ;;  %5825 = vmatpush1.bf16.msra.mxu1 %v10195_v19  ;;  %v10287_v18 = vld [vmem:[%s13898_s1 + $0x12ac] ss:$16 sps:$4 sm:$0xff]   ;;  %v10282_v19 = vld [vmem:[%s13898_s1 + $0x12a0] ss:$16 sps:$4 sm:$0xff]  }
 0x21c   :  { %5293 = vmatprep.subr.bf16.mxu0 %v10200_v20  ;;  %5826 = vmatprep.subr.bf16.mxu1 %v10203_v22  ;;  %v10285_v20 = vld [vmem:[%s13898_s1 + $0x12a8] ss:$16 sps:$4 sm:$0xff]   ;;  %v10290_v22 = vld [vmem:[%s13898_s1 + $0x12c4] ss:$16 sps:$4 sm:$0xff]  }
 0x21f   :  { %5294 = vmatpush1.bf16.msra.mxu0 %v10198_v23  ;;  %5827 = vmatpush1.bf16.msra.mxu1 %v10201_v24  ;;  %v10293_v23 = vld [vmem:[%s13898_s1 + $0x12cc] ss:$16 sps:$4 sm:$0xff]   ;;  %v10288_v24 = vld [vmem:[%s13898_s1 + $0x12c0] ss:$16 sps:$4 sm:$0xff]  }
 0x220   :  { %5295 = vmatprep.subr.bf16.mxu0 %v10206_v13  ;;  %5828 = vmatprep.subr.bf16.mxu1 %v10209_v27  ;;  %v10291_v13 = vld [vmem:[%s13898_s1 + $0x12c8] ss:$16 sps:$4 sm:$0xff]   ;;  %v10296_v27 = vld [vmem:[%s13898_s1 + $0x12e4] ss:$16 sps:$4 sm:$0xff]  }
 0x223   :  { %5296 = vmatpush1.bf16.msra.mxu0 %v10204_v28  ;;  %5829 = vmatpush1.bf16.msra.mxu1 %v10207_v29  ;;  %v10299_v28 = vld [vmem:[%s13898_s1 + $0x12ec] ss:$16 sps:$4 sm:$0xff]   ;;  %v10294_v29 = vld [vmem:[%s13898_s1 + $0x12e0] ss:$16 sps:$4 sm:$0xff]  }
 0x224   :  { %5297 = vmatprep.subr.bf16.mxu0 %v10212_v14  ;;  %5830 = vmatprep.subr.bf16.mxu1 %v10215_v30  ;;  %v10297_v14 = vld [vmem:[%s13898_s1 + $0x12e8] ss:$16 sps:$4 sm:$0xff]   ;;  %v10302_v30 = vld [vmem:[%s13898_s1 + $0x1304] ss:$16 sps:$4 sm:$0xff]  }
 0x227   :  { %5298 = vmatpush1.bf16.msra.mxu0 %v10210_v31  ;;  %5831 = vmatpush1.bf16.msra.mxu1 %v10213_v25  ;;  %v10305_v31 = vld [vmem:[%s13898_s1 + $0x130c] ss:$16 sps:$4 sm:$0xff]   ;;  %v10300_v25 = vld [vmem:[%s13898_s1 + $0x1300] ss:$16 sps:$4 sm:$0xff]  }
 0x228   :  { %5299 = vmatprep.subr.bf16.mxu0 %v10218_v32  ;;  %5832 = vmatprep.subr.bf16.mxu1 %v10221_v33  ;;  %v10303_v32 = vld [vmem:[%s13898_s1 + $0x1308] ss:$16 sps:$4 sm:$0xff]   ;;  %v10308_v33 = vld [vmem:[%s13898_s1 + $0x1324] ss:$16 sps:$4 sm:$0xff]  }
 0x22b   :  { %5300 = vmatpush1.bf16.msra.mxu0 %v10216_v26  ;;  %5833 = vmatpush1.bf16.msra.mxu1 %v10219_v36  ;;  %v10311_v26 = vld [vmem:[%s13898_s1 + $0x132c] ss:$16 sps:$4 sm:$0xff]   ;;  %v10306_v36 = vld [vmem:[%s13898_s1 + $0x1320] ss:$16 sps:$4 sm:$0xff]  }
 0x22c   :  { %5301 = vmatprep.subr.bf16.mxu0 %v10224_v37  ;;  %5834 = vmatprep.subr.bf16.mxu1 %v10227_v21  ;;  %v10309_v37 = vld [vmem:[%s13898_s1 + $0x1328] ss:$16 sps:$4 sm:$0xff]   ;;  %v10314_v21 = vld [vmem:[%s13898_s1 + $0x1344] ss:$16 sps:$4 sm:$0xff]  }
 0x22f   :  { %5302 = vmatpush1.bf16.msra.mxu0 %v10222_v39  ;;  %5835 = vmatpush1.bf16.msra.mxu1 %v10225_v40  ;;  %v10317_v39 = vld [vmem:[%s13898_s1 + $0x134c] ss:$16 sps:$4 sm:$0xff]   ;;  %v10312_v40 = vld [vmem:[%s13898_s1 + $0x1340] ss:$16 sps:$4 sm:$0xff]  }
 0x230   :  { %5303 = vmatprep.subr.bf16.mxu0 %v10230_v41  ;;  %5836 = vmatprep.subr.bf16.mxu1 %v10233_v34  ;;  %v10315_v41 = vld [vmem:[%s13898_s1 + $0x1348] ss:$16 sps:$4 sm:$0xff]   ;;  %v10320_v34 = vld [vmem:[%s13898_s1 + $0x1364] ss:$16 sps:$4 sm:$0xff]  }
 0x233   :  { %5304 = vmatpush1.bf16.msra.mxu0 %v10228_v43  ;;  %5837 = vmatpush1.bf16.msra.mxu1 %v10231_v45  ;;  %v10323_v43 = vld [vmem:[%s13898_s1 + $0x136c] ss:$16 sps:$4 sm:$0xff]  }
 0x234   :  { %5305 = vmatprep.subr.bf16.mxu0 %v10236_v46  ;;  %5838 = vmatprep.subr.bf16.mxu1 %v10239_v35 }
 0x237   :  { %5306 = vmatpush1.bf16.msra.mxu0 %v10234_v50  ;;  %5839 = vmatpush1.bf16.msra.mxu1 %v10237_v53 }
 0x238   :  { %5307 = vmatprep.subr.bf16.mxu0 %v10242_v38  ;;  %5840 = vmatprep.subr.bf16.mxu1 %v10245_v54 }
 0x23b   :  { %5308 = vmatpush1.bf16.msra.mxu0 %v10240_v55  ;;  %5841 = vmatpush1.bf16.msra.mxu1 %v10243_v56 }
 0x23c   :  { %5309 = vmatprep.subr.bf16.mxu0 %v10248_v47  ;;  %5842 = vmatprep.subr.bf16.mxu1 %v10251_v57 }
 0x23f   :  { %5310 = vmatpush1.bf16.msra.mxu0 %v10246_v58  ;;  %5843 = vmatpush1.bf16.msra.mxu1 %v10249_v59 }
 0x240   :  { %5320 = vmatprep.subr.bf16.mxu0 %v10254_v48  ;;  %5853 = vmatprep.subr.bf16.mxu1 %v10257_v61 }
 0x242   :  { %5312 = vmatmul.mubr.bf16.vlgmr.msra.gmra.mrb[0].mxu0 %v12664_v62  ;;  %5845 = vmatmul.mubr.bf16.vlgmr.msra.gmra.mrb[0].mxu1 %v12664_v62 }
 0x243   :  { %5321 = vmatpush1.bf16.msra.mxu0 %v10252_v63  ;;  %5854 = vmatpush1.bf16.msra.mxu1 %v10255_v0 }
 0x244   :  { %5322 = vmatprep.subr.bf16.mxu0 %v10260_v1  ;;  %5855 = vmatprep.subr.bf16.mxu1 %v10263_v51 }
 0x245   :  { %5352 = vmatprep.mubr.bf16.mxu0 %v987_v2  ;;  %5885 = vmatprep.mubr.bf16.mxu1 %v987_v2 }
 0x247   :  { %5323 = vmatpush1.bf16.msra.mxu0 %v10258_v3  ;;  %5856 = vmatpush1.bf16.msra.mxu1 %v10261_v4 }
 0x248   :  { %5324 = vmatprep.subr.bf16.mxu0 %v10266_v60  ;;  %5857 = vmatprep.subr.bf16.mxu1 %v10269_v5 }
 0x24b   :  { %5325 = vmatpush1.bf16.msra.mxu0 %v10264_v6  ;;  %5858 = vmatpush1.bf16.msra.mxu1 %v10267_v7 }
 0x24c   :  { %5326 = vmatprep.subr.bf16.mxu0 %v10272_v8  ;;  %5859 = vmatprep.subr.bf16.mxu1 %v10275_v9 }
 0x24f   :  { %5327 = vmatpush1.bf16.msra.mxu0 %v10270_v10  ;;  %5860 = vmatpush1.bf16.msra.mxu1 %v10273_v11 }
 0x250   :  { %5328 = vmatprep.subr.bf16.mxu0 %v10278_v12  ;;  %5861 = vmatprep.subr.bf16.mxu1 %v10281_v52 }
 0x253   :  { %5329 = vmatpush1.bf16.msra.mxu0 %v10276_v15  ;;  %5862 = vmatpush1.bf16.msra.mxu1 %v10279_v16 }
 0x254   :  { %5330 = vmatprep.subr.bf16.mxu0 %v10284_v17  ;;  %5863 = vmatprep.subr.bf16.mxu1 %v10287_v18 }
 0x257   :  { %5331 = vmatpush1.bf16.msra.mxu0 %v10282_v19  ;;  %5864 = vmatpush1.bf16.msra.mxu1 %v10285_v20 }
 0x258   :  { %5332 = vmatprep.subr.bf16.mxu0 %v10290_v22  ;;  %5865 = vmatprep.subr.bf16.mxu1 %v10293_v23 }
 0x25b   :  { %5333 = vmatpush1.bf16.msra.mxu0 %v10288_v24  ;;  %5866 = vmatpush1.bf16.msra.mxu1 %v10291_v13 }
 0x25c   :  { %5334 = vmatprep.subr.bf16.mxu0 %v10296_v27  ;;  %5867 = vmatprep.subr.bf16.mxu1 %v10299_v28 }
 0x25f   :  { %5335 = vmatpush1.bf16.msra.mxu0 %v10294_v29  ;;  %5868 = vmatpush1.bf16.msra.mxu1 %v10297_v14 }
 0x260   :  { %5336 = vmatprep.subr.bf16.mxu0 %v10302_v30  ;;  %5869 = vmatprep.subr.bf16.mxu1 %v10305_v31 }
 0x263   :  { %5337 = vmatpush1.bf16.msra.mxu0 %v10300_v25  ;;  %5870 = vmatpush1.bf16.msra.mxu1 %v10303_v32 }
 0x264   :  { %5338 = vmatprep.subr.bf16.mxu0 %v10308_v33  ;;  %5871 = vmatprep.subr.bf16.mxu1 %v10311_v26 }
 0x267   :  { %5339 = vmatpush1.bf16.msra.mxu0 %v10306_v36  ;;  %5872 = vmatpush1.bf16.msra.mxu1 %v10309_v37 }
 0x268   :  { %5340 = vmatprep.subr.bf16.mxu0 %v10314_v21  ;;  %5873 = vmatprep.subr.bf16.mxu1 %v10317_v39 }
 0x269   :  { %14 = vsyncpa [#allocation5], 0  ;;  %v10318_v45 = vld [vmem:[%s13898_s1 + $0x1360] ss:$16 sps:$4 sm:$0xff]   ;;  %v10321_v46 = vld [vmem:[%s13898_s1 + $0x1368] ss:$16 sps:$4 sm:$0xff]   ;;  %v940_v59 = vcombine.high %v12431_v44, %v12431_v44  ;;  %v985_v60 = vcombine.high %v12664_v62, %v12664_v62 }
 0x26a   :  { %v10326_v35 = vld [vmem:[%s13898_s1 + $0x1384] ss:$16 sps:$4 sm:$0xff]   ;;  %v10329_v50 = vld [vmem:[%s13898_s1 + $0x138c] ss:$16 sps:$4 sm:$0xff]   ;;  %v10324_v53 = vld [vmem:[%s13898_s1 + $0x1380] ss:$16 sps:$4 sm:$0xff]  }
 0x26b   :  { %5341 = vmatpush1.bf16.msra.mxu0 %v10312_v40  ;;  %5874 = vmatpush1.bf16.msra.mxu1 %v10315_v41  ;;  %v10327_v38 = vld [vmem:[%s13898_s1 + $0x1388] ss:$16 sps:$4 sm:$0xff]   ;;  %v10332_v54 = vld [vmem:[%s13898_s1 + $0x13a4] ss:$16 sps:$4 sm:$0xff]   ;;  %v10335_v55 = vld [vmem:[%s13898_s1 + $0x13ac] ss:$16 sps:$4 sm:$0xff]   ;;  %v12853_v0 = vrot.slane %v940_v59, %v10960_v49 }
 0x26c   :  { %5342 = vmatprep.subr.bf16.mxu0 %v10320_v34  ;;  %5875 = vmatprep.subr.bf16.mxu1 %v10323_v43  ;;  %v10330_v56 = vld [vmem:[%s13898_s1 + $0x13a0] ss:$16 sps:$4 sm:$0xff]   ;;  %v10333_v47 = vld [vmem:[%s13898_s1 + $0x13a8] ss:$16 sps:$4 sm:$0xff]   ;;  %v10338_v57 = vld [vmem:[%s13898_s1 + $0x13c4] ss:$16 sps:$4 sm:$0xff]  }
 0x26d   :  { %v10341_v58 = vld [vmem:[%s13898_s1 + $0x13cc] ss:$16 sps:$4 sm:$0xff]   ;;  %v10336_v48 = vld [vmem:[%s13898_s1 + $0x13c0] ss:$16 sps:$4 sm:$0xff]   ;;  %v10339_v61 = vld [vmem:[%s13898_s1 + $0x13c8] ss:$16 sps:$4 sm:$0xff]   ;;  %v956_v4 = vcombine.high %v12853_v0, %v12853_v0 }
 0x26e   :  { %v10344_v63 = vld [vmem:[%s13898_s1 + $0x13e4] ss:$16 sps:$4 sm:$0xff]   ;;  %v10347_v44 = vld [vmem:[%s13898_s1 + $0x13ec] ss:$16 sps:$4 sm:$0xff]   ;;  %v10342_v1 = vld [vmem:[%s13898_s1 + $0x13e0] ss:$16 sps:$4 sm:$0xff]  }
 0x26f   :  { %5343 = vmatpush1.bf16.msra.mxu0 %v10318_v45  ;;  %5876 = vmatpush1.bf16.msra.mxu1 %v10321_v46  ;;  %v10345_v51 = vld [vmem:[%s13898_s1 + $0x13e8] ss:$16 sps:$4 sm:$0xff]   ;;  %v10350_v2 = vld [vmem:[%s13898_s1 + $0x1404] ss:$16 sps:$4 sm:$0xff]   ;;  %v10353_v3 = vld [vmem:[%s13898_s1 + $0x140c] ss:$16 sps:$4 sm:$0xff]   ;;  %v12884_v8 = vrot.slane %v956_v4, %v10960_v49 }
 0x270   :  { %5344 = vmatprep.subr.bf16.mxu0 %v10326_v35  ;;  %5877 = vmatprep.subr.bf16.mxu1 %v10329_v50  ;;  %v10348_v5 = vld [vmem:[%s13898_s1 + $0x1400] ss:$16 sps:$4 sm:$0xff]   ;;  %v10351_v6 = vld [vmem:[%s13898_s1 + $0x1408] ss:$16 sps:$4 sm:$0xff]   ;;  %v10356_v7 = vld [vmem:[%s13898_s1 + $0x1424] ss:$16 sps:$4 sm:$0xff]  }
 0x271   :  { %v10359_v62 = vld [vmem:[%s13898_s1 + $0x142c] ss:$16 sps:$4 sm:$0xff]   ;;  %v10354_v9 = vld [vmem:[%s13898_s1 + $0x1420] ss:$16 sps:$4 sm:$0xff]   ;;  %v10357_v10 = vld [vmem:[%s13898_s1 + $0x1428] ss:$16 sps:$4 sm:$0xff]  }
 0x272   :  { %v10362_v11 = vld [vmem:[%s13898_s1 + $0x1444] ss:$16 sps:$4 sm:$0xff]   ;;  %v10365_v12 = vld [vmem:[%s13898_s1 + $0x144c] ss:$16 sps:$4 sm:$0xff]   ;;  %v10360_v52 = vld [vmem:[%s13898_s1 + $0x1440] ss:$16 sps:$4 sm:$0xff]  }
 0x273   :  { %5345 = vmatpush1.bf16.msra.mxu0 %v10324_v53  ;;  %5878 = vmatpush1.bf16.msra.mxu1 %v10327_v38  ;;  %v10363_v15 = vld [vmem:[%s13898_s1 + $0x1448] ss:$16 sps:$4 sm:$0xff]   ;;  %v10368_v16 = vld [vmem:[%s13898_s1 + $0x1464] ss:$16 sps:$4 sm:$0xff]   ;;  %v10371_v17 = vld [vmem:[%s13898_s1 + $0x146c] ss:$16 sps:$4 sm:$0xff]  }
 0x274   :  { %5346 = vmatprep.subr.bf16.mxu0 %v10332_v54  ;;  %5879 = vmatprep.subr.bf16.mxu1 %v10335_v55  ;;  %v10366_v18 = vld [vmem:[%s13898_s1 + $0x1460] ss:$16 sps:$4 sm:$0xff]   ;;  %v10369_v19 = vld [vmem:[%s13898_s1 + $0x1468] ss:$16 sps:$4 sm:$0xff]   ;;  %v10374_v20 = vld [vmem:[%s13898_s1 + $0x1484] ss:$16 sps:$4 sm:$0xff]  }
 0x275   :  { %v10377_v22 = vld [vmem:[%s13898_s1 + $0x148c] ss:$16 sps:$4 sm:$0xff]   ;;  %v10372_v23 = vld [vmem:[%s13898_s1 + $0x1480] ss:$16 sps:$4 sm:$0xff]   ;;  %v10375_v24 = vld [vmem:[%s13898_s1 + $0x1488] ss:$16 sps:$4 sm:$0xff]  }
 0x276   :  { %v10380_v13 = vld [vmem:[%s13898_s1 + $0x14a4] ss:$16 sps:$4 sm:$0xff]   ;;  %v10383_v27 = vld [vmem:[%s13898_s1 + $0x14ac] ss:$16 sps:$4 sm:$0xff]   ;;  %v10782_v28 = vmov 0   ;;  %vm4947_vm0 = vcmask 523264  }
 0x277   :  { %5347 = vmatpush1.bf16.msra.mxu0 %v10330_v56  ;;  %5880 = vmatpush1.bf16.msra.mxu1 %v10333_v47  ;;  %v10378_v29 = vld [vmem:[%s13898_s1 + $0x14a0] ss:$16 sps:$4 sm:$0xff]   ;;  %v10381_v14 = vld [vmem:[%s13898_s1 + $0x14a8] ss:$16 sps:$4 sm:$0xff]   ;;  %v10386_v30 = vld [vmem:[%s13898_s1 + $0x14c4] ss:$16 sps:$4 sm:$0xff]  }
 0x278   :  { %5348 = vmatprep.subr.bf16.mxu0 %v10338_v57  ;;  %5881 = vmatprep.subr.bf16.mxu1 %v10341_v58  ;;  %v10389_v31 = vld [vmem:[%s13898_s1 + $0x14cc] ss:$16 sps:$4 sm:$0xff]   ;;  %v10384_v25 = vld [vmem:[%s13898_s1 + $0x14c0] ss:$16 sps:$4 sm:$0xff]   ;;  %v10387_v32 = vld [vmem:[%s13898_s1 + $0x14c8] ss:$16 sps:$4 sm:$0xff]  }
 0x279   :  { %9384 = vset.pattern.permute.xlu0 %v10782_v28  ;;  %9385 = vset.pattern.permute.xlu1 %v10782_v28  ;;  %v10392_v33 = vld [vmem:[%s13898_s1 + $0x14e4] ss:$16 sps:$4 sm:$0xff]   ;;  %v10395_v26 = vld [vmem:[%s13898_s1 + $0x14ec] ss:$16 sps:$4 sm:$0xff]   ;;  %v10390_v36 = vld [vmem:[%s13898_s1 + $0x14e0] ss:$16 sps:$4 sm:$0xff]  }
 0x27a   :  { %v10393_v37 = vld [vmem:[%s13898_s1 + $0x14e8] ss:$16 sps:$4 sm:$0xff]   ;;  %v10398_v21 = vld [vmem:[%s13898_s1 + $0x1504] ss:$16 sps:$4 sm:$0xff]   ;;  %v10401_v39 = vld [vmem:[%s13898_s1 + $0x150c] ss:$16 sps:$4 sm:$0xff]  }
 0x27b   :  { %5349 = vmatpush1.bf16.msra.mxu0 %v10336_v48  ;;  %5882 = vmatpush1.bf16.msra.mxu1 %v10339_v61  ;;  %v10396_v40 = vld [vmem:[%s13898_s1 + $0x1500] ss:$16 sps:$4 sm:$0xff]   ;;  %v10399_v41 = vld [vmem:[%s13898_s1 + $0x1508] ss:$16 sps:$4 sm:$0xff]   ;;  %v10404_v34 = vld [vmem:[%s13898_s1 + $0x1524] ss:$16 sps:$4 sm:$0xff]  }
 0x27c   :  { %5350 = vmatprep.subr.bf16.mxu0 %v10344_v63  ;;  %5883 = vmatprep.subr.bf16.mxu1 %v10347_v44  ;;  %v10407_v43 = vld [vmem:[%s13898_s1 + $0x152c] ss:$16 sps:$4 sm:$0xff]   ;;  %v10402_v45 = vld [vmem:[%s13898_s1 + $0x1520] ss:$16 sps:$4 sm:$0xff]   ;;  %v10405_v46 = vld [vmem:[%s13898_s1 + $0x1528] ss:$16 sps:$4 sm:$0xff]  }
 0x27d   :  { %v10410_v35 = vld [vmem:[%s13898_s1 + $0x1544] ss:$16 sps:$4 sm:$0xff]   ;;  %v10413_v50 = vld [vmem:[%s13898_s1 + $0x154c] ss:$16 sps:$4 sm:$0xff]   ;;  %v10408_v53 = vld [vmem:[%s13898_s1 + $0x1540] ss:$16 sps:$4 sm:$0xff]  }
 0x27e   :  { %v10411_v38 = vld [vmem:[%s13898_s1 + $0x1548] ss:$16 sps:$4 sm:$0xff]   ;;  %v10416_v54 = vld [vmem:[%s13898_s1 + $0x1564] ss:$16 sps:$4 sm:$0xff]   ;;  %v10419_v55 = vld [vmem:[%s13898_s1 + $0x156c] ss:$16 sps:$4 sm:$0xff]  }
 0x27f   :  { %5351 = vmatpush1.bf16.msra.mxu0 %v10342_v1  ;;  %5884 = vmatpush1.bf16.msra.mxu1 %v10345_v51  ;;  %v10414_v56 = vld [vmem:[%s13898_s1 + $0x1560] ss:$16 sps:$4 sm:$0xff]   ;;  %v10417_v47 = vld [vmem:[%s13898_s1 + $0x1568] ss:$16 sps:$4 sm:$0xff]   ;;  %v10422_v57 = vld [vmem:[%s13898_s1 + $0x1584] ss:$16 sps:$4 sm:$0xff]  }
 0x280   :  { %5361 = vmatprep.subr.bf16.mxu0 %v10350_v2  ;;  %5894 = vmatprep.subr.bf16.mxu1 %v10353_v3  ;;  %v10425_v58 = vld [vmem:[%s13898_s1 + $0x158c] ss:$16 sps:$4 sm:$0xff]   ;;  %v10420_v59 = vld [vmem:[%s13898_s1 + $0x1580] ss:$16 sps:$4 sm:$0xff]   ;;  %v10423_v48 = vld [vmem:[%s13898_s1 + $0x1588] ss:$16 sps:$4 sm:$0xff]  }
 0x281   :  { %v10428_v61 = vld [vmem:[%s13898_s1 + $0x15a4] ss:$16 sps:$4 sm:$0xff]   ;;  %v10431_v63 = vld [vmem:[%s13898_s1 + $0x15ac] ss:$16 sps:$4 sm:$0xff]   ;;  %v10426_v44 = vld [vmem:[%s13898_s1 + $0x15a0] ss:$16 sps:$4 sm:$0xff]  }
 0x282   :  { %5353 = vmatmul.mubr.bf16.vlgmr.msra.gmra.mrb[0].mxu0 %v985_v60  ;;  %5886 = vmatmul.mubr.bf16.vlgmr.msra.gmra.mrb[0].mxu1 %v985_v60  ;;  %v10429_v1 = vld [vmem:[%s13898_s1 + $0x15a8] ss:$16 sps:$4 sm:$0xff]   ;;  %v10434_v51 = vld [vmem:[%s13898_s1 + $0x15c4] ss:$16 sps:$4 sm:$0xff]   ;;  %v10437_v2 = vld [vmem:[%s13898_s1 + $0x15cc] ss:$16 sps:$4 sm:$0xff]  }
 0x283   :  { %5362 = vmatpush1.bf16.msra.mxu0 %v10348_v5  ;;  %5895 = vmatpush1.bf16.msra.mxu1 %v10351_v6  ;;  %v10432_v3 = vld [vmem:[%s13898_s1 + $0x15c0] ss:$16 sps:$4 sm:$0xff]   ;;  %v10435_v4 = vld [vmem:[%s13898_s1 + $0x15c8] ss:$16 sps:$4 sm:$0xff]   ;;  %v10440_v60 = vld [vmem:[%s13898_s1 + $0x15e4] ss:$16 sps:$4 sm:$0xff]  }
 0x284   :  { %5363 = vmatprep.subr.bf16.mxu0 %v10356_v7  ;;  %5896 = vmatprep.subr.bf16.mxu1 %v10359_v62  ;;  %v10443_v5 = vld [vmem:[%s13898_s1 + $0x15ec] ss:$16 sps:$4 sm:$0xff]   ;;  %v10438_v6 = vld [vmem:[%s13898_s1 + $0x15e0] ss:$16 sps:$4 sm:$0xff]   ;;  %v10441_v7 = vld [vmem:[%s13898_s1 + $0x15e8] ss:$16 sps:$4 sm:$0xff]  }
 0x285   :  { %5393 = vmatprep.mubr.bf16.mxu0 %v12884_v8  ;;  %5926 = vmatprep.mubr.bf16.mxu1 %v12884_v8  ;;  %v10447_v62 = vld [vmem:[%s13898_s1 + $0x1604] ss:$16 sps:$4 sm:$0xff]   ;;  %vm6030_vm1 = vcmask 1024   ;;  %vm7804_vm2 = vcmask 41984  }
 0x287   :  { %5364 = vmatpush1.bf16.msra.mxu0 %v10354_v9  ;;  %5897 = vmatpush1.bf16.msra.mxu1 %v10357_v10  ;;  %v10450_v9 = vld [vmem:[%s13898_s1 + $0x160c] ss:$16 sps:$4 sm:$0xff]   ;;  %v13072_v10 = vrot.slane %v12853_v0, %v10960_v49 }
 0x288   :  { %5365 = vmatprep.subr.bf16.mxu0 %v10362_v11  ;;  %5898 = vmatprep.subr.bf16.mxu1 %v10365_v12  ;;  %v10445_v11 = vld [vmem:[%s13898_s1 + $0x1600] ss:$16 sps:$4 sm:$0xff]   ;;  %v10448_v12 = vld [vmem:[%s13898_s1 + $0x1608] ss:$16 sps:$4 sm:$0xff]   ;;  %v10456_v0 = vld [vmem:[%s13898_s1 + $0x162c] ss:$16 sps:$4 sm:$0xff]  }
 0x28b   :  { %5366 = vmatpush1.bf16.msra.mxu0 %v10360_v52  ;;  %5899 = vmatpush1.bf16.msra.mxu1 %v10363_v15  ;;  %v10453_v52 = vld [vmem:[%s13898_s1 + $0x1624] ss:$16 sps:$4 sm:$0xff]   ;;  %v988_v15 = vcombine.high %v12884_v8, %v12884_v8 }
 0x28c   :  { %5367 = vmatprep.subr.bf16.mxu0 %v10368_v16  ;;  %5900 = vmatprep.subr.bf16.mxu1 %v10371_v17  ;;  %v10451_v16 = vld [vmem:[%s13898_s1 + $0x1620] ss:$16 sps:$4 sm:$0xff]   ;;  %v10454_v17 = vld [vmem:[%s13898_s1 + $0x1628] ss:$16 sps:$4 sm:$0xff]   ;;  %v10459_v8 = vld [vmem:[%s13898_s1 + $0x1644] ss:$16 sps:$4 sm:$0xff]  }
 0x28f   :  { %5368 = vmatpush1.bf16.msra.mxu0 %v10366_v18  ;;  %5901 = vmatpush1.bf16.msra.mxu1 %v10369_v19  ;;  %v10462_v18 = vld [vmem:[%s13898_s1 + $0x164c] ss:$16 sps:$4 sm:$0xff]   ;;  %v10457_v19 = vld [vmem:[%s13898_s1 + $0x1640] ss:$16 sps:$4 sm:$0xff]  }
 0x290   :  { %5369 = vmatprep.subr.bf16.mxu0 %v10374_v20  ;;  %5902 = vmatprep.subr.bf16.mxu1 %v10377_v22  ;;  %v10460_v20 = vld [vmem:[%s13898_s1 + $0x1648] ss:$16 sps:$4 sm:$0xff]   ;;  %v10465_v22 = vld [vmem:[%s13898_s1 + $0x1664] ss:$16 sps:$4 sm:$0xff]  }
 0x293   :  { %5370 = vmatpush1.bf16.msra.mxu0 %v10372_v23  ;;  %5903 = vmatpush1.bf16.msra.mxu1 %v10375_v24  ;;  %v10468_v23 = vld [vmem:[%s13898_s1 + $0x166c] ss:$16 sps:$4 sm:$0xff]   ;;  %v10463_v24 = vld [vmem:[%s13898_s1 + $0x1660] ss:$16 sps:$4 sm:$0xff]  }
 0x294   :  { %5371 = vmatprep.subr.bf16.mxu0 %v10380_v13  ;;  %5904 = vmatprep.subr.bf16.mxu1 %v10383_v27  ;;  %v10466_v13 = vld [vmem:[%s13898_s1 + $0x1668] ss:$16 sps:$4 sm:$0xff]   ;;  %v10471_v27 = vld [vmem:[%s13898_s1 + $0x1684] ss:$16 sps:$4 sm:$0xff]  }
 0x297   :  { %5372 = vmatpush1.bf16.msra.mxu0 %v10378_v29  ;;  %5905 = vmatpush1.bf16.msra.mxu1 %v10381_v14  ;;  %v10474_v29 = vld [vmem:[%s13898_s1 + $0x168c] ss:$16 sps:$4 sm:$0xff]   ;;  %v10469_v14 = vld [vmem:[%s13898_s1 + $0x1680] ss:$16 sps:$4 sm:$0xff]  }
 0x298   :  { %5373 = vmatprep.subr.bf16.mxu0 %v10386_v30  ;;  %5906 = vmatprep.subr.bf16.mxu1 %v10389_v31  ;;  %v10472_v30 = vld [vmem:[%s13898_s1 + $0x1688] ss:$16 sps:$4 sm:$0xff]   ;;  %v10477_v31 = vld [vmem:[%s13898_s1 + $0x16a4] ss:$16 sps:$4 sm:$0xff]  }
 0x29b   :  { %5374 = vmatpush1.bf16.msra.mxu0 %v10384_v25  ;;  %5907 = vmatpush1.bf16.msra.mxu1 %v10387_v32  ;;  %v10480_v25 = vld [vmem:[%s13898_s1 + $0x16ac] ss:$16 sps:$4 sm:$0xff]   ;;  %v10475_v32 = vld [vmem:[%s13898_s1 + $0x16a0] ss:$16 sps:$4 sm:$0xff]  }
 0x29c   :  { %5375 = vmatprep.subr.bf16.mxu0 %v10392_v33  ;;  %5908 = vmatprep.subr.bf16.mxu1 %v10395_v26  ;;  %v10478_v33 = vld [vmem:[%s13898_s1 + $0x16a8] ss:$16 sps:$4 sm:$0xff]   ;;  %v10483_v26 = vld [vmem:[%s13898_s1 + $0x16c4] ss:$16 sps:$4 sm:$0xff]  }
 0x29f   :  { %5376 = vmatpush1.bf16.msra.mxu0 %v10390_v36  ;;  %5909 = vmatpush1.bf16.msra.mxu1 %v10393_v37  ;;  %v10486_v36 = vld [vmem:[%s13898_s1 + $0x16cc] ss:$16 sps:$4 sm:$0xff]   ;;  %v10481_v37 = vld [vmem:[%s13898_s1 + $0x16c0] ss:$16 sps:$4 sm:$0xff]  }
 0x2a0   :  { %5377 = vmatprep.subr.bf16.mxu0 %v10398_v21  ;;  %5910 = vmatprep.subr.bf16.mxu1 %v10401_v39  ;;  %v10484_v21 = vld [vmem:[%s13898_s1 + $0x16c8] ss:$16 sps:$4 sm:$0xff]   ;;  %v10489_v39 = vld [vmem:[%s13898_s1 + $0x16e4] ss:$16 sps:$4 sm:$0xff]  }
 0x2a3   :  { %5378 = vmatpush1.bf16.msra.mxu0 %v10396_v40  ;;  %5911 = vmatpush1.bf16.msra.mxu1 %v10399_v41  ;;  %v10492_v40 = vld [vmem:[%s13898_s1 + $0x16ec] ss:$16 sps:$4 sm:$0xff]   ;;  %v10487_v41 = vld [vmem:[%s13898_s1 + $0x16e0] ss:$16 sps:$4 sm:$0xff]  }
 0x2a4   :  { %5379 = vmatprep.subr.bf16.mxu0 %v10404_v34  ;;  %5912 = vmatprep.subr.bf16.mxu1 %v10407_v43  ;;  %v10490_v34 = vld [vmem:[%s13898_s1 + $0x16e8] ss:$16 sps:$4 sm:$0xff]   ;;  %v10495_v43 = vld [vmem:[%s13898_s1 + $0x1704] ss:$16 sps:$4 sm:$0xff]  }
 0x2a7   :  { %5380 = vmatpush1.bf16.msra.mxu0 %v10402_v45  ;;  %5913 = vmatpush1.bf16.msra.mxu1 %v10405_v46  ;;  %v10498_v45 = vld [vmem:[%s13898_s1 + $0x170c] ss:$16 sps:$4 sm:$0xff]   ;;  %v10493_v46 = vld [vmem:[%s13898_s1 + $0x1700] ss:$16 sps:$4 sm:$0xff]  }
 0x2a8   :  { %5381 = vmatprep.subr.bf16.mxu0 %v10410_v35  ;;  %5914 = vmatprep.subr.bf16.mxu1 %v10413_v50  ;;  %v10496_v35 = vld [vmem:[%s13898_s1 + $0x1708] ss:$16 sps:$4 sm:$0xff]   ;;  %v10501_v50 = vld [vmem:[%s13898_s1 + $0x1724] ss:$16 sps:$4 sm:$0xff]  }
 0x2ab   :  { %5382 = vmatpush1.bf16.msra.mxu0 %v10408_v53  ;;  %5915 = vmatpush1.bf16.msra.mxu1 %v10411_v38  ;;  %v10504_v53 = vld [vmem:[%s13898_s1 + $0x172c] ss:$16 sps:$4 sm:$0xff]   ;;  %v10499_v38 = vld [vmem:[%s13898_s1 + $0x1720] ss:$16 sps:$4 sm:$0xff]  }
 0x2ac   :  { %5383 = vmatprep.subr.bf16.mxu0 %v10416_v54  ;;  %5916 = vmatprep.subr.bf16.mxu1 %v10419_v55  ;;  %v10502_v54 = vld [vmem:[%s13898_s1 + $0x1728] ss:$16 sps:$4 sm:$0xff]   ;;  %v10507_v55 = vld [vmem:[%s13898_s1 + $0x1744] ss:$16 sps:$4 sm:$0xff]  }
 0x2af   :  { %5384 = vmatpush1.bf16.msra.mxu0 %v10414_v56  ;;  %5917 = vmatpush1.bf16.msra.mxu1 %v10417_v47  ;;  %v10510_v56 = vld [vmem:[%s13898_s1 + $0x174c] ss:$16 sps:$4 sm:$0xff]   ;;  %v10505_v47 = vld [vmem:[%s13898_s1 + $0x1740] ss:$16 sps:$4 sm:$0xff]  }
 0x2b0   :  { %5385 = vmatprep.subr.bf16.mxu0 %v10422_v57  ;;  %5918 = vmatprep.subr.bf16.mxu1 %v10425_v58  ;;  %v10508_v57 = vld [vmem:[%s13898_s1 + $0x1748] ss:$16 sps:$4 sm:$0xff]   ;;  %v10513_v58 = vld [vmem:[%s13898_s1 + $0x1764] ss:$16 sps:$4 sm:$0xff]  }
 0x2b3   :  { %5386 = vmatpush1.bf16.msra.mxu0 %v10420_v59  ;;  %5919 = vmatpush1.bf16.msra.mxu1 %v10423_v48  ;;  %v10516_v59 = vld [vmem:[%s13898_s1 + $0x176c] ss:$16 sps:$4 sm:$0xff]   ;;  %v10511_v48 = vld [vmem:[%s13898_s1 + $0x1760] ss:$16 sps:$4 sm:$0xff]  }
 0x2b4   :  { %5387 = vmatprep.subr.bf16.mxu0 %v10428_v61  ;;  %5920 = vmatprep.subr.bf16.mxu1 %v10431_v63  ;;  %v10514_v61 = vld [vmem:[%s13898_s1 + $0x1768] ss:$16 sps:$4 sm:$0xff]   ;;  %v10519_v63 = vld [vmem:[%s13898_s1 + $0x1784] ss:$16 sps:$4 sm:$0xff]  }
 0x2b7   :  { %5388 = vmatpush1.bf16.msra.mxu0 %v10426_v44  ;;  %5921 = vmatpush1.bf16.msra.mxu1 %v10429_v1  ;;  %v10522_v44 = vld [vmem:[%s13898_s1 + $0x178c] ss:$16 sps:$4 sm:$0xff]   ;;  %v10517_v1 = vld [vmem:[%s13898_s1 + $0x1780] ss:$16 sps:$4 sm:$0xff]  }
 0x2b8   :  { %5389 = vmatprep.subr.bf16.mxu0 %v10434_v51  ;;  %5922 = vmatprep.subr.bf16.mxu1 %v10437_v2  ;;  %v10520_v51 = vld [vmem:[%s13898_s1 + $0x1788] ss:$16 sps:$4 sm:$0xff]   ;;  %v10525_v2 = vld [vmem:[%s13898_s1 + $0x17a4] ss:$16 sps:$4 sm:$0xff]  }
 0x2bb   :  { %5390 = vmatpush1.bf16.msra.mxu0 %v10432_v3  ;;  %5923 = vmatpush1.bf16.msra.mxu1 %v10435_v4  ;;  %v10528_v3 = vld [vmem:[%s13898_s1 + $0x17ac] ss:$16 sps:$4 sm:$0xff]   ;;  %v10523_v4 = vld [vmem:[%s13898_s1 + $0x17a0] ss:$16 sps:$4 sm:$0xff]  }
 0x2bc   :  { %5391 = vmatprep.subr.bf16.mxu0 %v10440_v60  ;;  %5924 = vmatprep.subr.bf16.mxu1 %v10443_v5  ;;  %v10526_v60 = vld [vmem:[%s13898_s1 + $0x17a8] ss:$16 sps:$4 sm:$0xff]   ;;  %v10531_v5 = vld [vmem:[%s13898_s1 + $0x17c4] ss:$16 sps:$4 sm:$0xff]  }
 0x2bf   :  { %5392 = vmatpush1.bf16.msra.mxu0 %v10438_v6  ;;  %5925 = vmatpush1.bf16.msra.mxu1 %v10441_v7  ;;  %v10534_v6 = vld [vmem:[%s13898_s1 + $0x17cc] ss:$16 sps:$4 sm:$0xff]   ;;  %v10529_v7 = vld [vmem:[%s13898_s1 + $0x17c0] ss:$16 sps:$4 sm:$0xff]  }
 0x2c0   :  { %5402 = vmatprep.subr.bf16.mxu0 %v10447_v62  ;;  %5935 = vmatprep.subr.bf16.mxu1 %v10450_v9  ;;  %v10532_v62 = vld [vmem:[%s13898_s1 + $0x17c8] ss:$16 sps:$4 sm:$0xff]   ;;  %v10537_v9 = vld [vmem:[%s13898_s1 + $0x17e4] ss:$16 sps:$4 sm:$0xff]  }
 0x2c2   :  { %5394 = vmatmul.mubr.bf16.vlgmr.msra.gmra.mrb[0].mxu0 %v13072_v10  ;;  %5927 = vmatmul.mubr.bf16.vlgmr.msra.gmra.mrb[0].mxu1 %v13072_v10 }
 0x2c3   :  { %5403 = vmatpush1.bf16.msra.mxu0 %v10445_v11  ;;  %5936 = vmatpush1.bf16.msra.mxu1 %v10448_v12  ;;  %v10540_v11 = vld [vmem:[%s13898_s1 + $0x17ec] ss:$16 sps:$4 sm:$0xff]   ;;  %v10535_v12 = vld [vmem:[%s13898_s1 + $0x17e0] ss:$16 sps:$4 sm:$0xff]  }
 0x2c4   :  { %5404 = vmatprep.subr.bf16.mxu0 %v10453_v52  ;;  %5937 = vmatprep.subr.bf16.mxu1 %v10456_v0  ;;  %v10538_v52 = vld [vmem:[%s13898_s1 + $0x17e8] ss:$16 sps:$4 sm:$0xff]   ;;  %v10543_v0 = vld [vmem:[%s13898_s1 + $0x1804] ss:$16 sps:$4 sm:$0xff]  }
 0x2c5   :  { %5434 = vmatprep.mubr.bf16.mxu0 %v988_v15  ;;  %5967 = vmatprep.mubr.bf16.mxu1 %v988_v15  ;;  %v10546_v15 = vld [vmem:[%s13898_s1 + $0x180c] ss:$16 sps:$4 sm:$0xff]  }
 0x2c7   :  { %5405 = vmatpush1.bf16.msra.mxu0 %v10451_v16  ;;  %5938 = vmatpush1.bf16.msra.mxu1 %v10454_v17  ;;  %v986_v16 = vcombine.high %v13072_v10, %v13072_v10  ;;  %v10541_v17 = vld [vmem:[%s13898_s1 + $0x1800] ss:$16 sps:$4 sm:$0xff]   ;;  %v10552_v10 = vld [vmem:[%s13898_s1 + $0x182c] ss:$16 sps:$4 sm:$0xff]  }
 0x2c8   :  { %5406 = vmatprep.subr.bf16.mxu0 %v10459_v8  ;;  %5939 = vmatprep.subr.bf16.mxu1 %v10462_v18  ;;  %v10544_v8 = vld [vmem:[%s13898_s1 + $0x1808] ss:$16 sps:$4 sm:$0xff]   ;;  %v10549_v18 = vld [vmem:[%s13898_s1 + $0x1824] ss:$16 sps:$4 sm:$0xff]  }
 0x2cb   :  { %5407 = vmatpush1.bf16.msra.mxu0 %v10457_v19  ;;  %5940 = vmatpush1.bf16.msra.mxu1 %v10460_v20  ;;  %v10547_v19 = vld [vmem:[%s13898_s1 + $0x1820] ss:$16 sps:$4 sm:$0xff]   ;;  %v10550_v20 = vld [vmem:[%s13898_s1 + $0x1828] ss:$16 sps:$4 sm:$0xff]  }
 0x2cc   :  { %5408 = vmatprep.subr.bf16.mxu0 %v10465_v22  ;;  %5941 = vmatprep.subr.bf16.mxu1 %v10468_v23  ;;  %v10555_v22 = vld [vmem:[%s13898_s1 + $0x1844] ss:$16 sps:$4 sm:$0xff]   ;;  %v10558_v23 = vld [vmem:[%s13898_s1 + $0x184c] ss:$16 sps:$4 sm:$0xff]  }
 0x2cf   :  { %5409 = vmatpush1.bf16.msra.mxu0 %v10463_v24  ;;  %5942 = vmatpush1.bf16.msra.mxu1 %v10466_v13  ;;  %v10553_v24 = vld [vmem:[%s13898_s1 + $0x1840] ss:$16 sps:$4 sm:$0xff]   ;;  %v10556_v13 = vld [vmem:[%s13898_s1 + $0x1848] ss:$16 sps:$4 sm:$0xff]  }
 0x2d0   :  { %5410 = vmatprep.subr.bf16.mxu0 %v10471_v27  ;;  %5943 = vmatprep.subr.bf16.mxu1 %v10474_v29  ;;  %v10561_v27 = vld [vmem:[%s13898_s1 + $0x1864] ss:$16 sps:$4 sm:$0xff]   ;;  %v10559_v29 = vld [vmem:[%s13898_s1 + $0x1860] ss:$16 sps:$4 sm:$0xff]  }
 0x2d3   :  { %5411 = vmatpush1.bf16.msra.mxu0 %v10469_v14  ;;  %5944 = vmatpush1.bf16.msra.mxu1 %v10472_v30  ;;  %v10562_v14 = vld [vmem:[%s13898_s1 + $0x1868] ss:$16 sps:$4 sm:$0xff]  }
 0x2d4   :  { %5412 = vmatprep.subr.bf16.mxu0 %v10477_v31  ;;  %5945 = vmatprep.subr.bf16.mxu1 %v10480_v25  ;;  %v7848_v30 = vld.sshfl [vmem:[%s13897_s0 + $0x18] sm:$0x1 pattern:$0x75316420]  ;;  %v10565_v31 = vld [vmem:[%s13900_s3 + $0x40] sm:$0xff]  }
 0x2d5   :  { %v10566_v25 = vld [vmem:[%s13900_s3 + $0xc0] sm:$0xff]  }
 0x2d7   :  { %5413 = vmatpush1.bf16.msra.mxu0 %v10475_v32  ;;  %5946 = vmatpush1.bf16.msra.mxu1 %v10478_v33  ;;  %v1002_v32 = vrot.slane %v7848_v30, %v10960_v49  ;;  %v10567_v33 = vld [vmem:[%s13900_s3] sm:$0xff]   ;;  %v10570_v49 = vld [vmem:[%s13900_s3 + $0xc8] sm:$0xff]  }
 0x2d8   :  { %5414 = vmatprep.subr.bf16.mxu0 %v10483_v26  ;;  %5947 = vmatprep.subr.bf16.mxu1 %v10486_v36  ;;  %v10568_v26 = vld [vmem:[%s13900_s3 + $0x80] sm:$0xff]   ;;  %v10569_v36 = vld [vmem:[%s13900_s3 + $0x48] sm:$0xff]  }
 0x2db   :  { %5415 = vmatpush1.bf16.msra.mxu0 %v10481_v37  ;;  %5948 = vmatpush1.bf16.msra.mxu1 %v10484_v21  ;;  %v10571_v37 = vld [vmem:[%s13900_s3 + $0x8] sm:$0xff]  }
 0x2dc   :  { %5416 = vmatprep.subr.bf16.mxu0 %v10489_v39  ;;  %5949 = vmatprep.subr.bf16.mxu1 %v10492_v40  ;;  %v10572_v21 = vld [vmem:[%s13900_s3 + $0x88] sm:$0xff]   ;;  %v10573_v39 = vld [vmem:[%s13900_s3 + $0x50] sm:$0xff]  }
 0x2dd   :  { %v10574_v40 = vld [vmem:[%s13900_s3 + $0xd0] sm:$0xff]  }
 0x2df   :  { %5417 = vmatpush1.bf16.msra.mxu0 %v10487_v41  ;;  %5950 = vmatpush1.bf16.msra.mxu1 %v10490_v34  ;;  %v10575_v41 = vld [vmem:[%s13900_s3 + $0x10] sm:$0xff]  }
 0x2e0   :  { %5418 = vmatprep.subr.bf16.mxu0 %v10495_v43  ;;  %5951 = vmatprep.subr.bf16.mxu1 %v10498_v45  ;;  %v10576_v34 = vld [vmem:[%s13900_s3 + $0x90] sm:$0xff]   ;;  %v10577_v43 = vld [vmem:[%s13900_s3 + $0x58] sm:$0xff]  }
 0x2e1   :  { %v10578_v45 = vld [vmem:[%s13900_s3 + $0xd8] sm:$0xff]  }
 0x2e3   :  { %5419 = vmatpush1.bf16.msra.mxu0 %v10493_v46  ;;  %5952 = vmatpush1.bf16.msra.mxu1 %v10496_v35  ;;  %v10579_v46 = vld [vmem:[%s13900_s3 + $0x18] sm:$0xff]  }
 0x2e4   :  { %5420 = vmatprep.subr.bf16.mxu0 %v10501_v50  ;;  %5953 = vmatprep.subr.bf16.mxu1 %v10504_v53  ;;  %v10580_v35 = vld [vmem:[%s13900_s3 + $0x98] sm:$0xff]   ;;  %v10581_v50 = vld [vmem:[%s13900_s3 + $0x60] sm:$0xff]  }
 0x2e5   :  { %v10582_v53 = vld [vmem:[%s13900_s3 + $0xe0] sm:$0xff]  }
 0x2e7   :  { %5421 = vmatpush1.bf16.msra.mxu0 %v10499_v38  ;;  %5954 = vmatpush1.bf16.msra.mxu1 %v10502_v54  ;;  %v10583_v38 = vld [vmem:[%s13900_s3 + $0x20] sm:$0xff]  }
 0x2e8   :  { %5422 = vmatprep.subr.bf16.mxu0 %v10507_v55  ;;  %5955 = vmatprep.subr.bf16.mxu1 %v10510_v56  ;;  %v10584_v54 = vld [vmem:[%s13900_s3 + $0xa0] sm:$0xff]   ;;  %v10585_v55 = vld [vmem:[%s13900_s3 + $0x68] sm:$0xff]  }
 0x2e9   :  { %v10586_v56 = vld [vmem:[%s13900_s3 + $0xe8] sm:$0xff]  }
 0x2eb   :  { %5423 = vmatpush1.bf16.msra.mxu0 %v10505_v47  ;;  %5956 = vmatpush1.bf16.msra.mxu1 %v10508_v57  ;;  %v10587_v47 = vld [vmem:[%s13900_s3 + $0x28] sm:$0xff]  }
 0x2ec   :  { %5424 = vmatprep.subr.bf16.mxu0 %v10513_v58  ;;  %5957 = vmatprep.subr.bf16.mxu1 %v10516_v59  ;;  %v10588_v57 = vld [vmem:[%s13900_s3 + $0xa8] sm:$0xff]   ;;  %v10589_v58 = vld [vmem:[%s13900_s3 + $0x70] sm:$0xff]  }
 0x2ed   :  { %v10590_v59 = vld [vmem:[%s13900_s3 + $0xf0] sm:$0xff]  }
 0x2ef   :  { %5425 = vmatpush1.bf16.msra.mxu0 %v10511_v48  ;;  %5958 = vmatpush1.bf16.msra.mxu1 %v10514_v61  ;;  %v10591_v48 = vld [vmem:[%s13900_s3 + $0x30] sm:$0xff]  }
 0x2f0   :  { %5426 = vmatprep.subr.bf16.mxu0 %v10519_v63  ;;  %5959 = vmatprep.subr.bf16.mxu1 %v10522_v44  ;;  %v10592_v61 = vld [vmem:[%s13900_s3 + $0xb0] sm:$0xff]   ;;  %v10593_v63 = vld [vmem:[%s13900_s3 + $0x78] sm:$0xff]  }
 0x2f1   :  { %v10594_v44 = vld [vmem:[%s13900_s3 + $0xf8] sm:$0xff]  }
 0x2f3   :  { %5427 = vmatpush1.bf16.msra.mxu0 %v10517_v1  ;;  %5960 = vmatpush1.bf16.msra.mxu1 %v10520_v51  ;;  %v10595_v1 = vld [vmem:[%s13900_s3 + $0x38] sm:$0xff]  }
 0x2f4   :  { %5428 = vmatprep.subr.bf16.mxu0 %v10525_v2  ;;  %5961 = vmatprep.subr.bf16.mxu1 %v10528_v3  ;;  %v10596_v51 = vld [vmem:[%s13900_s3 + $0xb8] sm:$0xff]   ;;  %v10597_v2 = vld [vmem:[%s13900_s3 + $0x140] sm:$0xff]  }
 0x2f5   :  { %v10598_v3 = vld [vmem:[%s13900_s3 + $0x1c0] sm:$0xff]  }
 0x2f7   :  { %5429 = vmatpush1.bf16.msra.mxu0 %v10523_v4  ;;  %5962 = vmatpush1.bf16.msra.mxu1 %v10526_v60  ;;  %v6025_v4 = vld [vmem:[%s13902_s5] sm:$0x3]  ;;  %v6026_v60 = vld [vmem:[%s13902_s5 + $0x2] sm:$0x3] }
 0x2f8   :  { %5430 = vmatprep.subr.bf16.mxu0 %v10531_v5  ;;  %5963 = vmatprep.subr.bf16.mxu1 %v10534_v6  ;;  %v6031_v5 = vsel %vm6030_vm1, %v6025_v4, 0.0  ;;  %v6032_v6 = vsel %vm6030_vm1, %v6026_v60, 0.0 }
 0x2fb   :  { %5431 = vmatpush1.bf16.msra.mxu0 %v10529_v7  ;;  %5964 = vmatpush1.bf16.msra.mxu1 %v10532_v62  ;;  %v6027_v7 = vld [vmem:[%s13902_s5 + $0x4] sm:$0x3]  ;;  %v6033_v62 = vadd.f32 %v6032_v6, %v6031_v5  ;;  %v10617_v6 = vld [vmem:[%s13900_s3 + $0x168] sm:$0xff]  }
 0x2fc   :  { %5432 = vmatprep.subr.bf16.mxu0 %v10537_v9  ;;  %5965 = vmatprep.subr.bf16.mxu1 %v10540_v11  ;;  %v6034_v9 = vsel %vm6030_vm1, %v6027_v7, 0.0  ;;  %v13434_v11 = vld [vmem:[%s13902_s5 + $0x6] sm:$0x3] }
 0x2fd   :  { %v10616_v5 = vld [vmem:[%s13900_s3 + $0x1a0] sm:$0xff]  }
 0x2ff   :  { %5433 = vmatpush1.bf16.msra.mxu0 %v10535_v12  ;;  %5966 = vmatpush1.bf16.msra.mxu1 %v10538_v52  ;;  %v6035_v12 = vadd.f32 %v6034_v9, %v6033_v62  ;;  %v6036_v52 = vsel %vm6030_vm1, %v13434_v11, 0.0  ;;  %v10619_v62 = vld [vmem:[%s13900_s3 + $0x128] sm:$0xff]  }
 0x300   :  { %5443 = vmatprep.subr.bf16.mxu0 %v10543_v0  ;;  %5976 = vmatprep.subr.bf16.mxu1 %v10546_v15  ;;  %v6029_v0 = vld [vmem:[%s13902_s5 + $0x8] sm:$0x3] }
 0x301   :  { %v6037_v15 = vadd.f32 %v6036_v52, %v6035_v12  ;;  %v10620_v9 = vld [vmem:[%s13900_s3 + $0x1a8] sm:$0xff]   ;;  %v10622_v12 = vld [vmem:[%s13900_s3 + $0x1f0] sm:$0xff]  }
 0x302   :  { %5435 = vmatmul.mubr.bf16.vlgmr.msra.gmra.mrb[0].mxu0 %v986_v16  ;;  %5968 = vmatmul.mubr.bf16.vlgmr.msra.gmra.mrb[0].mxu1 %v986_v16  ;;  %v6038_v16 = vsel %vm6030_vm1, %v6029_v0, 0.0  ;;  %v10623_v52 = vld [vmem:[%s13900_s3 + $0x130] sm:$0xff]  }
 0x303   :  { %5444 = vmatpush1.bf16.msra.mxu0 %v10541_v17  ;;  %5977 = vmatpush1.bf16.msra.mxu1 %v10544_v8  ;;  %v6039_v17 = vadd.f32 %v6038_v16, %v6037_v15  ;;  %v10625_v15 = vld [vmem:[%s13900_s3 + $0x178] sm:$0xff]  }
 0x304   :  { %5445 = vmatprep.subr.bf16.mxu0 %v10549_v18  ;;  %5978 = vmatprep.subr.bf16.mxu1 %v10552_v10  ;;  %v820_v10 = vsub.s32 0, %v10942_v42  ;;  %v10626_v16 = vld [vmem:[%s13900_s3 + $0x1f8] sm:$0xff]  }
 0x305   :  { %5475 = vmatprep.mubr.bf16.mxu0 %v10782_v28  ;;  %6008 = vmatprep.mubr.bf16.mxu1 %v10782_v28  ;;  %v10564_v28 = vld [vmem:[%s13898_s1 + $0x186c] ss:$16 sps:$4 sm:$0xff]   ;;  %10725 = vrcp.f32 %v6039_v17 }
 0x306   :  { %v10627_v17 = vld [vmem:[%s13900_s3 + $0x138] sm:$0xff]  }
 0x307   :  { %5446 = vmatpush1.bf16.msra.mxu0 %v10547_v19  ;;  %5979 = vmatpush1.bf16.msra.mxu1 %v10550_v20  ;;  %v828_v19 = vsub.s32 2, %v10942_v42  ;;  %v816_v20 = vld [vmem:[%s13899_s2] sm:$0xf] }
 0x308   :  { %5447 = vmatprep.subr.bf16.mxu0 %v10555_v22  ;;  %5980 = vmatprep.subr.bf16.mxu1 %v10558_v23  ;;  %v824_v22 = vsub.s32 1, %v10942_v42  ;;  %v832_v23 = vsub.s32 3, %v10942_v42 }
 0x30b   :  { %5448 = vmatpush1.bf16.msra.mxu0 %v10553_v24  ;;  %5981 = vmatpush1.bf16.msra.mxu1 %v10556_v13  ;;  %v821_v24 = vrot.slane %v816_v20, %v820_v10  ;;  %v829_v13 = vrot.slane %v816_v20, %v828_v19  ;;  %v10630_v10 = vld [vmem:[%s13900_s3 + $0x2c0] sm:$0xff]  }
 0x30c   :  { %5449 = vmatprep.subr.bf16.mxu0 %v10561_v27  ;;  %5982 = vmatprep.subr.bf16.mxu1 %v10564_v28  ;;  %v825_v27 = vrot.slane %v816_v20, %v824_v22  ;;  %v833_v28 = vrot.slane %v816_v20, %v832_v23  ;;  %v10631_v19 = vld [vmem:[%s13900_s3 + $0x200] sm:$0xff]   ;;  %v10633_v22 = vld [vmem:[%s13900_s3 + $0x248] sm:$0xff]  }
 0x30d   :  { %v10632_v20 = vld [vmem:[%s13900_s3 + $0x280] sm:$0xff]   ;;  %v10634_v23 = vld [vmem:[%s13900_s3 + $0x2c8] sm:$0xff]  }
 0x30f   :  { %5450 = vmatpush1.bf16.msra.mxu0 %v10559_v29  ;;  %5983 = vmatpush1.bf16.msra.mxu1 %v10562_v14  ;;  %v10726_v8 = vpop.eup %10725 }
 0x310   :  { %9060 = vmatprep.subr.bf16.mxu0 %v10565_v31  ;;  %9082 = vmatprep.subr.bf16.mxu1 %v10566_v25  ;;  %v6041_v18 = vmul.f32 %v10726_v8, %v6025_v4  ;;  %v10614_v4 = vld [vmem:[%s13900_s3 + $0x1e0] sm:$0xff]  }
 0x312   :  { %8633 = vmatmul.mubr.msk.bf16.vlgmr.msra.gmra.mrb[0].mxu0 %vm4947_vm0, %v1002_v32  ;;  %8634 = vmatmul.mubr.msk.bf16.vlgmr.msra.gmra.mrb[0].mxu1 %vm4947_vm0, %v1002_v32 }
 0x313   :  { %9061 = vmatpush3.bf16.msra.mxu0 %v10567_v33  ;;  %9083 = vmatpush3.bf16.msra.mxu1 %v10568_v26 }
 0x314   :  { %9062 = vmatprep.subr.bf16.mxu0 %v10569_v36  ;;  %9084 = vmatprep.subr.bf16.mxu1 %v10570_v49 }
 0x315   :  { %6391 = vperm.xlu0 %9384, %v6041_v18   ;;  %v10629_v18 = vld [vmem:[%s13900_s3 + $0x240] sm:$0xff]  }
 0x317   :  { %9063 = vmatpush3.bf16.msra.mxu0 %v10571_v37  ;;  %9085 = vmatpush3.bf16.msra.mxu1 %v10572_v21 }
 0x318   :  { %9064 = vmatprep.subr.bf16.mxu0 %v10573_v39  ;;  %9086 = vmatprep.subr.bf16.mxu1 %v10574_v40 }
 0x31b   :  { %9065 = vmatpush3.bf16.msra.mxu0 %v10575_v41  ;;  %9087 = vmatpush3.bf16.msra.mxu1 %v10576_v34  ;;  %v6042_v41 = vmul.f32 %v10726_v8, %v6026_v60  ;;  %v10615_v60 = vld [vmem:[%s13900_s3 + $0x120] sm:$0xff]  }
 0x31c   :  { %9066 = vmatprep.subr.bf16.mxu0 %v10577_v43  ;;  %9088 = vmatprep.subr.bf16.mxu1 %v10578_v45 }
 0x31d   :  { %6743 = vperm.xlu0 %9384, %v6042_v41   ;;  %v10653_v41 = vld [vmem:[%s13900_s3 + $0x270] sm:$0xff]  }
 0x31f   :  { %9067 = vmatpush3.bf16.msra.mxu0 %v10579_v46  ;;  %9089 = vmatpush3.bf16.msra.mxu1 %v10580_v35  ;;  %v10599_v46 = vld [vmem:[%s13900_s3 + $0x100] sm:$0xff]  }
 0x320   :  { %9068 = vmatprep.subr.bf16.mxu0 %v10581_v50  ;;  %9090 = vmatprep.subr.bf16.mxu1 %v10582_v53  ;;  %v10600_v35 = vld [vmem:[%s13900_s3 + $0x180] sm:$0xff]  }
 0x323   :  { %9069 = vmatpush3.bf16.msra.mxu0 %v10583_v38  ;;  %9091 = vmatpush3.bf16.msra.mxu1 %v10584_v54  ;;  %v10601_v38 = vld [vmem:[%s13900_s3 + $0x148] sm:$0xff]  }
 0x324   :  { %9070 = vmatprep.subr.bf16.mxu0 %v10585_v55  ;;  %9092 = vmatprep.subr.bf16.mxu1 %v10586_v56  ;;  %v10602_v54 = vld [vmem:[%s13900_s3 + $0x1c8] sm:$0xff]  }
 0x325   :  { %v10603_v55 = vld [vmem:[%s13900_s3 + $0x108] sm:$0xff]  }
 0x326   :  { %v10604_v56 = vld [vmem:[%s13900_s3 + $0x188] sm:$0xff]  }
 0x327   :  { %9071 = vmatpush3.bf16.msra.mxu0 %v10587_v47  ;;  %9093 = vmatpush3.bf16.msra.mxu1 %v10588_v57  ;;  %v6043_v47 = vmul.f32 %v10726_v8, %v6027_v7  ;;  %v6045_v57 = vmul.f32 %v10726_v8, %v6029_v0  ;;  %v10618_v7 = vld [vmem:[%s13900_s3 + $0x1e8] sm:$0xff]   ;;  %v10624_v0 = vld [vmem:[%s13900_s3 + $0x1b0] sm:$0xff]  }
 0x328   :  { %9072 = vmatprep.subr.bf16.mxu0 %v10589_v58  ;;  %9094 = vmatprep.subr.bf16.mxu1 %v10590_v59  ;;  %v10605_v58 = vld [vmem:[%s13900_s3 + $0x150] sm:$0xff]  }
 0x329   :  { %v10606_v59 = vld [vmem:[%s13900_s3 + $0x1d0] sm:$0xff]   ;;  %7095 = vperm.xlu1 %9385, %v6043_v47   ;;  %7799 = vperm.xlu0 %9384, %v6045_v57   ;;  %v10662_v47 = vld [vmem:[%s13900_s3 + $0x3c0] sm:$0xff]  }
 0x32a   :  { %v10663_v57 = vld [vmem:[%s13900_s3 + $0x300] sm:$0xff]  }
 0x32b   :  { %9073 = vmatpush3.bf16.msra.mxu0 %v10591_v48  ;;  %9095 = vmatpush3.bf16.msra.mxu1 %v10592_v61  ;;  %v6044_v48 = vmul.f32 %v10726_v8, %v13434_v11  ;;  %v10607_v61 = vld [vmem:[%s13900_s3 + $0x110] sm:$0xff]   ;;  %v10628_v8 = vld [vmem:[%s13900_s3 + $0x1b8] sm:$0xff]  }
 0x32c   :  { %9074 = vmatprep.subr.bf16.mxu0 %v10593_v63  ;;  %9096 = vmatprep.subr.bf16.mxu1 %v10594_v44  ;;  %v10608_v63 = vld [vmem:[%s13900_s3 + $0x190] sm:$0xff]   ;;  %v10609_v44 = vld [vmem:[%s13900_s3 + $0x158] sm:$0xff]  }
 0x32d   :  { %7447 = vperm.xlu1 %9385, %v6044_v48   ;;  %v10621_v11 = vld [vmem:[%s13900_s3 + $0x170] sm:$0xff]   ;;  %v10666_v48 = vld [vmem:[%s13900_s3 + $0x3c8] sm:$0xff]  }
 0x32f   :  { %9075 = vmatpush3.bf16.msra.mxu0 %v10595_v1  ;;  %9097 = vmatpush3.bf16.msra.mxu1 %v10596_v51  ;;  %v10610_v1 = vld [vmem:[%s13900_s3 + $0x1d8] sm:$0xff]  }
 0x330   :  { %9104 = vmatprep.subr.bf16.mxu0 %v10597_v2  ;;  %9126 = vmatprep.subr.bf16.mxu1 %v10598_v3  ;;  %v10611_v51 = vld [vmem:[%s13900_s3 + $0x118] sm:$0xff]   ;;  %v10613_v3 = vld [vmem:[%s13900_s3 + $0x160] sm:$0xff]  }
 0x331   :  { %v10612_v2 = vld [vmem:[%s13900_s3 + $0x198] sm:$0xff]  }
 0x3e5   :  { %v5477_v29 = vpop.f32.mrb[0].mxu0  ;;  %v6010_v14 = vpop.f32.mrb[0].mxu1 }
 0x3e6   :  { %v9280_v30 = vadd.f32 %v5477_v29, %v821_v24  ;;  %v9282_v31 = vadd.f32 %v6010_v14, %v829_v13  ;;  %v5479_v25 = vpop.f32.mrb[1].mxu0  ;;  %v6012_v32 = vpop.f32.mrb[1].mxu1  ;;  %v10635_v24 = vld [vmem:[%s13900_s3 + $0x208] sm:$0xff]   ;;  %v10639_v29 = vld [vmem:[%s13900_s3 + $0x210] sm:$0xff]  }
 0x3e7   :  { %v9281_v33 = vadd.f32 %v5479_v25, %v825_v27  ;;  %v9283_v26 = vadd.f32 %v6012_v32, %v833_v28  ;;  %v5481_v36 = vpop.f32.mrb[2].mxu0  ;;  %v6014_v49 = vpop.f32.mrb[2].mxu1  ;;  %v10636_v13 = vld [vmem:[%s13900_s3 + $0x288] sm:$0xff]   ;;  %v10637_v27 = vld [vmem:[%s13900_s3 + $0x250] sm:$0xff]   ;;  %v10643_v25 = vld [vmem:[%s13900_s3 + $0x218] sm:$0xff]  }
 0x3e8   :  { %v6017_v37 = vmax.f32 %v9280_v30, 0.0  ;;  %v6019_v21 = vmax.f32 %v9282_v31, 0.0  ;;  %v5482_v39 = vpop.f32.mrb[3].mxu0  ;;  %v6015_v40 = vpop.f32.mrb[3].mxu1  ;;  %v10638_v28 = vld [vmem:[%s13900_s3 + $0x2d0] sm:$0xff]   ;;  %v10641_v30 = vld [vmem:[%s13900_s3 + $0x258] sm:$0xff]  }
 0x3e9   :  { %v6018_v42 = vmax.f32 %v9281_v33, 0.0  ;;  %v6020_v34 = vmax.f32 %v9283_v26, 0.0  ;;  %v10640_v14 = vld [vmem:[%s13900_s3 + $0x290] sm:$0xff]   ;;  %v10642_v31 = vld [vmem:[%s13900_s3 + $0x2d8] sm:$0xff]   ;;  %v10645_v33 = vld [vmem:[%s13900_s3 + $0x260] sm:$0xff]  }
 0x3ea   :  { %v13457_v50 = vpack.c.bf16 %v6017_v37, %v6017_v37  ;;  %v13459_v53 = vpack.c.bf16 %v6019_v21, %v6019_v21  ;;  %v10644_v32 = vld [vmem:[%s13900_s3 + $0x298] sm:$0xff]   ;;  %v10646_v26 = vld [vmem:[%s13900_s3 + $0x2e0] sm:$0xff]   ;;  %v10649_v37 = vld [vmem:[%s13900_s3 + $0x268] sm:$0xff]  }
 0x3eb   :  { %v13447_v43 = vpack.c.bf16 %v6018_v42, %v6018_v42  ;;  %v13449_v45 = vpack.c.bf16 %v6020_v34, %v6020_v34  ;;  %v10647_v36 = vld [vmem:[%s13900_s3 + $0x220] sm:$0xff]   ;;  %v10650_v21 = vld [vmem:[%s13900_s3 + $0x2e8] sm:$0xff]   ;;  %v10654_v42 = vld [vmem:[%s13900_s3 + $0x2f0] sm:$0xff]  }
 0x3ec   :  { %v10648_v49 = vld [vmem:[%s13900_s3 + $0x2a0] sm:$0xff]   ;;  %v10651_v39 = vld [vmem:[%s13900_s3 + $0x228] sm:$0xff]   ;;  %v10655_v34 = vld [vmem:[%s13900_s3 + $0x230] sm:$0xff]  }
 0x3ed   :  { %6341 = vmatprep.mubr.bf16.mxu0 %v13447_v43  ;;  %6381 = vmatprep.mubr.bf16.mxu1 %v13449_v45  ;;  %v10652_v40 = vld [vmem:[%s13900_s3 + $0x2a8] sm:$0xff]  }
 0x3ee   :  { %6342 = vmatmul.mubr.bf16.vlgmr.msra.gmra.mrb[4].mxu0 %v13457_v50  ;;  %6382 = vmatmul.mubr.bf16.vlgmr.msra.gmra.mrb[4].mxu1 %v13459_v53 }
 0x3ef   :  { %9105 = vmatpush3.bf16.msra.mxu0 %v10599_v46  ;;  %9127 = vmatpush3.bf16.msra.mxu1 %v10600_v35  ;;  %v10656_v46 = vld [vmem:[%s13900_s3 + $0x2b0] sm:$0xff]   ;;  %v10657_v35 = vld [vmem:[%s13900_s3 + $0x278] sm:$0xff]  }
 0x3f0   :  { %6693 = vmatprep.mubr.bf16.mxu0 %v13447_v43  ;;  %6733 = vmatprep.mubr.bf16.mxu1 %v13449_v45 }
 0x3f1   :  { %9106 = vmatprep.subr.bf16.mxu0 %v10601_v38  ;;  %9128 = vmatprep.subr.bf16.mxu1 %v10602_v54  ;;  %v10658_v38 = vld [vmem:[%s13900_s3 + $0x2f8] sm:$0xff]  }
 0x3f2   :  { %v10659_v54 = vld [vmem:[%s13900_s3 + $0x238] sm:$0xff]  }
 0x3f3   :  { %9107 = vmatpush3.bf16.msra.mxu0 %v10603_v55  ;;  %9129 = vmatpush3.bf16.msra.mxu1 %v10604_v56  ;;  %v10660_v55 = vld [vmem:[%s13900_s3 + $0x2b8] sm:$0xff]   ;;  %v10661_v56 = vld [vmem:[%s13900_s3 + $0x340] sm:$0xff]  }
 0x3f4   :  { %9108 = vmatprep.subr.bf16.mxu0 %v10605_v58  ;;  %9130 = vmatprep.subr.bf16.mxu1 %v10606_v59  ;;  %v10664_v58 = vld [vmem:[%s13900_s3 + $0x380] sm:$0xff]   ;;  %v10665_v59 = vld [vmem:[%s13900_s3 + $0x348] sm:$0xff]  }
 0x3f7   :  { %9109 = vmatpush3.bf16.msra.mxu0 %v10607_v61  ;;  %9131 = vmatpush3.bf16.msra.mxu1 %v10608_v63  ;;  %v10667_v61 = vld [vmem:[%s13900_s3 + $0x308] sm:$0xff]  }
 0x3f8   :  { %9110 = vmatprep.subr.bf16.mxu0 %v10609_v44  ;;  %9132 = vmatprep.subr.bf16.mxu1 %v10610_v1  ;;  %v10668_v63 = vld [vmem:[%s13900_s3 + $0x388] sm:$0xff]   ;;  %v10669_v44 = vld [vmem:[%s13900_s3 + $0x350] sm:$0xff]  }
 0x3f9   :  { %v10670_v1 = vld [vmem:[%s13900_s3 + $0x3d0] sm:$0xff]  }
 0x3fb   :  { %9111 = vmatpush3.bf16.msra.mxu0 %v10611_v51  ;;  %9133 = vmatpush3.bf16.msra.mxu1 %v10612_v2  ;;  %v10671_v51 = vld [vmem:[%s13900_s3 + $0x310] sm:$0xff]  }
 0x3fc   :  { %9112 = vmatprep.subr.bf16.mxu0 %v10613_v3  ;;  %9134 = vmatprep.subr.bf16.mxu1 %v10614_v4  ;;  %v10672_v2 = vld [vmem:[%s13900_s3 + $0x390] sm:$0xff]   ;;  %v10673_v3 = vld [vmem:[%s13900_s3 + $0x358] sm:$0xff]  }
 0x3fd   :  { %v10674_v4 = vld [vmem:[%s13900_s3 + $0x3d8] sm:$0xff]  }
 0x3ff   :  { %9113 = vmatpush3.bf16.msra.mxu0 %v10615_v60  ;;  %9135 = vmatpush3.bf16.msra.mxu1 %v10616_v5  ;;  %v10675_v60 = vld [vmem:[%s13900_s3 + $0x318] sm:$0xff]  }
 0x400   :  { %9114 = vmatprep.subr.bf16.mxu0 %v10617_v6  ;;  %9136 = vmatprep.subr.bf16.mxu1 %v10618_v7  ;;  %v10676_v5 = vld [vmem:[%s13900_s3 + $0x398] sm:$0xff]   ;;  %v10677_v6 = vld [vmem:[%s13900_s3 + $0x360] sm:$0xff]  }
 0x401   :  { %v10678_v7 = vld [vmem:[%s13900_s3 + $0x3e0] sm:$0xff]  }
 0x403   :  { %9115 = vmatpush3.bf16.msra.mxu0 %v10619_v62  ;;  %9137 = vmatpush3.bf16.msra.mxu1 %v10620_v9  ;;  %v10679_v62 = vld [vmem:[%s13900_s3 + $0x320] sm:$0xff]  }
 0x404   :  { %9116 = vmatprep.subr.bf16.mxu0 %v10621_v11  ;;  %9138 = vmatprep.subr.bf16.mxu1 %v10622_v12  ;;  %v10680_v9 = vld [vmem:[%s13900_s3 + $0x3a0] sm:$0xff]   ;;  %v10681_v11 = vld [vmem:[%s13900_s3 + $0x368] sm:$0xff]  }
 0x405   :  { %v10682_v12 = vld [vmem:[%s13900_s3 + $0x3e8] sm:$0xff]  }
 0x407   :  { %9117 = vmatpush3.bf16.msra.mxu0 %v10623_v52  ;;  %9139 = vmatpush3.bf16.msra.mxu1 %v10624_v0  ;;  %v10683_v52 = vld [vmem:[%s13900_s3 + $0x328] sm:$0xff]  }
 0x408   :  { %9118 = vmatprep.subr.bf16.mxu0 %v10625_v15  ;;  %9140 = vmatprep.subr.bf16.mxu1 %v10626_v16  ;;  %v10684_v0 = vld [vmem:[%s13900_s3 + $0x3a8] sm:$0xff]   ;;  %v10685_v15 = vld [vmem:[%s13900_s3 + $0x370] sm:$0xff]  }
 0x409   :  { %v10686_v16 = vld [vmem:[%s13900_s3 + $0x3f0] sm:$0xff]  }
 0x40b   :  { %9119 = vmatpush3.bf16.msra.mxu0 %v10627_v17  ;;  %9141 = vmatpush3.bf16.msra.mxu1 %v10628_v8  ;;  %v10687_v17 = vld [vmem:[%s13900_s3 + $0x330] sm:$0xff]  }
 0x40c   :  { %9148 = vmatprep.subr.bf16.mxu0 %v10629_v18  ;;  %9170 = vmatprep.subr.bf16.mxu1 %v10630_v10  ;;  %v10688_v8 = vld [vmem:[%s13900_s3 + $0x3b0] sm:$0xff]   ;;  %v10689_v18 = vld [vmem:[%s13900_s3 + $0x378] sm:$0xff]  }
 0x40d   :  { %v10690_v10 = vld [vmem:[%s13900_s3 + $0x3f8] sm:$0xff]  }
 0x40e   :  { %6694 = vmatmul.mubr.bf16.vlgmr.msra.gmra.mrb[8].mxu0 %v13457_v50  ;;  %6734 = vmatmul.mubr.bf16.vlgmr.msra.gmra.mrb[8].mxu1 %v13459_v53 }
 0x40f   :  { %9149 = vmatpush3.bf16.msra.mxu0 %v10631_v19  ;;  %7045 = vmatprep.mubr.bf16.mxu0 %v13447_v43  ;;  %v10691_v19 = vld [vmem:[%s13900_s3 + $0x338] sm:$0xff]  }
 0x410   :  { %9171 = vmatpush3.bf16.msra.mxu1 %v10632_v20  ;;  %7085 = vmatprep.mubr.bf16.mxu1 %v13449_v45  ;;  %v10692_v20 = vld [vmem:[%s13900_s3 + $0x3b8] sm:$0xff]  }
 0x411   :  { %9150 = vmatprep.subr.bf16.mxu0 %v10633_v22  ;;  %9172 = vmatprep.subr.bf16.mxu1 %v10634_v23  ;;  %v10693_v22 = vld [vmem:[%s13900_s3 + $0x440] sm:$0xff]  }
 0x412   :  { %v10694_v23 = vld [vmem:[%s13900_s3 + $0x4c0] sm:$0xff]  }
 0x413   :  { %9151 = vmatpush3.bf16.msra.mxu0 %v10635_v24  ;;  %v10695_v24 = vld [vmem:[%s13900_s3 + $0x400] sm:$0xff]  }
 0x414   :  { %9173 = vmatpush3.bf16.msra.mxu1 %v10636_v13  ;;  %9152 = vmatprep.subr.bf16.mxu0 %v10637_v27  ;;  %v10696_v13 = vld [vmem:[%s13900_s3 + $0x480] sm:$0xff]   ;;  %v10697_v27 = vld [vmem:[%s13900_s3 + $0x448] sm:$0xff]  }
 0x415   :  { %9174 = vmatprep.subr.bf16.mxu1 %v10638_v28  ;;  %v10698_v28 = vld [vmem:[%s13900_s3 + $0x4c8] sm:$0xff]  }
 0x417   :  { %9153 = vmatpush3.bf16.msra.mxu0 %v10639_v29  ;;  %v10699_v29 = vld [vmem:[%s13900_s3 + $0x408] sm:$0xff]  }
 0x418   :  { %9175 = vmatpush3.bf16.msra.mxu1 %v10640_v14  ;;  %9154 = vmatprep.subr.bf16.mxu0 %v10641_v30  ;;  %v10700_v14 = vld [vmem:[%s13900_s3 + $0x488] sm:$0xff]   ;;  %v10701_v30 = vld [vmem:[%s13900_s3 + $0x450] sm:$0xff]  }
 0x419   :  { %9176 = vmatprep.subr.bf16.mxu1 %v10642_v31  ;;  %v10702_v31 = vld [vmem:[%s13900_s3 + $0x4d0] sm:$0xff]  }
 0x41b   :  { %9155 = vmatpush3.bf16.msra.mxu0 %v10643_v25  ;;  %v10704_v25 = vld [vmem:[%s13900_s3 + $0x490] sm:$0xff]  }
 0x41c   :  { %9177 = vmatpush3.bf16.msra.mxu1 %v10644_v32  ;;  %9156 = vmatprep.subr.bf16.mxu0 %v10645_v33  ;;  %v10706_v32 = vld [vmem:[%s13900_s3 + $0x4d8] sm:$0xff]  }
 0x41d   :  { %9178 = vmatprep.subr.bf16.mxu1 %v10646_v26  ;;  %v10707_v33 = vld [vmem:[%s13900_s3 + $0x418] sm:$0xff]  }
 0x41e   :  { %v10708_v26 = vld [vmem:[%s13900_s3 + $0x498] sm:$0xff]  }
 0x41f   :  { %9157 = vmatpush3.bf16.msra.mxu0 %v10647_v36  ;;  %v10709_v36 = vld [vmem:[%s13900_s3 + $0x460] sm:$0xff]  }
 0x420   :  { %9179 = vmatpush3.bf16.msra.mxu1 %v10648_v49  ;;  %9158 = vmatprep.subr.bf16.mxu0 %v10649_v37  ;;  %v10710_v49 = vld [vmem:[%s13900_s3 + $0x4e0] sm:$0xff]  }
 0x421   :  { %9180 = vmatprep.subr.bf16.mxu1 %v10650_v21  ;;  %v10711_v37 = vld [vmem:[%s13900_s3 + $0x420] sm:$0xff]  }
 0x422   :  { %v10712_v21 = vld [vmem:[%s13900_s3 + $0x4a0] sm:$0xff]  }
 0x423   :  { %9159 = vmatpush3.bf16.msra.mxu0 %v10651_v39  ;;  %v10713_v39 = vld [vmem:[%s13900_s3 + $0x468] sm:$0xff]  }
 0x424   :  { %9181 = vmatpush3.bf16.msra.mxu1 %v10652_v40  ;;  %9160 = vmatprep.subr.bf16.mxu0 %v10653_v41  ;;  %v10714_v40 = vld [vmem:[%s13900_s3 + $0x4e8] sm:$0xff]  }
 0x425   :  { %9182 = vmatprep.subr.bf16.mxu1 %v10654_v42  ;;  %v10715_v41 = vld [vmem:[%s13900_s3 + $0x428] sm:$0xff]  }
 0x426   :  { %v10716_v42 = vld [vmem:[%s13900_s3 + $0x4a8] sm:$0xff]  }
 0x427   :  { %9161 = vmatpush3.bf16.msra.mxu0 %v10655_v34  ;;  %v10717_v34 = vld [vmem:[%s13900_s3 + $0x470] sm:$0xff]  }
 0x428   :  { %9183 = vmatpush3.bf16.msra.mxu1 %v10656_v46  ;;  %9162 = vmatprep.subr.bf16.mxu0 %v10657_v35  ;;  %v10718_v46 = vld [vmem:[%s13900_s3 + $0x4f0] sm:$0xff]  }
 0x429   :  { %9184 = vmatprep.subr.bf16.mxu1 %v10658_v38  ;;  %v10719_v35 = vld [vmem:[%s13900_s3 + $0x430] sm:$0xff]  }
 0x42a   :  { %v10720_v38 = vld [vmem:[%s13900_s3 + $0x4b0] sm:$0xff]  }
 0x42b   :  { %9163 = vmatpush3.bf16.msra.mxu0 %v10659_v54  ;;  %v10721_v54 = vld [vmem:[%s13900_s3 + $0x478] sm:$0xff]  }
 0x42c   :  { %9185 = vmatpush3.bf16.msra.mxu1 %v10660_v55  ;;  %9192 = vmatprep.subr.bf16.mxu0 %v10661_v56  ;;  %v10722_v55 = vld [vmem:[%s13900_s3 + $0x4f8] sm:$0xff]  }
 0x42d   :  { %9214 = vmatprep.subr.bf16.mxu1 %v10662_v47  ;;  %v10723_v56 = vld [vmem:[%s13900_s3 + $0x438] sm:$0xff]  }
 0x42e   :  { %7046 = vmatmul.mubr.bf16.vlgmr.msra.gmra.mrb[12].mxu0 %v13457_v50  ;;  %v10724_v47 = vld [vmem:[%s13900_s3 + $0x4b8] sm:$0xff]  }
 0x42f   :  { %7086 = vmatmul.mubr.bf16.vlgmr.msra.gmra.mrb[12].mxu1 %v13459_v53  ;;  %9193 = vmatpush3.bf16.msra.mxu0 %v10663_v57 }
 0x430   :  { %7397 = vmatprep.mubr.bf16.mxu0 %v13447_v43  ;;  %9215 = vmatpush3.bf16.msra.mxu1 %v10664_v58 }
 0x431   :  { %7437 = vmatprep.mubr.bf16.mxu1 %v13449_v45  ;;  %9194 = vmatprep.subr.bf16.mxu0 %v10665_v59  ;;  %v8635_v59 = vld [vmem:[%s13901_s4] ss:$0 sm:$0xff] }
 0x432   :  { %9216 = vmatprep.subr.bf16.mxu1 %v10666_v48 }
 0x433   :  { %9195 = vmatpush3.bf16.msra.mxu0 %v10667_v61 }
 0x434   :  { %9217 = vmatpush3.bf16.msra.mxu1 %v10668_v63  ;;  %9196 = vmatprep.subr.bf16.mxu0 %v10669_v44 }
 0x435   :  { %9218 = vmatprep.subr.bf16.mxu1 %v10670_v1 }
 0x437   :  { %9197 = vmatpush3.bf16.msra.mxu0 %v10671_v51 }
 0x438   :  { %9219 = vmatpush3.bf16.msra.mxu1 %v10672_v2  ;;  %9198 = vmatprep.subr.bf16.mxu0 %v10673_v3 }
 0x439   :  { %9220 = vmatprep.subr.bf16.mxu1 %v10674_v4 }
 0x43b   :  { %9199 = vmatpush3.bf16.msra.mxu0 %v10675_v60 }
 0x43c   :  { %9221 = vmatpush3.bf16.msra.mxu1 %v10676_v5  ;;  %9200 = vmatprep.subr.bf16.mxu0 %v10677_v6  ;;  %v6392_v5 = vpop.permute.xlu0 %6391 }
 0x43d   :  { %9222 = vmatprep.subr.bf16.mxu1 %v10678_v7 }
 0x43f   :  { %9201 = vmatpush3.bf16.msra.mxu0 %v10679_v62 }
 0x440   :  { %9223 = vmatpush3.bf16.msra.mxu1 %v10680_v9  ;;  %9202 = vmatprep.subr.bf16.mxu0 %v10681_v11 }
 0x441   :  { %9224 = vmatprep.subr.bf16.mxu1 %v10682_v12 }
 0x443   :  { %9203 = vmatpush3.bf16.msra.mxu0 %v10683_v52 }
 0x444   :  { %9225 = vmatpush3.bf16.msra.mxu1 %v10684_v0  ;;  %9204 = vmatprep.subr.bf16.mxu0 %v10685_v15 }
 0x445   :  { %9226 = vmatprep.subr.bf16.mxu1 %v10686_v16 }
 0x447   :  { %9205 = vmatpush3.bf16.msra.mxu0 %v10687_v17  ;;  %v6744_v17 = vpop.permute.xlu0 %6743 }
 0x448   :  { %9227 = vmatpush3.bf16.msra.mxu1 %v10688_v8  ;;  %9206 = vmatprep.subr.bf16.mxu0 %v10689_v18 }
 0x449   :  { %9228 = vmatprep.subr.bf16.mxu1 %v10690_v10 }
 0x44b   :  { %9207 = vmatpush3.bf16.msra.mxu0 %v10691_v19 }
 0x44c   :  { %9229 = vmatpush3.bf16.msra.mxu1 %v10692_v20  ;;  %9236 = vmatprep.subr.bf16.mxu0 %v10693_v22 }
 0x44d   :  { %9258 = vmatprep.subr.bf16.mxu1 %v10694_v23  ;;  %v8831_v23 = vld [vmem:[%s13901_s4 + $0x2] ss:$0 sm:$0xff] }
 0x44e   :  { %7398 = vmatmul.mubr.bf16.vlgmr.msra.gmra.mrb[16].mxu0 %v13457_v50 }
 0x44f   :  { %7438 = vmatmul.mubr.bf16.vlgmr.msra.gmra.mrb[16].mxu1 %v13459_v53  ;;  %9237 = vmatpush3.bf16.msra.mxu0 %v10695_v24 }
 0x450   :  { %7749 = vmatprep.mubr.bf16.mxu0 %v13447_v43  ;;  %9259 = vmatpush3.bf16.msra.mxu1 %v10696_v13  ;;  %v10703_v43 = vld [vmem:[%s13900_s3 + $0x410] sm:$0xff]  }
 0x451   :  { %7789 = vmatprep.mubr.bf16.mxu1 %v13449_v45  ;;  %9238 = vmatprep.subr.bf16.mxu0 %v10697_v27  ;;  %v10705_v45 = vld [vmem:[%s13900_s3 + $0x458] sm:$0xff]  }
 0x452   :  { %9260 = vmatprep.subr.bf16.mxu1 %v10698_v28 }
 0x453   :  { %9239 = vmatpush3.bf16.msra.mxu0 %v10699_v29 }
 0x454   :  { %9261 = vmatpush3.bf16.msra.mxu1 %v10700_v14  ;;  %9240 = vmatprep.subr.bf16.mxu0 %v10701_v30 }
 0x455   :  { %9262 = vmatprep.subr.bf16.mxu1 %v10702_v31 }
 0x457   :  { %9241 = vmatpush3.bf16.msra.mxu0 %v10703_v43 }
 0x458   :  { %9263 = vmatpush3.bf16.msra.mxu1 %v10704_v25  ;;  %9242 = vmatprep.subr.bf16.mxu0 %v10705_v45  ;;  %v7096_v25 = vpop.permute.xlu1 %7095 }
 0x459   :  { %9264 = vmatprep.subr.bf16.mxu1 %v10706_v32 }
 0x45b   :  { %9243 = vmatpush3.bf16.msra.mxu0 %v10707_v33 }
 0x45c   :  { %9265 = vmatpush3.bf16.msra.mxu1 %v10708_v26  ;;  %9244 = vmatprep.subr.bf16.mxu0 %v10709_v36 }
 0x45d   :  { %9266 = vmatprep.subr.bf16.mxu1 %v10710_v49  ;;  %v8929_v49 = vld [vmem:[%s13901_s4 + $0x3] ss:$0 sm:$0xff] }
 0x45f   :  { %9245 = vmatpush3.bf16.msra.mxu0 %v10711_v37 }
 0x460   :  { %9267 = vmatpush3.bf16.msra.mxu1 %v10712_v21  ;;  %9246 = vmatprep.subr.bf16.mxu0 %v10713_v39 }
 0x461   :  { %9268 = vmatprep.subr.bf16.mxu1 %v10714_v40 }
 0x463   :  { %9247 = vmatpush3.bf16.msra.mxu0 %v10715_v41 }
 0x464   :  { %9269 = vmatpush3.bf16.msra.mxu1 %v10716_v42  ;;  %9248 = vmatprep.subr.bf16.mxu0 %v10717_v34 }
 0x465   :  { %9270 = vmatprep.subr.bf16.mxu1 %v10718_v46 }
 0x467   :  { %9249 = vmatpush3.bf16.msra.mxu0 %v10719_v35 }
 0x468   :  { %9271 = vmatpush3.bf16.msra.mxu1 %v10720_v38  ;;  %9250 = vmatprep.subr.bf16.mxu0 %v10721_v54  ;;  %v7448_v38 = vpop.permute.xlu1 %7447 }
 0x469   :  { %9272 = vmatprep.subr.bf16.mxu1 %v10722_v55 }
 0x46b   :  { %9251 = vmatpush3.bf16.msra.mxu0 %v10723_v56 }
 0x46c   :  { %9273 = vmatpush3.bf16.msra.mxu1 %v10724_v47 }
 0x46e   :  { %7750 = vmatmul.mubr.bf16.vlgmr.msra.gmra.mrb[20].mxu0 %v13457_v50 }
 0x46f   :  { %7790 = vmatmul.mubr.bf16.vlgmr.msra.gmra.mrb[20].mxu1 %v13459_v53  ;;  %v8733_v53 = vld [vmem:[%s13901_s4 + $0x1] ss:$0 sm:$0xff] }
 0x4c1   :  { %v9076_v57 = vpop.f32.mrb[4].mxu0  ;;  %v9098_v58 = vpop.f32.mrb[4].mxu1 }
 0x4c2   :  { %v9077_v48 = vpop.f32.mrb[5].mxu0  ;;  %v9099_v61 = vpop.f32.mrb[5].mxu1 }
 0x4c3   :  { %v9078_v63 = vadd.f32 %v9077_v48, %v9076_v57  ;;  %v9100_v44 = vadd.f32 %v9099_v61, %v9098_v58  ;;  %v9079_v1 = vpop.f32.mrb[6].mxu0  ;;  %v9101_v51 = vpop.f32.mrb[6].mxu1  ;;  %v9027_v58 = vld [vmem:[%s13901_s4 + $0x4] ss:$0 sm:$0xff]  ;;  %s10783_s4 = smov [#allocation4]  }
 0x4c4   :  { %v9080_v2 = vpop.f32.mrb[7].mxu0  ;;  %v9102_v3 = vpop.f32.mrb[7].mxu1  ;;  %s7836_s11 = sshll.u32 %s10783_s4, 4  ;;  %s7837_s11 = int_to_ptr.vmem [resolvable:$true] %s7836_s11 }
 0x4c5   :  { %v6344_v4 = vadd.f32 %v9078_v63, %v8635_v59  ;;  %s10733_s12 = scalar_lea.vmem %s7837_s11, 32  ;;  %p10738_p1 = scmp.lt.s32.totalorder %s7837_s11, %s7837_s11 }
 0x4c6   :  { %p10734_p0 = scmp.ne.s32.totalorder %s7837_s11, %s10733_s12  ;;  %p10739_p2 = scmp.lt.s32.totalorder %s10733_s12, %s10733_s12 }
 0x4c7   :  { %v6384_v60 = vadd.f32 %v9100_v44, %v6344_v4 }
 0x4c8   :  { %p10740_p3 = por %p10739_p2, %p10738_p1 }
 0x4c9   :  { %v6394_v18 = vmul.f32 %v6392_v5, %v6384_v60  ;;  %v7800_v60 = vpop.permute.xlu0 %7799 }
 0x4ca   :  { %p10741_p4 = pnand %p10740_p3, %p10734_p0 }
 0x4e1   :  { %v9120_v50 = vpop.f32.mrb[8].mxu0  ;;  %v9142_v6 = vpop.f32.mrb[8].mxu1 }
 0x4e2   :  { %v9121_v7 = vpop.f32.mrb[9].mxu0  ;;  %v9143_v62 = vpop.f32.mrb[9].mxu1 }
 0x4e3   :  { %v9122_v9 = vadd.f32 %v9121_v7, %v9120_v50  ;;  %v9144_v11 = vadd.f32 %v9143_v62, %v9142_v6  ;;  %v9123_v12 = vpop.f32.mrb[10].mxu0  ;;  %v9145_v52 = vpop.f32.mrb[10].mxu1 }
 0x4e4   :  { %v9124_v0 = vpop.f32.mrb[11].mxu0  ;;  %v9146_v15 = vpop.f32.mrb[11].mxu1 }
 0x4e5   :  { %v6696_v16 = vadd.f32 %v9122_v9, %v8733_v53 }
 0x4e7   :  { %v6736_v8 = vadd.f32 %v9144_v11, %v6696_v16 }
 0x4e9   :  { %v6746_v10 = vmul.f32 %v6744_v17, %v6736_v8 }
 0x4eb   :  { %v6747_v19 = vadd.f32 %v6746_v10, %v6394_v18 }
 0x501   :  { %v9164_v20 = vpop.f32.mrb[12].mxu0 }
 0x502   :  { %v9186_v22 = vpop.f32.mrb[12].mxu1  ;;  %v9165_v24 = vpop.f32.mrb[13].mxu0 }
 0x503   :  { %v9166_v13 = vadd.f32 %v9165_v24, %v9164_v20  ;;  %v9187_v27 = vpop.f32.mrb[13].mxu1  ;;  %v9167_v28 = vpop.f32.mrb[14].mxu0 }
 0x504   :  { %v9188_v29 = vadd.f32 %v9187_v27, %v9186_v22  ;;  %v9189_v14 = vpop.f32.mrb[14].mxu1  ;;  %v9168_v30 = vpop.f32.mrb[15].mxu0 }
 0x505   :  { %v7048_v31 = vadd.f32 %v9166_v13, %v8831_v23  ;;  %v9190_v43 = vpop.f32.mrb[15].mxu1 }
 0x507   :  { %v7088_v45 = vadd.f32 %v9188_v29, %v7048_v31 }
 0x509   :  { %v7098_v32 = vmul.f32 %v7096_v25, %v7088_v45 }
 0x50b   :  { %v7099_v33 = vadd.f32 %v7098_v32, %v6747_v19 }
 0x521   :  { %v9208_v26 = vpop.f32.mrb[16].mxu0 }
 0x522   :  { %v9230_v36 = vpop.f32.mrb[16].mxu1  ;;  %v9209_v37 = vpop.f32.mrb[17].mxu0 }
 0x523   :  { %v9210_v21 = vadd.f32 %v9209_v37, %v9208_v26  ;;  %v9231_v39 = vpop.f32.mrb[17].mxu1  ;;  %v9211_v40 = vpop.f32.mrb[18].mxu0 }
 0x524   :  { %v9232_v41 = vadd.f32 %v9231_v39, %v9230_v36  ;;  %v9233_v42 = vpop.f32.mrb[18].mxu1  ;;  %v9212_v34 = vpop.f32.mrb[19].mxu0 }
 0x525   :  { %v7400_v46 = vadd.f32 %v9210_v21, %v8929_v49  ;;  %v9234_v35 = vpop.f32.mrb[19].mxu1 }
 0x527   :  { %v7440_v54 = vadd.f32 %v9232_v41, %v7400_v46 }
 0x529   :  { %v7450_v55 = vmul.f32 %v7448_v38, %v7440_v54 }
 0x52b   :  { %v7451_v56 = vadd.f32 %v7450_v55, %v7099_v33 }
 0x541   :  { %v9252_v47 = vpop.f32.mrb[20].mxu0 }
 0x542   :  { %v9274_v57 = vpop.f32.mrb[20].mxu1  ;;  %v9253_v59 = vpop.f32.mrb[21].mxu0 }
 0x543   :  { %v9254_v48 = vadd.f32 %v9253_v59, %v9252_v47  ;;  %v9275_v61 = vpop.f32.mrb[21].mxu1  ;;  %v9255_v63 = vpop.f32.mrb[22].mxu0 }
 0x544   :  { %v9276_v44 = vadd.f32 %v9275_v61, %v9274_v57  ;;  %v9277_v1 = vpop.f32.mrb[22].mxu1  ;;  %v9256_v51 = vpop.f32.mrb[23].mxu0 }
 0x545   :  { %v7752_v2 = vadd.f32 %v9254_v48, %v9027_v58  ;;  %v9278_v3 = vpop.f32.mrb[23].mxu1 }
 0x547   :  { %v7792_v4 = vadd.f32 %v9276_v44, %v7752_v2 }
 0x549   :  { %v7802_v5 = vmul.f32 %v7800_v60, %v7792_v4 }
 0x54b   :  { %v7803_v50 = vadd.f32 %v7802_v5, %v7451_v56 }
 0x54d   :  { %v7805_v6 = vsel %vm7804_vm2, %v7803_v50, -inf  ;;  %7819 = vst.msk [vmem:[#allocation4] sm:$0x3] %vm7804_vm2, %v7803_v50 }
 0x54e   :  { %7806 = vmax.xlane.f32.xlu1 %v7805_v6 }
 0x5db   :  { %v7807_v53 = vpop.xlane.xlu1 %7806 }
 0x5dc   :  { %v7808_v7 = vsub.f32 %v7803_v50, %v7807_v53 }
 0x5de   :  { %v7809_v62 = vmul.f32 1.442695, %v7808_v7 }
 0x5e0   :  { %10727 = vpow2.f32 %v7809_v62 }
 0x5ea   :  { %v10728_v9 = vpop.eup %10727 }
 0x5eb   :  { %v7811_v11 = vsel %vm7804_vm2, %v10728_v9, 0.0 }
 0x5ec   :  { %7812 = vadd.xlane.f32.xlu0 %v7811_v11 }
 0x5ed   :  { %10744 = shalt.err (!%p10741_p4)
}
 0x5ee   :  { %s10745_s15 = scalar_lea.hbm %s13904_s7, 32 }
 0x5ef   :  { %p10746_p5 = scmp.ne.s32.totalorder %s13904_s7, %s10745_s15  ;;  %p10749_p6 = scmp.lt.u32.totalorder %s10745_s15, %s13904_s7 }
 0x5f1   :  { %p10751_p7 = pnand %p10749_p6, %p10746_p5 }
 0x5f3   :  { %10754 = shalt.err (!%p10751_p7)
}
 0x5f4   :  { %7839 = dma.vmem_to_hbm [thread:$0]  %s7837_s11, 32, %s13904_s7, [#allocation5]  }
 0x5f5   :  { %s10784_s19 = smov [#allocation2]  }
 0x5f6   :  { %s7826_s0 = sshll.u32 %s10784_s19, 4  ;;  %s7827_s0 = int_to_ptr.vmem [resolvable:$true] %s7826_s0 }
 0x5f7   :  { %s10755_s20 = scalar_lea.vmem %s7827_s0, 32  ;;  %p10760_p9 = scmp.lt.s32.totalorder %s7827_s0, %s7827_s0 }
 0x5f8   :  { %p10756_p8 = scmp.ne.s32.totalorder %s7827_s0, %s10755_s20  ;;  %p10761_p10 = scmp.lt.s32.totalorder %s10755_s20, %s10755_s20 }
 0x5fa   :  { %p10762_p11 = por %p10761_p10, %p10760_p9 }
 0x5fc   :  { %p10763_p12 = pnand %p10762_p11, %p10756_p8 }
 0x679   :  { %v7813_v12 = vpop.xlane.xlu0 %7812 }
 0x67a   :  { %10729 = vlog2.f32 %v7813_v12 }
 0x684   :  { %v10730_v52 = vpop.eup %10729 }
 0x685   :  { %v7815_v0 = vmul.f32 0.6931472, %v10730_v52 }
 0x687   :  { %v7816_v15 = vadd.f32 %v7815_v0, %v7807_v53 }
 0x689   :  { %v7817_v16 = vsub.f32 %v7803_v50, %v7816_v15 }
 0x68b   :  { %7818 = vst.msk [vmem:[#allocation2] sm:$0x3] %vm7804_vm2, %v7817_v16 }
 0x68c   :  { %10766 = shalt.err (!%p10763_p12)
}
 0x68d   :  { %s10767_s22 = scalar_lea.hbm %s13903_s6, 32 }
 0x68e   :  { %p10768_p13 = scmp.ne.s32.totalorder %s13903_s6, %s10767_s22  ;;  %p10771_p0 = scmp.lt.u32.totalorder %s10767_s22, %s13903_s6 }
 0x690   :  { %p10773_p1 = pnand %p10771_p0, %p10768_p13 }
 0x692   :  { %10776 = shalt.err (!%p10773_p1)
}
 0x693   :  { %7829 = dma.vmem_to_hbm [thread:$0]  %s7827_s0, 32, %s13903_s6, [#allocation3]  }
 0x694   :  { %10777 = dma.done.wait [#allocation3], 32  }
 0x695   :  { %10778 = vsyncadd [#allocation3], 4294967264 }
 0x696   :  { %10779 = dma.done.wait [#allocation5], 32  }
 0x697   :  { %10780 = vsyncadd [#allocation5], 4294967264 }
 0x698   :  { %7846 = vsyncpa [#allocation3], 1 }
 0x699   :  { %7847 = vsyncpa [#allocation5], 1 }

</bundles_post_ra>
